<compile_context>
chip_gen: v6e
topology: v6e:2x2x1
jax: 0.10.0
libtpu: 0.0.40
codegen_flags: <defaults>
</compile_context>

<pallas_src>
import functools

import jax
import jax.numpy as jnp
from jax.experimental import pallas as pl
from jax.experimental.pallas import tpu as pltpu

# Geometry implied by the PyTorch module (fc1 expects 96*12*1 features):
#   input (N, 1, 16, 5) -> conv1 3x3 p1 -> (N,96,16,5) -> conv2 5x5 p1 -> (N,96,14,3)
#   -> conv3 3x3 p0 -> (N,96,12,1) -> fc1 1152->192 -> fc2 192->1
H0, W0 = 16, 5
H1, W1 = 16, 5              # conv1 output
H1P, W1P = H1 + 2, W1 + 2   # conv1 output zero-padded for conv2
H2, W2 = 14, 3              # conv2 output
H3, W3 = 12, 1              # conv3 output
CP = 128                    # channels padded 96 -> 128 (lane dense)
FC1P = 256                  # fc1 outputs padded 192 -> 256
K1P = 16                    # conv1 im2col K padded 9 -> 16


# -----------------------------------------------------------------------------
# Fused Pallas kernel: conv1+conv2+conv3+fc1+fc2 with VMEM-resident activations
# -----------------------------------------------------------------------------
def _ptr_net_kernel(p1_ref, w1_ref, b1_ref, w2_ref, b2_ref, w3_ref, b3_ref,
                    wf1_ref, bf1_ref, wf2_ref, bf2_ref, out_ref,
                    act1_ref, act2_ref, *, n_batch):
    f32 = jnp.float32
    bf16 = jnp.bfloat16

    # ---- conv1 + ReLU --> zero-padded row-layout buffer act1[(n,hp),(wp,c)] ----
    act1_ref[...] = jnp.zeros_like(act1_ref)          # zero border = conv2 padding
    b1 = b1_ref[...]
    for ow in range(W1):
        acc = jnp.dot(p1_ref[ow].astype(bf16), w1_ref[...],
                      preferred_element_type=f32)      # (N*16, 128)
        a1 = jnp.maximum(acc + b1, 0.0)
        for n in range(n_batch):
            act1_ref[n * H1P + 1: n * H1P + 1 + H1,
                     (ow + 1) * CP: (ow + 2) * CP] = a1[n * H1: (n + 1) * H1, :]

    # ---- conv2 + ReLU --> row-layout buffer act2[(n,h2),(w2,c)] ----------------
    b2 = b2_ref[...]
    for n in range(n_batch):
        for ow in range(W2):
            acc = jnp.zeros((H2, CP), f32)
            for i in range(5):                         # kernel-row taps
                x = act1_ref[n * H1P + i: n * H1P + i + H2,
                             ow * CP: ow * CP + 5 * CP]        # (14, 640)
                acc = acc + jnp.dot(x.astype(bf16), w2_ref[i],
                                    preferred_element_type=f32)
            act2_ref[n * H2: (n + 1) * H2,
                     ow * CP: (ow + 1) * CP] = jnp.maximum(acc + b2, 0.0)

    # ---- conv3 + ReLU (kept in registers) --------------------------------------
    b3 = b3_ref[...]
    h3 = []
    for n in range(n_batch):
        acc = jnp.zeros((H3, CP), f32)
        for i in range(3):
            x = act2_ref[n * H2 + i: n * H2 + i + H3, :]       # (12, 384)
            acc = acc + jnp.dot(x.astype(bf16), w3_ref[i],
                                preferred_element_type=f32)
        h3.append(jnp.maximum(acc + b3, 0.0))                  # (12, 128)

    # ---- fc1 + ReLU (weight pre-permuted to conv3's (h, c) layout) -------------
    acc = jnp.zeros((n_batch, FC1P), f32)
    for h in range(H3):
        xh = jnp.concatenate([h3[n][h: h + 1, :] for n in range(n_batch)], axis=0)
        acc = acc + jnp.dot(xh.astype(bf16), wf1_ref[h],
                            preferred_element_type=f32)        # (N, 256)
    h4 = jnp.maximum(acc + bf1_ref[...], 0.0)

    # ---- fc2 (folded into the same kernel; real result in lane 0) --------------
    out = jnp.dot(h4.astype(bf16), wf2_ref[...],
                  preferred_element_type=f32) + bf2_ref[...]
    out_ref[...] = out.astype(out_ref.dtype)


def _full_spec(shape):
    return pl.BlockSpec(shape, lambda *_: (0,) * len(shape))


@functools.lru_cache(maxsize=None)
def _build_net_call(n_batch):
    kernel = functools.partial(_ptr_net_kernel, n_batch=n_batch)
    in_shapes = [
        (W1, n_batch * H1, K1P),        # conv1 patches (grouped by output column)
        (K1P, CP), (1, CP),             # w1, b1
        (5, 5 * CP, CP), (1, CP),       # w2, b2
        (3, 3 * CP, CP), (1, CP),       # w3, b3
        (H3, CP, FC1P), (1, FC1P),      # wfc1, bfc1
        (FC1P, CP), (1, CP),            # wfc2, bfc2
    ]
    return pl.pallas_call(
        kernel,
        out_shape=jax.ShapeDtypeStruct((n_batch, CP), jnp.float32),
        in_specs=[_full_spec(s) for s in in_shapes],
        out_specs=_full_spec((n_batch, CP)),
        scratch_shapes=[
            pltpu.VMEM((n_batch * H1P, W1P * CP), jnp.float32),  # padded conv1 out
            pltpu.VMEM((n_batch * H2, W2 * CP), jnp.float32),    # conv2 out
        ],
        cost_estimate=pl.CostEstimate(flops=80_000_000, transcendentals=0,
                                      bytes_accessed=3_000_000),
    )


# -----------------------------------------------------------------------------
# One-time parameter preparation (permute / pad to 128 lanes / cast to bf16)
# -----------------------------------------------------------------------------
def prepare_params(params):
    f32, bf16 = jnp.float32, jnp.bfloat16

    w1 = jnp.transpose(params["conv1_w"][:, 0], (1, 2, 0)).reshape(9, 96)  # [i*3+j, co]
    w1k = jnp.zeros((K1P, CP), f32).at[:9, :96].set(w1).astype(bf16)
    b1k = jnp.zeros((1, CP), f32).at[0, :96].set(params["conv1_b"])

    w2 = jnp.transpose(params["conv2_w"], (2, 3, 1, 0))                    # [i, j, ci, co]
    w2k = (jnp.zeros((5, 5, CP, CP), f32).at[:, :, :96, :96].set(w2)
           .reshape(5, 5 * CP, CP).astype(bf16))
    b2k = jnp.zeros((1, CP), f32).at[0, :96].set(params["conv2_b"])

    w3 = jnp.transpose(params["conv3_w"], (2, 3, 1, 0))                    # [i, j, ci, co]
    w3k = (jnp.zeros((3, 3, CP, CP), f32).at[:, :, :96, :96].set(w3)
           .reshape(3, 3 * CP, CP).astype(bf16))
    b3k = jnp.zeros((1, CP), f32).at[0, :96].set(params["conv3_b"])

    # fc1 weight (192, 96*12); PyTorch flatten index is c*12 + h -> permute to [h, c, f]
    wf1 = jnp.transpose(params["fc1_w"].reshape(192, 96, H3), (2, 1, 0))   # (12, 96, 192)
    wf1k = jnp.zeros((H3, CP, FC1P), f32).at[:, :96, :192].set(wf1).astype(bf16)
    bf1k = jnp.zeros((1, FC1P), f32).at[0, :192].set(params["fc1_b"])

    wf2k = jnp.zeros((FC1P, CP), f32).at[:192, 0].set(params["fc2_w"][0]).astype(bf16)
    bf2k = jnp.zeros((1, CP), f32).at[0, 0].set(params["fc2_b"][0])

    return {"w1": w1k, "b1": b1k, "w2": w2k, "b2": b2k, "w3": w3k, "b3": b3k,
            "wf1": wf1k, "bf1": bf1k, "wf2": wf2k, "bf2": bf2k}


# -----------------------------------------------------------------------------
# Forward pass (mirrors the PyTorch module)
# -----------------------------------------------------------------------------
def net_forward(x_nchw, kparams):
    """x_nchw: (N, 1, 16, 5) float32 -> (N, 1) float32."""
    n = x_nchw.shape[0]
    assert x_nchw.shape[1:] == (1, H0, W0), x_nchw.shape
    xp = jnp.pad(x_nchw[:, 0].astype(jnp.float32), ((0, 0), (1, 1), (1, 1)))  # (N,18,7)

    # conv1 im2col (tiny), grouped by output column so each of the kernel's 5 small
    # dots writes a lane-dense 128-wide column block of the row-layout buffer.
    cols = []
    for ow in range(W1):
        taps = [xp[:, i:i + H1, ow + j] for i in range(3) for j in range(3)]
        cols.append(jnp.stack(taps, axis=-1).reshape(n * H1, 9))
    p1 = jnp.pad(jnp.stack(cols, axis=0), ((0, 0), (0, 0), (0, K1P - 9)))      # (5,N*16,16)

    out = _build_net_call(n)(
        p1,
        kparams["w1"], kparams["b1"], kparams["w2"], kparams["b2"],
        kparams["w3"], kparams["b3"], kparams["wf1"], kparams["bf1"],
        kparams["wf2"], kparams["bf2"])
    return out[:, :1]


# -----------------------------------------------------------------------------
# Pure-JAX f32 reference (matches the PyTorch module) + params
# -----------------------------------------------------------------------------
def reference_forward(x_nchw, params):
    def conv(x, w, b, pad):
        y = jax.lax.conv_general_dilated(
            x, w, window_strides=(1, 1), padding=[(pad, pad), (pad, pad)],
            dimension_numbers=("NCHW", "OIHW", "NCHW"))
        return y + b[None, :, None, None]

    x = jax.nn.relu(conv(x_nchw, params["conv1_w"], params["conv1_b"], 1))
    x = jax.nn.relu(conv(x, params["conv2_w"], params["conv2_b"], 1))
    x = jax.nn.relu(conv(x, params["conv3_w"], params["conv3_b"], 0))
    x = x.reshape(x.shape[0], -1)                      # NCHW flatten == torch .view
    x = jax.nn.relu(x @ params["fc1_w"].T + params["fc1_b"])
    return x @ params["fc2_w"].T + params["fc2_b"]


def init_params(key):
    ks = jax.random.split(key, 10)

    def w(k, shape, fan_in):
        return (jax.random.normal(k, shape, jnp.float32) / jnp.sqrt(fan_in)).astype(jnp.float32)

    return {
        "conv1_w": w(ks[0], (96, 1, 3, 3), 1 * 3 * 3),
        "conv1_b": w(ks[1], (96,), 1 * 3 * 3),
        "conv2_w": w(ks[2], (96, 96, 5, 5), 96 * 5 * 5),
        "conv2_b": w(ks[3], (96,), 96 * 5 * 5),
        "conv3_w": w(ks[4], (96, 96, 3, 3), 96 * 3 * 3),
        "conv3_b": w(ks[5], (96,), 96 * 3 * 3),
        "fc1_w": w(ks[6], (192, 96 * 12 * 1), 96 * 12 * 1),   # PyTorch Linear: (out, in)
        "fc1_b": w(ks[7], (192,), 96 * 12 * 1),
        "fc2_w": w(ks[8], (1, 192), 192),
        "fc2_b": w(ks[9], (1,), 192),
    }


if __name__ == "__main__":
    key = jax.random.PRNGKey(0)
    k_param, k_x = jax.random.split(key)
    params = init_params(k_param)
    kparams = prepare_params(params)

    # Input: batch=2, 1 channel, 16x5 spatial (so the flatten is 96*12*1 as fc1 needs).
    x = jax.random.normal(k_x, (2, 1, 16, 5), jnp.float32)

    out = jax.jit(net_forward)(x, kparams)
    out = jax.block_until_ready(out)
    assert out.shape == (2, 1), out.shape

    # Loose tolerance: kernel matmuls use bf16 operands with f32 accumulation.
    ref = reference_forward(x, params)
    assert float(jnp.max(jnp.abs(out - ref))) < 0.2, (out, ref)

    print("KERNEL_OK")
</pallas_src>

<mosaic_0001>
module attributes {stable_mosaic.version = 11 : i64} {
  func.func @_ptr_net_kernel(%arg0: memref<5x32x16xf32, #tpu.memory_space<vmem>>, %arg1: memref<16x128xbf16, #tpu.memory_space<vmem>>, %arg2: memref<1x128xf32, #tpu.memory_space<vmem>>, %arg3: memref<5x640x128xbf16, #tpu.memory_space<vmem>>, %arg4: memref<1x128xf32, #tpu.memory_space<vmem>>, %arg5: memref<3x384x128xbf16, #tpu.memory_space<vmem>>, %arg6: memref<1x128xf32, #tpu.memory_space<vmem>>, %arg7: memref<12x128x256xbf16, #tpu.memory_space<vmem>>, %arg8: memref<1x256xf32, #tpu.memory_space<vmem>>, %arg9: memref<256x128xbf16, #tpu.memory_space<vmem>>, %arg10: memref<1x128xf32, #tpu.memory_space<vmem>>, %arg11: memref<2x128xf32, #tpu.memory_space<vmem>>, %arg12: memref<36x896xf32, #tpu.memory_space<vmem>>, %arg13: memref<28x384xf32, #tpu.memory_space<vmem>>) attributes {dimension_semantics = [], scalar_prefetch = 0 : i64, scratch_operands = 2 : i64, tpu.core_type = #tpu.core_type<tc>} {
    %cst = arith.constant 0.000000e+00 : f32
    %0 = vector.broadcast %cst : f32 to vector<36x896xf32>
    %c0 = arith.constant 0 : index
    %c0_0 = arith.constant 0 : index
    %1 = vector.load %arg12[%c0, %c0_0] : memref<36x896xf32, #tpu.memory_space<vmem>>, vector<36x896xf32>
    tpu.vector_store %arg12[%c0, %c0_0], %0 {strides = array<i32>} : memref<36x896xf32, #tpu.memory_space<vmem>>, vector<36x896xf32>,
    %c0_1 = arith.constant 0 : index
    %c0_2 = arith.constant 0 : index
    %2 = vector.load %arg2[%c0_1, %c0_2] : memref<1x128xf32, #tpu.memory_space<vmem>>, vector<1x128xf32>
    %c0_3 = arith.constant 0 : index
    %c0_4 = arith.constant 0 : index
    %c0_5 = arith.constant 0 : index
    %3 = vector.load %arg0[%c0_3, %c0_4, %c0_5] : memref<5x32x16xf32, #tpu.memory_space<vmem>>, vector<1x32x16xf32>
    %4 = vector.shape_cast %3 : vector<1x32x16xf32> to vector<32x16xf32>
    %5 = arith.truncf %4 : vector<32x16xf32> to vector<32x16xbf16>
    %c0_6 = arith.constant 0 : index
    %c0_7 = arith.constant 0 : index
    %6 = vector.load %arg1[%c0_6, %c0_7] : memref<16x128xbf16, #tpu.memory_space<vmem>>, vector<16x128xbf16>
    %cst_8 = arith.constant dense<0.000000e+00> : vector<32x128xf32>
    %7 = tpu.matmul %5, %6, %cst_8 {dimension_numbers = #tpu.dot_dimension_numbers<[1], [0], [0], [1], [0, 0, 1, 1], [], []>} : vector<32x16xbf16>, vector<16x128xbf16>, vector<32x128xf32> -> vector<32x128xf32>
    %8 = vector.broadcast %2 : vector<1x128xf32> to vector<32x128xf32>
    %9 = arith.addf %7, %8 : vector<32x128xf32>
    %cst_9 = arith.constant 0.000000e+00 : f32
    %10 = vector.broadcast %cst_9 : f32 to vector<32x128xf32>
    %11 = arith.maximumf %9, %10 : vector<32x128xf32>
    %12 = vector.extract_strided_slice %11 {offsets = [0, 0], sizes = [16, 128], strides = [1, 1]} : vector<32x128xf32> to vector<16x128xf32>
    %c1 = arith.constant 1 : index
    %c128 = arith.constant 128 : index
    %13 = vector.load %arg12[%c1, %c128] : memref<36x896xf32, #tpu.memory_space<vmem>>, vector<16x128xf32>
    tpu.vector_store %arg12[%c1, %c128], %12 {strides = array<i32>} : memref<36x896xf32, #tpu.memory_space<vmem>>, vector<16x128xf32>,
    %14 = vector.extract_strided_slice %11 {offsets = [16, 0], sizes = [16, 128], strides = [1, 1]} : vector<32x128xf32> to vector<16x128xf32>
    %c19 = arith.constant 19 : index
    %c128_10 = arith.constant 128 : index
    %15 = vector.load %arg12[%c19, %c128_10] : memref<36x896xf32, #tpu.memory_space<vmem>>, vector<16x128xf32>
    tpu.vector_store %arg12[%c19, %c128_10], %14 {strides = array<i32>} : memref<36x896xf32, #tpu.memory_space<vmem>>, vector<16x128xf32>,
    %c1_11 = arith.constant 1 : index
    %c0_12 = arith.constant 0 : index
    %c0_13 = arith.constant 0 : index
    %16 = vector.load %arg0[%c1_11, %c0_12, %c0_13] : memref<5x32x16xf32, #tpu.memory_space<vmem>>, vector<1x32x16xf32>
    %17 = vector.shape_cast %16 : vector<1x32x16xf32> to vector<32x16xf32>
    %18 = arith.truncf %17 : vector<32x16xf32> to vector<32x16xbf16>
    %c0_14 = arith.constant 0 : index
    %c0_15 = arith.constant 0 : index
    %19 = vector.load %arg1[%c0_14, %c0_15] : memref<16x128xbf16, #tpu.memory_space<vmem>>, vector<16x128xbf16>
    %cst_16 = arith.constant dense<0.000000e+00> : vector<32x128xf32>
    %20 = tpu.matmul %18, %19, %cst_16 {dimension_numbers = #tpu.dot_dimension_numbers<[1], [0], [0], [1], [0, 0, 1, 1], [], []>} : vector<32x16xbf16>, vector<16x128xbf16>, vector<32x128xf32> -> vector<32x128xf32>
    %21 = vector.broadcast %2 : vector<1x128xf32> to vector<32x128xf32>
    %22 = arith.addf %20, %21 : vector<32x128xf32>
    %cst_17 = arith.constant 0.000000e+00 : f32
    %23 = vector.broadcast %cst_17 : f32 to vector<32x128xf32>
    %24 = arith.maximumf %22, %23 : vector<32x128xf32>
    %25 = vector.extract_strided_slice %24 {offsets = [0, 0], sizes = [16, 128], strides = [1, 1]} : vector<32x128xf32> to vector<16x128xf32>
    %c1_18 = arith.constant 1 : index
    %c256 = arith.constant 256 : index
    %26 = vector.load %arg12[%c1_18, %c256] : memref<36x896xf32, #tpu.memory_space<vmem>>, vector<16x128xf32>
    tpu.vector_store %arg12[%c1_18, %c256], %25 {strides = array<i32>} : memref<36x896xf32, #tpu.memory_space<vmem>>, vector<16x128xf32>,
    %27 = vector.extract_strided_slice %24 {offsets = [16, 0], sizes = [16, 128], strides = [1, 1]} : vector<32x128xf32> to vector<16x128xf32>
    %c19_19 = arith.constant 19 : index
    %c256_20 = arith.constant 256 : index
    %28 = vector.load %arg12[%c19_19, %c256_20] : memref<36x896xf32, #tpu.memory_space<vmem>>, vector<16x128xf32>
    tpu.vector_store %arg12[%c19_19, %c256_20], %27 {strides = array<i32>} : memref<36x896xf32, #tpu.memory_space<vmem>>, vector<16x128xf32>,
    %c2 = arith.constant 2 : index
    %c0_21 = arith.constant 0 : index
    %c0_22 = arith.constant 0 : index
    %29 = vector.load %arg0[%c2, %c0_21, %c0_22] : memref<5x32x16xf32, #tpu.memory_space<vmem>>, vector<1x32x16xf32>
    %30 = vector.shape_cast %29 : vector<1x32x16xf32> to vector<32x16xf32>
    %31 = arith.truncf %30 : vector<32x16xf32> to vector<32x16xbf16>
    %c0_23 = arith.constant 0 : index
    %c0_24 = arith.constant 0 : index
    %32 = vector.load %arg1[%c0_23, %c0_24] : memref<16x128xbf16, #tpu.memory_space<vmem>>, vector<16x128xbf16>
    %cst_25 = arith.constant dense<0.000000e+00> : vector<32x128xf32>
    %33 = tpu.matmul %31, %32, %cst_25 {dimension_numbers = #tpu.dot_dimension_numbers<[1], [0], [0], [1], [0, 0, 1, 1], [], []>} : vector<32x16xbf16>, vector<16x128xbf16>, vector<32x128xf32> -> vector<32x128xf32>
    %34 = vector.broadcast %2 : vector<1x128xf32> to vector<32x128xf32>
    %35 = arith.addf %33, %34 : vector<32x128xf32>
    %cst_26 = arith.constant 0.000000e+00 : f32
    %36 = vector.broadcast %cst_26 : f32 to vector<32x128xf32>
    %37 = arith.maximumf %35, %36 : vector<32x128xf32>
    %38 = vector.extract_strided_slice %37 {offsets = [0, 0], sizes = [16, 128], strides = [1, 1]} : vector<32x128xf32> to vector<16x128xf32>
    %c1_27 = arith.constant 1 : index
    %c384 = arith.constant 384 : index
    %39 = vector.load %arg12[%c1_27, %c384] : memref<36x896xf32, #tpu.memory_space<vmem>>, vector<16x128xf32>
    tpu.vector_store %arg12[%c1_27, %c384], %38 {strides = array<i32>} : memref<36x896xf32, #tpu.memory_space<vmem>>, vector<16x128xf32>,
    %40 = vector.extract_strided_slice %37 {offsets = [16, 0], sizes = [16, 128], strides = [1, 1]} : vector<32x128xf32> to vector<16x128xf32>
    %c19_28 = arith.constant 19 : index
    %c384_29 = arith.constant 384 : index
    %41 = vector.load %arg12[%c19_28, %c384_29] : memref<36x896xf32, #tpu.memory_space<vmem>>, vector<16x128xf32>
    tpu.vector_store %arg12[%c19_28, %c384_29], %40 {strides = array<i32>} : memref<36x896xf32, #tpu.memory_space<vmem>>, vector<16x128xf32>,
    %c3 = arith.constant 3 : index
    %c0_30 = arith.constant 0 : index
    %c0_31 = arith.constant 0 : index
    %42 = vector.load %arg0[%c3, %c0_30, %c0_31] : memref<5x32x16xf32, #tpu.memory_space<vmem>>, vector<1x32x16xf32>
    %43 = vector.shape_cast %42 : vector<1x32x16xf32> to vector<32x16xf32>
    %44 = arith.truncf %43 : vector<32x16xf32> to vector<32x16xbf16>
    %c0_32 = arith.constant 0 : index
    %c0_33 = arith.constant 0 : index
    %45 = vector.load %arg1[%c0_32, %c0_33] : memref<16x128xbf16, #tpu.memory_space<vmem>>, vector<16x128xbf16>
    %cst_34 = arith.constant dense<0.000000e+00> : vector<32x128xf32>
    %46 = tpu.matmul %44, %45, %cst_34 {dimension_numbers = #tpu.dot_dimension_numbers<[1], [0], [0], [1], [0, 0, 1, 1], [], []>} : vector<32x16xbf16>, vector<16x128xbf16>, vector<32x128xf32> -> vector<32x128xf32>
    %47 = vector.broadcast %2 : vector<1x128xf32> to vector<32x128xf32>
    %48 = arith.addf %46, %47 : vector<32x128xf32>
    %cst_35 = arith.constant 0.000000e+00 : f32
    %49 = vector.broadcast %cst_35 : f32 to vector<32x128xf32>
    %50 = arith.maximumf %48, %49 : vector<32x128xf32>
    %51 = vector.extract_strided_slice %50 {offsets = [0, 0], sizes = [16, 128], strides = [1, 1]} : vector<32x128xf32> to vector<16x128xf32>
    %c1_36 = arith.constant 1 : index
    %c512 = arith.constant 512 : index
    %52 = vector.load %arg12[%c1_36, %c512] : memref<36x896xf32, #tpu.memory_space<vmem>>, vector<16x128xf32>
    tpu.vector_store %arg12[%c1_36, %c512], %51 {strides = array<i32>} : memref<36x896xf32, #tpu.memory_space<vmem>>, vector<16x128xf32>,
    %53 = vector.extract_strided_slice %50 {offsets = [16, 0], sizes = [16, 128], strides = [1, 1]} : vector<32x128xf32> to vector<16x128xf32>
    %c19_37 = arith.constant 19 : index
    %c512_38 = arith.constant 512 : index
    %54 = vector.load %arg12[%c19_37, %c512_38] : memref<36x896xf32, #tpu.memory_space<vmem>>, vector<16x128xf32>
    tpu.vector_store %arg12[%c19_37, %c512_38], %53 {strides = array<i32>} : memref<36x896xf32, #tpu.memory_space<vmem>>, vector<16x128xf32>,
    %c4 = arith.constant 4 : index
    %c0_39 = arith.constant 0 : index
    %c0_40 = arith.constant 0 : index
    %55 = vector.load %arg0[%c4, %c0_39, %c0_40] : memref<5x32x16xf32, #tpu.memory_space<vmem>>, vector<1x32x16xf32>
    %56 = vector.shape_cast %55 : vector<1x32x16xf32> to vector<32x16xf32>
    %57 = arith.truncf %56 : vector<32x16xf32> to vector<32x16xbf16>
    %c0_41 = arith.constant 0 : index
    %c0_42 = arith.constant 0 : index
    %58 = vector.load %arg1[%c0_41, %c0_42] : memref<16x128xbf16, #tpu.memory_space<vmem>>, vector<16x128xbf16>
    %cst_43 = arith.constant dense<0.000000e+00> : vector<32x128xf32>
    %59 = tpu.matmul %57, %58, %cst_43 {dimension_numbers = #tpu.dot_dimension_numbers<[1], [0], [0], [1], [0, 0, 1, 1], [], []>} : vector<32x16xbf16>, vector<16x128xbf16>, vector<32x128xf32> -> vector<32x128xf32>
    %60 = vector.broadcast %2 : vector<1x128xf32> to vector<32x128xf32>
    %61 = arith.addf %59, %60 : vector<32x128xf32>
    %cst_44 = arith.constant 0.000000e+00 : f32
    %62 = vector.broadcast %cst_44 : f32 to vector<32x128xf32>
    %63 = arith.maximumf %61, %62 : vector<32x128xf32>
    %64 = vector.extract_strided_slice %63 {offsets = [0, 0], sizes = [16, 128], strides = [1, 1]} : vector<32x128xf32> to vector<16x128xf32>
    %c1_45 = arith.constant 1 : index
    %c640 = arith.constant 640 : index
    %65 = vector.load %arg12[%c1_45, %c640] : memref<36x896xf32, #tpu.memory_space<vmem>>, vector<16x128xf32>
    tpu.vector_store %arg12[%c1_45, %c640], %64 {strides = array<i32>} : memref<36x896xf32, #tpu.memory_space<vmem>>, vector<16x128xf32>,
    %66 = vector.extract_strided_slice %63 {offsets = [16, 0], sizes = [16, 128], strides = [1, 1]} : vector<32x128xf32> to vector<16x128xf32>
    %c19_46 = arith.constant 19 : index
    %c640_47 = arith.constant 640 : index
    %67 = vector.load %arg12[%c19_46, %c640_47] : memref<36x896xf32, #tpu.memory_space<vmem>>, vector<16x128xf32>
    tpu.vector_store %arg12[%c19_46, %c640_47], %66 {strides = array<i32>} : memref<36x896xf32, #tpu.memory_space<vmem>>, vector<16x128xf32>,
    %c0_48 = arith.constant 0 : index
    %c0_49 = arith.constant 0 : index
    %68 = vector.load %arg4[%c0_48, %c0_49] : memref<1x128xf32, #tpu.memory_space<vmem>>, vector<1x128xf32>
    %cst_50 = arith.constant 0.000000e+00 : f32
    %69 = vector.broadcast %cst_50 : f32 to vector<14x128xf32>
    %c0_51 = arith.constant 0 : index
    %c0_52 = arith.constant 0 : index
    %70 = vector.load %arg12[%c0_51, %c0_52] : memref<36x896xf32, #tpu.memory_space<vmem>>, vector<14x640xf32>
    %71 = arith.truncf %70 : vector<14x640xf32> to vector<14x640xbf16>
    %c0_53 = arith.constant 0 : index
    %c0_54 = arith.constant 0 : index
    %c0_55 = arith.constant 0 : index
    %72 = vector.load %arg3[%c0_53, %c0_54, %c0_55] : memref<5x640x128xbf16, #tpu.memory_space<vmem>>, vector<1x640x128xbf16>
    %73 = vector.shape_cast %72 : vector<1x640x128xbf16> to vector<640x128xbf16>
    %cst_56 = arith.constant dense<0.000000e+00> : vector<14x128xf32>
    %74 = tpu.matmul %71, %73, %cst_56 {dimension_numbers = #tpu.dot_dimension_numbers<[1], [0], [0], [1], [0, 0, 1, 1], [], []>} : vector<14x640xbf16>, vector<640x128xbf16>, vector<14x128xf32> -> vector<14x128xf32>
    %75 = arith.addf %69, %74 : vector<14x128xf32>
    %c1_57 = arith.constant 1 : index
    %c0_58 = arith.constant 0 : index
    %76 = vector.load %arg12[%c1_57, %c0_58] : memref<36x896xf32, #tpu.memory_space<vmem>>, vector<14x640xf32>
    %77 = arith.truncf %76 : vector<14x640xf32> to vector<14x640xbf16>
    %c1_59 = arith.constant 1 : index
    %c0_60 = arith.constant 0 : index
    %c0_61 = arith.constant 0 : index
    %78 = vector.load %arg3[%c1_59, %c0_60, %c0_61] : memref<5x640x128xbf16, #tpu.memory_space<vmem>>, vector<1x640x128xbf16>
    %79 = vector.shape_cast %78 : vector<1x640x128xbf16> to vector<640x128xbf16>
    %cst_62 = arith.constant dense<0.000000e+00> : vector<14x128xf32>
    %80 = tpu.matmul %77, %79, %cst_62 {dimension_numbers = #tpu.dot_dimension_numbers<[1], [0], [0], [1], [0, 0, 1, 1], [], []>} : vector<14x640xbf16>, vector<640x128xbf16>, vector<14x128xf32> -> vector<14x128xf32>
    %81 = arith.addf %75, %80 : vector<14x128xf32>
    %c2_63 = arith.constant 2 : index
    %c0_64 = arith.constant 0 : index
    %82 = vector.load %arg12[%c2_63, %c0_64] : memref<36x896xf32, #tpu.memory_space<vmem>>, vector<14x640xf32>
    %83 = arith.truncf %82 : vector<14x640xf32> to vector<14x640xbf16>
    %c2_65 = arith.constant 2 : index
    %c0_66 = arith.constant 0 : index
    %c0_67 = arith.constant 0 : index
    %84 = vector.load %arg3[%c2_65, %c0_66, %c0_67] : memref<5x640x128xbf16, #tpu.memory_space<vmem>>, vector<1x640x128xbf16>
    %85 = vector.shape_cast %84 : vector<1x640x128xbf16> to vector<640x128xbf16>
    %cst_68 = arith.constant dense<0.000000e+00> : vector<14x128xf32>
    %86 = tpu.matmul %83, %85, %cst_68 {dimension_numbers = #tpu.dot_dimension_numbers<[1], [0], [0], [1], [0, 0, 1, 1], [], []>} : vector<14x640xbf16>, vector<640x128xbf16>, vector<14x128xf32> -> vector<14x128xf32>
    %87 = arith.addf %81, %86 : vector<14x128xf32>
    %c3_69 = arith.constant 3 : index
    %c0_70 = arith.constant 0 : index
    %88 = vector.load %arg12[%c3_69, %c0_70] : memref<36x896xf32, #tpu.memory_space<vmem>>, vector<14x640xf32>
    %89 = arith.truncf %88 : vector<14x640xf32> to vector<14x640xbf16>
    %c3_71 = arith.constant 3 : index
    %c0_72 = arith.constant 0 : index
    %c0_73 = arith.constant 0 : index
    %90 = vector.load %arg3[%c3_71, %c0_72, %c0_73] : memref<5x640x128xbf16, #tpu.memory_space<vmem>>, vector<1x640x128xbf16>
    %91 = vector.shape_cast %90 : vector<1x640x128xbf16> to vector<640x128xbf16>
    %cst_74 = arith.constant dense<0.000000e+00> : vector<14x128xf32>
    %92 = tpu.matmul %89, %91, %cst_74 {dimension_numbers = #tpu.dot_dimension_numbers<[1], [0], [0], [1], [0, 0, 1, 1], [], []>} : vector<14x640xbf16>, vector<640x128xbf16>, vector<14x128xf32> -> vector<14x128xf32>
    %93 = arith.addf %87, %92 : vector<14x128xf32>
    %c4_75 = arith.constant 4 : index
    %c0_76 = arith.constant 0 : index
    %94 = vector.load %arg12[%c4_75, %c0_76] : memref<36x896xf32, #tpu.memory_space<vmem>>, vector<14x640xf32>
    %95 = arith.truncf %94 : vector<14x640xf32> to vector<14x640xbf16>
    %c4_77 = arith.constant 4 : index
    %c0_78 = arith.constant 0 : index
    %c0_79 = arith.constant 0 : index
    %96 = vector.load %arg3[%c4_77, %c0_78, %c0_79] : memref<5x640x128xbf16, #tpu.memory_space<vmem>>, vector<1x640x128xbf16>
    %97 = vector.shape_cast %96 : vector<1x640x128xbf16> to vector<640x128xbf16>
    %cst_80 = arith.constant dense<0.000000e+00> : vector<14x128xf32>
    %98 = tpu.matmul %95, %97, %cst_80 {dimension_numbers = #tpu.dot_dimension_numbers<[1], [0], [0], [1], [0, 0, 1, 1], [], []>} : vector<14x640xbf16>, vector<640x128xbf16>, vector<14x128xf32> -> vector<14x128xf32>
    %99 = arith.addf %93, %98 : vector<14x128xf32>
    %100 = vector.broadcast %68 : vector<1x128xf32> to vector<14x128xf32>
    %101 = arith.addf %99, %100 : vector<14x128xf32>
    %cst_81 = arith.constant 0.000000e+00 : f32
    %102 = vector.broadcast %cst_81 : f32 to vector<14x128xf32>
    %103 = arith.maximumf %101, %102 : vector<14x128xf32>
    %c0_82 = arith.constant 0 : index
    %c0_83 = arith.constant 0 : index
    %104 = vector.load %arg13[%c0_82, %c0_83] : memref<28x384xf32, #tpu.memory_space<vmem>>, vector<14x128xf32>
    tpu.vector_store %arg13[%c0_82, %c0_83], %103 {strides = array<i32>} : memref<28x384xf32, #tpu.memory_space<vmem>>, vector<14x128xf32>,
    %cst_84 = arith.constant 0.000000e+00 : f32
    %105 = vector.broadcast %cst_84 : f32 to vector<14x128xf32>
    %c0_85 = arith.constant 0 : index
    %c128_86 = arith.constant 128 : index
    %106 = vector.load %arg12[%c0_85, %c128_86] : memref<36x896xf32, #tpu.memory_space<vmem>>, vector<14x640xf32>
    %107 = arith.truncf %106 : vector<14x640xf32> to vector<14x640xbf16>
    %c0_87 = arith.constant 0 : index
    %c0_88 = arith.constant 0 : index
    %c0_89 = arith.constant 0 : index
    %108 = vector.load %arg3[%c0_87, %c0_88, %c0_89] : memref<5x640x128xbf16, #tpu.memory_space<vmem>>, vector<1x640x128xbf16>
    %109 = vector.shape_cast %108 : vector<1x640x128xbf16> to vector<640x128xbf16>
    %cst_90 = arith.constant dense<0.000000e+00> : vector<14x128xf32>
    %110 = tpu.matmul %107, %109, %cst_90 {dimension_numbers = #tpu.dot_dimension_numbers<[1], [0], [0], [1], [0, 0, 1, 1], [], []>} : vector<14x640xbf16>, vector<640x128xbf16>, vector<14x128xf32> -> vector<14x128xf32>
    %111 = arith.addf %105, %110 : vector<14x128xf32>
    %c1_91 = arith.constant 1 : index
    %c128_92 = arith.constant 128 : index
    %112 = vector.load %arg12[%c1_91, %c128_92] : memref<36x896xf32, #tpu.memory_space<vmem>>, vector<14x640xf32>
    %113 = arith.truncf %112 : vector<14x640xf32> to vector<14x640xbf16>
    %c1_93 = arith.constant 1 : index
    %c0_94 = arith.constant 0 : index
    %c0_95 = arith.constant 0 : index
    %114 = vector.load %arg3[%c1_93, %c0_94, %c0_95] : memref<5x640x128xbf16, #tpu.memory_space<vmem>>, vector<1x640x128xbf16>
    %115 = vector.shape_cast %114 : vector<1x640x128xbf16> to vector<640x128xbf16>
    %cst_96 = arith.constant dense<0.000000e+00> : vector<14x128xf32>
    %116 = tpu.matmul %113, %115, %cst_96 {dimension_numbers = #tpu.dot_dimension_numbers<[1], [0], [0], [1], [0, 0, 1, 1], [], []>} : vector<14x640xbf16>, vector<640x128xbf16>, vector<14x128xf32> -> vector<14x128xf32>
    %117 = arith.addf %111, %116 : vector<14x128xf32>
    %c2_97 = arith.constant 2 : index
    %c128_98 = arith.constant 128 : index
    %118 = vector.load %arg12[%c2_97, %c128_98] : memref<36x896xf32, #tpu.memory_space<vmem>>, vector<14x640xf32>
    %119 = arith.truncf %118 : vector<14x640xf32> to vector<14x640xbf16>
    %c2_99 = arith.constant 2 : index
    %c0_100 = arith.constant 0 : index
    %c0_101 = arith.constant 0 : index
    %120 = vector.load %arg3[%c2_99, %c0_100, %c0_101] : memref<5x640x128xbf16, #tpu.memory_space<vmem>>, vector<1x640x128xbf16>
    %121 = vector.shape_cast %120 : vector<1x640x128xbf16> to vector<640x128xbf16>
    %cst_102 = arith.constant dense<0.000000e+00> : vector<14x128xf32>
    %122 = tpu.matmul %119, %121, %cst_102 {dimension_numbers = #tpu.dot_dimension_numbers<[1], [0], [0], [1], [0, 0, 1, 1], [], []>} : vector<14x640xbf16>, vector<640x128xbf16>, vector<14x128xf32> -> vector<14x128xf32>
    %123 = arith.addf %117, %122 : vector<14x128xf32>
    %c3_103 = arith.constant 3 : index
    %c128_104 = arith.constant 128 : index
    %124 = vector.load %arg12[%c3_103, %c128_104] : memref<36x896xf32, #tpu.memory_space<vmem>>, vector<14x640xf32>
    %125 = arith.truncf %124 : vector<14x640xf32> to vector<14x640xbf16>
    %c3_105 = arith.constant 3 : index
    %c0_106 = arith.constant 0 : index
    %c0_107 = arith.constant 0 : index
    %126 = vector.load %arg3[%c3_105, %c0_106, %c0_107] : memref<5x640x128xbf16, #tpu.memory_space<vmem>>, vector<1x640x128xbf16>
    %127 = vector.shape_cast %126 : vector<1x640x128xbf16> to vector<640x128xbf16>
    %cst_108 = arith.constant dense<0.000000e+00> : vector<14x128xf32>
    %128 = tpu.matmul %125, %127, %cst_108 {dimension_numbers = #tpu.dot_dimension_numbers<[1], [0], [0], [1], [0, 0, 1, 1], [], []>} : vector<14x640xbf16>, vector<640x128xbf16>, vector<14x128xf32> -> vector<14x128xf32>
    %129 = arith.addf %123, %128 : vector<14x128xf32>
    %c4_109 = arith.constant 4 : index
    %c128_110 = arith.constant 128 : index
    %130 = vector.load %arg12[%c4_109, %c128_110] : memref<36x896xf32, #tpu.memory_space<vmem>>, vector<14x640xf32>
    %131 = arith.truncf %130 : vector<14x640xf32> to vector<14x640xbf16>
    %c4_111 = arith.constant 4 : index
    %c0_112 = arith.constant 0 : index
    %c0_113 = arith.constant 0 : index
    %132 = vector.load %arg3[%c4_111, %c0_112, %c0_113] : memref<5x640x128xbf16, #tpu.memory_space<vmem>>, vector<1x640x128xbf16>
    %133 = vector.shape_cast %132 : vector<1x640x128xbf16> to vector<640x128xbf16>
    %cst_114 = arith.constant dense<0.000000e+00> : vector<14x128xf32>
    %134 = tpu.matmul %131, %133, %cst_114 {dimension_numbers = #tpu.dot_dimension_numbers<[1], [0], [0], [1], [0, 0, 1, 1], [], []>} : vector<14x640xbf16>, vector<640x128xbf16>, vector<14x128xf32> -> vector<14x128xf32>
    %135 = arith.addf %129, %134 : vector<14x128xf32>
    %136 = vector.broadcast %68 : vector<1x128xf32> to vector<14x128xf32>
    %137 = arith.addf %135, %136 : vector<14x128xf32>
    %cst_115 = arith.constant 0.000000e+00 : f32
    %138 = vector.broadcast %cst_115 : f32 to vector<14x128xf32>
    %139 = arith.maximumf %137, %138 : vector<14x128xf32>
    %c0_116 = arith.constant 0 : index
    %c128_117 = arith.constant 128 : index
    %140 = vector.load %arg13[%c0_116, %c128_117] : memref<28x384xf32, #tpu.memory_space<vmem>>, vector<14x128xf32>
    tpu.vector_store %arg13[%c0_116, %c128_117], %139 {strides = array<i32>} : memref<28x384xf32, #tpu.memory_space<vmem>>, vector<14x128xf32>,
    %cst_118 = arith.constant 0.000000e+00 : f32
    %141 = vector.broadcast %cst_118 : f32 to vector<14x128xf32>
    %c0_119 = arith.constant 0 : index
    %c256_120 = arith.constant 256 : index
    %142 = vector.load %arg12[%c0_119, %c256_120] : memref<36x896xf32, #tpu.memory_space<vmem>>, vector<14x640xf32>
    %143 = arith.truncf %142 : vector<14x640xf32> to vector<14x640xbf16>
    %c0_121 = arith.constant 0 : index
    %c0_122 = arith.constant 0 : index
    %c0_123 = arith.constant 0 : index
    %144 = vector.load %arg3[%c0_121, %c0_122, %c0_123] : memref<5x640x128xbf16, #tpu.memory_space<vmem>>, vector<1x640x128xbf16>
    %145 = vector.shape_cast %144 : vector<1x640x128xbf16> to vector<640x128xbf16>
    %cst_124 = arith.constant dense<0.000000e+00> : vector<14x128xf32>
    %146 = tpu.matmul %143, %145, %cst_124 {dimension_numbers = #tpu.dot_dimension_numbers<[1], [0], [0], [1], [0, 0, 1, 1], [], []>} : vector<14x640xbf16>, vector<640x128xbf16>, vector<14x128xf32> -> vector<14x128xf32>
    %147 = arith.addf %141, %146 : vector<14x128xf32>
    %c1_125 = arith.constant 1 : index
    %c256_126 = arith.constant 256 : index
    %148 = vector.load %arg12[%c1_125, %c256_126] : memref<36x896xf32, #tpu.memory_space<vmem>>, vector<14x640xf32>
    %149 = arith.truncf %148 : vector<14x640xf32> to vector<14x640xbf16>
    %c1_127 = arith.constant 1 : index
    %c0_128 = arith.constant 0 : index
    %c0_129 = arith.constant 0 : index
    %150 = vector.load %arg3[%c1_127, %c0_128, %c0_129] : memref<5x640x128xbf16, #tpu.memory_space<vmem>>, vector<1x640x128xbf16>
    %151 = vector.shape_cast %150 : vector<1x640x128xbf16> to vector<640x128xbf16>
    %cst_130 = arith.constant dense<0.000000e+00> : vector<14x128xf32>
    %152 = tpu.matmul %149, %151, %cst_130 {dimension_numbers = #tpu.dot_dimension_numbers<[1], [0], [0], [1], [0, 0, 1, 1], [], []>} : vector<14x640xbf16>, vector<640x128xbf16>, vector<14x128xf32> -> vector<14x128xf32>
    %153 = arith.addf %147, %152 : vector<14x128xf32>
    %c2_131 = arith.constant 2 : index
    %c256_132 = arith.constant 256 : index
    %154 = vector.load %arg12[%c2_131, %c256_132] : memref<36x896xf32, #tpu.memory_space<vmem>>, vector<14x640xf32>
    %155 = arith.truncf %154 : vector<14x640xf32> to vector<14x640xbf16>
    %c2_133 = arith.constant 2 : index
    %c0_134 = arith.constant 0 : index
    %c0_135 = arith.constant 0 : index
    %156 = vector.load %arg3[%c2_133, %c0_134, %c0_135] : memref<5x640x128xbf16, #tpu.memory_space<vmem>>, vector<1x640x128xbf16>
    %157 = vector.shape_cast %156 : vector<1x640x128xbf16> to vector<640x128xbf16>
    %cst_136 = arith.constant dense<0.000000e+00> : vector<14x128xf32>
    %158 = tpu.matmul %155, %157, %cst_136 {dimension_numbers = #tpu.dot_dimension_numbers<[1], [0], [0], [1], [0, 0, 1, 1], [], []>} : vector<14x640xbf16>, vector<640x128xbf16>, vector<14x128xf32> -> vector<14x128xf32>
    %159 = arith.addf %153, %158 : vector<14x128xf32>
    %c3_137 = arith.constant 3 : index
    %c256_138 = arith.constant 256 : index
    %160 = vector.load %arg12[%c3_137, %c256_138] : memref<36x896xf32, #tpu.memory_space<vmem>>, vector<14x640xf32>
    %161 = arith.truncf %160 : vector<14x640xf32> to vector<14x640xbf16>
    %c3_139 = arith.constant 3 : index
    %c0_140 = arith.constant 0 : index
    %c0_141 = arith.constant 0 : index
    %162 = vector.load %arg3[%c3_139, %c0_140, %c0_141] : memref<5x640x128xbf16, #tpu.memory_space<vmem>>, vector<1x640x128xbf16>
    %163 = vector.shape_cast %162 : vector<1x640x128xbf16> to vector<640x128xbf16>
    %cst_142 = arith.constant dense<0.000000e+00> : vector<14x128xf32>
    %164 = tpu.matmul %161, %163, %cst_142 {dimension_numbers = #tpu.dot_dimension_numbers<[1], [0], [0], [1], [0, 0, 1, 1], [], []>} : vector<14x640xbf16>, vector<640x128xbf16>, vector<14x128xf32> -> vector<14x128xf32>
    %165 = arith.addf %159, %164 : vector<14x128xf32>
    %c4_143 = arith.constant 4 : index
    %c256_144 = arith.constant 256 : index
    %166 = vector.load %arg12[%c4_143, %c256_144] : memref<36x896xf32, #tpu.memory_space<vmem>>, vector<14x640xf32>
    %167 = arith.truncf %166 : vector<14x640xf32> to vector<14x640xbf16>
    %c4_145 = arith.constant 4 : index
    %c0_146 = arith.constant 0 : index
    %c0_147 = arith.constant 0 : index
    %168 = vector.load %arg3[%c4_145, %c0_146, %c0_147] : memref<5x640x128xbf16, #tpu.memory_space<vmem>>, vector<1x640x128xbf16>
    %169 = vector.shape_cast %168 : vector<1x640x128xbf16> to vector<640x128xbf16>
    %cst_148 = arith.constant dense<0.000000e+00> : vector<14x128xf32>
    %170 = tpu.matmul %167, %169, %cst_148 {dimension_numbers = #tpu.dot_dimension_numbers<[1], [0], [0], [1], [0, 0, 1, 1], [], []>} : vector<14x640xbf16>, vector<640x128xbf16>, vector<14x128xf32> -> vector<14x128xf32>
    %171 = arith.addf %165, %170 : vector<14x128xf32>
    %172 = vector.broadcast %68 : vector<1x128xf32> to vector<14x128xf32>
    %173 = arith.addf %171, %172 : vector<14x128xf32>
    %cst_149 = arith.constant 0.000000e+00 : f32
    %174 = vector.broadcast %cst_149 : f32 to vector<14x128xf32>
    %175 = arith.maximumf %173, %174 : vector<14x128xf32>
    %c0_150 = arith.constant 0 : index
    %c256_151 = arith.constant 256 : index
    %176 = vector.load %arg13[%c0_150, %c256_151] : memref<28x384xf32, #tpu.memory_space<vmem>>, vector<14x128xf32>
    tpu.vector_store %arg13[%c0_150, %c256_151], %175 {strides = array<i32>} : memref<28x384xf32, #tpu.memory_space<vmem>>, vector<14x128xf32>,
    %cst_152 = arith.constant 0.000000e+00 : f32
    %177 = vector.broadcast %cst_152 : f32 to vector<14x128xf32>
    %c18 = arith.constant 18 : index
    %c0_153 = arith.constant 0 : index
    %178 = vector.load %arg12[%c18, %c0_153] : memref<36x896xf32, #tpu.memory_space<vmem>>, vector<14x640xf32>
    %179 = arith.truncf %178 : vector<14x640xf32> to vector<14x640xbf16>
    %c0_154 = arith.constant 0 : index
    %c0_155 = arith.constant 0 : index
    %c0_156 = arith.constant 0 : index
    %180 = vector.load %arg3[%c0_154, %c0_155, %c0_156] : memref<5x640x128xbf16, #tpu.memory_space<vmem>>, vector<1x640x128xbf16>
    %181 = vector.shape_cast %180 : vector<1x640x128xbf16> to vector<640x128xbf16>
    %cst_157 = arith.constant dense<0.000000e+00> : vector<14x128xf32>
    %182 = tpu.matmul %179, %181, %cst_157 {dimension_numbers = #tpu.dot_dimension_numbers<[1], [0], [0], [1], [0, 0, 1, 1], [], []>} : vector<14x640xbf16>, vector<640x128xbf16>, vector<14x128xf32> -> vector<14x128xf32>
    %183 = arith.addf %177, %182 : vector<14x128xf32>
    %c19_158 = arith.constant 19 : index
    %c0_159 = arith.constant 0 : index
    %184 = vector.load %arg12[%c19_158, %c0_159] : memref<36x896xf32, #tpu.memory_space<vmem>>, vector<14x640xf32>
    %185 = arith.truncf %184 : vector<14x640xf32> to vector<14x640xbf16>
    %c1_160 = arith.constant 1 : index
    %c0_161 = arith.constant 0 : index
    %c0_162 = arith.constant 0 : index
    %186 = vector.load %arg3[%c1_160, %c0_161, %c0_162] : memref<5x640x128xbf16, #tpu.memory_space<vmem>>, vector<1x640x128xbf16>
    %187 = vector.shape_cast %186 : vector<1x640x128xbf16> to vector<640x128xbf16>
    %cst_163 = arith.constant dense<0.000000e+00> : vector<14x128xf32>
    %188 = tpu.matmul %185, %187, %cst_163 {dimension_numbers = #tpu.dot_dimension_numbers<[1], [0], [0], [1], [0, 0, 1, 1], [], []>} : vector<14x640xbf16>, vector<640x128xbf16>, vector<14x128xf32> -> vector<14x128xf32>
    %189 = arith.addf %183, %188 : vector<14x128xf32>
    %c20 = arith.constant 20 : index
    %c0_164 = arith.constant 0 : index
    %190 = vector.load %arg12[%c20, %c0_164] : memref<36x896xf32, #tpu.memory_space<vmem>>, vector<14x640xf32>
    %191 = arith.truncf %190 : vector<14x640xf32> to vector<14x640xbf16>
    %c2_165 = arith.constant 2 : index
    %c0_166 = arith.constant 0 : index
    %c0_167 = arith.constant 0 : index
    %192 = vector.load %arg3[%c2_165, %c0_166, %c0_167] : memref<5x640x128xbf16, #tpu.memory_space<vmem>>, vector<1x640x128xbf16>
    %193 = vector.shape_cast %192 : vector<1x640x128xbf16> to vector<640x128xbf16>
    %cst_168 = arith.constant dense<0.000000e+00> : vector<14x128xf32>
    %194 = tpu.matmul %191, %193, %cst_168 {dimension_numbers = #tpu.dot_dimension_numbers<[1], [0], [0], [1], [0, 0, 1, 1], [], []>} : vector<14x640xbf16>, vector<640x128xbf16>, vector<14x128xf32> -> vector<14x128xf32>
    %195 = arith.addf %189, %194 : vector<14x128xf32>
    %c21 = arith.constant 21 : index
    %c0_169 = arith.constant 0 : index
    %196 = vector.load %arg12[%c21, %c0_169] : memref<36x896xf32, #tpu.memory_space<vmem>>, vector<14x640xf32>
    %197 = arith.truncf %196 : vector<14x640xf32> to vector<14x640xbf16>
    %c3_170 = arith.constant 3 : index
    %c0_171 = arith.constant 0 : index
    %c0_172 = arith.constant 0 : index
    %198 = vector.load %arg3[%c3_170, %c0_171, %c0_172] : memref<5x640x128xbf16, #tpu.memory_space<vmem>>, vector<1x640x128xbf16>
    %199 = vector.shape_cast %198 : vector<1x640x128xbf16> to vector<640x128xbf16>
    %cst_173 = arith.constant dense<0.000000e+00> : vector<14x128xf32>
    %200 = tpu.matmul %197, %199, %cst_173 {dimension_numbers = #tpu.dot_dimension_numbers<[1], [0], [0], [1], [0, 0, 1, 1], [], []>} : vector<14x640xbf16>, vector<640x128xbf16>, vector<14x128xf32> -> vector<14x128xf32>
    %201 = arith.addf %195, %200 : vector<14x128xf32>
    %c22 = arith.constant 22 : index
    %c0_174 = arith.constant 0 : index
    %202 = vector.load %arg12[%c22, %c0_174] : memref<36x896xf32, #tpu.memory_space<vmem>>, vector<14x640xf32>
    %203 = arith.truncf %202 : vector<14x640xf32> to vector<14x640xbf16>
    %c4_175 = arith.constant 4 : index
    %c0_176 = arith.constant 0 : index
    %c0_177 = arith.constant 0 : index
    %204 = vector.load %arg3[%c4_175, %c0_176, %c0_177] : memref<5x640x128xbf16, #tpu.memory_space<vmem>>, vector<1x640x128xbf16>
    %205 = vector.shape_cast %204 : vector<1x640x128xbf16> to vector<640x128xbf16>
    %cst_178 = arith.constant dense<0.000000e+00> : vector<14x128xf32>
    %206 = tpu.matmul %203, %205, %cst_178 {dimension_numbers = #tpu.dot_dimension_numbers<[1], [0], [0], [1], [0, 0, 1, 1], [], []>} : vector<14x640xbf16>, vector<640x128xbf16>, vector<14x128xf32> -> vector<14x128xf32>
    %207 = arith.addf %201, %206 : vector<14x128xf32>
    %208 = vector.broadcast %68 : vector<1x128xf32> to vector<14x128xf32>
    %209 = arith.addf %207, %208 : vector<14x128xf32>
    %cst_179 = arith.constant 0.000000e+00 : f32
    %210 = vector.broadcast %cst_179 : f32 to vector<14x128xf32>
    %211 = arith.maximumf %209, %210 : vector<14x128xf32>
    %c14 = arith.constant 14 : index
    %c0_180 = arith.constant 0 : index
    %212 = vector.load %arg13[%c14, %c0_180] : memref<28x384xf32, #tpu.memory_space<vmem>>, vector<14x128xf32>
    tpu.vector_store %arg13[%c14, %c0_180], %211 {strides = array<i32>} : memref<28x384xf32, #tpu.memory_space<vmem>>, vector<14x128xf32>,
    %cst_181 = arith.constant 0.000000e+00 : f32
    %213 = vector.broadcast %cst_181 : f32 to vector<14x128xf32>
    %c18_182 = arith.constant 18 : index
    %c128_183 = arith.constant 128 : index
    %214 = vector.load %arg12[%c18_182, %c128_183] : memref<36x896xf32, #tpu.memory_space<vmem>>, vector<14x640xf32>
    %215 = arith.truncf %214 : vector<14x640xf32> to vector<14x640xbf16>
    %c0_184 = arith.constant 0 : index
    %c0_185 = arith.constant 0 : index
    %c0_186 = arith.constant 0 : index
    %216 = vector.load %arg3[%c0_184, %c0_185, %c0_186] : memref<5x640x128xbf16, #tpu.memory_space<vmem>>, vector<1x640x128xbf16>
    %217 = vector.shape_cast %216 : vector<1x640x128xbf16> to vector<640x128xbf16>
    %cst_187 = arith.constant dense<0.000000e+00> : vector<14x128xf32>
    %218 = tpu.matmul %215, %217, %cst_187 {dimension_numbers = #tpu.dot_dimension_numbers<[1], [0], [0], [1], [0, 0, 1, 1], [], []>} : vector<14x640xbf16>, vector<640x128xbf16>, vector<14x128xf32> -> vector<14x128xf32>
    %219 = arith.addf %213, %218 : vector<14x128xf32>
    %c19_188 = arith.constant 19 : index
    %c128_189 = arith.constant 128 : index
    %220 = vector.load %arg12[%c19_188, %c128_189] : memref<36x896xf32, #tpu.memory_space<vmem>>, vector<14x640xf32>
    %221 = arith.truncf %220 : vector<14x640xf32> to vector<14x640xbf16>
    %c1_190 = arith.constant 1 : index
    %c0_191 = arith.constant 0 : index
    %c0_192 = arith.constant 0 : index
    %222 = vector.load %arg3[%c1_190, %c0_191, %c0_192] : memref<5x640x128xbf16, #tpu.memory_space<vmem>>, vector<1x640x128xbf16>
    %223 = vector.shape_cast %222 : vector<1x640x128xbf16> to vector<640x128xbf16>
    %cst_193 = arith.constant dense<0.000000e+00> : vector<14x128xf32>
    %224 = tpu.matmul %221, %223, %cst_193 {dimension_numbers = #tpu.dot_dimension_numbers<[1], [0], [0], [1], [0, 0, 1, 1], [], []>} : vector<14x640xbf16>, vector<640x128xbf16>, vector<14x128xf32> -> vector<14x128xf32>
    %225 = arith.addf %219, %224 : vector<14x128xf32>
    %c20_194 = arith.constant 20 : index
    %c128_195 = arith.constant 128 : index
    %226 = vector.load %arg12[%c20_194, %c128_195] : memref<36x896xf32, #tpu.memory_space<vmem>>, vector<14x640xf32>
    %227 = arith.truncf %226 : vector<14x640xf32> to vector<14x640xbf16>
    %c2_196 = arith.constant 2 : index
    %c0_197 = arith.constant 0 : index
    %c0_198 = arith.constant 0 : index
    %228 = vector.load %arg3[%c2_196, %c0_197, %c0_198] : memref<5x640x128xbf16, #tpu.memory_space<vmem>>, vector<1x640x128xbf16>
    %229 = vector.shape_cast %228 : vector<1x640x128xbf16> to vector<640x128xbf16>
    %cst_199 = arith.constant dense<0.000000e+00> : vector<14x128xf32>
    %230 = tpu.matmul %227, %229, %cst_199 {dimension_numbers = #tpu.dot_dimension_numbers<[1], [0], [0], [1], [0, 0, 1, 1], [], []>} : vector<14x640xbf16>, vector<640x128xbf16>, vector<14x128xf32> -> vector<14x128xf32>
    %231 = arith.addf %225, %230 : vector<14x128xf32>
    %c21_200 = arith.constant 21 : index
    %c128_201 = arith.constant 128 : index
    %232 = vector.load %arg12[%c21_200, %c128_201] : memref<36x896xf32, #tpu.memory_space<vmem>>, vector<14x640xf32>
    %233 = arith.truncf %232 : vector<14x640xf32> to vector<14x640xbf16>
    %c3_202 = arith.constant 3 : index
    %c0_203 = arith.constant 0 : index
    %c0_204 = arith.constant 0 : index
    %234 = vector.load %arg3[%c3_202, %c0_203, %c0_204] : memref<5x640x128xbf16, #tpu.memory_space<vmem>>, vector<1x640x128xbf16>
    %235 = vector.shape_cast %234 : vector<1x640x128xbf16> to vector<640x128xbf16>
    %cst_205 = arith.constant dense<0.000000e+00> : vector<14x128xf32>
    %236 = tpu.matmul %233, %235, %cst_205 {dimension_numbers = #tpu.dot_dimension_numbers<[1], [0], [0], [1], [0, 0, 1, 1], [], []>} : vector<14x640xbf16>, vector<640x128xbf16>, vector<14x128xf32> -> vector<14x128xf32>
    %237 = arith.addf %231, %236 : vector<14x128xf32>
    %c22_206 = arith.constant 22 : index
    %c128_207 = arith.constant 128 : index
    %238 = vector.load %arg12[%c22_206, %c128_207] : memref<36x896xf32, #tpu.memory_space<vmem>>, vector<14x640xf32>
    %239 = arith.truncf %238 : vector<14x640xf32> to vector<14x640xbf16>
    %c4_208 = arith.constant 4 : index
    %c0_209 = arith.constant 0 : index
    %c0_210 = arith.constant 0 : index
    %240 = vector.load %arg3[%c4_208, %c0_209, %c0_210] : memref<5x640x128xbf16, #tpu.memory_space<vmem>>, vector<1x640x128xbf16>
    %241 = vector.shape_cast %240 : vector<1x640x128xbf16> to vector<640x128xbf16>
    %cst_211 = arith.constant dense<0.000000e+00> : vector<14x128xf32>
    %242 = tpu.matmul %239, %241, %cst_211 {dimension_numbers = #tpu.dot_dimension_numbers<[1], [0], [0], [1], [0, 0, 1, 1], [], []>} : vector<14x640xbf16>, vector<640x128xbf16>, vector<14x128xf32> -> vector<14x128xf32>
    %243 = arith.addf %237, %242 : vector<14x128xf32>
    %244 = vector.broadcast %68 : vector<1x128xf32> to vector<14x128xf32>
    %245 = arith.addf %243, %244 : vector<14x128xf32>
    %cst_212 = arith.constant 0.000000e+00 : f32
    %246 = vector.broadcast %cst_212 : f32 to vector<14x128xf32>
    %247 = arith.maximumf %245, %246 : vector<14x128xf32>
    %c14_213 = arith.constant 14 : index
    %c128_214 = arith.constant 128 : index
    %248 = vector.load %arg13[%c14_213, %c128_214] : memref<28x384xf32, #tpu.memory_space<vmem>>, vector<14x128xf32>
    tpu.vector_store %arg13[%c14_213, %c128_214], %247 {strides = array<i32>} : memref<28x384xf32, #tpu.memory_space<vmem>>, vector<14x128xf32>,
    %cst_215 = arith.constant 0.000000e+00 : f32
    %249 = vector.broadcast %cst_215 : f32 to vector<14x128xf32>
    %c18_216 = arith.constant 18 : index
    %c256_217 = arith.constant 256 : index
    %250 = vector.load %arg12[%c18_216, %c256_217] : memref<36x896xf32, #tpu.memory_space<vmem>>, vector<14x640xf32>
    %251 = arith.truncf %250 : vector<14x640xf32> to vector<14x640xbf16>
    %c0_218 = arith.constant 0 : index
    %c0_219 = arith.constant 0 : index
    %c0_220 = arith.constant 0 : index
    %252 = vector.load %arg3[%c0_218, %c0_219, %c0_220] : memref<5x640x128xbf16, #tpu.memory_space<vmem>>, vector<1x640x128xbf16>
    %253 = vector.shape_cast %252 : vector<1x640x128xbf16> to vector<640x128xbf16>
    %cst_221 = arith.constant dense<0.000000e+00> : vector<14x128xf32>
    %254 = tpu.matmul %251, %253, %cst_221 {dimension_numbers = #tpu.dot_dimension_numbers<[1], [0], [0], [1], [0, 0, 1, 1], [], []>} : vector<14x640xbf16>, vector<640x128xbf16>, vector<14x128xf32> -> vector<14x128xf32>
    %255 = arith.addf %249, %254 : vector<14x128xf32>
    %c19_222 = arith.constant 19 : index
    %c256_223 = arith.constant 256 : index
    %256 = vector.load %arg12[%c19_222, %c256_223] : memref<36x896xf32, #tpu.memory_space<vmem>>, vector<14x640xf32>
    %257 = arith.truncf %256 : vector<14x640xf32> to vector<14x640xbf16>
    %c1_224 = arith.constant 1 : index
    %c0_225 = arith.constant 0 : index
    %c0_226 = arith.constant 0 : index
    %258 = vector.load %arg3[%c1_224, %c0_225, %c0_226] : memref<5x640x128xbf16, #tpu.memory_space<vmem>>, vector<1x640x128xbf16>
    %259 = vector.shape_cast %258 : vector<1x640x128xbf16> to vector<640x128xbf16>
    %cst_227 = arith.constant dense<0.000000e+00> : vector<14x128xf32>
    %260 = tpu.matmul %257, %259, %cst_227 {dimension_numbers = #tpu.dot_dimension_numbers<[1], [0], [0], [1], [0, 0, 1, 1], [], []>} : vector<14x640xbf16>, vector<640x128xbf16>, vector<14x128xf32> -> vector<14x128xf32>
    %261 = arith.addf %255, %260 : vector<14x128xf32>
    %c20_228 = arith.constant 20 : index
    %c256_229 = arith.constant 256 : index
    %262 = vector.load %arg12[%c20_228, %c256_229] : memref<36x896xf32, #tpu.memory_space<vmem>>, vector<14x640xf32>
    %263 = arith.truncf %262 : vector<14x640xf32> to vector<14x640xbf16>
    %c2_230 = arith.constant 2 : index
    %c0_231 = arith.constant 0 : index
    %c0_232 = arith.constant 0 : index
    %264 = vector.load %arg3[%c2_230, %c0_231, %c0_232] : memref<5x640x128xbf16, #tpu.memory_space<vmem>>, vector<1x640x128xbf16>
    %265 = vector.shape_cast %264 : vector<1x640x128xbf16> to vector<640x128xbf16>
    %cst_233 = arith.constant dense<0.000000e+00> : vector<14x128xf32>
    %266 = tpu.matmul %263, %265, %cst_233 {dimension_numbers = #tpu.dot_dimension_numbers<[1], [0], [0], [1], [0, 0, 1, 1], [], []>} : vector<14x640xbf16>, vector<640x128xbf16>, vector<14x128xf32> -> vector<14x128xf32>
    %267 = arith.addf %261, %266 : vector<14x128xf32>
    %c21_234 = arith.constant 21 : index
    %c256_235 = arith.constant 256 : index
    %268 = vector.load %arg12[%c21_234, %c256_235] : memref<36x896xf32, #tpu.memory_space<vmem>>, vector<14x640xf32>
    %269 = arith.truncf %268 : vector<14x640xf32> to vector<14x640xbf16>
    %c3_236 = arith.constant 3 : index
    %c0_237 = arith.constant 0 : index
    %c0_238 = arith.constant 0 : index
    %270 = vector.load %arg3[%c3_236, %c0_237, %c0_238] : memref<5x640x128xbf16, #tpu.memory_space<vmem>>, vector<1x640x128xbf16>
    %271 = vector.shape_cast %270 : vector<1x640x128xbf16> to vector<640x128xbf16>
    %cst_239 = arith.constant dense<0.000000e+00> : vector<14x128xf32>
    %272 = tpu.matmul %269, %271, %cst_239 {dimension_numbers = #tpu.dot_dimension_numbers<[1], [0], [0], [1], [0, 0, 1, 1], [], []>} : vector<14x640xbf16>, vector<640x128xbf16>, vector<14x128xf32> -> vector<14x128xf32>
    %273 = arith.addf %267, %272 : vector<14x128xf32>
    %c22_240 = arith.constant 22 : index
    %c256_241 = arith.constant 256 : index
    %274 = vector.load %arg12[%c22_240, %c256_241] : memref<36x896xf32, #tpu.memory_space<vmem>>, vector<14x640xf32>
    %275 = arith.truncf %274 : vector<14x640xf32> to vector<14x640xbf16>
    %c4_242 = arith.constant 4 : index
    %c0_243 = arith.constant 0 : index
    %c0_244 = arith.constant 0 : index
    %276 = vector.load %arg3[%c4_242, %c0_243, %c0_244] : memref<5x640x128xbf16, #tpu.memory_space<vmem>>, vector<1x640x128xbf16>
    %277 = vector.shape_cast %276 : vector<1x640x128xbf16> to vector<640x128xbf16>
    %cst_245 = arith.constant dense<0.000000e+00> : vector<14x128xf32>
    %278 = tpu.matmul %275, %277, %cst_245 {dimension_numbers = #tpu.dot_dimension_numbers<[1], [0], [0], [1], [0, 0, 1, 1], [], []>} : vector<14x640xbf16>, vector<640x128xbf16>, vector<14x128xf32> -> vector<14x128xf32>
    %279 = arith.addf %273, %278 : vector<14x128xf32>
    %280 = vector.broadcast %68 : vector<1x128xf32> to vector<14x128xf32>
    %281 = arith.addf %279, %280 : vector<14x128xf32>
    %cst_246 = arith.constant 0.000000e+00 : f32
    %282 = vector.broadcast %cst_246 : f32 to vector<14x128xf32>
    %283 = arith.maximumf %281, %282 : vector<14x128xf32>
    %c14_247 = arith.constant 14 : index
    %c256_248 = arith.constant 256 : index
    %284 = vector.load %arg13[%c14_247, %c256_248] : memref<28x384xf32, #tpu.memory_space<vmem>>, vector<14x128xf32>
    tpu.vector_store %arg13[%c14_247, %c256_248], %283 {strides = array<i32>} : memref<28x384xf32, #tpu.memory_space<vmem>>, vector<14x128xf32>,
    %c0_249 = arith.constant 0 : index
    %c0_250 = arith.constant 0 : index
    %285 = vector.load %arg6[%c0_249, %c0_250] : memref<1x128xf32, #tpu.memory_space<vmem>>, vector<1x128xf32>
    %cst_251 = arith.constant 0.000000e+00 : f32
    %286 = vector.broadcast %cst_251 : f32 to vector<12x128xf32>
    %c0_252 = arith.constant 0 : index
    %c0_253 = arith.constant 0 : index
    %287 = vector.load %arg13[%c0_252, %c0_253] : memref<28x384xf32, #tpu.memory_space<vmem>>, vector<12x384xf32>
    %288 = arith.truncf %287 : vector<12x384xf32> to vector<12x384xbf16>
    %c0_254 = arith.constant 0 : index
    %c0_255 = arith.constant 0 : index
    %c0_256 = arith.constant 0 : index
    %289 = vector.load %arg5[%c0_254, %c0_255, %c0_256] : memref<3x384x128xbf16, #tpu.memory_space<vmem>>, vector<1x384x128xbf16>
    %290 = vector.shape_cast %289 : vector<1x384x128xbf16> to vector<384x128xbf16>
    %cst_257 = arith.constant dense<0.000000e+00> : vector<12x128xf32>
    %291 = tpu.matmul %288, %290, %cst_257 {dimension_numbers = #tpu.dot_dimension_numbers<[1], [0], [0], [1], [0, 0, 1, 1], [], []>} : vector<12x384xbf16>, vector<384x128xbf16>, vector<12x128xf32> -> vector<12x128xf32>
    %292 = arith.addf %286, %291 : vector<12x128xf32>
    %c1_258 = arith.constant 1 : index
    %c0_259 = arith.constant 0 : index
    %293 = vector.load %arg13[%c1_258, %c0_259] : memref<28x384xf32, #tpu.memory_space<vmem>>, vector<12x384xf32>
    %294 = arith.truncf %293 : vector<12x384xf32> to vector<12x384xbf16>
    %c1_260 = arith.constant 1 : index
    %c0_261 = arith.constant 0 : index
    %c0_262 = arith.constant 0 : index
    %295 = vector.load %arg5[%c1_260, %c0_261, %c0_262] : memref<3x384x128xbf16, #tpu.memory_space<vmem>>, vector<1x384x128xbf16>
    %296 = vector.shape_cast %295 : vector<1x384x128xbf16> to vector<384x128xbf16>
    %cst_263 = arith.constant dense<0.000000e+00> : vector<12x128xf32>
    %297 = tpu.matmul %294, %296, %cst_263 {dimension_numbers = #tpu.dot_dimension_numbers<[1], [0], [0], [1], [0, 0, 1, 1], [], []>} : vector<12x384xbf16>, vector<384x128xbf16>, vector<12x128xf32> -> vector<12x128xf32>
    %298 = arith.addf %292, %297 : vector<12x128xf32>
    %c2_264 = arith.constant 2 : index
    %c0_265 = arith.constant 0 : index
    %299 = vector.load %arg13[%c2_264, %c0_265] : memref<28x384xf32, #tpu.memory_space<vmem>>, vector<12x384xf32>
    %300 = arith.truncf %299 : vector<12x384xf32> to vector<12x384xbf16>
    %c2_266 = arith.constant 2 : index
    %c0_267 = arith.constant 0 : index
    %c0_268 = arith.constant 0 : index
    %301 = vector.load %arg5[%c2_266, %c0_267, %c0_268] : memref<3x384x128xbf16, #tpu.memory_space<vmem>>, vector<1x384x128xbf16>
    %302 = vector.shape_cast %301 : vector<1x384x128xbf16> to vector<384x128xbf16>
    %cst_269 = arith.constant dense<0.000000e+00> : vector<12x128xf32>
    %303 = tpu.matmul %300, %302, %cst_269 {dimension_numbers = #tpu.dot_dimension_numbers<[1], [0], [0], [1], [0, 0, 1, 1], [], []>} : vector<12x384xbf16>, vector<384x128xbf16>, vector<12x128xf32> -> vector<12x128xf32>
    %304 = arith.addf %298, %303 : vector<12x128xf32>
    %305 = vector.broadcast %285 : vector<1x128xf32> to vector<12x128xf32>
    %306 = arith.addf %304, %305 : vector<12x128xf32>
    %cst_270 = arith.constant 0.000000e+00 : f32
    %307 = vector.broadcast %cst_270 : f32 to vector<12x128xf32>
    %308 = arith.maximumf %306, %307 : vector<12x128xf32>
    %cst_271 = arith.constant 0.000000e+00 : f32
    %309 = vector.broadcast %cst_271 : f32 to vector<12x128xf32>
    %c14_272 = arith.constant 14 : index
    %c0_273 = arith.constant 0 : index
    %310 = vector.load %arg13[%c14_272, %c0_273] : memref<28x384xf32, #tpu.memory_space<vmem>>, vector<12x384xf32>
    %311 = arith.truncf %310 : vector<12x384xf32> to vector<12x384xbf16>
    %c0_274 = arith.constant 0 : index
    %c0_275 = arith.constant 0 : index
    %c0_276 = arith.constant 0 : index
    %312 = vector.load %arg5[%c0_274, %c0_275, %c0_276] : memref<3x384x128xbf16, #tpu.memory_space<vmem>>, vector<1x384x128xbf16>
    %313 = vector.shape_cast %312 : vector<1x384x128xbf16> to vector<384x128xbf16>
    %cst_277 = arith.constant dense<0.000000e+00> : vector<12x128xf32>
    %314 = tpu.matmul %311, %313, %cst_277 {dimension_numbers = #tpu.dot_dimension_numbers<[1], [0], [0], [1], [0, 0, 1, 1], [], []>} : vector<12x384xbf16>, vector<384x128xbf16>, vector<12x128xf32> -> vector<12x128xf32>
    %315 = arith.addf %309, %314 : vector<12x128xf32>
    %c15 = arith.constant 15 : index
    %c0_278 = arith.constant 0 : index
    %316 = vector.load %arg13[%c15, %c0_278] : memref<28x384xf32, #tpu.memory_space<vmem>>, vector<12x384xf32>
    %317 = arith.truncf %316 : vector<12x384xf32> to vector<12x384xbf16>
    %c1_279 = arith.constant 1 : index
    %c0_280 = arith.constant 0 : index
    %c0_281 = arith.constant 0 : index
    %318 = vector.load %arg5[%c1_279, %c0_280, %c0_281] : memref<3x384x128xbf16, #tpu.memory_space<vmem>>, vector<1x384x128xbf16>
    %319 = vector.shape_cast %318 : vector<1x384x128xbf16> to vector<384x128xbf16>
    %cst_282 = arith.constant dense<0.000000e+00> : vector<12x128xf32>
    %320 = tpu.matmul %317, %319, %cst_282 {dimension_numbers = #tpu.dot_dimension_numbers<[1], [0], [0], [1], [0, 0, 1, 1], [], []>} : vector<12x384xbf16>, vector<384x128xbf16>, vector<12x128xf32> -> vector<12x128xf32>
    %321 = arith.addf %315, %320 : vector<12x128xf32>
    %c16 = arith.constant 16 : index
    %c0_283 = arith.constant 0 : index
    %322 = vector.load %arg13[%c16, %c0_283] : memref<28x384xf32, #tpu.memory_space<vmem>>, vector<12x384xf32>
    %323 = arith.truncf %322 : vector<12x384xf32> to vector<12x384xbf16>
    %c2_284 = arith.constant 2 : index
    %c0_285 = arith.constant 0 : index
    %c0_286 = arith.constant 0 : index
    %324 = vector.load %arg5[%c2_284, %c0_285, %c0_286] : memref<3x384x128xbf16, #tpu.memory_space<vmem>>, vector<1x384x128xbf16>
    %325 = vector.shape_cast %324 : vector<1x384x128xbf16> to vector<384x128xbf16>
    %cst_287 = arith.constant dense<0.000000e+00> : vector<12x128xf32>
    %326 = tpu.matmul %323, %325, %cst_287 {dimension_numbers = #tpu.dot_dimension_numbers<[1], [0], [0], [1], [0, 0, 1, 1], [], []>} : vector<12x384xbf16>, vector<384x128xbf16>, vector<12x128xf32> -> vector<12x128xf32>
    %327 = arith.addf %321, %326 : vector<12x128xf32>
    %328 = vector.broadcast %285 : vector<1x128xf32> to vector<12x128xf32>
    %329 = arith.addf %327, %328 : vector<12x128xf32>
    %cst_288 = arith.constant 0.000000e+00 : f32
    %330 = vector.broadcast %cst_288 : f32 to vector<12x128xf32>
    %331 = arith.maximumf %329, %330 : vector<12x128xf32>
    %cst_289 = arith.constant 0.000000e+00 : f32
    %332 = vector.broadcast %cst_289 : f32 to vector<2x256xf32>
    %333 = vector.extract_strided_slice %308 {offsets = [0, 0], sizes = [1, 128], strides = [1, 1]} : vector<12x128xf32> to vector<1x128xf32>
    %334 = vector.extract_strided_slice %331 {offsets = [0, 0], sizes = [1, 128], strides = [1, 1]} : vector<12x128xf32> to vector<1x128xf32>
    %335 = tpu.concatenate %333, %334 in 0 : vector<1x128xf32>, vector<1x128xf32> -> vector<2x128xf32>
    %336 = arith.truncf %335 : vector<2x128xf32> to vector<2x128xbf16>
    %c0_290 = arith.constant 0 : index
    %c0_291 = arith.constant 0 : index
    %c0_292 = arith.constant 0 : index
    %337 = vector.load %arg7[%c0_290, %c0_291, %c0_292] : memref<12x128x256xbf16, #tpu.memory_space<vmem>>, vector<1x128x256xbf16>
    %338 = vector.shape_cast %337 : vector<1x128x256xbf16> to vector<128x256xbf16>
    %cst_293 = arith.constant dense<0.000000e+00> : vector<2x256xf32>
    %339 = tpu.matmul %336, %338, %cst_293 {dimension_numbers = #tpu.dot_dimension_numbers<[1], [0], [0], [1], [0, 0, 1, 1], [], []>} : vector<2x128xbf16>, vector<128x256xbf16>, vector<2x256xf32> -> vector<2x256xf32>
    %340 = arith.addf %332, %339 : vector<2x256xf32>
    %341 = vector.extract_strided_slice %308 {offsets = [1, 0], sizes = [1, 128], strides = [1, 1]} : vector<12x128xf32> to vector<1x128xf32>
    %342 = vector.extract_strided_slice %331 {offsets = [1, 0], sizes = [1, 128], strides = [1, 1]} : vector<12x128xf32> to vector<1x128xf32>
    %343 = tpu.concatenate %341, %342 in 0 : vector<1x128xf32>, vector<1x128xf32> -> vector<2x128xf32>
    %344 = arith.truncf %343 : vector<2x128xf32> to vector<2x128xbf16>
    %c1_294 = arith.constant 1 : index
    %c0_295 = arith.constant 0 : index
    %c0_296 = arith.constant 0 : index
    %345 = vector.load %arg7[%c1_294, %c0_295, %c0_296] : memref<12x128x256xbf16, #tpu.memory_space<vmem>>, vector<1x128x256xbf16>
    %346 = vector.shape_cast %345 : vector<1x128x256xbf16> to vector<128x256xbf16>
    %cst_297 = arith.constant dense<0.000000e+00> : vector<2x256xf32>
    %347 = tpu.matmul %344, %346, %cst_297 {dimension_numbers = #tpu.dot_dimension_numbers<[1], [0], [0], [1], [0, 0, 1, 1], [], []>} : vector<2x128xbf16>, vector<128x256xbf16>, vector<2x256xf32> -> vector<2x256xf32>
    %348 = arith.addf %340, %347 : vector<2x256xf32>
    %349 = vector.extract_strided_slice %308 {offsets = [2, 0], sizes = [1, 128], strides = [1, 1]} : vector<12x128xf32> to vector<1x128xf32>
    %350 = vector.extract_strided_slice %331 {offsets = [2, 0], sizes = [1, 128], strides = [1, 1]} : vector<12x128xf32> to vector<1x128xf32>
    %351 = tpu.concatenate %349, %350 in 0 : vector<1x128xf32>, vector<1x128xf32> -> vector<2x128xf32>
    %352 = arith.truncf %351 : vector<2x128xf32> to vector<2x128xbf16>
    %c2_298 = arith.constant 2 : index
    %c0_299 = arith.constant 0 : index
    %c0_300 = arith.constant 0 : index
    %353 = vector.load %arg7[%c2_298, %c0_299, %c0_300] : memref<12x128x256xbf16, #tpu.memory_space<vmem>>, vector<1x128x256xbf16>
    %354 = vector.shape_cast %353 : vector<1x128x256xbf16> to vector<128x256xbf16>
    %cst_301 = arith.constant dense<0.000000e+00> : vector<2x256xf32>
    %355 = tpu.matmul %352, %354, %cst_301 {dimension_numbers = #tpu.dot_dimension_numbers<[1], [0], [0], [1], [0, 0, 1, 1], [], []>} : vector<2x128xbf16>, vector<128x256xbf16>, vector<2x256xf32> -> vector<2x256xf32>
    %356 = arith.addf %348, %355 : vector<2x256xf32>
    %357 = vector.extract_strided_slice %308 {offsets = [3, 0], sizes = [1, 128], strides = [1, 1]} : vector<12x128xf32> to vector<1x128xf32>
    %358 = vector.extract_strided_slice %331 {offsets = [3, 0], sizes = [1, 128], strides = [1, 1]} : vector<12x128xf32> to vector<1x128xf32>
    %359 = tpu.concatenate %357, %358 in 0 : vector<1x128xf32>, vector<1x128xf32> -> vector<2x128xf32>
    %360 = arith.truncf %359 : vector<2x128xf32> to vector<2x128xbf16>
    %c3_302 = arith.constant 3 : index
    %c0_303 = arith.constant 0 : index
    %c0_304 = arith.constant 0 : index
    %361 = vector.load %arg7[%c3_302, %c0_303, %c0_304] : memref<12x128x256xbf16, #tpu.memory_space<vmem>>, vector<1x128x256xbf16>
    %362 = vector.shape_cast %361 : vector<1x128x256xbf16> to vector<128x256xbf16>
    %cst_305 = arith.constant dense<0.000000e+00> : vector<2x256xf32>
    %363 = tpu.matmul %360, %362, %cst_305 {dimension_numbers = #tpu.dot_dimension_numbers<[1], [0], [0], [1], [0, 0, 1, 1], [], []>} : vector<2x128xbf16>, vector<128x256xbf16>, vector<2x256xf32> -> vector<2x256xf32>
    %364 = arith.addf %356, %363 : vector<2x256xf32>
    %365 = vector.extract_strided_slice %308 {offsets = [4, 0], sizes = [1, 128], strides = [1, 1]} : vector<12x128xf32> to vector<1x128xf32>
    %366 = vector.extract_strided_slice %331 {offsets = [4, 0], sizes = [1, 128], strides = [1, 1]} : vector<12x128xf32> to vector<1x128xf32>
    %367 = tpu.concatenate %365, %366 in 0 : vector<1x128xf32>, vector<1x128xf32> -> vector<2x128xf32>
    %368 = arith.truncf %367 : vector<2x128xf32> to vector<2x128xbf16>
    %c4_306 = arith.constant 4 : index
    %c0_307 = arith.constant 0 : index
    %c0_308 = arith.constant 0 : index
    %369 = vector.load %arg7[%c4_306, %c0_307, %c0_308] : memref<12x128x256xbf16, #tpu.memory_space<vmem>>, vector<1x128x256xbf16>
    %370 = vector.shape_cast %369 : vector<1x128x256xbf16> to vector<128x256xbf16>
    %cst_309 = arith.constant dense<0.000000e+00> : vector<2x256xf32>
    %371 = tpu.matmul %368, %370, %cst_309 {dimension_numbers = #tpu.dot_dimension_numbers<[1], [0], [0], [1], [0, 0, 1, 1], [], []>} : vector<2x128xbf16>, vector<128x256xbf16>, vector<2x256xf32> -> vector<2x256xf32>
    %372 = arith.addf %364, %371 : vector<2x256xf32>
    %373 = vector.extract_strided_slice %308 {offsets = [5, 0], sizes = [1, 128], strides = [1, 1]} : vector<12x128xf32> to vector<1x128xf32>
    %374 = vector.extract_strided_slice %331 {offsets = [5, 0], sizes = [1, 128], strides = [1, 1]} : vector<12x128xf32> to vector<1x128xf32>
    %375 = tpu.concatenate %373, %374 in 0 : vector<1x128xf32>, vector<1x128xf32> -> vector<2x128xf32>
    %376 = arith.truncf %375 : vector<2x128xf32> to vector<2x128xbf16>
    %c5 = arith.constant 5 : index
    %c0_310 = arith.constant 0 : index
    %c0_311 = arith.constant 0 : index
    %377 = vector.load %arg7[%c5, %c0_310, %c0_311] : memref<12x128x256xbf16, #tpu.memory_space<vmem>>, vector<1x128x256xbf16>
    %378 = vector.shape_cast %377 : vector<1x128x256xbf16> to vector<128x256xbf16>
    %cst_312 = arith.constant dense<0.000000e+00> : vector<2x256xf32>
    %379 = tpu.matmul %376, %378, %cst_312 {dimension_numbers = #tpu.dot_dimension_numbers<[1], [0], [0], [1], [0, 0, 1, 1], [], []>} : vector<2x128xbf16>, vector<128x256xbf16>, vector<2x256xf32> -> vector<2x256xf32>
    %380 = arith.addf %372, %379 : vector<2x256xf32>
    %381 = vector.extract_strided_slice %308 {offsets = [6, 0], sizes = [1, 128], strides = [1, 1]} : vector<12x128xf32> to vector<1x128xf32>
    %382 = vector.extract_strided_slice %331 {offsets = [6, 0], sizes = [1, 128], strides = [1, 1]} : vector<12x128xf32> to vector<1x128xf32>
    %383 = tpu.concatenate %381, %382 in 0 : vector<1x128xf32>, vector<1x128xf32> -> vector<2x128xf32>
    %384 = arith.truncf %383 : vector<2x128xf32> to vector<2x128xbf16>
    %c6 = arith.constant 6 : index
    %c0_313 = arith.constant 0 : index
    %c0_314 = arith.constant 0 : index
    %385 = vector.load %arg7[%c6, %c0_313, %c0_314] : memref<12x128x256xbf16, #tpu.memory_space<vmem>>, vector<1x128x256xbf16>
    %386 = vector.shape_cast %385 : vector<1x128x256xbf16> to vector<128x256xbf16>
    %cst_315 = arith.constant dense<0.000000e+00> : vector<2x256xf32>
    %387 = tpu.matmul %384, %386, %cst_315 {dimension_numbers = #tpu.dot_dimension_numbers<[1], [0], [0], [1], [0, 0, 1, 1], [], []>} : vector<2x128xbf16>, vector<128x256xbf16>, vector<2x256xf32> -> vector<2x256xf32>
    %388 = arith.addf %380, %387 : vector<2x256xf32>
    %389 = vector.extract_strided_slice %308 {offsets = [7, 0], sizes = [1, 128], strides = [1, 1]} : vector<12x128xf32> to vector<1x128xf32>
    %390 = vector.extract_strided_slice %331 {offsets = [7, 0], sizes = [1, 128], strides = [1, 1]} : vector<12x128xf32> to vector<1x128xf32>
    %391 = tpu.concatenate %389, %390 in 0 : vector<1x128xf32>, vector<1x128xf32> -> vector<2x128xf32>
    %392 = arith.truncf %391 : vector<2x128xf32> to vector<2x128xbf16>
    %c7 = arith.constant 7 : index
    %c0_316 = arith.constant 0 : index
    %c0_317 = arith.constant 0 : index
    %393 = vector.load %arg7[%c7, %c0_316, %c0_317] : memref<12x128x256xbf16, #tpu.memory_space<vmem>>, vector<1x128x256xbf16>
    %394 = vector.shape_cast %393 : vector<1x128x256xbf16> to vector<128x256xbf16>
    %cst_318 = arith.constant dense<0.000000e+00> : vector<2x256xf32>
    %395 = tpu.matmul %392, %394, %cst_318 {dimension_numbers = #tpu.dot_dimension_numbers<[1], [0], [0], [1], [0, 0, 1, 1], [], []>} : vector<2x128xbf16>, vector<128x256xbf16>, vector<2x256xf32> -> vector<2x256xf32>
    %396 = arith.addf %388, %395 : vector<2x256xf32>
    %397 = vector.extract_strided_slice %308 {offsets = [8, 0], sizes = [1, 128], strides = [1, 1]} : vector<12x128xf32> to vector<1x128xf32>
    %398 = vector.extract_strided_slice %331 {offsets = [8, 0], sizes = [1, 128], strides = [1, 1]} : vector<12x128xf32> to vector<1x128xf32>
    %399 = tpu.concatenate %397, %398 in 0 : vector<1x128xf32>, vector<1x128xf32> -> vector<2x128xf32>
    %400 = arith.truncf %399 : vector<2x128xf32> to vector<2x128xbf16>
    %c8 = arith.constant 8 : index
    %c0_319 = arith.constant 0 : index
    %c0_320 = arith.constant 0 : index
    %401 = vector.load %arg7[%c8, %c0_319, %c0_320] : memref<12x128x256xbf16, #tpu.memory_space<vmem>>, vector<1x128x256xbf16>
    %402 = vector.shape_cast %401 : vector<1x128x256xbf16> to vector<128x256xbf16>
    %cst_321 = arith.constant dense<0.000000e+00> : vector<2x256xf32>
    %403 = tpu.matmul %400, %402, %cst_321 {dimension_numbers = #tpu.dot_dimension_numbers<[1], [0], [0], [1], [0, 0, 1, 1], [], []>} : vector<2x128xbf16>, vector<128x256xbf16>, vector<2x256xf32> -> vector<2x256xf32>
    %404 = arith.addf %396, %403 : vector<2x256xf32>
    %405 = vector.extract_strided_slice %308 {offsets = [9, 0], sizes = [1, 128], strides = [1, 1]} : vector<12x128xf32> to vector<1x128xf32>
    %406 = vector.extract_strided_slice %331 {offsets = [9, 0], sizes = [1, 128], strides = [1, 1]} : vector<12x128xf32> to vector<1x128xf32>
    %407 = tpu.concatenate %405, %406 in 0 : vector<1x128xf32>, vector<1x128xf32> -> vector<2x128xf32>
    %408 = arith.truncf %407 : vector<2x128xf32> to vector<2x128xbf16>
    %c9 = arith.constant 9 : index
    %c0_322 = arith.constant 0 : index
    %c0_323 = arith.constant 0 : index
    %409 = vector.load %arg7[%c9, %c0_322, %c0_323] : memref<12x128x256xbf16, #tpu.memory_space<vmem>>, vector<1x128x256xbf16>
    %410 = vector.shape_cast %409 : vector<1x128x256xbf16> to vector<128x256xbf16>
    %cst_324 = arith.constant dense<0.000000e+00> : vector<2x256xf32>
    %411 = tpu.matmul %408, %410, %cst_324 {dimension_numbers = #tpu.dot_dimension_numbers<[1], [0], [0], [1], [0, 0, 1, 1], [], []>} : vector<2x128xbf16>, vector<128x256xbf16>, vector<2x256xf32> -> vector<2x256xf32>
    %412 = arith.addf %404, %411 : vector<2x256xf32>
    %413 = vector.extract_strided_slice %308 {offsets = [10, 0], sizes = [1, 128], strides = [1, 1]} : vector<12x128xf32> to vector<1x128xf32>
    %414 = vector.extract_strided_slice %331 {offsets = [10, 0], sizes = [1, 128], strides = [1, 1]} : vector<12x128xf32> to vector<1x128xf32>
    %415 = tpu.concatenate %413, %414 in 0 : vector<1x128xf32>, vector<1x128xf32> -> vector<2x128xf32>
    %416 = arith.truncf %415 : vector<2x128xf32> to vector<2x128xbf16>
    %c10 = arith.constant 10 : index
    %c0_325 = arith.constant 0 : index
    %c0_326 = arith.constant 0 : index
    %417 = vector.load %arg7[%c10, %c0_325, %c0_326] : memref<12x128x256xbf16, #tpu.memory_space<vmem>>, vector<1x128x256xbf16>
    %418 = vector.shape_cast %417 : vector<1x128x256xbf16> to vector<128x256xbf16>
    %cst_327 = arith.constant dense<0.000000e+00> : vector<2x256xf32>
    %419 = tpu.matmul %416, %418, %cst_327 {dimension_numbers = #tpu.dot_dimension_numbers<[1], [0], [0], [1], [0, 0, 1, 1], [], []>} : vector<2x128xbf16>, vector<128x256xbf16>, vector<2x256xf32> -> vector<2x256xf32>
    %420 = arith.addf %412, %419 : vector<2x256xf32>
    %421 = vector.extract_strided_slice %308 {offsets = [11, 0], sizes = [1, 128], strides = [1, 1]} : vector<12x128xf32> to vector<1x128xf32>
    %422 = vector.extract_strided_slice %331 {offsets = [11, 0], sizes = [1, 128], strides = [1, 1]} : vector<12x128xf32> to vector<1x128xf32>
    %423 = tpu.concatenate %421, %422 in 0 : vector<1x128xf32>, vector<1x128xf32> -> vector<2x128xf32>
    %424 = arith.truncf %423 : vector<2x128xf32> to vector<2x128xbf16>
    %c11 = arith.constant 11 : index
    %c0_328 = arith.constant 0 : index
    %c0_329 = arith.constant 0 : index
    %425 = vector.load %arg7[%c11, %c0_328, %c0_329] : memref<12x128x256xbf16, #tpu.memory_space<vmem>>, vector<1x128x256xbf16>
    %426 = vector.shape_cast %425 : vector<1x128x256xbf16> to vector<128x256xbf16>
    %cst_330 = arith.constant dense<0.000000e+00> : vector<2x256xf32>
    %427 = tpu.matmul %424, %426, %cst_330 {dimension_numbers = #tpu.dot_dimension_numbers<[1], [0], [0], [1], [0, 0, 1, 1], [], []>} : vector<2x128xbf16>, vector<128x256xbf16>, vector<2x256xf32> -> vector<2x256xf32>
    %428 = arith.addf %420, %427 : vector<2x256xf32>
    %c0_331 = arith.constant 0 : index
    %c0_332 = arith.constant 0 : index
    %429 = vector.load %arg8[%c0_331, %c0_332] : memref<1x256xf32, #tpu.memory_space<vmem>>, vector<1x256xf32>
    %430 = vector.broadcast %429 : vector<1x256xf32> to vector<2x256xf32>
    %431 = arith.addf %428, %430 : vector<2x256xf32>
    %cst_333 = arith.constant 0.000000e+00 : f32
    %432 = vector.broadcast %cst_333 : f32 to vector<2x256xf32>
    %433 = arith.maximumf %431, %432 : vector<2x256xf32>
    %434 = arith.truncf %433 : vector<2x256xf32> to vector<2x256xbf16>
    %c0_334 = arith.constant 0 : index
    %c0_335 = arith.constant 0 : index
    %435 = vector.load %arg9[%c0_334, %c0_335] : memref<256x128xbf16, #tpu.memory_space<vmem>>, vector<256x128xbf16>
    %cst_336 = arith.constant dense<0.000000e+00> : vector<2x128xf32>
    %436 = tpu.matmul %434, %435, %cst_336 {dimension_numbers = #tpu.dot_dimension_numbers<[1], [0], [0], [1], [0, 0, 1, 1], [], []>} : vector<2x256xbf16>, vector<256x128xbf16>, vector<2x128xf32> -> vector<2x128xf32>
    %c0_337 = arith.constant 0 : index
    %c0_338 = arith.constant 0 : index
    %437 = vector.load %arg10[%c0_337, %c0_338] : memref<1x128xf32, #tpu.memory_space<vmem>>, vector<1x128xf32>
    %438 = vector.broadcast %437 : vector<1x128xf32> to vector<2x128xf32>
    %439 = arith.addf %436, %438 : vector<2x128xf32>
    %c0_339 = arith.constant 0 : index
    %c0_340 = arith.constant 0 : index
    %440 = vector.load %arg11[%c0_339, %c0_340] : memref<2x128xf32, #tpu.memory_space<vmem>>, vector<2x128xf32>
    tpu.vector_store %arg11[%c0_339, %c0_340], %439 {strides = array<i32>} : memref<2x128xf32, #tpu.memory_space<vmem>>, vector<2x128xf32>,
    return
  }
}

</mosaic_0001>

<bundles_post_ra>
// kernel: net_forward.1
= control target key start
LH: loop header
LB: loop body
LE: loop exit
PB: predicated region body
PF: predicated region fallthrough
CT: control target
= control target key end

     0   :  { %16 = vsyncpa [#allocation5], 0  ;;  %s26582_s0 = inlined_call_operand.vmem [shape: f32[5,32,16], index: 0, kind: input, shape index: {}]   ;;  %s26583_s1 = inlined_call_operand.vmem [shape: bf16[16,128], index: 1, kind: input, shape index: {}]   ;;  %s26584_s2 = inlined_call_operand.vmem [shape: f32[1,128], index: 2, kind: input, shape index: {}]   ;;  %s26585_s3 = inlined_call_operand.hbm [shape: bf16[5,640,128], index: 3, kind: input, shape index: {}]   ;;  %s26586_s4 = inlined_call_operand.vmem [shape: f32[1,128], index: 4, kind: input, shape index: {}]   ;;  %s26587_s5 = inlined_call_operand.vmem [shape: bf16[3,384,128], index: 5, kind: input, shape index: {}]   ;;  %s26588_s6 = inlined_call_operand.vmem [shape: f32[1,128], index: 6, kind: input, shape index: {}]   ;;  %s26589_s7 = inlined_call_operand.hbm [shape: bf16[12,128,256], index: 7, kind: input, shape index: {}]   ;;  %s26590_s8 = inlined_call_operand.vmem [shape: f32[1,256], index: 8, kind: input, shape index: {}]   ;;  %s26591_s9 = inlined_call_operand.vmem [shape: bf16[256,128], index: 9, kind: input, shape index: {}]   ;;  %s26592_s10 = inlined_call_operand.vmem [shape: f32[1,128], index: 10, kind: input, shape index: {}]   ;;  %s26593_s11 = inlined_call_operand.vmem [shape: f32[2,128], index: 11, kind: output, shape index: {}]  }
   0x1   :  { %17 = vsyncpa [#allocation7], 0  ;;  %s24764_s17 = smov [#allocation4]  }
   0x2   :  { %s29_s18 = sshll.u32 %s24764_s17, 4  ;;  %s30_s18 = int_to_ptr.vmem [resolvable:$true] %s29_s18 }
   0x3   :  { %s24728_s19 = scalar_lea.vmem %s30_s18, 25600  ;;  %p24733_p1 = scmp.lt.s32.totalorder %s30_s18, %s30_s18 }
   0x4   :  { %p24729_p0 = scmp.ne.s32.totalorder %s30_s18, %s24728_s19  ;;  %p24734_p2 = scmp.lt.s32.totalorder %s24728_s19, %s24728_s19 }
   0x6   :  { %p24735_p3 = por %p24734_p2, %p24733_p1 }
   0x8   :  { %p24736_p4 = pnand %p24735_p3, %p24729_p0 }
   0xa   :  { %24739 = shalt.err (!%p24736_p4)
}
   0xb   :  { %s24765_s20 = smov 64   ;;  %s24766_s21 = smov 4  }
   0xc   :  { %35 = dma.hbm_to_vmem [thread:$0]  %s26585_s3, 25600, %s30_s18, [#allocation5], %s24765_s20, %s24765_s20, %s24766_s21  }
   0xd   :  { %s24767_s24 = smov [#allocation6]  }
   0xe   :  { %s47_s25 = sshll.u32 %s24767_s24, 4  ;;  %s48_s25 = int_to_ptr.vmem [resolvable:$true] %s47_s25 }
   0xf   :  { %s24748_s26 = scalar_lea.vmem %s48_s25, 24576  ;;  %p24753_p6 = scmp.lt.s32.totalorder %s48_s25, %s48_s25 }
  0x10   :  { %p24749_p5 = scmp.ne.s32.totalorder %s48_s25, %s24748_s26  ;;  %p24754_p7 = scmp.lt.s32.totalorder %s24748_s26, %s24748_s26 }
  0x12   :  { %p24755_p8 = por %p24754_p7, %p24753_p6 }
  0x14   :  { %p24756_p9 = pnand %p24755_p8, %p24749_p5 }
  0x16   :  { %24759 = shalt.err (!%p24756_p9)
}
  0x17   :  { %s24768_s27 = smov 128   ;;  %s24769_s28 = smov 8  }
  0x18   :  { %53 = dma.hbm_to_vmem [thread:$0]  %s26589_s7, 24576, %s48_s25, [#allocation7], %s24768_s27, %s24768_s27, %s24769_s28  }
  0x19   :  { %24760 = dma.done.wait [#allocation5], 25600  }
  0x1a   :  { %24761 = vsyncadd [#allocation5], 4294941696 }
  0x1b   :  { %24762 = dma.done.wait [#allocation7], 24576  }
  0x1c   :  { %24763 = vsyncadd [#allocation7], 4294942720  ;;  %v24770_v0 = vmov 0.0   ;;  %v23102_v1 = vld [vmem:[%s26583_s1] sm:$0xff]   ;;  %v104_v3 = vld [vmem:[%s26582_s0 + $0x8] sm:$0xff]  ;;  %vm123_vm0 = vcmask 130048  }
  0x1d   :  { %82 = vst [vmem:[#allocation2 + $0x100] sm:$0xff] %v24770_v0  ;;  %67 = vst [vmem:[#allocation2 + $0xb0] sm:$0xff] %v24770_v0  ;;  %v103_v2 = vld [vmem:[%s26582_s0] sm:$0xff]  ;;  %v105_v4 = vld [vmem:[%s26582_s0 + $0x10] sm:$0xff]  ;;  %22343 = vmatprep.subr.bf16.mxu0 %v23102_v1  ;;  %vm197_vm1 = vcmask 1042432   ;;  %vm185_vm2 = vcmask 1040384  }
  0x1e   :  { %68 = vst [vmem:[#allocation2 + $0xd0] sm:$0xff] %v24770_v0  ;;  %69 = vst [vmem:[#allocation2 + $0x10] sm:$0xff] %v24770_v0  ;;  %v107_v5 = vpack.c.bf16 %v104_v3, %v103_v2  ;;  %v106_v6 = vld [vmem:[%s26582_s0 + $0x18] sm:$0xff]  ;;  %22344 = vmatpush3.bf16.msra.mxu0 %v23102_v1  ;;  %v23103_v8 = vld [vmem:[%s26583_s1] sm:$0xff]   ;;  %vm24771_vm3 = vmmov 0   ;;  %vm2678_vm5 = vcmask 1045504  }
  0x1f   :  { %70 = vst [vmem:[#allocation2 + $0x48] sm:$0xff] %v24770_v0  ;;  %71 = vst [vmem:[#allocation2 + $0x108] sm:$0xff] %v24770_v0  ;;  %v108_v7 = vpack.c.bf16 %v106_v6, %v105_v4  ;;  %v18923_v9 = vld [vmem:[%s26582_s0 + $0x20] sm:$0xff]  ;;  %v18924_v10 = vld [vmem:[%s26582_s0 + $0x28] sm:$0xff]  ;;  %22349 = vmatprep.subr.bf16.mxu0 %v23103_v8  ;;  %vm2131_vm4 = vsmask.f32 6400 }
  0x20   :  { %72 = vst [vmem:[#allocation2 + $0x68] sm:$0xff] %v24770_v0  ;;  %73 = vst [vmem:[#allocation2 + $0x30] sm:$0xff] %v24770_v0  ;;  %22345 = vmatprep.mubr.msk.bf16.mxu0 %vm123_vm0, %v107_v5  ;;  %v212_v11 = vpack.c.bf16 %v18924_v10, %v18923_v9  ;;  %v18925_v12 = vld [vmem:[%s26582_s0 + $0x30] sm:$0xff]  ;;  %v23104_v13 = vld [vmem:[%s26583_s1] sm:$0xff]   ;;  %vm9621_vm6 = vsmask.f32 5376 }
  0x21   :  { %74 = vst [vmem:[#allocation2 + $0x18] sm:$0xff] %v24770_v0  ;;  %80 = vst [vmem:[#allocation2 + $0xc8] sm:$0xff] %v24770_v0  ;;  %22346 = vmatmul.mubr.msk.bf16.vlgmr.msra.gmra.mxu0 %vm123_vm0, %v108_v7  ;;  %v18926_v14 = vld [vmem:[%s26582_s0 + $0x38] sm:$0xff]  ;;  %v18930_v15 = vld [vmem:[%s26582_s0 + $0x40] sm:$0xff]  ;;  %vm10187_vm7 = vcmask 1044480  }
  0x22   :  { %81 = vst [vmem:[#allocation2 + $0x70] sm:$0xff] %v24770_v0  ;;  %83 = vst [vmem:[#allocation2 + $0xc0] sm:$0xff] %v24770_v0  ;;  %v18931_v16 = vld [vmem:[%s26582_s0 + $0x48] sm:$0xff]  ;;  %22350 = vmatpush3.bf16.msra.mxu0 %v23103_v8  ;;  %22351 = vmatprep.mubr.msk.bf16.mxu0 %vm123_vm0, %v212_v11  ;;  %v23105_v17 = vld [vmem:[%s26583_s1] sm:$0xff]   ;;  %v213_v23 = vpack.c.bf16 %v18926_v14, %v18925_v12  ;;  %vm16645_vm8 = vsmask.f32 4352 }
  0x23   :  { %84 = vst [vmem:[#allocation2 + $0x88] sm:$0xff] %v24770_v0  ;;  %85 = vst [vmem:[#allocation2 + $0x98] sm:$0xff] %v24770_v0  ;;  %22355 = vmatprep.subr.bf16.mxu0 %v23104_v13  ;;  %v18937_v18 = vld [vmem:[%s26582_s0 + $0x60] sm:$0xff]  ;;  %v18938_v19 = vld [vmem:[%s26582_s0 + $0x68] sm:$0xff]  ;;  %22361 = vmatprep.subr.bf16.mxu1 %v23105_v17  ;;  %v308_v26 = vpack.c.bf16 %v18931_v16, %v18930_v15 }
  0x24   :  { %86 = vst [vmem:[#allocation2 + $0x28] sm:$0xff] %v24770_v0  ;;  %87 = vst [vmem:[#allocation2 + $0x50] sm:$0xff] %v24770_v0  ;;  %v18939_v20 = vld [vmem:[%s26582_s0 + $0x70] sm:$0xff]  ;;  %v404_v21 = vpack.c.bf16 %v18938_v19, %v18937_v18  ;;  %v18940_v22 = vld [vmem:[%s26582_s0 + $0x78] sm:$0xff]  ;;  %22362 = vmatpush3.bf16.msra.mxu1 %v23105_v17 }
  0x25   :  { %95 = vst [vmem:[#allocation2 + $0xe8] sm:$0xf] %v24770_v0  ;;  %96 = vst [vmem:[#allocation2] sm:$0xf] %v24770_v0  ;;  %v405_v24 = vpack.c.bf16 %v18940_v22, %v18939_v20  ;;  %v23106_v25 = vld [vmem:[#allocation4 + $0x1b8] sm:$0xff]   ;;  %v18933_v29 = vld [vmem:[%s26582_s0 + $0x58] sm:$0xff] }
  0x26   :  { %97 = vst [vmem:[#allocation2 + $0x60] sm:$0xf] %v24770_v0  ;;  %98 = vst [vmem:[#allocation2 + $0xf8] sm:$0xf] %v24770_v0  ;;  %22363 = vmatprep.mubr.msk.bf16.mxu1 %vm123_vm0, %v404_v21  ;;  %v23107_v27 = vld [vmem:[#allocation4 + $0x178] sm:$0xff]   ;;  %20545 = vmatprep.subr.bf16.mxu1 %v23106_v25  ;;  %v23108_v31 = vld [vmem:[#allocation4 + $0x1b0] sm:$0xff]  }
  0x27   :  { %99 = vst [vmem:[#allocation2 + $0xa8] sm:$0xf] %v24770_v0  ;;  %100 = vst [vmem:[#allocation2 + $0x78] sm:$0xf] %v24770_v0  ;;  %v18932_v28 = vld [vmem:[%s26582_s0 + $0x50] sm:$0xff]  ;;  %22364 = vmatmul.mubr.msk.bf16.vlgmr.msra.gmra.mxu1 %vm123_vm0, %v405_v24  ;;  %v23109_v32 = vld [vmem:[%s26583_s1] sm:$0xff]  }
  0x28   :  { %101 = vst [vmem:[#allocation2 + $0xe0] sm:$0xf] %v24770_v0  ;;  %20546 = vmatpush3.bf16.msra.mxu1 %v23107_v27  ;;  %v309_v30 = vpack.c.bf16 %v18933_v29, %v18932_v28  ;;  %v23110_v33 = vld [vmem:[#allocation4 + $0x170] sm:$0xff]   ;;  %v18944_v34 = vld [vmem:[%s26582_s0 + $0x80] sm:$0xff]  ;;  %v18946_v37 = vld [vmem:[%s26582_s0 + $0x90] sm:$0xff] }
  0x29   :  { %22352 = vmatmul.mubr.msk.bf16.vlgmr.msra.gmra.mxu0 %vm123_vm0, %v213_v23  ;;  %20547 = vmatprep.subr.bf16.mxu1 %v23108_v31  ;;  %v18945_v35 = vld [vmem:[%s26582_s0 + $0x88] sm:$0xff]  ;;  %v18947_v38 = vld [vmem:[%s26582_s0 + $0x98] sm:$0xff]  ;;  %v23111_v39 = vld [vmem:[#allocation4 + $0x1a8] sm:$0xff]  }
  0x2a   :  { %22356 = vmatpush3.bf16.msra.mxu0 %v23104_v13  ;;  %22357 = vmatprep.mubr.msk.bf16.mxu0 %vm123_vm0, %v308_v26  ;;  %v500_v36 = vpack.c.bf16 %v18945_v35, %v18944_v34  ;;  %v501_v40 = vpack.c.bf16 %v18947_v38, %v18946_v37  ;;  %v23112_v41 = vld [vmem:[#allocation4 + $0x168] sm:$0xff]   ;;  %v23113_v42 = vld [vmem:[#allocation4 + $0x1a0] sm:$0xff]   ;;  %v23115_v44 = vld [vmem:[#allocation4 + $0x198] sm:$0xff]  }
  0x2b   :  { %22367 = vmatprep.subr.bf16.mxu0 %v23109_v32  ;;  %v23114_v43 = vld [vmem:[#allocation4 + $0x160] sm:$0xff]   ;;  %v23116_v45 = vld [vmem:[#allocation4 + $0x238] sm:$0xff]   ;;  %v23119_v48 = vld [vmem:[#allocation4 + $0x190] sm:$0xff]  }
  0x2c   :  { %20548 = vmatpush3.bf16.msra.mxu1 %v23110_v33  ;;  %v23117_v46 = vld [vmem:[#allocation4 + $0x158] sm:$0xff]   ;;  %v23120_v49 = vld [vmem:[#allocation4 + $0x230] sm:$0xff]   ;;  %v23123_v52 = vld [vmem:[#allocation4 + $0x188] sm:$0xff]  }
  0x2d   :  { %20549 = vmatprep.subr.bf16.mxu1 %v23111_v39  ;;  %v23118_v47 = vld [vmem:[#allocation4 + $0x1f8] sm:$0xff]   ;;  %v23121_v50 = vld [vmem:[#allocation4 + $0x150] sm:$0xff]   ;;  %v23124_v53 = vld [vmem:[#allocation4 + $0x228] sm:$0xff]  }
  0x2e   :  { %v23122_v51 = vld [vmem:[#allocation4 + $0x1f0] sm:$0xff]   ;;  %v23125_v54 = vld [vmem:[#allocation4 + $0x148] sm:$0xff]   ;;  %v23127_v56 = vld [vmem:[#allocation4 + $0x180] sm:$0xff]  }
  0x2f   :  { %v23126_v55 = vld [vmem:[#allocation4 + $0x1e8] sm:$0xff]   ;;  %v23128_v57 = vld [vmem:[#allocation4 + $0x220] sm:$0xff]   ;;  %v23131_v60 = vld [vmem:[#allocation4 + $0x218] sm:$0xff]  }
  0x30   :  { %20550 = vmatpush3.bf16.msra.mxu1 %v23112_v41  ;;  %v23129_v58 = vld [vmem:[#allocation4 + $0x140] sm:$0xff]   ;;  %v23132_v61 = vld [vmem:[#allocation4 + $0x1d8] sm:$0xff]   ;;  %v23134_v62 = vld [vmem:[#allocation4 + $0x210] sm:$0xff]  }
  0x31   :  { %22358 = vmatmul.mubr.msk.bf16.vlgmr.msra.gmra.mxu0 %vm123_vm0, %v309_v30  ;;  %20551 = vmatprep.subr.bf16.mxu1 %v23113_v42  ;;  %v23130_v59 = vld [vmem:[#allocation4 + $0x1e0] sm:$0xff]   ;;  %v23135_v63 = vld [vmem:[#allocation4 + $0x1d0] sm:$0xff]   ;;  %v23137_v1 = vld [vmem:[#allocation4 + $0x208] sm:$0xff]  }
  0x32   :  { %22368 = vmatpush3.bf16.msra.mxu0 %v23109_v32  ;;  %22369 = vmatprep.mubr.msk.bf16.mxu0 %vm123_vm0, %v500_v36  ;;  %v23138_v2 = vld [vmem:[#allocation4 + $0x1c8] sm:$0xff]   ;;  %v23140_v3 = vld [vmem:[#allocation4 + $0x200] sm:$0xff]   ;;  %v23143_v5 = vld [vmem:[#allocation4 + $0x78] sm:$0xff]  }
  0x33   :  { %20567 = vmatprep.subr.bf16.mxu0 %v23116_v45  ;;  %v23141_v4 = vld [vmem:[#allocation4 + $0x1c0] sm:$0xff]   ;;  %v687_v25 = vld [vmem:[#allocation2 + $0xb0] sm:$0xfe] }
  0x34   :  { %20552 = vmatpush3.bf16.msra.mxu1 %v23114_v43  ;;  %v692_v26 = vld [vmem:[#allocation2 + $0x18] sm:$0x7f] }
  0x35   :  { %20553 = vmatprep.subr.bf16.mxu1 %v23115_v44 }
  0x38   :  { %20554 = vmatpush3.bf16.msra.mxu1 %v23117_v46  ;;  %v697_v46 = vpack.c.bf16 %v692_v26, %v687_v25 }
  0x39   :  { %22370 = vmatmul.mubr.msk.bf16.vlgmr.msra.gmra.mxu0 %vm123_vm0, %v501_v40  ;;  %20555 = vmatprep.subr.bf16.mxu1 %v23119_v48 }
  0x3a   :  { %20568 = vmatpush3.bf16.msra.mxu0 %v23118_v47 }
  0x3b   :  { %20569 = vmatprep.subr.bf16.mxu0 %v23120_v49 }
  0x3c   :  { %20556 = vmatpush3.bf16.msra.mxu1 %v23121_v50 }
  0x3d   :  { %20557 = vmatprep.subr.bf16.mxu1 %v23123_v52 }
  0x3e   :  { %20570 = vmatpush3.bf16.msra.mxu0 %v23122_v51 }
  0x3f   :  { %20571 = vmatprep.subr.bf16.mxu0 %v23124_v53 }
  0x40   :  { %20558 = vmatpush3.bf16.msra.mxu1 %v23125_v54 }
  0x41   :  { %20559 = vmatprep.subr.bf16.mxu1 %v23127_v56 }
  0x42   :  { %20572 = vmatpush3.bf16.msra.mxu0 %v23126_v55 }
  0x43   :  { %20573 = vmatprep.subr.bf16.mxu0 %v23128_v57 }
  0x44   :  { %20560 = vmatpush3.bf16.msra.mxu1 %v23129_v58 }
  0x45   :  { %22373 = vmatprep.subr.bf16.mxu1 %v24770_v0  ;;  %v24951_v0 = vld [vmem:[%s26584_s2] ss:$0 sm:$0xff] }
  0x46   :  { %20574 = vmatpush3.bf16.msra.mxu0 %v23130_v59 }
  0x47   :  { %20575 = vmatprep.subr.bf16.mxu0 %v23131_v60  ;;  %v786_v60 = vshll.u32 %v697_v46, 16 }
  0x4a   :  { %20576 = vmatpush3.bf16.msra.mxu0 %v23132_v61 }
  0x4b   :  { %20577 = vmatprep.subr.bf16.mxu0 %v23134_v62 }
  0x4e   :  { %20578 = vmatpush3.bf16.msra.mxu0 %v23135_v63 }
  0x4f   :  { %20579 = vmatprep.subr.bf16.mxu0 %v23137_v1 }
  0x52   :  { %20580 = vmatpush3.bf16.msra.mxu0 %v23138_v2 }
  0x53   :  { %20581 = vmatprep.subr.bf16.mxu0 %v23140_v3 }
  0x56   :  { %20582 = vmatpush3.bf16.msra.mxu0 %v23141_v4 }
  0x57   :  { %20598 = vmatprep.subr.bf16.mxu0 %v23143_v5 }
  0xe1   :  { %v22347_v6 = vpop.f32.mrf.mxu0 }
  0xe2   :  { %v173_v7 = vadd.f32 %v22347_v6, %v24951_v0 }
  0xe3   :  { %v164_v8 = vpop.f32.mrf.mxu0 }
  0xe4   :  { %v181_v9 = vmax.f32 %v173_v7, 0.0  ;;  %v165_v10 = vadd.f32 %v24951_v0, %v164_v8 }
  0xe5   :  { %v22348_v11 = vpop.f32.mrf.mxu0 }
  0xe6   :  { %v198_v12 = vrot.slane %v181_v9, 5  ;;  %v179_v13 = vmax.f32 %v165_v10, 0.0  ;;  %v176_v14 = vadd.f32 %v22348_v11, %v24951_v0 }
  0xe7   :  { %v167_v15 = vpop.f32.mrf.mxu0  ;;  %v22365_v19 = vpop.f32.mrf.mxu1 }
  0xe8   :  { %204 = vst [vmem:[#allocation2 + $0x100] sm:$0xf8] %v198_v12  ;;  %v186_v16 = vrot.slane %v179_v13, 7  ;;  %v182_v17 = vmax.f32 %v176_v14, 0.0  ;;  %v168_v18 = vadd.f32 %v24951_v0, %v167_v15  ;;  %v463_v21 = vadd.f32 %v22365_v19, %v24951_v0 }
  0xe9   :  { %v22353_v20 = vpop.f32.mrf.mxu0  ;;  %v454_v27 = vpop.f32.mrf.mxu1  ;;  %v784_v14 = vshrl.u32 %v697_v46, 16 }
  0xea   :  { %192 = vst [vmem:[#allocation2 + $0xd0] sm:$0xfe] %v186_v16  ;;  %v199_v22 = vrot.slane %v182_v17, 5  ;;  %v180_v23 = vmax.f32 %v168_v18, 0.0  ;;  %v271_v24 = vadd.f32 %v22353_v20, %v24951_v0  ;;  %v471_v29 = vmax.f32 %v463_v21, 0.0 }
  0xeb   :  { %v262_v28 = vpop.f32.mrf.mxu0  ;;  %v455_v30 = vadd.f32 %v24951_v0, %v454_v27  ;;  %v22366_v35 = vpop.f32.mrf.mxu1  ;;  %v788_v18 = vrot.slane %v786_v60, 1  ;;  %v23149_v60 = vld [vmem:[#allocation4 + $0x68] sm:$0xff]  }
  0xec   :  { %v200_v31 = vsel %vm197_vm1, %v198_v12, %v199_v22  ;;  %206 = vst [vmem:[#allocation2] sm:$0x7] %v199_v22  ;;  %v187_v32 = vrot.slane %v180_v23, 7  ;;  %v279_v33 = vmax.f32 %v271_v24, 0.0  ;;  %v263_v34 = vadd.f32 %v24951_v0, %v262_v28  ;;  %v23133_v28 = vld [vmem:[#allocation4 + $0x278] sm:$0xff]  }
  0xed   :  { %205 = vst [vmem:[#allocation2 + $0x58] sm:$0xff] %v200_v31  ;;  %v22354_v36 = vpop.f32.mrf.mxu0  ;;  %v486_v37 = vrot.slane %v471_v29, 5  ;;  %v469_v38 = vmax.f32 %v455_v30, 0.0  ;;  %v466_v39 = vadd.f32 %v22366_v35, %v24951_v0  ;;  %v457_v44 = vpop.f32.mrf.mxu1  ;;  %v789_v26 = vor.u32 %v788_v18, %v784_v14  ;;  %v23136_v31 = vld [vmem:[#allocation4 + $0x270] sm:$0xff]   ;;  %v23139_v35 = vld [vmem:[#allocation4 + $0x268] sm:$0xff]  }
  0xee   :  { %v24964_v40 = vsel %vm185_vm2, %v186_v16, %v187_v32  ;;  %194 = vst [vmem:[#allocation2 + $0x100] sm:$0x1] %v187_v32  ;;  %v294_v41 = vrot.slane %v279_v33, 5  ;;  %v277_v42 = vmax.f32 %v263_v34, 0.0  ;;  %v274_v43 = vadd.f32 %v22354_v36, %v24951_v0  ;;  %v24983_v33 = vld [vmem:[#allocation2 + $0xb0] sm:$0xff]  ;;  %v23160_v14 = vld [vmem:[#allocation4 + $0xf0] sm:$0xff]  }
  0xef   :  { %193 = vst [vmem:[#allocation2 + $0x80] sm:$0xff] %v24964_v40  ;;  %v265_v45 = vpop.f32.mrf.mxu0  ;;  %492 = vst [vmem:[#allocation2 + $0x98] sm:$0xf8] %v486_v37  ;;  %v475_v47 = vrot.slane %v469_v38, 7  ;;  %v472_v48 = vmax.f32 %v466_v39, 0.0  ;;  %v458_v49 = vadd.f32 %v24951_v0, %v457_v44  ;;  %v23163_v18 = vld [vmem:[#allocation4 + $0x48] sm:$0xff]  }
  0xf0   :  { %300 = vst [vmem:[#allocation2 + $0xc0] sm:$0xf8] %v294_v41  ;;  %v283_v50 = vrot.slane %v277_v42, 7  ;;  %v280_v51 = vmax.f32 %v274_v43, 0.0  ;;  %v266_v52 = vadd.f32 %v24951_v0, %v265_v45 }
  0xf1   :  { %v22359_v53 = vpop.f32.mrf.mxu0  ;;  %481 = vst [vmem:[#allocation2 + $0x108] sm:$0xfe] %v475_v47  ;;  %v487_v54 = vrot.slane %v472_v48, 5  ;;  %v470_v55 = vmax.f32 %v458_v49, 0.0  ;;  %v688_v10 = vld [vmem:[#allocation2 + $0xd0] sm:$0xfe] }
  0xf2   :  { %289 = vst [vmem:[#allocation2 + $0x10] sm:$0xfe] %v283_v50  ;;  %v295_v56 = vrot.slane %v280_v51, 5  ;;  %v278_v57 = vmax.f32 %v266_v52, 0.0  ;;  %v367_v58 = vadd.f32 %v22359_v53, %v24951_v0  ;;  %v23145_v48 = vld [vmem:[#allocation4 + $0x38] sm:$0xff]  }
  0xf3   :  { %v358_v59 = vpop.f32.mrf.mxu0  ;;  %v488_v61 = vsel %vm197_vm1, %v486_v37, %v487_v54  ;;  %494 = vst [vmem:[#allocation2 + $0xa8] sm:$0x7] %v487_v54  ;;  %v476_v62 = vrot.slane %v470_v55, 7  ;;  %v593_v54 = vld [vmem:[#allocation2 + $0xd0] sm:$0xff]  ;;  %v23146_v55 = vld [vmem:[#allocation4 + $0x70] sm:$0xff]  }
  0xf4   :  { %v296_v63 = vsel %vm197_vm1, %v294_v41, %v295_v56  ;;  %302 = vst [vmem:[#allocation2 + $0x60] sm:$0x7] %v295_v56  ;;  %v284_v1 = vrot.slane %v278_v57, 7  ;;  %v375_v2 = vmax.f32 %v367_v58, 0.0  ;;  %v359_v3 = vadd.f32 %v24951_v0, %v358_v59  ;;  %493 = vst [vmem:[#allocation2 + $0x8] sm:$0xff] %v488_v61  ;;  %v23142_v41 = vld [vmem:[#allocation4 + $0x260] sm:$0xff]  }
  0xf5   :  { %301 = vst [vmem:[#allocation2 + $0xa0] sm:$0xff] %v296_v63  ;;  %v22360_v4 = vpop.f32.mrf.mxu0  ;;  %v477_v5 = vsel %vm185_vm2, %v475_v47, %v476_v62  ;;  %483 = vst [vmem:[#allocation2 + $0x98] sm:$0x1] %v476_v62  ;;  %v23144_v47 = vld [vmem:[#allocation4 + $0x258] sm:$0xff]   ;;  %v23147_v58 = vld [vmem:[#allocation4 + $0x250] sm:$0xff]  }
  0xf6   :  { %v285_v6 = vsel %vm185_vm2, %v283_v50, %v284_v1  ;;  %291 = vst [vmem:[#allocation2 + $0xc0] sm:$0x1] %v284_v1  ;;  %v390_v7 = vrot.slane %v375_v2, 5  ;;  %v373_v8 = vmax.f32 %v359_v3, 0.0  ;;  %v370_v9 = vadd.f32 %v22360_v4, %v24951_v0  ;;  %v693_v11 = vld [vmem:[#allocation2 + $0x80] sm:$0x7f] }
  0xf7   :  { %482 = vst [vmem:[#allocation2 + $0xf0] sm:$0xff] %v477_v5  ;;  %290 = vst [vmem:[#allocation2 + $0x110] sm:$0xff] %v285_v6  ;;  %v361_v12 = vpop.f32.mrf.mxu0  ;;  %v698_v13 = vpack.c.bf16 %v693_v11, %v688_v10  ;;  %v598_v50 = vld [vmem:[#allocation2 + $0x80] sm:$0x3f]  ;;  %v23148_v59 = vld [vmem:[#allocation4 + $0x30] sm:$0xff]  }
  0xf8   :  { %396 = vst [vmem:[#allocation2 + $0x88] sm:$0xf8] %v390_v7  ;;  %v379_v15 = vrot.slane %v373_v8, 7  ;;  %v376_v16 = vmax.f32 %v370_v9, 0.0  ;;  %v362_v17 = vadd.f32 %v24951_v0, %v361_v12  ;;  %v691_v51 = vld [vmem:[#allocation2 + $0x108] sm:$0xfe]  ;;  %v603_v56 = vpack.c.bf16 %v598_v50, %v593_v54 }
  0xf9   :  { %v793_v19 = vshll.u32 %v698_v13, 16  ;;  %v791_v22 = vshrl.u32 %v698_v13, 16  ;;  %v689_v32 = vld [vmem:[#allocation2 + $0x10] sm:$0xfe]  ;;  %v23150_v62 = vld [vmem:[#allocation4 + $0x248] sm:$0xff]   ;;  %v23152_v1 = vld [vmem:[#allocation4 + $0x60] sm:$0xff]  }
  0xfa   :  { %385 = vst [vmem:[#allocation2 + $0x48] sm:$0xfe] %v379_v15  ;;  %v391_v20 = vrot.slane %v376_v16, 5  ;;  %v374_v21 = vmax.f32 %v362_v17, 0.0  ;;  %v23151_v63 = vld [vmem:[#allocation4 + $0x28] sm:$0xff]   ;;  %v23153_v2 = vld [vmem:[#allocation4 + $0x240] sm:$0xff]  }
  0xfb   :  { %v795_v23 = vrot.slane %v793_v19, 1  ;;  %v23154_v3 = vld [vmem:[#allocation4 + $0x20] sm:$0xff]   ;;  %v23155_v6 = vld [vmem:[#allocation4 + $0x58] sm:$0xff]   ;;  %v23159_v12 = vld [vmem:[#allocation4 + $0x50] sm:$0xff]  }
  0xfc   :  { %v392_v24 = vsel %vm197_vm1, %v390_v7, %v391_v20  ;;  %398 = vst [vmem:[#allocation2 + $0xf8] sm:$0x7] %v391_v20  ;;  %v380_v25 = vrot.slane %v374_v21, 7  ;;  %v23156_v7 = vld [vmem:[#allocation4 + $0xf8] sm:$0xff]   ;;  %v23161_v16 = vld [vmem:[#allocation4 + $0x10] sm:$0xff]   ;;  %v23164_v19 = vld [vmem:[#allocation4 + $0xe8] sm:$0xff]  }
  0xfd   :  { %397 = vst [vmem:[#allocation2 + $0x40] sm:$0xff] %v392_v24  ;;  %v796_v27 = vor.u32 %v795_v23, %v791_v22  ;;  %v23157_v8 = vld [vmem:[#allocation4 + $0x18] sm:$0xff]   ;;  %v23162_v17 = vld [vmem:[#allocation4 + $0xb0] sm:$0xff]   ;;  %v23165_v20 = vld [vmem:[#allocation4 + $0x8] sm:$0xff]  }
  0xfe   :  { %v24980_v29 = vsel %vm185_vm2, %v379_v15, %v380_v25  ;;  %387 = vst [vmem:[#allocation2 + $0x88] sm:$0x1] %v380_v25  ;;  %v694_v30 = vld [vmem:[#allocation2 + $0x110] sm:$0x7f]  ;;  %v23166_v21 = vld [vmem:[#allocation4 + $0xa8] sm:$0xff]   ;;  %v23167_v22 = vld [vmem:[#allocation4 + $0x40] sm:$0xff]  }
  0xff   :  { %386 = vst [vmem:[#allocation2 + $0x90] sm:$0xff] %v24980_v29  ;;  %1095 = vmatprep.mubr.bf16.mxu1 %v796_v27  ;;  %v699_v34 = vpack.c.bf16 %v694_v30, %v689_v32  ;;  %v696_v52 = vld [vmem:[#allocation2 + $0xf0] sm:$0x7f]  ;;  %v23168_v23 = vld [vmem:[#allocation4 + $0xe0] sm:$0xff]  }
 0x100   :  { %1096 = vmatmul.mubr.bf16.vlgmr.msra.gmra.mxu1 %v789_v26  ;;  %v701_v57 = vpack.c.bf16 %v696_v52, %v691_v51  ;;  %v23158_v9 = vld [vmem:[#allocation4 + $0xb8] sm:$0xff]   ;;  %v23169_v24 = vld [vmem:[#allocation4] sm:$0xff]   ;;  %v22371_v26 = vpop.f32.mrf.mxu0  ;;  %v23176_v51 = vld [vmem:[#allocation4 + $0x130] sm:$0xff]  }
 0x101   :  { %22374 = vmatpush3.bf16.msra.mxu1 %v23133_v28  ;;  %22389 = vmatprep.mubr.msk.bf16.mxu1 %vm24771_vm3, %v24983_v33  ;;  %v690_v36 = vld [vmem:[#allocation2 + $0x48] sm:$0xfe]  ;;  %v800_v38 = vshll.u32 %v699_v34, 16  ;;  %v798_v46 = vshrl.u32 %v699_v34, 16  ;;  %v23170_v25 = vld [vmem:[#allocation4 + $0xa0] sm:$0xff]   ;;  %v559_v27 = vadd.f32 %v22371_v26, %v24951_v0  ;;  %v23177_v52 = vld [vmem:[#allocation4 + $0xc8] sm:$0xff]  }
 0x102   :  { %22375 = vmatprep.subr.bf16.mxu1 %v24983_v33  ;;  %v814_v61 = vshll.u32 %v701_v57, 16  ;;  %v812_v4 = vshrl.u32 %v701_v57, 16  ;;  %v595_v13 = vld [vmem:[#allocation2 + $0x48] sm:$0xff]  ;;  %v597_v28 = vld [vmem:[#allocation2 + $0x18] sm:$0x3f]  ;;  %v550_v30 = vpop.f32.mrf.mxu0 }
 0x103   :  { %v802_v43 = vrot.slane %v800_v38, 1  ;;  %v567_v32 = vmax.f32 %v559_v27, 0.0  ;;  %v551_v34 = vadd.f32 %v24951_v0, %v550_v30  ;;  %v602_v38 = vpack.c.bf16 %v597_v28, %v24983_v33  ;;  %v23180_v57 = vld [vmem:[#allocation4 + $0xc0] sm:$0xff]   ;;  %v23202_v27 = vld [vmem:[#allocation4 + $0x330] sm:$0xff]   ;;  %v23203_v28 = vld [vmem:[#allocation4 + $0x2c8] sm:$0xff]  }
 0x104   :  { %v816_v5 = vrot.slane %v814_v61, 1  ;;  %v599_v61 = vld [vmem:[#allocation2 + $0x110] sm:$0x3f]  ;;  %v23204_v30 = vld [vmem:[#allocation4 + $0x368] sm:$0xff]  }
 0x105   :  { %22376 = vmatpush3.bf16.msra.mxu1 %v23136_v31  ;;  %v803_v53 = vor.u32 %v802_v43, %v798_v46  ;;  %v23171_v31 = vld [vmem:[#allocation4 + $0xd8] sm:$0xff]   ;;  %v23174_v43 = vld [vmem:[#allocation4 + $0xd0] sm:$0xff]  }
 0x106   :  { %22377 = vmatprep.subr.bf16.mxu1 %v24983_v33  ;;  %v695_v37 = vld [vmem:[#allocation2 + $0x90] sm:$0x7f]  ;;  %v817_v10 = vor.u32 %v816_v5, %v812_v4  ;;  %v23186_v5 = vld [vmem:[#allocation4 + $0x2f0] sm:$0xff]  }
 0x107   :  { %v700_v39 = vpack.c.bf16 %v695_v37, %v690_v36  ;;  %v600_v11 = vld [vmem:[#allocation2 + $0x90] sm:$0x3f]  ;;  %v22372_v37 = vpop.f32.mrf.mxu0 }
 0x108   :  { %v605_v15 = vpack.c.bf16 %v600_v11, %v595_v13  ;;  %v23173_v36 = vld [vmem:[#allocation4 + $0x138] sm:$0xff]   ;;  %v23192_v11 = vld [vmem:[#allocation4 + $0x2e0] sm:$0xff]  }
 0x109   :  { %22378 = vmatpush3.bf16.msra.mxu1 %v23139_v35  ;;  %v807_v42 = vshll.u32 %v700_v39, 16  ;;  %v805_v44 = vshrl.u32 %v700_v39, 16  ;;  %v23172_v35 = vld [vmem:[#allocation4 + $0x98] sm:$0xff]   ;;  %v582_v39 = vrot.slane %v567_v32, 5  ;;  %v23194_v13 = vld [vmem:[#allocation4 + $0x2a0] sm:$0xff]  }
 0x10a   :  { %22379 = vmatprep.subr.bf16.mxu1 %v24983_v33  ;;  %v23207_v32 = vld [vmem:[#allocation4 + $0x2c0] sm:$0xff]  }
 0x10b   :  { %v809_v45 = vrot.slane %v807_v42, 1  ;;  %v562_v42 = vadd.f32 %v22372_v37, %v24951_v0  ;;  %588 = vst [vmem:[#allocation2 + $0x28] sm:$0xf8] %v582_v39  ;;  %v23209_v37 = vld [vmem:[#allocation4 + $0x280] sm:$0xff]  }
 0x10d   :  { %22380 = vmatpush3.bf16.msra.mxu1 %v23142_v41  ;;  %v810_v49 = vor.u32 %v809_v45, %v805_v44  ;;  %v565_v41 = vmax.f32 %v551_v34, 0.0  ;;  %v553_v44 = vpop.f32.mrf.mxu0  ;;  %v568_v46 = vmax.f32 %v562_v42, 0.0  ;;  %v23208_v34 = vld [vmem:[#allocation4 + $0x360] sm:$0xff]   ;;  %v23213_v42 = vld [vmem:[#allocation4 + $0x3b8] sm:$0xff]  }
 0x10e   :  { %22381 = vmatprep.subr.bf16.mxu1 %v24983_v33 }
 0x10f   :  { %1136 = vmatprep.mubr.bf16.mxu0 %v810_v49  ;;  %v571_v45 = vrot.slane %v565_v41, 7  ;;  %v583_v49 = vrot.slane %v568_v46, 5  ;;  %v23212_v41 = vld [vmem:[#allocation4 + $0x318] sm:$0xff]   ;;  %v25015_v46 = vld [vmem:[#allocation2 + $0x80] sm:$0xff] }
 0x110   :  { %1137 = vmatmul.mubr.bf16.vlgmr.msra.gmra.mxu0 %v803_v53 }
 0x111   :  { %22382 = vmatpush3.bf16.msra.mxu1 %v23144_v47  ;;  %20599 = vmatpush3.bf16.msra.mxu0 %v23145_v48  ;;  %v554_v47 = vadd.f32 %v24951_v0, %v553_v44  ;;  %v23175_v48 = vld [vmem:[#allocation4 + $0x90] sm:$0xff]   ;;  %577 = vst [vmem:[#allocation2 + $0x68] sm:$0xfe] %v571_v45  ;;  %v584_v53 = vsel %vm197_vm1, %v582_v39, %v583_v49  ;;  %590 = vst [vmem:[#allocation2 + $0x78] sm:$0x7] %v583_v49  ;;  %v23211_v39 = vld [vmem:[#allocation4 + $0x358] sm:$0xff]  }
 0x112   :  { %1458 = vmatprep.mubr.bf16.mxu0 %v603_v56  ;;  %22383 = vmatprep.subr.bf16.mxu1 %v24983_v33  ;;  %589 = vst [vmem:[#allocation2 + $0xb8] sm:$0xff] %v584_v53  ;;  %v23179_v56 = vld [vmem:[#allocation4 + $0x128] sm:$0xff]   ;;  %v23214_v44 = vld [vmem:[#allocation4 + $0x350] sm:$0xff]  }
 0x113   :  { %20600 = vmatprep.subr.bf16.mxu0 %v23146_v55  ;;  %v566_v50 = vmax.f32 %v554_v47, 0.0  ;;  %v23178_v55 = vld [vmem:[#allocation4 + $0x88] sm:$0xff]   ;;  %v23215_v47 = vld [vmem:[#allocation4 + $0x310] sm:$0xff]  }
 0x114   :  { %v23217_v49 = vld [vmem:[#allocation4 + $0x348] sm:$0xff]  }
 0x115   :  { %22384 = vmatpush3.bf16.msra.mxu1 %v23147_v58  ;;  %20601 = vmatpush3.bf16.msra.mxu0 %v23148_v59  ;;  %v572_v54 = vrot.slane %v566_v50, 7  ;;  %v23181_v58 = vld [vmem:[#allocation4 + $0x80] sm:$0xff]   ;;  %v23219_v53 = vld [vmem:[#allocation4 + $0x3a8] sm:$0xff]  }
 0x116   :  { %22385 = vmatprep.subr.bf16.mxu1 %v24983_v33  ;;  %20602 = vmatprep.subr.bf16.mxu0 %v23149_v60  ;;  %v23182_v59 = vld [vmem:[#allocation4 + $0x120] sm:$0xff]   ;;  %v1550_v60 = vld [vmem:[#allocation2 + $0xd0] sm:$0xfc] }
 0x117   :  { %v573_v0 = vsel %vm185_vm2, %v571_v45, %v572_v54  ;;  %579 = vst [vmem:[#allocation2 + $0x28] sm:$0x1] %v572_v54  ;;  %v2026_v45 = vld [vmem:[#allocation2 + $0xd0] sm:$0xf8] }
 0x118   :  { %578 = vst [vmem:[#allocation2 + $0x20] sm:$0xff] %v573_v0  ;;  %v2041_v50 = vpack.c.bf16 %v25015_v46, %v2026_v45  ;;  %v23242_v45 = vld [vmem:[#allocation4 + $0x470] sm:$0xff]  }
 0x119   :  { %22386 = vmatpush3.bf16.msra.mxu1 %v23150_v62  ;;  %20603 = vmatpush3.bf16.msra.mxu0 %v23151_v63  ;;  %v23183_v62 = vld [vmem:[#allocation4 + $0x2f8] sm:$0xff]   ;;  %v1560_v63 = vpack.c.bf16 %v24964_v40, %v1550_v60  ;;  %v23189_v40 = vld [vmem:[#allocation4 + $0x2e8] sm:$0xff]  }
 0x11a   :  { %22387 = vmatprep.subr.bf16.mxu1 %v24983_v33  ;;  %20604 = vmatprep.subr.bf16.mxu0 %v23152_v1  ;;  %v594_v1 = vld [vmem:[#allocation2 + $0x10] sm:$0xff]  ;;  %v2146_v54 = vshrl.u32 %v2041_v50, 16  ;;  %v2149_v0 = vshll.u32 %v2041_v50, 16 }
 0x11b   :  { %v604_v4 = vpack.c.bf16 %v599_v61, %v594_v1  ;;  %v1551_v60 = vld [vmem:[#allocation2 + $0x10] sm:$0xfc] }
 0x11c   :  { %v2148_v61 = vrot.slane %v2146_v54, 1  ;;  %v23223_v1 = vld [vmem:[#allocation4 + $0x438] sm:$0xff]   ;;  %v23246_v54 = vld [vmem:[#allocation4 + $0x468] sm:$0xff]  }
 0x11d   :  { %22388 = vmatpush3.bf16.msra.mxu1 %v23153_v2  ;;  %20605 = vmatpush3.bf16.msra.mxu0 %v23154_v3  ;;  %v23184_v2 = vld [vmem:[#allocation4 + $0x118] sm:$0xff]  }
 0x11e   :  { %20606 = vmatprep.subr.bf16.mxu0 %v23155_v6  ;;  %20620 = vmatprep.subr.bf16.mxu1 %v23156_v7  ;;  %v23185_v3 = vld [vmem:[#allocation4 + $0x2b8] sm:$0xff]   ;;  %v1651_v6 = vrot.slane %v1560_v63, 1  ;;  %v23187_v7 = vld [vmem:[#allocation4 + $0x110] sm:$0xff]  }
 0x120   :  { %22390 = vmatmul.mubr.bf16.vlgmr.msra.gmra.mxu1 %v817_v10  ;;  %v23191_v10 = vld [vmem:[#allocation4 + $0x2a8] sm:$0xff]  }
 0x121   :  { %20607 = vmatpush3.bf16.msra.mxu0 %v23157_v8  ;;  %20621 = vmatpush3.bf16.msra.mxu1 %v23158_v9  ;;  %v23188_v8 = vld [vmem:[#allocation4 + $0x2b0] sm:$0xff]   ;;  %v23190_v9 = vld [vmem:[#allocation4 + $0x108] sm:$0xff]  }
 0x122   :  { %1499 = vmatprep.mubr.bf16.mxu1 %v605_v15  ;;  %20608 = vmatprep.subr.bf16.mxu0 %v23159_v12  ;;  %v23193_v12 = vld [vmem:[#allocation4 + $0x100] sm:$0xff]   ;;  %v23196_v15 = vld [vmem:[#allocation4 + $0x378] sm:$0xff]  }
 0x123   :  { %20622 = vmatprep.subr.bf16.mxu1 %v23160_v14  ;;  %v23195_v14 = vld [vmem:[#allocation4 + $0x2d8] sm:$0xff]  }
 0x125   :  { %20609 = vmatpush3.bf16.msra.mxu0 %v23161_v16  ;;  %20623 = vmatpush3.bf16.msra.mxu1 %v23162_v17  ;;  %v596_v16 = vld [vmem:[#allocation2 + $0x108] sm:$0xff] }
 0x126   :  { %20610 = vmatprep.subr.bf16.mxu0 %v23163_v18  ;;  %20624 = vmatprep.subr.bf16.mxu1 %v23164_v19  ;;  %v1552_v17 = vld [vmem:[#allocation2 + $0x48] sm:$0xfc]  ;;  %v601_v18 = vld [vmem:[#allocation2 + $0xf0] sm:$0x3f] }
 0x127   :  { %v23197_v19 = vld [vmem:[#allocation4 + $0x298] sm:$0xff]  }
 0x129   :  { %20611 = vmatpush3.bf16.msra.mxu0 %v23165_v20  ;;  %20625 = vmatpush3.bf16.msra.mxu1 %v23166_v21  ;;  %v23198_v20 = vld [vmem:[#allocation4 + $0x338] sm:$0xff]   ;;  %v1562_v21 = vpack.c.bf16 %v24980_v29, %v1552_v17  ;;  %v23206_v29 = vld [vmem:[#allocation4 + $0x328] sm:$0xff]  }
 0x12a   :  { %20612 = vmatprep.subr.bf16.mxu0 %v23167_v22  ;;  %20626 = vmatprep.subr.bf16.mxu1 %v23168_v23  ;;  %v23199_v22 = vld [vmem:[#allocation4 + $0x2d0] sm:$0xff]   ;;  %v23230_v17 = vld [vmem:[#allocation4 + $0x388] sm:$0xff]  }
 0x12b   :  { %v23200_v23 = vld [vmem:[#allocation4 + $0x370] sm:$0xff]   ;;  %v1653_v26 = vrot.slane %v1562_v21, 1 }
 0x12d   :  { %20613 = vmatpush3.bf16.msra.mxu0 %v23169_v24  ;;  %20627 = vmatpush3.bf16.msra.mxu1 %v23170_v25  ;;  %v606_v24 = vpack.c.bf16 %v601_v18, %v596_v16  ;;  %v23201_v25 = vld [vmem:[#allocation4 + $0x290] sm:$0xff]   ;;  %v23231_v18 = vld [vmem:[#allocation4 + $0x3e8] sm:$0xff]  }
 0x12e   :  { %20628 = vmatprep.subr.bf16.mxu1 %v23171_v31  ;;  %22393 = vmatprep.subr.bf16.mxu0 %v24983_v33  ;;  %v23205_v31 = vld [vmem:[#allocation4 + $0x288] sm:$0xff]   ;;  %v1553_v16 = vld [vmem:[#allocation2 + $0x108] sm:$0xfc] }
 0x130   :  { %1459 = vmatmul.mubr.bf16.vlgmr.msra.gmra.mxu0 %v602_v38  ;;  %v23210_v38 = vld [vmem:[#allocation4 + $0x320] sm:$0xff]  }
 0x131   :  { %20629 = vmatpush3.bf16.msra.mxu1 %v23172_v35  ;;  %22394 = vmatpush3.bf16.msra.mxu0 %v23173_v36  ;;  %v1549_v35 = vld [vmem:[#allocation2 + $0xb0] sm:$0xfc] }
 0x132   :  { %20630 = vmatprep.subr.bf16.mxu1 %v23174_v43  ;;  %22395 = vmatprep.subr.bf16.mxu0 %v24983_v33  ;;  %v1559_v36 = vpack.c.bf16 %v24983_v33, %v1549_v35 }
 0x133   :  { %22409 = vmatprep.mubr.msk.bf16.mxu0 %vm24771_vm3, %v24983_v33 }
 0x134   :  { %v1650_v43 = vrot.slane %v1559_v36, 1  ;;  %v23238_v36 = vld [vmem:[#allocation4 + $0x478] sm:$0xff]  }
 0x135   :  { %20631 = vmatpush3.bf16.msra.mxu1 %v23175_v48  ;;  %22396 = vmatpush3.bf16.msra.mxu0 %v23176_v51  ;;  %v23216_v48 = vld [vmem:[#allocation4 + $0x3b0] sm:$0xff]   ;;  %v2036_v51 = vld [vmem:[#allocation2 + $0x100] sm:$0x1] }
 0x136   :  { %20632 = vmatprep.subr.bf16.mxu1 %v23177_v52  ;;  %22397 = vmatprep.subr.bf16.mxu0 %v24983_v33  ;;  %v23218_v52 = vld [vmem:[#allocation4 + $0x308] sm:$0xff]  }
 0x139   :  { %20633 = vmatpush3.bf16.msra.mxu1 %v23178_v55  ;;  %22398 = vmatpush3.bf16.msra.mxu0 %v23179_v56  ;;  %v23220_v55 = vld [vmem:[#allocation4 + $0x340] sm:$0xff]   ;;  %v2046_v56 = vpack.c.bf16 %v2036_v51, %v2036_v51 }
 0x13a   :  { %20634 = vmatprep.subr.bf16.mxu1 %v23180_v57  ;;  %22399 = vmatprep.subr.bf16.mxu0 %v24983_v33  ;;  %v23221_v57 = vld [vmem:[#allocation4 + $0x300] sm:$0xff]  }
 0x13d   :  { %20635 = vmatpush3.bf16.msra.mxu1 %v23181_v58  ;;  %22400 = vmatpush3.bf16.msra.mxu0 %v23182_v59  ;;  %v23222_v58 = vld [vmem:[#allocation4 + $0x3a0] sm:$0xff]   ;;  %v25022_v59 = vld [vmem:[#allocation2 + $0x110] sm:$0xff] }
 0x13e   :  { %22401 = vmatprep.subr.bf16.mxu0 %v24983_v33  ;;  %20651 = vmatprep.subr.bf16.mxu1 %v23183_v62  ;;  %v2151_v62 = vrot.slane %v2149_v0, 2  ;;  %v1561_v63 = vpack.c.bf16 %v25022_v59, %v1551_v60  ;;  %v23249_v60 = vld [vmem:[#allocation4 + $0x3c0] sm:$0xff]  }
 0x140   :  { %1500 = vmatmul.mubr.bf16.vlgmr.msra.gmra.mxu1 %v604_v4  ;;  %v23225_v4 = vld [vmem:[#allocation4 + $0x3f8] sm:$0xff]  }
 0x141   :  { %22402 = vmatpush3.bf16.msra.mxu0 %v23184_v2  ;;  %20652 = vmatpush3.bf16.msra.mxu1 %v23185_v3  ;;  %v2154_v2 = vshll.u32 %v2046_v56, 16  ;;  %v23224_v3 = vld [vmem:[#allocation4 + $0x398] sm:$0xff]  }
 0x142   :  { %1932 = vmatprep.mubr.bf16.mxu1 %v1651_v6  ;;  %22403 = vmatprep.subr.bf16.mxu0 %v24983_v33  ;;  %v1652_v6 = vrot.slane %v1561_v63, 1 }
 0x143   :  { %20653 = vmatprep.subr.bf16.mxu1 %v23186_v5  ;;  %v2152_v5 = vor.u32 %v2151_v62, %v2148_v61  ;;  %v23250_v61 = vld [vmem:[#allocation4 + $0x460] sm:$0xff]  }
 0x145   :  { %22404 = vmatpush3.bf16.msra.mxu0 %v23187_v7  ;;  %20654 = vmatpush3.bf16.msra.mxu1 %v23188_v8  ;;  %v2156_v7 = vrot.slane %v2154_v2, 2  ;;  %v23226_v8 = vld [vmem:[#allocation4 + $0x430] sm:$0xff]   ;;  %v23252_v2 = vld [vmem:[#allocation4 + $0x458] sm:$0xff]  }
 0x146   :  { %22405 = vmatprep.subr.bf16.mxu0 %v24983_v33  ;;  %20655 = vmatprep.subr.bf16.mxu1 %v23189_v40  ;;  %v25027_v40 = vld [vmem:[#allocation2 + $0x90] sm:$0xff] }
 0x149   :  { %22406 = vmatpush3.bf16.msra.mxu0 %v23190_v9  ;;  %20656 = vmatpush3.bf16.msra.mxu1 %v23191_v10  ;;  %v23227_v9 = vld [vmem:[#allocation4 + $0x390] sm:$0xff]  }
 0x14a   :  { %22407 = vmatprep.subr.bf16.mxu0 %v24983_v33  ;;  %20657 = vmatprep.subr.bf16.mxu1 %v23192_v11  ;;  %v23228_v10 = vld [vmem:[#allocation4 + $0x3f0] sm:$0xff]   ;;  %v23229_v11 = vld [vmem:[#allocation4 + $0x428] sm:$0xff]  }
 0x14d   :  { %22408 = vmatpush3.bf16.msra.mxu0 %v23193_v12  ;;  %20658 = vmatpush3.bf16.msra.mxu1 %v23194_v13  ;;  %v2028_v12 = vld [vmem:[#allocation2 + $0x48] sm:$0xf8]  ;;  %v2157_v13 = vsel %vm2131_vm4, %v2152_v5, %v2156_v7 }
 0x14e   :  { %20659 = vmatprep.subr.bf16.mxu1 %v23195_v14  ;;  %20673 = vmatprep.subr.bf16.mxu0 %v23196_v15  ;;  %v2038_v14 = vld [vmem:[#allocation2 + $0x88] sm:$0x1]  ;;  %v2043_v15 = vpack.c.bf16 %v25027_v40, %v2028_v12 }
 0x150   :  { %22410 = vmatmul.mubr.bf16.vlgmr.msra.gmra.mxu0 %v606_v24  ;;  %v2172_v21 = vshrl.u32 %v2043_v15, 16 }
 0x151   :  { %20660 = vmatpush3.bf16.msra.mxu1 %v23197_v19  ;;  %20674 = vmatpush3.bf16.msra.mxu0 %v23198_v20  ;;  %v23232_v19 = vld [vmem:[#allocation4 + $0x420] sm:$0xff]   ;;  %v2048_v20 = vpack.c.bf16 %v2038_v14, %v2038_v14  ;;  %v23258_v14 = vld [vmem:[#allocation4 + $0x448] sm:$0xff]  }
 0x152   :  { %1973 = vmatprep.mubr.bf16.mxu0 %v1653_v26  ;;  %20661 = vmatprep.subr.bf16.mxu1 %v23199_v22  ;;  %v2175_v22 = vshll.u32 %v2043_v15, 16  ;;  %v23234_v26 = vld [vmem:[#allocation4 + $0x3e0] sm:$0xff]   ;;  %v23259_v15 = vld [vmem:[#allocation4 + $0x4e8] sm:$0xff]  }
 0x153   :  { %20675 = vmatprep.subr.bf16.mxu0 %v23200_v23  ;;  %v24684_v23 = vld [vmem:[#allocation2 + $0xf0] sm:$0xff] }
 0x154   :  { %v1563_v24 = vpack.c.bf16 %v24684_v23, %v1553_v16 }
 0x155   :  { %20662 = vmatpush3.bf16.msra.mxu1 %v23201_v25  ;;  %20676 = vmatpush3.bf16.msra.mxu0 %v23202_v27  ;;  %v23233_v25 = vld [vmem:[#allocation4 + $0x380] sm:$0xff]   ;;  %v23235_v27 = vld [vmem:[#allocation4 + $0x418] sm:$0xff]  }
 0x156   :  { %20663 = vmatprep.subr.bf16.mxu1 %v23203_v28  ;;  %20677 = vmatprep.subr.bf16.mxu0 %v23204_v30  ;;  %v2174_v28 = vrot.slane %v2172_v21, 1  ;;  %v2177_v30 = vrot.slane %v2175_v22, 2  ;;  %v1654_v35 = vrot.slane %v1563_v24, 1  ;;  %v23261_v24 = vld [vmem:[#allocation4 + $0x440] sm:$0xff]  }
 0x159   :  { %20664 = vmatpush3.bf16.msra.mxu1 %v23205_v31  ;;  %20678 = vmatpush3.bf16.msra.mxu0 %v23206_v29  ;;  %v2180_v31 = vshll.u32 %v2048_v20, 16  ;;  %v25033_v29 = vld [vmem:[#allocation2 + $0xb0] sm:$0xff] }
 0x15a   :  { %20665 = vmatprep.subr.bf16.mxu1 %v23207_v32  ;;  %20679 = vmatprep.subr.bf16.mxu0 %v23208_v34  ;;  %v23236_v32 = vld [vmem:[#allocation4 + $0x4b8] sm:$0xff]  }
 0x15b   :  { %v2025_v34 = vld [vmem:[#allocation2 + $0xb0] sm:$0xf8] }
 0x15d   :  { %20666 = vmatpush3.bf16.msra.mxu1 %v23209_v37  ;;  %20680 = vmatpush3.bf16.msra.mxu0 %v23210_v38  ;;  %v23239_v37 = vld [vmem:[#allocation4 + $0x410] sm:$0xff]   ;;  %v2178_v38 = vor.u32 %v2177_v30, %v2174_v28  ;;  %v23263_v28 = vld [vmem:[#allocation4 + $0x578] sm:$0xff]  }
 0x15e   :  { %20681 = vmatprep.subr.bf16.mxu0 %v23211_v39  ;;  %22413 = vmatprep.subr.bf16.mxu1 %v24983_v33  ;;  %v2182_v39 = vrot.slane %v2180_v31, 2  ;;  %v25047_v30 = vld [vmem:[#allocation2 + $0xf0] sm:$0xff] }
 0x160   :  { %1933 = vmatmul.mubr.bf16.vlgmr.msra.gmra.mxu1 %v1650_v43  ;;  %v2040_v43 = vpack.c.bf16 %v25033_v29, %v2025_v34  ;;  %v23265_v34 = vld [vmem:[#allocation4 + $0x538] sm:$0xff]  }
 0x161   :  { %20682 = vmatpush3.bf16.msra.mxu0 %v23212_v41  ;;  %22414 = vmatpush3.bf16.msra.mxu1 %v23213_v42  ;;  %v23240_v41 = vld [vmem:[#allocation4 + $0x4b0] sm:$0xff]   ;;  %v2035_v42 = vld [vmem:[#allocation2 + $0x70] sm:$0x1] }
 0x162   :  { %20683 = vmatprep.subr.bf16.mxu0 %v23214_v44  ;;  %22415 = vmatprep.subr.bf16.mxu1 %v24983_v33  ;;  %v23241_v44 = vld [vmem:[#allocation4 + $0x3d0] sm:$0xff]   ;;  %v2045_v50 = vpack.c.bf16 %v2035_v42, %v2035_v42  ;;  %v2133_v51 = vshrl.u32 %v2040_v43, 16 }
 0x163   :  { %22429 = vmatprep.mubr.msk.bf16.mxu1 %vm24771_vm3, %v24983_v33  ;;  %v23267_v42 = vld [vmem:[#allocation4 + $0x4d0] sm:$0xff]  }
 0x164   :  { %v2135_v0 = vrot.slane %v2133_v51, 1  ;;  %v2141_v56 = vshll.u32 %v2045_v50, 16  ;;  %v2575_v50 = vld [vmem:[#allocation2 + $0x88] sm:$0x3]  ;;  %v23270_v51 = vld [vmem:[#allocation4 + $0x4c8] sm:$0xff]  }
 0x165   :  { %20684 = vmatpush3.bf16.msra.mxu0 %v23215_v47  ;;  %22416 = vmatpush3.bf16.msra.mxu1 %v23216_v48  ;;  %v23243_v47 = vld [vmem:[#allocation4 + $0x408] sm:$0xff]  }
 0x166   :  { %20685 = vmatprep.subr.bf16.mxu0 %v23217_v49  ;;  %22417 = vmatprep.subr.bf16.mxu1 %v24983_v33  ;;  %v23244_v48 = vld [vmem:[#allocation4 + $0x4a8] sm:$0xff]   ;;  %v2183_v49 = vsel %vm2131_vm4, %v2178_v38, %v2182_v39  ;;  %v2143_v63 = vrot.slane %v2141_v56, 2 }
 0x169   :  { %20686 = vmatpush3.bf16.msra.mxu0 %v23218_v52  ;;  %22418 = vmatpush3.bf16.msra.mxu1 %v23219_v53  ;;  %v2136_v52 = vshll.u32 %v2040_v43, 16  ;;  %v23245_v53 = vld [vmem:[#allocation4 + $0x3c8] sm:$0xff]   ;;  %v23268_v43 = vld [vmem:[#allocation4 + $0x530] sm:$0xff]  }
 0x16a   :  { %20687 = vmatprep.subr.bf16.mxu0 %v23220_v55  ;;  %22419 = vmatprep.subr.bf16.mxu1 %v24983_v33 }
 0x16b   :  { %v2138_v55 = vrot.slane %v2136_v52, 2  ;;  %v23271_v52 = vld [vmem:[#allocation4 + $0x528] sm:$0xff]  }
 0x16d   :  { %20688 = vmatpush3.bf16.msra.mxu0 %v23221_v57  ;;  %22420 = vmatpush3.bf16.msra.mxu1 %v23222_v58  ;;  %v23247_v57 = vld [vmem:[#allocation4 + $0x400] sm:$0xff]   ;;  %v2139_v62 = vor.u32 %v2138_v55, %v2135_v0 }
 0x16e   :  { %22421 = vmatprep.subr.bf16.mxu1 %v24983_v33  ;;  %20704 = vmatprep.subr.bf16.mxu0 %v23223_v1  ;;  %v23248_v58 = vld [vmem:[#allocation4 + $0x4a0] sm:$0xff]   ;;  %v23251_v1 = vld [vmem:[#allocation4 + $0x498] sm:$0xff]  }
 0x16f   :  { %v2144_v5 = vsel %vm2131_vm4, %v2139_v62, %v2143_v63  ;;  %v23275_v62 = vld [vmem:[#allocation4 + $0x558] sm:$0xff]  }
 0x170   :  { %1974 = vmatmul.mubr.bf16.vlgmr.msra.gmra.mxu0 %v1652_v6  ;;  %v23254_v6 = vld [vmem:[#allocation4 + $0x490] sm:$0xff]   ;;  %v23276_v63 = vld [vmem:[#allocation4 + $0x5f8] sm:$0xff]  }
 0x171   :  { %22422 = vmatpush3.bf16.msra.mxu1 %v23224_v3  ;;  %20705 = vmatpush3.bf16.msra.mxu0 %v23225_v4  ;;  %v23253_v3 = vld [vmem:[#allocation4 + $0x4f8] sm:$0xff]  }
 0x172   :  { %2474 = vmatprep.mubr.bf16.mxu0 %v2157_v13  ;;  %22423 = vmatprep.subr.bf16.mxu1 %v24983_v33  ;;  %v2027_v4 = vld [vmem:[#allocation2 + $0x10] sm:$0xf8] }
 0x173   :  { %20706 = vmatprep.subr.bf16.mxu0 %v23226_v8  ;;  %v2042_v7 = vpack.c.bf16 %v25022_v59, %v2027_v4  ;;  %v23255_v8 = vld [vmem:[#allocation4 + $0x450] sm:$0xff]   ;;  %v23278_v4 = vld [vmem:[#allocation4 + $0x5b8] sm:$0xff]  }
 0x175   :  { %22424 = vmatpush3.bf16.msra.mxu1 %v23227_v9  ;;  %20707 = vmatpush3.bf16.msra.mxu0 %v23228_v10  ;;  %v23256_v9 = vld [vmem:[#allocation4 + $0x4f0] sm:$0xff]   ;;  %v2037_v10 = vld [vmem:[#allocation2 + $0xc0] sm:$0x1]  ;;  %v2159_v12 = vshrl.u32 %v2042_v7, 16  ;;  %v2162_v13 = vshll.u32 %v2042_v7, 16 }
 0x176   :  { %22425 = vmatprep.subr.bf16.mxu1 %v24983_v33  ;;  %20708 = vmatprep.subr.bf16.mxu0 %v23229_v11  ;;  %v23237_v33 = vld [vmem:[#allocation4 + $0x3d8] sm:$0xff]   ;;  %v23257_v11 = vld [vmem:[#allocation4 + $0x488] sm:$0xff]   ;;  %v2047_v16 = vpack.c.bf16 %v2037_v10, %v2037_v10 }
 0x177   :  { %v2161_v20 = vrot.slane %v2159_v12, 1  ;;  %v2164_v21 = vrot.slane %v2162_v13, 2  ;;  %v23283_v10 = vld [vmem:[#allocation4 + $0x548] sm:$0xff]   ;;  %v2567_v12 = vld [vmem:[#allocation2 + $0xb0] sm:$0xf0] }
 0x179   :  { %22426 = vmatpush3.bf16.msra.mxu1 %v23230_v17  ;;  %20709 = vmatpush3.bf16.msra.mxu0 %v23231_v18  ;;  %v2573_v17 = vld [vmem:[#allocation2 + $0x100] sm:$0x3]  ;;  %v23260_v18 = vld [vmem:[#allocation4 + $0x480] sm:$0xff]   ;;  %v2165_v31 = vor.u32 %v2164_v21, %v2161_v20 }
 0x17a   :  { %22427 = vmatprep.subr.bf16.mxu1 %v25033_v29  ;;  %20710 = vmatprep.subr.bf16.mxu0 %v23232_v19  ;;  %v2568_v19 = vld [vmem:[#allocation2 + $0xd0] sm:$0xf0]  ;;  %v2583_v23 = vpack.c.bf16 %v2573_v17, %v2573_v17  ;;  %v23287_v17 = vld [vmem:[#allocation4 + $0x540] sm:$0xff]  }
 0x17b   :  { %v2578_v22 = vpack.c.bf16 %v25015_v46, %v2568_v19  ;;  %v23288_v20 = vld [vmem:[#allocation4 + $0x5e0] sm:$0xff]  }
 0x17c   :  { %v23289_v21 = vld [vmem:[#allocation4 + $0x500] sm:$0xff]  }
 0x17d   :  { %22428 = vmatpush3.bf16.msra.mxu1 %v23233_v25  ;;  %20711 = vmatpush3.bf16.msra.mxu0 %v23234_v26  ;;  %v23262_v25 = vld [vmem:[#allocation4 + $0x4e0] sm:$0xff]   ;;  %v2167_v26 = vshll.u32 %v2047_v16, 16  ;;  %v23286_v16 = vld [vmem:[#allocation4 + $0x5a8] sm:$0xff]  }
 0x17e   :  { %20712 = vmatprep.subr.bf16.mxu0 %v23235_v27  ;;  %20726 = vmatprep.subr.bf16.mxu1 %v23236_v32  ;;  %v2029_v27 = vld [vmem:[#allocation2 + $0x108] sm:$0xf8]  ;;  %v23264_v32 = vld [vmem:[#allocation4 + $0x4d8] sm:$0xff]  }
 0x17f   :  { %v2169_v46 = vrot.slane %v2167_v26, 2  ;;  %v2044_v38 = vpack.c.bf16 %v25047_v30, %v2029_v27  ;;  %v23292_v26 = vld [vmem:[#allocation4 + $0x598] sm:$0xff]  }
 0x180   :  { %22430 = vmatmul.mubr.bf16.vlgmr.msra.gmra.mxu1 %v1654_v35  ;;  %v2682_v35 = vrot.slane %v2578_v22, 2  ;;  %v23290_v22 = vld [vmem:[#allocation4 + $0x5a0] sm:$0xff]   ;;  %v23293_v27 = vld [vmem:[#allocation4 + $0x638] sm:$0xff]  }
 0x181   :  { %20713 = vmatpush3.bf16.msra.mxu0 %v23237_v33  ;;  %20727 = vmatpush3.bf16.msra.mxu1 %v23238_v36  ;;  %v2683_v33 = vrot.slane %v2583_v23, 2  ;;  %v23266_v36 = vld [vmem:[#allocation4 + $0x570] sm:$0xff]   ;;  %v2170_v39 = vsel %vm2131_vm4, %v2165_v31, %v2169_v46 }
 0x182   :  { %2515 = vmatprep.mubr.bf16.mxu1 %v2183_v49  ;;  %20714 = vmatprep.subr.bf16.mxu0 %v23239_v37  ;;  %v2039_v37 = vld [vmem:[#allocation2 + $0x98] sm:$0x1]  ;;  %v2570_v49 = vld [vmem:[#allocation2 + $0x48] sm:$0xf0] }
 0x183   :  { %20728 = vmatprep.subr.bf16.mxu1 %v23240_v41  ;;  %v2684_v41 = vsel %vm2678_vm5, %v2682_v35, %v2683_v33  ;;  %v2580_v0 = vpack.c.bf16 %v25027_v40, %v2570_v49  ;;  %v23295_v35 = vld [vmem:[#allocation4 + $0x590] sm:$0xff]  }
 0x184   :  { %v23296_v33 = vld [vmem:[#allocation4 + $0x630] sm:$0xff]  }
 0x185   :  { %20715 = vmatpush3.bf16.msra.mxu0 %v23241_v44  ;;  %20729 = vmatpush3.bf16.msra.mxu1 %v23242_v45  ;;  %v2185_v44 = vshrl.u32 %v2044_v38, 16  ;;  %v23269_v45 = vld [vmem:[#allocation4 + $0x568] sm:$0xff]  }
 0x186   :  { %20716 = vmatprep.subr.bf16.mxu0 %v23243_v47  ;;  %20730 = vmatprep.subr.bf16.mxu1 %v23244_v48  ;;  %v2049_v47 = vpack.c.bf16 %v2039_v37, %v2039_v37  ;;  %v2188_v48 = vshll.u32 %v2044_v38, 16  ;;  %v23297_v38 = vld [vmem:[#allocation4 + $0x5c8] sm:$0xff]  }
 0x187   :  { %v2187_v55 = vrot.slane %v2185_v44, 1  ;;  %v23299_v44 = vld [vmem:[#allocation4 + $0x628] sm:$0xff]  }
 0x188   :  { %v2190_v56 = vrot.slane %v2188_v48, 2 }
 0x189   :  { %20717 = vmatpush3.bf16.msra.mxu0 %v23245_v53  ;;  %20731 = vmatpush3.bf16.msra.mxu1 %v23246_v54  ;;  %v23272_v53 = vld [vmem:[#allocation4 + $0x560] sm:$0xff]   ;;  %v2193_v54 = vshll.u32 %v2049_v47, 16 }
 0x18a   :  { %20718 = vmatprep.subr.bf16.mxu0 %v23247_v57  ;;  %20732 = vmatprep.subr.bf16.mxu1 %v23248_v58  ;;  %v23273_v57 = vld [vmem:[#allocation4 + $0x4c0] sm:$0xff]  }
 0x18b   :  { %v23274_v58 = vld [vmem:[#allocation4 + $0x520] sm:$0xff]  }
 0x18d   :  { %20719 = vmatpush3.bf16.msra.mxu0 %v23249_v60  ;;  %20733 = vmatpush3.bf16.msra.mxu1 %v23250_v61  ;;  %v2585_v60 = vpack.c.bf16 %v2575_v50, %v2575_v50  ;;  %v2195_v61 = vrot.slane %v2193_v54, 2  ;;  %v23301_v50 = vld [vmem:[#allocation4 + $0x580] sm:$0xff]   ;;  %v23303_v54 = vld [vmem:[#allocation4 + $0x1b8] sm:$0xff]  }
 0x18e   :  { %20734 = vmatprep.subr.bf16.mxu1 %v23251_v1  ;;  %22433 = vmatprep.subr.bf16.mxu0 %v25033_v29  ;;  %v2688_v1 = vrot.slane %v2580_v0, 2 }
 0x18f   :  { %v2689_v40 = vrot.slane %v2585_v60, 2  ;;  %v3179_v60 = vld [vmem:[#allocation2 + $0xf0] sm:$0x7f] }
 0x190   :  { %2475 = vmatmul.mubr.bf16.vlgmr.msra.gmra.mxu0 %v2144_v5  ;;  %v23279_v5 = vld [vmem:[#allocation4 + $0x550] sm:$0xff]  }
 0x191   :  { %20735 = vmatpush3.bf16.msra.mxu1 %v23252_v2  ;;  %22434 = vmatpush3.bf16.msra.mxu0 %v23253_v3  ;;  %v2191_v2 = vor.u32 %v2190_v56, %v2187_v55  ;;  %v23277_v3 = vld [vmem:[#allocation4 + $0x518] sm:$0xff]   ;;  %v2690_v13 = vsel %vm2678_vm5, %v2688_v1, %v2689_v40  ;;  %v23309_v40 = vld [vmem:[#allocation4 + $0x1a8] sm:$0xff]  }
 0x192   :  { %20736 = vmatprep.subr.bf16.mxu1 %v23254_v6  ;;  %22435 = vmatprep.subr.bf16.mxu0 %v25033_v29  ;;  %v23280_v6 = vld [vmem:[#allocation4 + $0x5f0] sm:$0xff]   ;;  %v23304_v55 = vld [vmem:[#allocation4 + $0x618] sm:$0xff]  }
 0x193   :  { %22449 = vmatprep.mubr.msk.bf16.mxu0 %vm24771_vm3, %v25033_v29  ;;  %v2196_v7 = vsel %vm2131_vm4, %v2191_v2, %v2195_v61  ;;  %v23305_v56 = vld [vmem:[#allocation4 + $0x178] sm:$0xff]   ;;  %v23307_v2 = vld [vmem:[#allocation4 + $0x610] sm:$0xff]  }
 0x195   :  { %20737 = vmatpush3.bf16.msra.mxu1 %v23255_v8  ;;  %22436 = vmatpush3.bf16.msra.mxu0 %v23256_v9  ;;  %v23281_v8 = vld [vmem:[#allocation4 + $0x510] sm:$0xff]  }
 0x196   :  { %20738 = vmatprep.subr.bf16.mxu1 %v23257_v11  ;;  %22437 = vmatprep.subr.bf16.mxu0 %v25033_v29  ;;  %v23282_v9 = vld [vmem:[#allocation4 + $0x5b0] sm:$0xff]   ;;  %v23284_v11 = vld [vmem:[#allocation4 + $0x5e8] sm:$0xff]  }
 0x199   :  { %20739 = vmatpush3.bf16.msra.mxu1 %v23258_v14  ;;  %22438 = vmatpush3.bf16.msra.mxu0 %v23259_v15  ;;  %v2572_v14 = vld [vmem:[#allocation2 + $0x70] sm:$0x3]  ;;  %v23285_v15 = vld [vmem:[#allocation4 + $0x508] sm:$0xff]  }
 0x19a   :  { %20740 = vmatprep.subr.bf16.mxu1 %v23260_v18  ;;  %22439 = vmatprep.subr.bf16.mxu0 %v25033_v29  ;;  %v2577_v18 = vpack.c.bf16 %v25033_v29, %v2567_v12  ;;  %v2582_v19 = vpack.c.bf16 %v2572_v14, %v2572_v14  ;;  %v23311_v12 = vld [vmem:[#allocation4 + $0x168] sm:$0xff]  }
 0x19c   :  { %v2679_v23 = vrot.slane %v2577_v18, 2 }
 0x19d   :  { %20741 = vmatpush3.bf16.msra.mxu1 %v23261_v24  ;;  %22440 = vmatpush3.bf16.msra.mxu0 %v23262_v25  ;;  %v2680_v24 = vrot.slane %v2582_v19, 2  ;;  %v23291_v25 = vld [vmem:[#allocation4 + $0x5d8] sm:$0xff]  }
 0x19e   :  { %22441 = vmatprep.subr.bf16.mxu0 %v25033_v29  ;;  %20757 = vmatprep.subr.bf16.mxu1 %v23263_v28  ;;  %v3177_v28 = vld [vmem:[#allocation2 + $0x110] sm:$0x7f] }
 0x19f   :  { %v2681_v31 = vsel %vm2678_vm5, %v2679_v23, %v2680_v24  ;;  %v23315_v24 = vld [vmem:[#allocation4 + $0x198] sm:$0xff]  }
 0x1a0   :  { %2516 = vmatmul.mubr.bf16.vlgmr.msra.gmra.mxu1 %v2170_v39 }
 0x1a1   :  { %22442 = vmatpush3.bf16.msra.mxu0 %v23264_v32  ;;  %20758 = vmatpush3.bf16.msra.mxu1 %v23265_v34  ;;  %v23294_v32 = vld [vmem:[#allocation4 + $0x5d0] sm:$0xff]   ;;  %v3172_v34 = vld [vmem:[#allocation2 + $0x10] sm:$0xfe] }
 0x1a2   :  { %2971 = vmatprep.mubr.bf16.mxu1 %v2684_v41  ;;  %22443 = vmatprep.subr.bf16.mxu0 %v25033_v29  ;;  %v23298_v41 = vld [vmem:[#allocation4 + $0x588] sm:$0xff]  }
 0x1a3   :  { %20759 = vmatprep.subr.bf16.mxu1 %v23266_v36  ;;  %v3182_v36 = vpack.c.bf16 %v3177_v28, %v3172_v34  ;;  %v23319_v34 = vld [vmem:[#allocation4 + $0x190] sm:$0xff]  }
 0x1a5   :  { %22444 = vmatpush3.bf16.msra.mxu0 %v23267_v42  ;;  %20760 = vmatpush3.bf16.msra.mxu1 %v23268_v43  ;;  %v2569_v42 = vld [vmem:[#allocation2 + $0x10] sm:$0xf0]  ;;  %v2574_v43 = vld [vmem:[#allocation2 + $0xc0] sm:$0x3]  ;;  %v3276_v47 = vshll.u32 %v3182_v36, 16 }
 0x1a6   :  { %22445 = vmatprep.subr.bf16.mxu0 %v25033_v29  ;;  %20761 = vmatprep.subr.bf16.mxu1 %v23269_v45  ;;  %v23300_v45 = vld [vmem:[#allocation4 + $0x5c0] sm:$0xff]   ;;  %v2579_v48 = vpack.c.bf16 %v25022_v59, %v2569_v42  ;;  %v2584_v49 = vpack.c.bf16 %v2574_v43, %v2574_v43  ;;  %v3174_v59 = vld [vmem:[#allocation2 + $0x108] sm:$0xfe]  ;;  %v23323_v42 = vld [vmem:[#allocation4 + $0x188] sm:$0xff]  }
 0x1a7   :  { %v3278_v0 = vrot.slane %v3276_v47, 1  ;;  %v23324_v43 = vld [vmem:[#allocation4 + $0x228] sm:$0xff]  }
 0x1a8   :  { %v23325_v47 = vld [vmem:[#allocation4 + $0x148] sm:$0xff]  }
 0x1a9   :  { %22446 = vmatpush3.bf16.msra.mxu0 %v23270_v51  ;;  %20762 = vmatpush3.bf16.msra.mxu1 %v23271_v52  ;;  %v23302_v51 = vld [vmem:[#allocation4 + $0x620] sm:$0xff]   ;;  %v2685_v52 = vrot.slane %v2579_v48, 2 }
 0x1aa   :  { %22447 = vmatprep.subr.bf16.mxu0 %v25033_v29  ;;  %20763 = vmatprep.subr.bf16.mxu1 %v23272_v53  ;;  %v2686_v53 = vrot.slane %v2584_v49, 2  ;;  %v23326_v49 = vld [vmem:[#allocation4 + $0x1e8] sm:$0xff]  }
 0x1ac   :  { %v2687_v61 = vsel %vm2678_vm5, %v2685_v52, %v2686_v53  ;;  %v23328_v52 = vld [vmem:[#allocation4 + $0x220] sm:$0xff]  }
 0x1ad   :  { %22448 = vmatpush3.bf16.msra.mxu0 %v23273_v57  ;;  %20764 = vmatpush3.bf16.msra.mxu1 %v23274_v58  ;;  %v3274_v57 = vshrl.u32 %v3182_v36, 16  ;;  %v23306_v58 = vld [vmem:[#allocation4 + $0x1b0] sm:$0xff]  }
 0x1ae   :  { %20765 = vmatprep.subr.bf16.mxu1 %v23275_v62  ;;  %20779 = vmatprep.subr.bf16.mxu0 %v23276_v63 }
 0x1af   :  { %v3279_v1 = vor.u32 %v3278_v0, %v3274_v57  ;;  %v23329_v0 = vld [vmem:[#allocation4 + $0x140] sm:$0xff]   ;;  %v23331_v57 = vld [vmem:[#allocation4 + $0x218] sm:$0xff]  }
 0x1b0   :  { %22450 = vmatmul.mubr.bf16.vlgmr.msra.gmra.mxu0 %v2196_v7 }
 0x1b1   :  { %20766 = vmatpush3.bf16.msra.mxu1 %v23277_v3  ;;  %20780 = vmatpush3.bf16.msra.mxu0 %v23278_v4  ;;  %v23308_v3 = vld [vmem:[#allocation4 + $0x170] sm:$0xff]  }
 0x1b2   :  { %3012 = vmatprep.mubr.bf16.mxu0 %v2690_v13  ;;  %20767 = vmatprep.subr.bf16.mxu1 %v23279_v5  ;;  %v2571_v4 = vld [vmem:[#allocation2 + $0x108] sm:$0xf0]  ;;  %v2576_v5 = vld [vmem:[#allocation2 + $0x98] sm:$0x3] }
 0x1b3   :  { %20781 = vmatprep.subr.bf16.mxu0 %v23280_v6  ;;  %v23312_v13 = vld [vmem:[#allocation4 + $0x1a0] sm:$0xff]  }
 0x1b5   :  { %20768 = vmatpush3.bf16.msra.mxu1 %v23281_v8  ;;  %20782 = vmatpush3.bf16.msra.mxu0 %v23282_v9  ;;  %v3184_v8 = vpack.c.bf16 %v3179_v60, %v3174_v59  ;;  %v23332_v60 = vld [vmem:[#allocation4 + $0x1d8] sm:$0xff]  }
 0x1b6   :  { %20769 = vmatprep.subr.bf16.mxu1 %v23283_v10  ;;  %20783 = vmatprep.subr.bf16.mxu0 %v23284_v11  ;;  %v23310_v11 = vld [vmem:[#allocation4 + $0x608] sm:$0xff]  }
 0x1b9   :  { %20770 = vmatpush3.bf16.msra.mxu1 %v23285_v15  ;;  %20784 = vmatpush3.bf16.msra.mxu0 %v23286_v16  ;;  %v2581_v15 = vpack.c.bf16 %v25047_v30, %v2571_v4  ;;  %v23316_v30 = vld [vmem:[#allocation4 + $0x238] sm:$0xff]   ;;  %v23336_v4 = vld [vmem:[#allocation4 + $0x270] sm:$0xff]  }
 0x1ba   :  { %20771 = vmatprep.subr.bf16.mxu1 %v23287_v17  ;;  %20785 = vmatprep.subr.bf16.mxu0 %v23288_v20  ;;  %v2586_v17 = vpack.c.bf16 %v2576_v5, %v2576_v5  ;;  %v23313_v20 = vld [vmem:[#allocation4 + $0x600] sm:$0xff]   ;;  %v23337_v5 = vld [vmem:[#allocation4 + $0x208] sm:$0xff]  }
 0x1bb   :  { %v2691_v23 = vrot.slane %v2581_v15, 2 }
 0x1bd   :  { %20772 = vmatpush3.bf16.msra.mxu1 %v23289_v21  ;;  %20786 = vmatpush3.bf16.msra.mxu0 %v23290_v22  ;;  %v3290_v21 = vshll.u32 %v3184_v8, 16  ;;  %v23314_v22 = vld [vmem:[#allocation4 + $0x160] sm:$0xff]  }
 0x1be   :  { %20787 = vmatprep.subr.bf16.mxu0 %v23291_v25  ;;  %22453 = vmatprep.subr.bf16.mxu1 %v25033_v29 }
 0x1bf   :  { %v3292_v28 = vrot.slane %v3290_v21, 1 }
 0x1c0   :  { %2972 = vmatmul.mubr.bf16.vlgmr.msra.gmra.mxu1 %v2681_v31  ;;  %v20561_v46 = vpop.f32.mrf.mxu1  ;;  %v23317_v31 = vld [vmem:[#allocation4 + $0x158] sm:$0xff]  }
 0x1c1   :  { %20788 = vmatpush3.bf16.msra.mxu0 %v23292_v26  ;;  %22454 = vmatpush3.bf16.msra.mxu1 %v23293_v27  ;;  %v2692_v26 = vrot.slane %v2586_v17, 2  ;;  %v3288_v27 = vshrl.u32 %v3184_v8, 16 }
 0x1c2   :  { %20789 = vmatprep.subr.bf16.mxu0 %v23294_v32  ;;  %22455 = vmatprep.subr.bf16.mxu1 %v25033_v29  ;;  %v20562_v37 = vpop.f32.mrf.mxu1  ;;  %v23318_v32 = vld [vmem:[#allocation4 + $0x1f8] sm:$0xff]  }
 0x1c3   :  { %v20563_v39 = vadd.f32 %v20562_v37, %v20561_v46  ;;  %22469 = vmatprep.mubr.msk.bf16.mxu1 %vm24771_vm3, %v25033_v29  ;;  %v2693_v46 = vsel %vm2678_vm5, %v2691_v23, %v2692_v26  ;;  %v3293_v37 = vor.u32 %v3292_v28, %v3288_v27  ;;  %v23344_v23 = vld [vmem:[#allocation4 + $0x258] sm:$0xff]   ;;  %v23346_v28 = vld [vmem:[#allocation4 + $0x70] sm:$0xff]  }
 0x1c4   :  { %v20564_v62 = vpop.f32.mrf.mxu1  ;;  %v3077_v26 = vld [vmem:[#allocation2 + $0x10] sm:$0xff] }
 0x1c5   :  { %20790 = vmatpush3.bf16.msra.mxu0 %v23295_v35  ;;  %22456 = vmatpush3.bf16.msra.mxu1 %v23296_v33  ;;  %v23320_v35 = vld [vmem:[#allocation4 + $0x230] sm:$0xff]   ;;  %v3176_v33 = vld [vmem:[#allocation2 + $0x80] sm:$0x7f] }
 0x1c6   :  { %20791 = vmatprep.subr.bf16.mxu0 %v23297_v38  ;;  %22457 = vmatprep.subr.bf16.mxu1 %v25033_v29  ;;  %v20565_v9 = vpop.f32.mrf.mxu1  ;;  %v23322_v38 = vld [vmem:[#allocation4 + $0x1f0] sm:$0xff]  }
 0x1c7   :  { %v20566_v18 = vadd.f32 %v20565_v9, %v20564_v62  ;;  %v23334_v62 = vld [vmem:[#allocation4 + $0x210] sm:$0xff]   ;;  %v23338_v9 = vld [vmem:[#allocation4 + $0x1c8] sm:$0xff]  }
 0x1c9   :  { %20792 = vmatpush3.bf16.msra.mxu0 %v23298_v41  ;;  %22458 = vmatpush3.bf16.msra.mxu1 %v23299_v44 }
 0x1ca   :  { %20793 = vmatprep.subr.bf16.mxu0 %v23300_v45  ;;  %22459 = vmatprep.subr.bf16.mxu1 %v25033_v29 }
 0x1cd   :  { %20794 = vmatpush3.bf16.msra.mxu0 %v23301_v50  ;;  %22460 = vmatpush3.bf16.msra.mxu1 %v23302_v51  ;;  %v23327_v50 = vld [vmem:[#allocation4 + $0x180] sm:$0xff]  }
 0x1ce   :  { %22461 = vmatprep.subr.bf16.mxu1 %v25033_v29  ;;  %20810 = vmatprep.subr.bf16.mxu0 %v23303_v54 }
 0x1d0   :  { %3013 = vmatmul.mubr.bf16.vlgmr.msra.gmra.mxu0 %v2687_v61  ;;  %v20583_v63 = vpop.f32.mrf.mxu0  ;;  %v23333_v61 = vld [vmem:[#allocation4 + $0x278] sm:$0xff]  }
 0x1d1   :  { %22462 = vmatpush3.bf16.msra.mxu1 %v23304_v55  ;;  %20811 = vmatpush3.bf16.msra.mxu0 %v23305_v56  ;;  %v23330_v55 = vld [vmem:[#allocation4 + $0x1e0] sm:$0xff]  }
 0x1d2   :  { %3578 = vmatprep.mubr.bf16.mxu0 %v3279_v1  ;;  %v20584_v6 = vpop.f32.mrf.mxu0  ;;  %22463 = vmatprep.subr.bf16.mxu1 %v25033_v29 }
 0x1d3   :  { %v20585_v7 = vadd.f32 %v20584_v6, %v20583_v63  ;;  %20812 = vmatprep.subr.bf16.mxu0 %v23306_v58  ;;  %v3178_v58 = vld [vmem:[#allocation2 + $0x90] sm:$0x7f]  ;;  %v3173_v63 = vld [vmem:[#allocation2 + $0x48] sm:$0xfe] }
 0x1d4   :  { %v20586_v10 = vpop.f32.mrf.mxu0  ;;  %v3183_v6 = vpack.c.bf16 %v3178_v58, %v3173_v63  ;;  %v23359_v58 = vld [vmem:[#allocation4 + $0x50] sm:$0xff]  }
 0x1d5   :  { %22464 = vmatpush3.bf16.msra.mxu1 %v23307_v2  ;;  %20813 = vmatpush3.bf16.msra.mxu0 %v23308_v3  ;;  %v1139_v14 = vadd.f32 %v20585_v7, %v20563_v39  ;;  %v3171_v39 = vld [vmem:[#allocation2 + $0xd0] sm:$0xfe]  ;;  %v23335_v3 = vld [vmem:[#allocation4 + $0x1d0] sm:$0xff]  }
 0x1d6   :  { %v20587_v16 = vpop.f32.mrf.mxu0  ;;  %22465 = vmatprep.subr.bf16.mxu1 %v25033_v29  ;;  %20814 = vmatprep.subr.bf16.mxu0 %v23309_v40  ;;  %v3181_v44 = vpack.c.bf16 %v3176_v33, %v3171_v39  ;;  %v25075_v2 = vld [vmem:[#allocation2 + $0xb0] sm:$0xff]  ;;  %v23348_v33 = vld [vmem:[#allocation4 + $0x30] sm:$0xff]   ;;  %v23350_v39 = vld [vmem:[#allocation4 + $0x248] sm:$0xff]  }
 0x1d7   :  { %v20588_v19 = vadd.f32 %v20587_v16, %v20586_v10  ;;  %v23339_v10 = vld [vmem:[#allocation4 + $0x268] sm:$0xff]  }
 0x1d8   :  { %v3269_v53 = vshll.u32 %v3181_v44, 16  ;;  %v3267_v59 = vshrl.u32 %v3181_v44, 16  ;;  %v23352_v44 = vld [vmem:[#allocation4 + $0x60] sm:$0xff]  }
 0x1d9   :  { %22466 = vmatpush3.bf16.msra.mxu1 %v23310_v11  ;;  %20815 = vmatpush3.bf16.msra.mxu0 %v23311_v12  ;;  %v1142_v25 = vadd.f32 %v20588_v19, %v20566_v18  ;;  %v23340_v12 = vld [vmem:[#allocation4 + $0x200] sm:$0xff]  }
 0x1da   :  { %22467 = vmatprep.subr.bf16.mxu1 %v25033_v29  ;;  %20816 = vmatprep.subr.bf16.mxu0 %v23312_v13  ;;  %v23321_v29 = vld [vmem:[#allocation4 + $0x150] sm:$0xff]   ;;  %v3271_v56 = vrot.slane %v3269_v53, 1  ;;  %v3283_v13 = vshll.u32 %v3183_v6, 16  ;;  %v23341_v18 = vld [vmem:[#allocation4 + $0x1c0] sm:$0xff]  }
 0x1db   :  { %v23342_v19 = vld [vmem:[#allocation4 + $0x260] sm:$0xff]  }
 0x1dc   :  { %v3272_v1 = vor.u32 %v3271_v56, %v3267_v59  ;;  %v3285_v21 = vrot.slane %v3283_v13, 1  ;;  %v3079_v56 = vld [vmem:[#allocation2 + $0x108] sm:$0xff]  ;;  %v23369_v13 = vld [vmem:[#allocation4] sm:$0xff]  }
 0x1dd   :  { %22468 = vmatpush3.bf16.msra.mxu1 %v23313_v20  ;;  %20817 = vmatpush3.bf16.msra.mxu0 %v23314_v22  ;;  %v3281_v20 = vshrl.u32 %v3183_v6, 16  ;;  %v23343_v22 = vld [vmem:[#allocation4 + $0x78] sm:$0xff]   ;;  %v23360_v59 = vld [vmem:[#allocation4 + $0xf0] sm:$0xff]  }
 0x1de   :  { %20818 = vmatprep.subr.bf16.mxu0 %v23315_v24  ;;  %20832 = vmatprep.subr.bf16.mxu1 %v23316_v30  ;;  %v3082_v24 = vld [vmem:[#allocation2 + $0x110] sm:$0x3f]  ;;  %v3175_v30 = vld [vmem:[#allocation2 + $0x68] sm:$0xfe] }
 0x1df   :  { %v3286_v27 = vor.u32 %v3285_v21, %v3281_v20  ;;  %v23374_v20 = vld [vmem:[#allocation4 + $0xd0] sm:$0xff]  }
 0x1e0   :  { %v1179_v36 = vpop.f32.mrf.mxu1  ;;  %22470 = vmatmul.mubr.bf16.vlgmr.msra.gmra.mxu1 %v2693_v46 }
 0x1e1   :  { %v1180_v41 = vadd.f32 %v1179_v36, %v1139_v14  ;;  %20819 = vmatpush3.bf16.msra.mxu0 %v23317_v31  ;;  %20833 = vmatpush3.bf16.msra.mxu1 %v23318_v32  ;;  %v3180_v31 = vld [vmem:[#allocation2 + $0x20] sm:$0x7f] }
 0x1e2   :  { %3619 = vmatprep.mubr.bf16.mxu1 %v3293_v37  ;;  %v22391_v45 = vpop.f32.mrf.mxu1  ;;  %20820 = vmatprep.subr.bf16.mxu0 %v23319_v34  ;;  %v3087_v34 = vpack.c.bf16 %v3082_v24, %v3077_v26  ;;  %v23349_v36 = vld [vmem:[#allocation4 + $0x68] sm:$0xff]   ;;  %v3185_v37 = vpack.c.bf16 %v3180_v31, %v3175_v30  ;;  %v23380_v31 = vld [vmem:[#allocation4 + $0xc0] sm:$0xff]  }
 0x1e3   :  { %20834 = vmatprep.subr.bf16.mxu1 %v23320_v35  ;;  %v23347_v35 = vld [vmem:[#allocation4 + $0x250] sm:$0xff]  }
 0x1e4   :  { %v1182_v48 = vpop.f32.mrf.mxu1  ;;  %v3297_v45 = vshll.u32 %v3185_v37, 16 }
 0x1e5   :  { %v1183_v51 = vadd.f32 %v1182_v48, %v1142_v25  ;;  %20821 = vmatpush3.bf16.msra.mxu0 %v23321_v29  ;;  %20835 = vmatpush3.bf16.msra.mxu1 %v23322_v38  ;;  %v23345_v25 = vld [vmem:[#allocation4 + $0x38] sm:$0xff]   ;;  %v23353_v48 = vld [vmem:[#allocation4 + $0x240] sm:$0xff]  }
 0x1e6   :  { %v22392_v54 = vpop.f32.mrf.mxu1  ;;  %20822 = vmatprep.subr.bf16.mxu0 %v23323_v42  ;;  %20836 = vmatprep.subr.bf16.mxu1 %v23324_v43  ;;  %v3299_v53 = vrot.slane %v3297_v45, 1  ;;  %v23387_v45 = vld [vmem:[#allocation4 + $0x110] sm:$0xff]  }
 0x1e7   :  { %v23356_v54 = vld [vmem:[#allocation4 + $0xf8] sm:$0xff]  }
 0x1e9   :  { %20823 = vmatpush3.bf16.msra.mxu0 %v23325_v47  ;;  %20837 = vmatpush3.bf16.msra.mxu1 %v23326_v49  ;;  %v23354_v49 = vld [vmem:[#allocation4 + $0x20] sm:$0xff]  }
 0x1ea   :  { %20824 = vmatprep.subr.bf16.mxu0 %v23327_v50  ;;  %20838 = vmatprep.subr.bf16.mxu1 %v23328_v52  ;;  %v3295_v50 = vshrl.u32 %v3185_v37, 16 }
 0x1ed   :  { %20825 = vmatpush3.bf16.msra.mxu0 %v23329_v0  ;;  %20839 = vmatpush3.bf16.msra.mxu1 %v23330_v55  ;;  %v23357_v0 = vld [vmem:[#allocation4 + $0x18] sm:$0xff]  }
 0x1ee   :  { %20840 = vmatprep.subr.bf16.mxu1 %v23331_v57  ;;  %22473 = vmatprep.subr.bf16.mxu0 %v25075_v2  ;;  %v23358_v55 = vld [vmem:[#allocation4 + $0xb8] sm:$0xff]  }
 0x1ef   :  { %v3084_v57 = vld [vmem:[#allocation2 + $0xf0] sm:$0x3f] }
 0x1f0   :  { %v20614_v40 = vpop.f32.mrf.mxu0  ;;  %3579 = vmatmul.mubr.bf16.vlgmr.msra.gmra.mxu0 %v3272_v1  ;;  %v3089_v63 = vpack.c.bf16 %v3084_v57, %v3079_v56  ;;  %v23362_v1 = vld [vmem:[#allocation4 + $0xb0] sm:$0xff]   ;;  %v3085_v57 = vld [vmem:[#allocation2 + $0x20] sm:$0x3f] }
 0x1f1   :  { %20841 = vmatpush3.bf16.msra.mxu1 %v23332_v60  ;;  %22474 = vmatpush3.bf16.msra.mxu0 %v23333_v61  ;;  %v3300_v60 = vor.u32 %v3299_v53, %v3295_v50  ;;  %v23361_v61 = vld [vmem:[#allocation4 + $0x10] sm:$0xff]   ;;  %v23390_v50 = vld [vmem:[#allocation4 + $0x108] sm:$0xff]   ;;  %v23393_v53 = vld [vmem:[#allocation4 + $0x100] sm:$0xff]  }
 0x1f2   :  { %v20615_v7 = vpop.f32.mrf.mxu0  ;;  %20842 = vmatprep.subr.bf16.mxu1 %v23334_v62  ;;  %22475 = vmatprep.subr.bf16.mxu0 %v25075_v2  ;;  %v3080_v56 = vld [vmem:[#allocation2 + $0x68] sm:$0xff] }
 0x1f3   :  { %v20616_v8 = vadd.f32 %v20615_v7, %v20614_v40  ;;  %22489 = vmatprep.mubr.msk.bf16.mxu0 %vm24771_vm3, %v25075_v2  ;;  %v23364_v40 = vld [vmem:[#allocation4 + $0xe8] sm:$0xff]  }
 0x1f4   :  { %v20617_v11 = vpop.f32.mrf.mxu0  ;;  %v23365_v7 = vld [vmem:[#allocation4 + $0x8] sm:$0xff]  }
 0x1f5   :  { %v1461_v14 = vadd.f32 %v20616_v8, %v1180_v41  ;;  %20843 = vmatpush3.bf16.msra.mxu1 %v23335_v3  ;;  %22476 = vmatpush3.bf16.msra.mxu0 %v23336_v4  ;;  %v23351_v41 = vld [vmem:[#allocation4 + $0x28] sm:$0xff]  }
 0x1f6   :  { %v20618_v15 = vpop.f32.mrf.mxu0  ;;  %20844 = vmatprep.subr.bf16.mxu1 %v23337_v5  ;;  %22477 = vmatprep.subr.bf16.mxu0 %v25075_v2  ;;  %v23363_v3 = vld [vmem:[#allocation4 + $0x48] sm:$0xff]  }
 0x1f7   :  { %v20619_v16 = vadd.f32 %v20618_v15, %v20617_v11  ;;  %v23366_v8 = vld [vmem:[#allocation4 + $0xa8] sm:$0xff]  }
 0x1f8   :  { %v3081_v15 = vld [vmem:[#allocation2 + $0x80] sm:$0x3f] }
 0x1f9   :  { %v1464_v17 = vadd.f32 %v20619_v16, %v1183_v51  ;;  %20845 = vmatpush3.bf16.msra.mxu1 %v23338_v9  ;;  %22478 = vmatpush3.bf16.msra.mxu0 %v23339_v10  ;;  %v23355_v51 = vld [vmem:[#allocation4 + $0x58] sm:$0xff]   ;;  %v23367_v10 = vld [vmem:[#allocation4 + $0x40] sm:$0xff]  }
 0x1fa   :  { %20846 = vmatprep.subr.bf16.mxu1 %v23340_v12  ;;  %22479 = vmatprep.subr.bf16.mxu0 %v25075_v2  ;;  %v23368_v12 = vld [vmem:[#allocation4 + $0xe0] sm:$0xff]   ;;  %v23371_v16 = vld [vmem:[#allocation4 + $0xd8] sm:$0xff]  }
 0x1fd   :  { %20847 = vmatpush3.bf16.msra.mxu1 %v23341_v18  ;;  %22480 = vmatpush3.bf16.msra.mxu0 %v23342_v19  ;;  %v23372_v18 = vld [vmem:[#allocation4 + $0x98] sm:$0xff]  }
 0x1fe   :  { %22481 = vmatprep.subr.bf16.mxu0 %v25075_v2  ;;  %20863 = vmatprep.subr.bf16.mxu1 %v23343_v22  ;;  %v23373_v19 = vld [vmem:[#allocation4 + $0x138] sm:$0xff]   ;;  %v23375_v22 = vld [vmem:[#allocation4 + $0x90] sm:$0xff]  }
 0x200   :  { %v20636_v32 = vpop.f32.mrf.mxu1  ;;  %3620 = vmatmul.mubr.bf16.vlgmr.msra.gmra.mxu1 %v3286_v27  ;;  %v23378_v27 = vld [vmem:[#allocation4 + $0x88] sm:$0xff]  }
 0x201   :  { %22482 = vmatpush3.bf16.msra.mxu0 %v23344_v23  ;;  %20864 = vmatpush3.bf16.msra.mxu1 %v23345_v25  ;;  %v23376_v23 = vld [vmem:[#allocation4 + $0x130] sm:$0xff]   ;;  %v23377_v25 = vld [vmem:[#allocation4 + $0xc8] sm:$0xff]  }
 0x202   :  { %3941 = vmatprep.mubr.bf16.mxu1 %v3087_v34  ;;  %v20637_v46 = vpop.f32.mrf.mxu1  ;;  %22483 = vmatprep.subr.bf16.mxu0 %v25075_v2  ;;  %v23381_v34 = vld [vmem:[#allocation4 + $0x80] sm:$0xff]  }
 0x203   :  { %v20638_v29 = vadd.f32 %v20637_v46, %v20636_v32  ;;  %20865 = vmatprep.subr.bf16.mxu1 %v23346_v28  ;;  %v23379_v28 = vld [vmem:[#allocation4 + $0x128] sm:$0xff]   ;;  %v25098_v32 = vld [vmem:[#allocation2 + $0x110] sm:$0xff] }
 0x204   :  { %v20639_v38 = vpop.f32.mrf.mxu1  ;;  %v4033_v46 = vld [vmem:[#allocation2 + $0x10] sm:$0xfc] }
 0x205   :  { %22484 = vmatpush3.bf16.msra.mxu0 %v23347_v35  ;;  %20866 = vmatpush3.bf16.msra.mxu1 %v23348_v33  ;;  %v1502_v42 = vadd.f32 %v20638_v29, %v1461_v14  ;;  %v23370_v14 = vld [vmem:[#allocation4 + $0xa0] sm:$0xff]   ;;  %v3083_v33 = vld [vmem:[#allocation2 + $0x90] sm:$0x3f]  ;;  %v4043_v37 = vpack.c.bf16 %v25098_v32, %v4033_v46  ;;  %v3078_v29 = vld [vmem:[#allocation2 + $0x48] sm:$0xff] }
 0x206   :  { %v20640_v43 = vpop.f32.mrf.mxu1  ;;  %22485 = vmatprep.subr.bf16.mxu0 %v25075_v2  ;;  %20867 = vmatprep.subr.bf16.mxu1 %v23349_v36  ;;  %v23382_v35 = vld [vmem:[#allocation4 + $0x120] sm:$0xff]   ;;  %v23383_v36 = vld [vmem:[#allocation4 + $0x2f8] sm:$0xff]  }
 0x207   :  { %v20641_v47 = vadd.f32 %v20640_v43, %v20639_v38  ;;  %v23384_v38 = vld [vmem:[#allocation4 + $0x118] sm:$0xff]  }
 0x209   :  { %22486 = vmatpush3.bf16.msra.mxu0 %v23350_v39  ;;  %20868 = vmatpush3.bf16.msra.mxu1 %v23351_v41  ;;  %v1505_v52 = vadd.f32 %v20641_v47, %v1464_v17  ;;  %v3076_v17 = vld [vmem:[#allocation2 + $0xd0] sm:$0xff]  ;;  %v3088_v41 = vpack.c.bf16 %v3083_v33, %v3078_v29  ;;  %v23388_v47 = vld [vmem:[#allocation4 + $0x2b0] sm:$0xff]   ;;  %v23410_v33 = vld [vmem:[#allocation4 + $0x320] sm:$0xff]  }
 0x20a   :  { %22487 = vmatprep.subr.bf16.mxu0 %v25075_v2  ;;  %20869 = vmatprep.subr.bf16.mxu1 %v23352_v44  ;;  %v3086_v21 = vpack.c.bf16 %v3081_v15, %v3076_v17  ;;  %v23385_v39 = vld [vmem:[#allocation4 + $0x2b8] sm:$0xff]   ;;  %v4133_v44 = vrot.slane %v4043_v37, 1  ;;  %v23402_v17 = vld [vmem:[#allocation4 + $0x330] sm:$0xff]  }
 0x20b   :  { %v23412_v37 = vld [vmem:[#allocation4 + $0x318] sm:$0xff]  }
 0x20c   :  { %v23413_v29 = vld [vmem:[#allocation4 + $0x3b8] sm:$0xff]  }
 0x20d   :  { %22488 = vmatpush3.bf16.msra.mxu0 %v23353_v48  ;;  %20870 = vmatpush3.bf16.msra.mxu1 %v23354_v49  ;;  %v23389_v48 = vld [vmem:[#allocation4 + $0x2e8] sm:$0xff]  }
 0x20e   :  { %20871 = vmatprep.subr.bf16.mxu1 %v23355_v51  ;;  %20885 = vmatprep.subr.bf16.mxu0 %v23356_v54  ;;  %v23391_v51 = vld [vmem:[#allocation4 + $0x2a8] sm:$0xff]   ;;  %v4035_v54 = vld [vmem:[#allocation2 + $0x108] sm:$0xfc] }
 0x210   :  { %v1542_v62 = vpop.f32.mrf.mxu0  ;;  %22490 = vmatmul.mubr.bf16.vlgmr.msra.gmra.mxu0 %v3300_v60 }
 0x211   :  { %v25087_v4 = vadd.f32 %v1542_v62, %v1502_v42  ;;  %20872 = vmatpush3.bf16.msra.mxu1 %v23357_v0  ;;  %20886 = vmatpush3.bf16.msra.mxu0 %v23358_v55  ;;  %v23386_v42 = vld [vmem:[#allocation4 + $0x2f0] sm:$0xff]   ;;  %v23394_v55 = vld [vmem:[#allocation4 + $0x2a0] sm:$0xff]  }
 0x212   :  { %3982 = vmatprep.mubr.bf16.mxu0 %v3089_v63  ;;  %v22411_v5 = vpop.f32.mrf.mxu0  ;;  %20873 = vmatprep.subr.bf16.mxu1 %v23359_v58  ;;  %v23395_v58 = vld [vmem:[#allocation4 + $0x2d8] sm:$0xff]  }
 0x213   :  { %20887 = vmatprep.subr.bf16.mxu0 %v23360_v59  ;;  %v25105_v59 = vld [vmem:[#allocation2 + $0xf0] sm:$0xff]  ;;  %v23399_v5 = vld [vmem:[#allocation4 + $0x2d0] sm:$0xff]  }
 0x214   :  { %v1545_v6 = vpop.f32.mrf.mxu0  ;;  %v23397_v63 = vld [vmem:[#allocation4 + $0x298] sm:$0xff]  }
 0x215   :  { %v25089_v9 = vadd.f32 %v1545_v6, %v1505_v52  ;;  %20874 = vmatpush3.bf16.msra.mxu1 %v23361_v61  ;;  %20888 = vmatpush3.bf16.msra.mxu0 %v23362_v1  ;;  %v23392_v52 = vld [vmem:[#allocation4 + $0x2e0] sm:$0xff]   ;;  %v23396_v61 = vld [vmem:[#allocation4 + $0x378] sm:$0xff]  }
 0x216   :  { %v22412_v11 = vpop.f32.mrf.mxu0  ;;  %20875 = vmatprep.subr.bf16.mxu1 %v23363_v3  ;;  %20889 = vmatprep.subr.bf16.mxu0 %v23364_v40  ;;  %v23398_v1 = vld [vmem:[#allocation4 + $0x338] sm:$0xff]   ;;  %v4045_v40 = vpack.c.bf16 %v25105_v59, %v4035_v54  ;;  %v4034_v54 = vld [vmem:[#allocation2 + $0x48] sm:$0xfc] }
 0x217   :  { %v23400_v11 = vld [vmem:[#allocation4 + $0x370] sm:$0xff]  }
 0x219   :  { %20876 = vmatpush3.bf16.msra.mxu1 %v23365_v7  ;;  %20890 = vmatpush3.bf16.msra.mxu0 %v23366_v8  ;;  %v3090_v7 = vpack.c.bf16 %v3085_v57, %v3080_v56 }
 0x21a   :  { %20877 = vmatprep.subr.bf16.mxu1 %v23367_v10  ;;  %20891 = vmatprep.subr.bf16.mxu0 %v23368_v12 }
 0x21d   :  { %20878 = vmatpush3.bf16.msra.mxu1 %v23369_v13  ;;  %20892 = vmatpush3.bf16.msra.mxu0 %v23370_v14  ;;  %v4135_v13 = vrot.slane %v4045_v40, 1  ;;  %v23401_v14 = vld [vmem:[#allocation4 + $0x290] sm:$0xff]  }
 0x21e   :  { %20893 = vmatprep.subr.bf16.mxu0 %v23371_v16  ;;  %22493 = vmatprep.subr.bf16.mxu1 %v25075_v2 }
 0x220   :  { %3942 = vmatmul.mubr.bf16.vlgmr.msra.gmra.mxu1 %v3086_v21  ;;  %v20667_v24 = vpop.f32.mrf.mxu1 }
 0x221   :  { %20894 = vmatpush3.bf16.msra.mxu0 %v23372_v18  ;;  %22494 = vmatpush3.bf16.msra.mxu1 %v23373_v19  ;;  %v23403_v19 = vld [vmem:[#allocation4 + $0x2c8] sm:$0xff]  }
 0x222   :  { %20895 = vmatprep.subr.bf16.mxu0 %v23374_v20  ;;  %22495 = vmatprep.subr.bf16.mxu1 %v25075_v2  ;;  %v20668_v26 = vpop.f32.mrf.mxu1  ;;  %v23404_v20 = vld [vmem:[#allocation4 + $0x368] sm:$0xff]  }
 0x223   :  { %v25093_v30 = vadd.f32 %v20668_v26, %v20667_v24  ;;  %22509 = vmatprep.mubr.msk.bf16.mxu1 %vm24771_vm3, %v25075_v2  ;;  %v23405_v24 = vld [vmem:[#allocation4 + $0x288] sm:$0xff]  }
 0x224   :  { %v20670_v60 = vpop.f32.mrf.mxu1  ;;  %v25113_v26 = vld [vmem:[#allocation2 + $0x80] sm:$0xff] }
 0x225   :  { %20896 = vmatpush3.bf16.msra.mxu0 %v23375_v22  ;;  %22496 = vmatpush3.bf16.msra.mxu1 %v23376_v23 }
 0x226   :  { %20897 = vmatprep.subr.bf16.mxu0 %v23377_v25  ;;  %22497 = vmatprep.subr.bf16.mxu1 %v25075_v2  ;;  %v20671_v6 = vpop.f32.mrf.mxu1  ;;  %v23406_v25 = vld [vmem:[#allocation4 + $0x328] sm:$0xff]  }
 0x227   :  { %v20672_v15 = vadd.f32 %v20671_v6, %v20670_v60  ;;  %v25128_v60 = vld [vmem:[#allocation2 + $0xb0] sm:$0xff]  ;;  %v4510_v6 = vld [vmem:[#allocation2 + $0x108] sm:$0xf8] }
 0x229   :  { %20898 = vmatpush3.bf16.msra.mxu0 %v23378_v27  ;;  %22498 = vmatpush3.bf16.msra.mxu1 %v23379_v28  ;;  %v23407_v27 = vld [vmem:[#allocation4 + $0x2c0] sm:$0xff]  }
 0x22a   :  { %20899 = vmatprep.subr.bf16.mxu0 %v23380_v31  ;;  %22499 = vmatprep.subr.bf16.mxu1 %v25075_v2  ;;  %v23408_v28 = vld [vmem:[#allocation4 + $0x360] sm:$0xff]  }
 0x22d   :  { %20900 = vmatpush3.bf16.msra.mxu0 %v23381_v34  ;;  %22500 = vmatpush3.bf16.msra.mxu1 %v23382_v35  ;;  %v4032_v35 = vld [vmem:[#allocation2 + $0xd0] sm:$0xfc] }
 0x22e   :  { %22501 = vmatprep.subr.bf16.mxu1 %v25075_v2  ;;  %20916 = vmatprep.subr.bf16.mxu0 %v23383_v36  ;;  %v4042_v46 = vpack.c.bf16 %v25113_v26, %v4032_v35  ;;  %v23411_v36 = vld [vmem:[#allocation4 + $0x358] sm:$0xff]  }
 0x230   :  { %v20689_v43 = vpop.f32.mrf.mxu0  ;;  %3983 = vmatmul.mubr.bf16.vlgmr.msra.gmra.mxu0 %v3088_v41  ;;  %v23415_v41 = vld [vmem:[#allocation4 + $0x310] sm:$0xff]  }
 0x231   :  { %22502 = vmatpush3.bf16.msra.mxu1 %v23384_v38  ;;  %20917 = vmatpush3.bf16.msra.mxu0 %v23385_v39  ;;  %v4132_v38 = vrot.slane %v4042_v46, 1  ;;  %v23414_v39 = vld [vmem:[#allocation4 + $0x350] sm:$0xff]   ;;  %v23436_v46 = vld [vmem:[#allocation4 + $0x4b8] sm:$0xff]  }
 0x232   :  { %4414 = vmatprep.mubr.bf16.mxu0 %v4133_v44  ;;  %22503 = vmatprep.subr.bf16.mxu1 %v25075_v2  ;;  %v20690_v49 = vpop.f32.mrf.mxu0 }
 0x233   :  { %20918 = vmatprep.subr.bf16.mxu0 %v23386_v42  ;;  %v20691_v62 = vadd.f32 %v20690_v49, %v20689_v43  ;;  %v23416_v42 = vld [vmem:[#allocation4 + $0x3b0] sm:$0xff]   ;;  %v4518_v43 = vld [vmem:[#allocation2 + $0xc0] sm:$0x1] }
 0x234   :  { %v20692_v0 = vpop.f32.mrf.mxu0 }
 0x235   :  { %22504 = vmatpush3.bf16.msra.mxu1 %v23387_v45  ;;  %20919 = vmatpush3.bf16.msra.mxu0 %v23388_v47  ;;  %v1976_v10 = vadd.f32 %v20691_v62, %v25093_v30  ;;  %v23417_v45 = vld [vmem:[#allocation4 + $0x348] sm:$0xff]   ;;  %v23424_v62 = vld [vmem:[#allocation4 + $0x398] sm:$0xff]  }
 0x236   :  { %22505 = vmatprep.subr.bf16.mxu1 %v25075_v2  ;;  %20920 = vmatprep.subr.bf16.mxu0 %v23389_v48  ;;  %v20693_v3 = vpop.f32.mrf.mxu0  ;;  %v23418_v47 = vld [vmem:[#allocation4 + $0x308] sm:$0xff]  }
 0x237   :  { %v20694_v8 = vadd.f32 %v20693_v3, %v20692_v0  ;;  %v23419_v48 = vld [vmem:[#allocation4 + $0x3a8] sm:$0xff]   ;;  %v23421_v0 = vld [vmem:[#allocation4 + $0x300] sm:$0xff]  }
 0x239   :  { %22506 = vmatpush3.bf16.msra.mxu1 %v23390_v50  ;;  %20921 = vmatpush3.bf16.msra.mxu0 %v23391_v51  ;;  %v1979_v22 = vadd.f32 %v20694_v8, %v20672_v15  ;;  %v23420_v51 = vld [vmem:[#allocation4 + $0x340] sm:$0xff]   ;;  %v23430_v15 = vld [vmem:[#allocation4 + $0x388] sm:$0xff]  }
 0x23a   :  { %22507 = vmatprep.subr.bf16.mxu1 %v25075_v2  ;;  %20922 = vmatprep.subr.bf16.mxu0 %v23392_v52  ;;  %v25125_v52 = vld [vmem:[#allocation2 + $0x90] sm:$0xff]  ;;  %v4520_v8 = vld [vmem:[#allocation2 + $0x98] sm:$0x1] }
 0x23b   :  { %v4044_v56 = vpack.c.bf16 %v25125_v52, %v4034_v54 }
 0x23d   :  { %22508 = vmatpush3.bf16.msra.mxu1 %v23393_v53  ;;  %20923 = vmatpush3.bf16.msra.mxu0 %v23394_v55  ;;  %v4528_v53 = vpack.c.bf16 %v4518_v43, %v4518_v43  ;;  %v23422_v55 = vld [vmem:[#allocation4 + $0x3a0] sm:$0xff]  }
 0x23e   :  { %20924 = vmatprep.subr.bf16.mxu0 %v23395_v58  ;;  %20938 = vmatprep.subr.bf16.mxu1 %v23396_v61  ;;  %v23423_v61 = vld [vmem:[#allocation4 + $0x438] sm:$0xff]  }
 0x240   :  { %v2016_v12 = vpop.f32.mrf.mxu1  ;;  %22510 = vmatmul.mubr.bf16.vlgmr.msra.gmra.mxu1 %v3090_v7  ;;  %v23427_v7 = vld [vmem:[#allocation4 + $0x390] sm:$0xff]  }
 0x241   :  { %v2017_v16 = vadd.f32 %v2016_v12, %v1976_v10  ;;  %20925 = vmatpush3.bf16.msra.mxu0 %v23397_v63  ;;  %20939 = vmatpush3.bf16.msra.mxu1 %v23398_v1  ;;  %v4134_v63 = vrot.slane %v4044_v56, 1  ;;  %v23425_v1 = vld [vmem:[#allocation4 + $0x3f8] sm:$0xff]   ;;  %v23429_v12 = vld [vmem:[#allocation4 + $0x428] sm:$0xff]  }
 0x242   :  { %4455 = vmatprep.mubr.bf16.mxu1 %v4135_v13  ;;  %v22431_v18 = vpop.f32.mrf.mxu1  ;;  %20926 = vmatprep.subr.bf16.mxu0 %v23399_v5  ;;  %v23426_v5 = vld [vmem:[#allocation4 + $0x430] sm:$0xff]   ;;  %v4525_v13 = vpack.c.bf16 %v25105_v59, %v4510_v6  ;;  %v23451_v6 = vld [vmem:[#allocation4 + $0x498] sm:$0xff]  }
 0x243   :  { %v25111_v21 = vadd.f32 %v2017_v16, %v25087_v4  ;;  %20940 = vmatprep.subr.bf16.mxu1 %v23400_v11  ;;  %v23409_v4 = vld [vmem:[#allocation4 + $0x280] sm:$0xff]   ;;  %v23428_v11 = vld [vmem:[#allocation4 + $0x3f0] sm:$0xff]   ;;  %v23431_v16 = vld [vmem:[#allocation4 + $0x3e8] sm:$0xff]  }
 0x244   :  { %v2019_v23 = vpop.f32.mrf.mxu1  ;;  %v4036_v18 = vld [vmem:[#allocation2 + $0x68] sm:$0xfc] }
 0x245   :  { %v2020_v30 = vadd.f32 %v2019_v23, %v1979_v22  ;;  %20927 = vmatpush3.bf16.msra.mxu0 %v23401_v14  ;;  %20941 = vmatpush3.bf16.msra.mxu1 %v23402_v17  ;;  %v23432_v17 = vld [vmem:[#allocation4 + $0x420] sm:$0xff]   ;;  %v4655_v22 = vshll.u32 %v4525_v13, 16 }
 0x246   :  { %v22432_v31 = vpop.f32.mrf.mxu1  ;;  %20928 = vmatprep.subr.bf16.mxu0 %v23403_v19  ;;  %20942 = vmatprep.subr.bf16.mxu1 %v23404_v20  ;;  %v4530_v19 = vpack.c.bf16 %v4520_v8, %v4520_v8  ;;  %v4652_v20 = vshrl.u32 %v4525_v13, 16  ;;  %v23453_v13 = vld [vmem:[#allocation4 + $0x4f8] sm:$0xff]  }
 0x247   :  { %v25116_v34 = vadd.f32 %v2020_v30, %v25089_v9  ;;  %v4508_v9 = vld [vmem:[#allocation2 + $0x10] sm:$0xf8]  ;;  %v25140_v30 = vld [vmem:[#allocation2 + $0x20] sm:$0xff] }
 0x248   :  { %v4523_v44 = vpack.c.bf16 %v25098_v32, %v4508_v9  ;;  %v4660_v31 = vshll.u32 %v4530_v19, 16  ;;  %v4046_v35 = vpack.c.bf16 %v25140_v30, %v4036_v18  ;;  %v23455_v18 = vld [vmem:[#allocation4 + $0x450] sm:$0xff]  }
 0x249   :  { %20929 = vmatpush3.bf16.msra.mxu0 %v23405_v24  ;;  %20943 = vmatpush3.bf16.msra.mxu1 %v23406_v25  ;;  %v23433_v24 = vld [vmem:[#allocation4 + $0x380] sm:$0xff]   ;;  %v23456_v19 = vld [vmem:[#allocation4 + $0x4f0] sm:$0xff]  }
 0x24a   :  { %20930 = vmatprep.subr.bf16.mxu0 %v23407_v27  ;;  %20944 = vmatprep.subr.bf16.mxu1 %v23408_v28  ;;  %v4626_v49 = vshrl.u32 %v4523_v44, 16  ;;  %v4629_v50 = vshll.u32 %v4523_v44, 16  ;;  %v23434_v25 = vld [vmem:[#allocation4 + $0x3e0] sm:$0xff]   ;;  %v4654_v27 = vrot.slane %v4652_v20, 1  ;;  %v4657_v28 = vrot.slane %v4655_v22, 2  ;;  %v23440_v44 = vld [vmem:[#allocation4 + $0x4b0] sm:$0xff]  }
 0x24c   :  { %v4628_v57 = vrot.slane %v4626_v49, 1  ;;  %v4631_v58 = vrot.slane %v4629_v50, 2  ;;  %v23443_v49 = vld [vmem:[#allocation4 + $0x408] sm:$0xff]  }
 0x24d   :  { %20931 = vmatpush3.bf16.msra.mxu0 %v23409_v4  ;;  %20945 = vmatpush3.bf16.msra.mxu1 %v23410_v33  ;;  %v23435_v33 = vld [vmem:[#allocation4 + $0x418] sm:$0xff]   ;;  %v4517_v50 = vld [vmem:[#allocation2 + $0x100] sm:$0x1] }
 0x24e   :  { %20946 = vmatprep.subr.bf16.mxu1 %v23411_v36  ;;  %22513 = vmatprep.subr.bf16.mxu0 %v25075_v2  ;;  %v4632_v3 = vor.u32 %v4631_v58, %v4628_v57  ;;  %v23437_v36 = vld [vmem:[#allocation4 + $0x3d8] sm:$0xff]   ;;  %v23446_v57 = vld [vmem:[#allocation4 + $0x468] sm:$0xff]   ;;  %v23447_v58 = vld [vmem:[#allocation4 + $0x400] sm:$0xff]  }
 0x250   :  { %4415 = vmatmul.mubr.bf16.vlgmr.msra.gmra.mxu0 %v4132_v38  ;;  %v25134_v14 = vpop.f32.mrf.mxu0  ;;  %v4658_v38 = vor.u32 %v4657_v28, %v4654_v27  ;;  %v23458_v28 = vld [vmem:[#allocation4 + $0x448] sm:$0xff]  }
 0x251   :  { %20947 = vmatpush3.bf16.msra.mxu1 %v23412_v37  ;;  %22514 = vmatpush3.bf16.msra.mxu0 %v23413_v29  ;;  %v4507_v37 = vld [vmem:[#allocation2 + $0xd0] sm:$0xf8] }
 0x252   :  { %20948 = vmatprep.subr.bf16.mxu1 %v23414_v39  ;;  %22515 = vmatprep.subr.bf16.mxu0 %v25075_v2  ;;  %v25137_v23 = vpop.f32.mrf.mxu0  ;;  %v23438_v29 = vld [vmem:[#allocation4 + $0x478] sm:$0xff]   ;;  %v4662_v39 = vrot.slane %v4660_v31, 2  ;;  %v4522_v43 = vpack.c.bf16 %v25113_v26, %v4507_v37  ;;  %v23459_v31 = vld [vmem:[#allocation4 + $0x4e8] sm:$0xff]  }
 0x253   :  { %22529 = vmatprep.mubr.msk.bf16.mxu0 %vm24771_vm3, %v25075_v2  ;;  %v5048_v37 = vld [vmem:[#allocation2 + $0x10] sm:$0xf0] }
 0x254   :  { %v25142_v4 = vpop.f32.mrf.mxu0  ;;  %v4616_v26 = vshll.u32 %v4522_v43, 16 }
 0x255   :  { %20949 = vmatpush3.bf16.msra.mxu1 %v23415_v41  ;;  %22516 = vmatpush3.bf16.msra.mxu0 %v23416_v42  ;;  %v4136_v41 = vrot.slane %v4046_v35, 1  ;;  %v23439_v42 = vld [vmem:[#allocation4 + $0x410] sm:$0xff]  }
 0x256   :  { %20950 = vmatprep.subr.bf16.mxu1 %v23417_v45  ;;  %22517 = vmatprep.subr.bf16.mxu0 %v25075_v2  ;;  %v4634_v2 = vshll.u32 %v4528_v53, 16  ;;  %v25146_v9 = vpop.f32.mrf.mxu0  ;;  %v23441_v45 = vld [vmem:[#allocation4 + $0x3d0] sm:$0xff]   ;;  %v23444_v53 = vld [vmem:[#allocation4 + $0x4a8] sm:$0xff]  }
 0x258   :  { %v4636_v40 = vrot.slane %v4634_v2, 2  ;;  %v4527_v2 = vpack.c.bf16 %v4517_v50, %v4517_v50 }
 0x259   :  { %20951 = vmatpush3.bf16.msra.mxu1 %v23418_v47  ;;  %22518 = vmatpush3.bf16.msra.mxu0 %v23419_v48  ;;  %v23442_v48 = vld [vmem:[#allocation4 + $0x470] sm:$0xff]  }
 0x25a   :  { %20952 = vmatprep.subr.bf16.mxu1 %v23420_v51  ;;  %22519 = vmatprep.subr.bf16.mxu0 %v25128_v60  ;;  %v4637_v10 = vsel %vm2131_vm4, %v4632_v3, %v4636_v40  ;;  %v4663_v51 = vsel %vm2131_vm4, %v4658_v38, %v4662_v39  ;;  %v4618_v3 = vrot.slane %v4616_v26, 2  ;;  %v23450_v40 = vld [vmem:[#allocation4 + $0x460] sm:$0xff]   ;;  %v4511_v38 = vld [vmem:[#allocation2 + $0x68] sm:$0xf8] }
 0x25b   :  { %v23466_v26 = vld [vmem:[#allocation4 + $0x570] sm:$0xff]  }
 0x25d   :  { %20953 = vmatpush3.bf16.msra.mxu1 %v23421_v0  ;;  %22520 = vmatpush3.bf16.msra.mxu0 %v23422_v55  ;;  %v4613_v0 = vshrl.u32 %v4522_v43, 16  ;;  %v23445_v55 = vld [vmem:[#allocation4 + $0x3c8] sm:$0xff]   ;;  %v5058_v43 = vpack.c.bf16 %v25098_v32, %v5048_v37  ;;  %v4521_v32 = vld [vmem:[#allocation2 + $0x28] sm:$0x1] }
 0x25e   :  { %22521 = vmatprep.subr.bf16.mxu0 %v25128_v60  ;;  %20969 = vmatprep.subr.bf16.mxu1 %v23423_v61  ;;  %v23448_v61 = vld [vmem:[#allocation4 + $0x4a0] sm:$0xff]  }
 0x260   :  { %4456 = vmatmul.mubr.bf16.vlgmr.msra.gmra.mxu1 %v4134_v63  ;;  %v23449_v63 = vld [vmem:[#allocation4 + $0x3c0] sm:$0xff]   ;;  %v25160_v27 = vpop.f32.mrf.mxu1 }
 0x261   :  { %22522 = vmatpush3.bf16.msra.mxu0 %v23424_v62  ;;  %20970 = vmatpush3.bf16.msra.mxu1 %v23425_v1  ;;  %v4615_v1 = vrot.slane %v4613_v0, 1  ;;  %v5160_v0 = vrot.slane %v5058_v43, 2 }
 0x262   :  { %4954 = vmatprep.mubr.bf16.mxu1 %v4637_v10  ;;  %22523 = vmatprep.subr.bf16.mxu0 %v25128_v60  ;;  %v23452_v10 = vld [vmem:[#allocation4 + $0x458] sm:$0xff]   ;;  %v20743_v39 = vpop.f32.mrf.mxu1 }
 0x263   :  { %20971 = vmatprep.subr.bf16.mxu1 %v23426_v5  ;;  %v4621_v5 = vshll.u32 %v4527_v2, 16  ;;  %v4619_v8 = vor.u32 %v4618_v3, %v4615_v1  ;;  %v23467_v2 = vld [vmem:[#allocation4 + $0x4d0] sm:$0xff]   ;;  %v23469_v3 = vld [vmem:[#allocation4 + $0x568] sm:$0xff]  }
 0x265   :  { %22524 = vmatpush3.bf16.msra.mxu0 %v23427_v7  ;;  %20972 = vmatpush3.bf16.msra.mxu1 %v23428_v11  ;;  %v4509_v7 = vld [vmem:[#allocation2 + $0x48] sm:$0xf8]  ;;  %v4519_v11 = vld [vmem:[#allocation2 + $0x88] sm:$0x1] }
 0x266   :  { %22525 = vmatprep.subr.bf16.mxu0 %v25128_v60  ;;  %20973 = vmatprep.subr.bf16.mxu1 %v23429_v12  ;;  %v4623_v12 = vrot.slane %v4621_v5, 2  ;;  %v4529_v20 = vpack.c.bf16 %v4519_v11, %v4519_v11  ;;  %v5050_v5 = vld [vmem:[#allocation2 + $0x108] sm:$0xf0]  ;;  %v23470_v11 = vld [vmem:[#allocation4 + $0x4c8] sm:$0xff]  }
 0x269   :  { %22526 = vmatpush3.bf16.msra.mxu0 %v23430_v15  ;;  %20974 = vmatpush3.bf16.msra.mxu1 %v23431_v16  ;;  %v23454_v15 = vld [vmem:[#allocation4 + $0x490] sm:$0xff]   ;;  %v4524_v16 = vpack.c.bf16 %v25125_v52, %v4509_v7  ;;  %v4531_v7 = vpack.c.bf16 %v4521_v32, %v4521_v32 }
 0x26a   :  { %22527 = vmatprep.subr.bf16.mxu0 %v25128_v60  ;;  %20975 = vmatprep.subr.bf16.mxu1 %v23432_v17  ;;  %v4624_v17 = vsel %vm2131_vm4, %v4619_v8, %v4623_v12  ;;  %v5055_v8 = vld [vmem:[#allocation2 + $0x98] sm:$0x3]  ;;  %v23471_v12 = vld [vmem:[#allocation4 + $0x528] sm:$0xff]  }
 0x26b   :  { %v4639_v22 = vshrl.u32 %v4524_v16, 16 }
 0x26d   :  { %22528 = vmatpush3.bf16.msra.mxu0 %v23433_v24  ;;  %20976 = vmatpush3.bf16.msra.mxu1 %v23434_v25  ;;  %v23457_v24 = vld [vmem:[#allocation4 + $0x488] sm:$0xff]   ;;  %v4642_v25 = vshll.u32 %v4524_v16, 16  ;;  %v4641_v35 = vrot.slane %v4639_v22, 1  ;;  %v20722_v22 = vadd.f32 %v25137_v23, %v25134_v14 }
 0x26e   :  { %20977 = vmatprep.subr.bf16.mxu1 %v23435_v33  ;;  %20991 = vmatprep.subr.bf16.mxu0 %v23436_v46  ;;  %v4647_v33 = vshll.u32 %v4529_v20, 16  ;;  %v23460_v46 = vld [vmem:[#allocation4 + $0x480] sm:$0xff]   ;;  %v4673_v20 = vshll.u32 %v4531_v7, 16  ;;  %v5047_v7 = vld [vmem:[#allocation2 + $0xd0] sm:$0xf0] }
 0x270   :  { %v25149_v47 = vpop.f32.mrf.mxu0  ;;  %22530 = vmatmul.mubr.bf16.vlgmr.msra.gmra.mxu0 %v4136_v41  ;;  %v23461_v41 = vld [vmem:[#allocation4 + $0x440] sm:$0xff]   ;;  %v4649_v50 = vrot.slane %v4647_v33, 2 }
 0x271   :  { %20978 = vmatpush3.bf16.msra.mxu1 %v23437_v36  ;;  %20992 = vmatpush3.bf16.msra.mxu0 %v23438_v29  ;;  %v4644_v36 = vrot.slane %v4642_v25, 2  ;;  %v5053_v29 = vld [vmem:[#allocation2 + $0xc0] sm:$0x3]  ;;  %v5065_v25 = vpack.c.bf16 %v5055_v8, %v5055_v8 }
 0x272   :  { %4995 = vmatprep.mubr.bf16.mxu0 %v4663_v51  ;;  %v22451_v54 = vpop.f32.mrf.mxu0  ;;  %20979 = vmatprep.subr.bf16.mxu1 %v23439_v42  ;;  %v23462_v42 = vld [vmem:[#allocation4 + $0x4e0] sm:$0xff]   ;;  %v23464_v51 = vld [vmem:[#allocation4 + $0x4d8] sm:$0xff]  }
 0x273   :  { %20993 = vmatprep.subr.bf16.mxu0 %v23440_v44  ;;  %v5063_v44 = vpack.c.bf16 %v5053_v29, %v5053_v29  ;;  %v23465_v54 = vld [vmem:[#allocation4 + $0x538] sm:$0xff]  }
 0x274   :  { %v25152_v56 = vpop.f32.mrf.mxu0 }
 0x275   :  { %20980 = vmatpush3.bf16.msra.mxu1 %v23441_v45  ;;  %20994 = vmatpush3.bf16.msra.mxu0 %v23442_v48  ;;  %v23463_v45 = vld [vmem:[#allocation4 + $0x578] sm:$0xff]   ;;  %v4645_v48 = vor.u32 %v4644_v36, %v4641_v35 }
 0x276   :  { %v22452_v62 = vpop.f32.mrf.mxu0  ;;  %20981 = vmatprep.subr.bf16.mxu1 %v23443_v49  ;;  %20995 = vmatprep.subr.bf16.mxu0 %v23444_v53  ;;  %v20745_v49 = vpop.f32.mrf.mxu1  ;;  %v4526_v53 = vpack.c.bf16 %v25140_v30, %v4511_v38  ;;  %v23475_v35 = vld [vmem:[#allocation4 + $0x558] sm:$0xff]   ;;  %v4675_v38 = vrot.slane %v4673_v20, 2 }
 0x277   :  { %v23468_v62 = vld [vmem:[#allocation4 + $0x530] sm:$0xff]  }
 0x279   :  { %20982 = vmatpush3.bf16.msra.mxu1 %v23445_v55  ;;  %20996 = vmatpush3.bf16.msra.mxu0 %v23446_v57  ;;  %v5161_v55 = vrot.slane %v5063_v44, 2  ;;  %v4650_v57 = vsel %vm2131_vm4, %v4645_v48, %v4649_v50  ;;  %v23478_v44 = vld [vmem:[#allocation4 + $0x5b8] sm:$0xff]   ;;  %v23480_v48 = vld [vmem:[#allocation4 + $0x5f0] sm:$0xff]  }
 0x27a   :  { %20983 = vmatprep.subr.bf16.mxu1 %v23447_v58  ;;  %20997 = vmatprep.subr.bf16.mxu0 %v23448_v61  ;;  %v20746_v58 = vpop.f32.mrf.mxu1 }
 0x27b   :  { %v5162_v1 = vsel %vm2678_vm5, %v5160_v0, %v5161_v55  ;;  %v20747_v36 = vadd.f32 %v20746_v58, %v20745_v49  ;;  %v23481_v55 = vld [vmem:[#allocation4 + $0x510] sm:$0xff]  }
 0x27d   :  { %20984 = vmatpush3.bf16.msra.mxu1 %v23449_v63  ;;  %20998 = vmatpush3.bf16.msra.mxu0 %v23450_v40  ;;  %v4665_v63 = vshrl.u32 %v4526_v53, 16  ;;  %v4668_v40 = vshll.u32 %v4526_v53, 16 }
 0x27e   :  { %20999 = vmatprep.subr.bf16.mxu0 %v23451_v6  ;;  %22533 = vmatprep.subr.bf16.mxu1 %v25128_v60 }
 0x280   :  { %4955 = vmatmul.mubr.bf16.vlgmr.msra.gmra.mxu1 %v4624_v17  ;;  %v20773_v6 = vpop.f32.mrf.mxu1  ;;  %v5060_v17 = vpack.c.bf16 %v25105_v59, %v5050_v5  ;;  %v23486_v5 = vld [vmem:[#allocation4 + $0x5a8] sm:$0xff]  }
 0x281   :  { %21000 = vmatpush3.bf16.msra.mxu0 %v23452_v10  ;;  %22534 = vmatpush3.bf16.msra.mxu1 %v23453_v13  ;;  %v23472_v13 = vld [vmem:[#allocation4 + $0x560] sm:$0xff]  }
 0x282   :  { %21001 = vmatprep.subr.bf16.mxu0 %v23454_v15  ;;  %22535 = vmatprep.subr.bf16.mxu1 %v25128_v60  ;;  %v20744_v15 = vadd.f32 %v20743_v39, %v25160_v27  ;;  %v20774_v16 = vpop.f32.mrf.mxu1  ;;  %v5166_v59 = vrot.slane %v5060_v17, 2  ;;  %v23477_v39 = vld [vmem:[#allocation4 + $0x518] sm:$0xff]   ;;  %v24688_v17 = vld [vmem:[#allocation2 + $0x80] sm:$0xff] }
 0x283   :  { %22549 = vmatprep.mubr.msk.bf16.mxu1 %vm24771_vm3, %v25128_v60  ;;  %v20775_v43 = vadd.f32 %v20774_v16, %v20773_v6  ;;  %v23487_v6 = vld [vmem:[#allocation4 + $0x540] sm:$0xff]  }
 0x284   :  { %v2518_v27 = vadd.f32 %v20744_v15, %v20722_v22  ;;  %v20776_v33 = vpop.f32.mrf.mxu1  ;;  %v23489_v16 = vld [vmem:[#allocation4 + $0x500] sm:$0xff]  }
 0x285   :  { %21002 = vmatpush3.bf16.msra.mxu0 %v23455_v18  ;;  %22536 = vmatpush3.bf16.msra.mxu1 %v23456_v19  ;;  %v4667_v18 = vrot.slane %v4665_v63, 1  ;;  %v4670_v19 = vrot.slane %v4668_v40, 2  ;;  %v23490_v22 = vld [vmem:[#allocation4 + $0x5a0] sm:$0xff]  }
 0x286   :  { %21003 = vmatprep.subr.bf16.mxu0 %v23457_v24  ;;  %22537 = vmatprep.subr.bf16.mxu1 %v25128_v60  ;;  %v2559_v14 = vadd.f32 %v25149_v47, %v2518_v27  ;;  %v20777_v50 = vpop.f32.mrf.mxu1  ;;  %v23493_v27 = vld [vmem:[#allocation4 + $0x638] sm:$0xff]  }
 0x287   :  { %v4671_v29 = vor.u32 %v4670_v19, %v4667_v18  ;;  %v5057_v18 = vpack.c.bf16 %v24688_v17, %v5047_v7 }
 0x288   :  { %v2565_v47 = vadd.f32 %v2559_v14, %v25111_v21  ;;  %v23484_v21 = vld [vmem:[#allocation4 + $0x5e8] sm:$0xff]  }
 0x289   :  { %21004 = vmatpush3.bf16.msra.mxu0 %v23458_v28  ;;  %22538 = vmatpush3.bf16.msra.mxu1 %v23459_v31  ;;  %v23473_v28 = vld [vmem:[#allocation4 + $0x4c0] sm:$0xff]  }
 0x28a   :  { %21005 = vmatprep.subr.bf16.mxu0 %v23460_v46  ;;  %22539 = vmatprep.subr.bf16.mxu1 %v25128_v60  ;;  %v23474_v31 = vld [vmem:[#allocation4 + $0x520] sm:$0xff]   ;;  %v23476_v46 = vld [vmem:[#allocation4 + $0x5f8] sm:$0xff]  }
 0x28d   :  { %21006 = vmatpush3.bf16.msra.mxu0 %v23461_v41  ;;  %22540 = vmatpush3.bf16.msra.mxu1 %v23462_v42  ;;  %v5167_v41 = vrot.slane %v5065_v25, 2  ;;  %v20725_v42 = vadd.f32 %v25146_v9, %v25142_v4  ;;  %v19151_v4 = vld [vmem:[%s26586_s4] ss:$0 sm:$0xff]  ;;  %v5157_v25 = vrot.slane %v5057_v18, 2 }
 0x28e   :  { %22541 = vmatprep.subr.bf16.mxu1 %v25128_v60  ;;  %21022 = vmatprep.subr.bf16.mxu0 %v23463_v45  ;;  %v23479_v45 = vld [vmem:[#allocation4 + $0x550] sm:$0xff]  }
 0x28f   :  { %v2521_v49 = vadd.f32 %v20747_v36, %v20725_v42  ;;  %v5168_v0 = vsel %vm2678_vm5, %v5166_v59, %v5167_v41  ;;  %v23495_v36 = vld [vmem:[#allocation4 + $0x590] sm:$0xff]   ;;  %v23498_v41 = vld [vmem:[#allocation4 + $0x588] sm:$0xff]  }
 0x290   :  { %v20795_v61 = vpop.f32.mrf.mxu0  ;;  %4996 = vmatmul.mubr.bf16.vlgmr.msra.gmra.mxu0 %v4650_v57  ;;  %v20778_v57 = vadd.f32 %v20777_v50, %v20776_v33  ;;  %v5644_v33 = vld [vmem:[#allocation2 + $0x48] sm:$0xfe] }
 0x291   :  { %22542 = vmatpush3.bf16.msra.mxu1 %v23464_v51  ;;  %21023 = vmatpush3.bf16.msra.mxu0 %v23465_v54  ;;  %v4676_v54 = vsel %vm2131_vm4, %v4671_v29, %v4675_v38  ;;  %v2562_v32 = vadd.f32 %v25152_v56, %v2521_v49  ;;  %v23497_v38 = vld [vmem:[#allocation4 + $0x5c8] sm:$0xff]   ;;  %v5049_v42 = vld [vmem:[#allocation2 + $0x48] sm:$0xf0] }
 0x292   :  { %5449 = vmatprep.mubr.bf16.mxu0 %v5162_v1  ;;  %22543 = vmatprep.subr.bf16.mxu1 %v25128_v60  ;;  %v20796_v10 = vpop.f32.mrf.mxu0  ;;  %v5059_v50 = vpack.c.bf16 %v25125_v52, %v5049_v42  ;;  %v5646_v52 = vld [vmem:[#allocation2 + $0x68] sm:$0xfe]  ;;  %v23523_v42 = vld [vmem:[#allocation4 + $0x188] sm:$0xff]  }
 0x293   :  { %21024 = vmatprep.subr.bf16.mxu0 %v23466_v26  ;;  %v20797_v37 = vadd.f32 %v20796_v10, %v20795_v61  ;;  %v23482_v26 = vld [vmem:[#allocation4 + $0x5b0] sm:$0xff]   ;;  %v23483_v61 = vld [vmem:[#allocation4 + $0x548] sm:$0xff]   ;;  %v2566_v56 = vadd.f32 %v2562_v32, %v25116_v34  ;;  %v23491_v34 = vld [vmem:[#allocation4 + $0x5d8] sm:$0xff]  }
 0x294   :  { %v20798_v24 = vpop.f32.mrf.mxu0  ;;  %v23506_v32 = vld [vmem:[#allocation4 + $0x1b0] sm:$0xff]  }
 0x295   :  { %22544 = vmatpush3.bf16.msra.mxu1 %v23467_v2  ;;  %21025 = vmatpush3.bf16.msra.mxu0 %v23468_v62  ;;  %v3015_v53 = vadd.f32 %v20797_v37, %v20775_v43  ;;  %v5052_v62 = vld [vmem:[#allocation2 + $0x100] sm:$0x3]  ;;  %v23496_v37 = vld [vmem:[#allocation4 + $0x630] sm:$0xff]  }
 0x296   :  { %22545 = vmatprep.subr.bf16.mxu1 %v25128_v60  ;;  %21026 = vmatprep.subr.bf16.mxu0 %v23469_v3  ;;  %v20799_v23 = vpop.f32.mrf.mxu0  ;;  %v23485_v3 = vld [vmem:[#allocation4 + $0x508] sm:$0xff]   ;;  %v5062_v19 = vpack.c.bf16 %v5052_v62, %v5052_v62  ;;  %v5054_v43 = vld [vmem:[#allocation2 + $0x88] sm:$0x3] }
 0x297   :  { %v20800_v51 = vadd.f32 %v20799_v23, %v20798_v24  ;;  %v5064_v49 = vpack.c.bf16 %v5054_v43, %v5054_v43  ;;  %v23507_v62 = vld [vmem:[#allocation4 + $0x610] sm:$0xff]  }
 0x299   :  { %22546 = vmatpush3.bf16.msra.mxu1 %v23470_v11  ;;  %21027 = vmatpush3.bf16.msra.mxu0 %v23471_v12  ;;  %v3018_v1 = vadd.f32 %v20800_v51, %v20778_v57  ;;  %v23488_v11 = vld [vmem:[#allocation4 + $0x5e0] sm:$0xff]   ;;  %v25195_v57 = vld [vmem:[#allocation2 + $0xb0] sm:$0xff] }
 0x29a   :  { %22547 = vmatprep.subr.bf16.mxu1 %v25128_v60  ;;  %21028 = vmatprep.subr.bf16.mxu0 %v23472_v13  ;;  %v23501_v51 = vld [vmem:[#allocation4 + $0x580] sm:$0xff]  }
 0x29d   :  { %22548 = vmatpush3.bf16.msra.mxu1 %v23473_v28  ;;  %21029 = vmatpush3.bf16.msra.mxu0 %v23474_v31  ;;  %v5158_v28 = vrot.slane %v5062_v19, 2  ;;  %v23492_v31 = vld [vmem:[#allocation4 + $0x598] sm:$0xff]   ;;  %v23513_v19 = vld [vmem:[#allocation4 + $0x600] sm:$0xff]  }
 0x29e   :  { %21030 = vmatprep.subr.bf16.mxu0 %v23475_v35  ;;  %21044 = vmatprep.subr.bf16.mxu1 %v23476_v46  ;;  %v5649_v35 = vld [vmem:[#allocation2 + $0x90] sm:$0x7f]  ;;  %v23494_v46 = vld [vmem:[#allocation4 + $0x5d0] sm:$0xff]  }
 0x29f   :  { %v5159_v59 = vsel %vm2678_vm5, %v5157_v25, %v5158_v28 }
 0x2a0   :  { %v3055_v9 = vpop.f32.mrf.mxu1  ;;  %22550 = vmatmul.mubr.bf16.vlgmr.msra.gmra.mxu1 %v4676_v54  ;;  %v5163_v54 = vrot.slane %v5059_v50, 2 }
 0x2a1   :  { %v3056_v58 = vadd.f32 %v3055_v9, %v3015_v53  ;;  %21031 = vmatpush3.bf16.msra.mxu0 %v23477_v39  ;;  %21045 = vmatpush3.bf16.msra.mxu1 %v23478_v44  ;;  %v5654_v39 = vpack.c.bf16 %v5649_v35, %v5644_v33  ;;  %v23499_v44 = vld [vmem:[#allocation4 + $0x628] sm:$0xff]   ;;  %v23502_v53 = vld [vmem:[#allocation4 + $0x620] sm:$0xff]   ;;  %v23518_v33 = vld [vmem:[#allocation4 + $0x1f8] sm:$0xff]  }
 0x2a2   :  { %5490 = vmatprep.mubr.bf16.mxu1 %v5168_v0  ;;  %v22471_v2 = vpop.f32.mrf.mxu1  ;;  %21032 = vmatprep.subr.bf16.mxu0 %v23479_v45  ;;  %v23500_v45 = vld [vmem:[#allocation4 + $0x5c0] sm:$0xff]   ;;  %v23504_v0 = vld [vmem:[#allocation4 + $0x618] sm:$0xff]  }
 0x2a3   :  { %v3062_v63 = vadd.f32 %v3056_v58, %v2565_v47  ;;  %21046 = vmatprep.subr.bf16.mxu1 %v23480_v48  ;;  %v5748_v48 = vshll.u32 %v5654_v39, 16  ;;  %v5164_v47 = vrot.slane %v5064_v49, 2  ;;  %v5651_v58 = vld [vmem:[#allocation2 + $0x20] sm:$0x7f] }
 0x2a4   :  { %v3058_v40 = vpop.f32.mrf.mxu1  ;;  %v23525_v49 = vld [vmem:[#allocation4 + $0x148] sm:$0xff]  }
 0x2a5   :  { %v3070_v8 = vadd.f32 %v19151_v4, %v3062_v63  ;;  %v3059_v10 = vadd.f32 %v3058_v40, %v3018_v1  ;;  %21033 = vmatpush3.bf16.msra.mxu0 %v23481_v55  ;;  %21047 = vmatpush3.bf16.msra.mxu1 %v23482_v26  ;;  %v5750_v9 = vrot.slane %v5748_v48, 1  ;;  %v23505_v55 = vld [vmem:[#allocation4 + $0x178] sm:$0xff]   ;;  %v5746_v26 = vshrl.u32 %v5654_v39, 16  ;;  %v23508_v63 = vld [vmem:[#allocation4 + $0x170] sm:$0xff]   ;;  %v23509_v1 = vld [vmem:[#allocation4 + $0x1a8] sm:$0xff]  }
 0x2a6   :  { %v22472_v12 = vpop.f32.mrf.mxu1  ;;  %21034 = vmatprep.subr.bf16.mxu0 %v23483_v61  ;;  %21048 = vmatprep.subr.bf16.mxu1 %v23484_v21  ;;  %v5165_v61 = vsel %vm2678_vm5, %v5163_v54, %v5164_v47  ;;  %v5643_v39 = vld [vmem:[#allocation2 + $0x10] sm:$0xfe]  ;;  %v23527_v54 = vld [vmem:[#allocation4 + $0x180] sm:$0xff]  }
 0x2a7   :  { %v3072_v13 = vmax.f32 %v3070_v8, 0.0  ;;  %v3063_v15 = vadd.f32 %v3059_v10, %v2566_v56  ;;  %v5751_v21 = vor.u32 %v5750_v9, %v5746_v26  ;;  %v23510_v8 = vld [vmem:[#allocation4 + $0x608] sm:$0xff]   ;;  %v5056_v10 = vld [vmem:[#allocation2 + $0x28] sm:$0x3] }
 0x2a9   :  { %3074 = vst [vmem:[#allocation3] sm:$0xff] %v3072_v13  ;;  %v3071_v20 = vadd.f32 %v19151_v4, %v3063_v15  ;;  %21035 = vmatpush3.bf16.msra.mxu0 %v23485_v3  ;;  %21049 = vmatpush3.bf16.msra.mxu1 %v23486_v5  ;;  %v23503_v4 = vld [vmem:[#allocation4 + $0x1b8] sm:$0xff]   ;;  %v5051_v3 = vld [vmem:[#allocation2 + $0x68] sm:$0xf0]  ;;  %v23512_v15 = vld [vmem:[#allocation4 + $0x1a0] sm:$0xff]  }
 0x2aa   :  { %21036 = vmatprep.subr.bf16.mxu0 %v23487_v6  ;;  %21050 = vmatprep.subr.bf16.mxu1 %v23488_v11  ;;  %v5656_v6 = vpack.c.bf16 %v5651_v58, %v5646_v52  ;;  %v23511_v11 = vld [vmem:[#allocation4 + $0x168] sm:$0xff]   ;;  %v23532_v52 = vld [vmem:[#allocation4 + $0x1d8] sm:$0xff]  }
 0x2ab   :  { %v3073_v24 = vmax.f32 %v3071_v20, 0.0  ;;  %v5066_v20 = vpack.c.bf16 %v5056_v10, %v5056_v10  ;;  %v23533_v58 = vld [vmem:[#allocation4 + $0x278] sm:$0xff]   ;;  %v23539_v10 = vld [vmem:[#allocation4 + $0x268] sm:$0xff]  }
 0x2ad   :  { %3075 = vst [vmem:[#allocation3 + $0x50] sm:$0x3f] %v3073_v24  ;;  %21037 = vmatpush3.bf16.msra.mxu0 %v23489_v16  ;;  %21051 = vmatpush3.bf16.msra.mxu1 %v23490_v22  ;;  %v5061_v16 = vpack.c.bf16 %v25140_v30, %v5051_v3  ;;  %v5762_v22 = vshll.u32 %v5656_v6, 16  ;;  %v23515_v24 = vld [vmem:[#allocation4 + $0x198] sm:$0xff]   ;;  %v5170_v35 = vrot.slane %v5066_v20, 2 }
 0x2ae   :  { %21052 = vmatprep.subr.bf16.mxu1 %v23491_v34  ;;  %22553 = vmatprep.subr.bf16.mxu0 %v25128_v60  ;;  %v23514_v34 = vld [vmem:[#allocation4 + $0x160] sm:$0xff]  }
 0x2af   :  { %v5169_v28 = vrot.slane %v5061_v16, 2  ;;  %v5764_v30 = vrot.slane %v5762_v22, 1 }
 0x2b0   :  { %v20826_v29 = vpop.f32.mrf.mxu0  ;;  %5450 = vmatmul.mubr.bf16.vlgmr.msra.gmra.mxu0 %v5159_v59  ;;  %v23519_v59 = vld [vmem:[#allocation4 + $0x190] sm:$0xff]  }
 0x2b1   :  { %21053 = vmatpush3.bf16.msra.mxu1 %v23492_v31  ;;  %22554 = vmatpush3.bf16.msra.mxu0 %v23493_v27  ;;  %v23516_v31 = vld [vmem:[#allocation4 + $0x238] sm:$0xff]  }
 0x2b2   :  { %v20827_v14 = vpop.f32.mrf.mxu0  ;;  %21054 = vmatprep.subr.bf16.mxu1 %v23494_v46  ;;  %22555 = vmatprep.subr.bf16.mxu0 %v25128_v60  ;;  %v23517_v27 = vld [vmem:[#allocation4 + $0x158] sm:$0xff]   ;;  %v5760_v46 = vshrl.u32 %v5656_v6, 16 }
 0x2b3   :  { %v20828_v23 = vadd.f32 %v20827_v14, %v20826_v29  ;;  %22569 = vmatprep.mubr.msk.bf16.mxu0 %vm24771_vm3, %v25128_v60  ;;  %v5171_v29 = vsel %vm2678_vm5, %v5169_v28, %v5170_v35  ;;  %v5554_v28 = vld [vmem:[#allocation2 + $0x90] sm:$0x3f]  ;;  %v5549_v35 = vld [vmem:[#allocation2 + $0x48] sm:$0xff] }
 0x2b5   :  { %21055 = vmatpush3.bf16.msra.mxu1 %v23495_v36  ;;  %22556 = vmatpush3.bf16.msra.mxu0 %v23496_v37  ;;  %v23520_v36 = vld [vmem:[#allocation4 + $0x230] sm:$0xff]   ;;  %v5648_v37 = vld [vmem:[#allocation2 + $0x110] sm:$0x7f] }
 0x2b6   :  { %21056 = vmatprep.subr.bf16.mxu1 %v23497_v38  ;;  %22557 = vmatprep.subr.bf16.mxu0 %v25128_v60  ;;  %v23521_v38 = vld [vmem:[#allocation4 + $0x150] sm:$0xff]   ;;  %v5653_v48 = vpack.c.bf16 %v5648_v37, %v5643_v39  ;;  %v23549_v39 = vld [vmem:[#allocation4 + $0x68] sm:$0xff]  }
 0x2b8   :  { %v5741_v9 = vshll.u32 %v5653_v48, 16 }
 0x2b9   :  { %21057 = vmatpush3.bf16.msra.mxu1 %v23498_v41  ;;  %22558 = vmatpush3.bf16.msra.mxu0 %v23499_v44  ;;  %v23522_v41 = vld [vmem:[#allocation4 + $0x1f0] sm:$0xff]   ;;  %v23524_v44 = vld [vmem:[#allocation4 + $0x228] sm:$0xff]  }
 0x2ba   :  { %21058 = vmatprep.subr.bf16.mxu1 %v23500_v45  ;;  %22559 = vmatprep.subr.bf16.mxu0 %v25128_v60  ;;  %v20829_v60 = vpop.f32.mrf.mxu0  ;;  %v5743_v26 = vrot.slane %v5741_v9, 1  ;;  %v23556_v9 = vld [vmem:[#allocation4 + $0xf8] sm:$0xff]  }
 0x2bc   :  { %v20830_v7 = vpop.f32.mrf.mxu0 }
 0x2bd   :  { %21059 = vmatpush3.bf16.msra.mxu1 %v23501_v51  ;;  %22560 = vmatpush3.bf16.msra.mxu0 %v23502_v53  ;;  %v20831_v17 = vadd.f32 %v20830_v7, %v20829_v60  ;;  %v23526_v51 = vld [vmem:[#allocation4 + $0x1e8] sm:$0xff]   ;;  %v23534_v60 = vld [vmem:[#allocation4 + $0x210] sm:$0xff]  }
 0x2be   :  { %22561 = vmatprep.subr.bf16.mxu0 %v25195_v57  ;;  %21075 = vmatprep.subr.bf16.mxu1 %v23503_v4  ;;  %v23528_v4 = vld [vmem:[#allocation4 + $0x220] sm:$0xff]  }
 0x2c0   :  { %v20848_v2 = vpop.f32.mrf.mxu1  ;;  %5491 = vmatmul.mubr.bf16.vlgmr.msra.gmra.mxu1 %v5165_v61  ;;  %v5739_v61 = vshrl.u32 %v5653_v48, 16  ;;  %v23552_v48 = vld [vmem:[#allocation4 + $0x60] sm:$0xff]  }
 0x2c1   :  { %22562 = vmatpush3.bf16.msra.mxu0 %v23504_v0  ;;  %21076 = vmatpush3.bf16.msra.mxu1 %v23505_v55  ;;  %v23529_v0 = vld [vmem:[#allocation4 + $0x140] sm:$0xff]  }
 0x2c2   :  { %6050 = vmatprep.mubr.bf16.mxu1 %v5751_v21  ;;  %v20849_v40 = vpop.f32.mrf.mxu1  ;;  %22563 = vmatprep.subr.bf16.mxu0 %v25195_v57  ;;  %v23530_v55 = vld [vmem:[#allocation4 + $0x1e0] sm:$0xff]   ;;  %v5650_v21 = vld [vmem:[#allocation2 + $0xf0] sm:$0x7f] }
 0x2c3   :  { %v20850_v5 = vadd.f32 %v20849_v40, %v20848_v2  ;;  %21077 = vmatprep.subr.bf16.mxu1 %v23506_v32  ;;  %v23531_v32 = vld [vmem:[#allocation4 + $0x218] sm:$0xff]   ;;  %v5645_v2 = vld [vmem:[#allocation2 + $0x108] sm:$0xfe]  ;;  %v23537_v40 = vld [vmem:[#allocation4 + $0x208] sm:$0xff]  }
 0x2c4   :  { %v20851_v56 = vpop.f32.mrf.mxu1  ;;  %v5655_v6 = vpack.c.bf16 %v5650_v21, %v5645_v2  ;;  %v23561_v21 = vld [vmem:[#allocation4 + $0x10] sm:$0xff]  }
 0x2c5   :  { %22564 = vmatpush3.bf16.msra.mxu0 %v23507_v62  ;;  %21078 = vmatpush3.bf16.msra.mxu1 %v23508_v63  ;;  %v3622_v12 = vadd.f32 %v20850_v5, %v20828_v23  ;;  %v5765_v23 = vor.u32 %v5764_v30, %v5760_v46  ;;  %v5744_v62 = vor.u32 %v5743_v26, %v5739_v61  ;;  %v23535_v63 = vld [vmem:[#allocation4 + $0x1d0] sm:$0xff]  }
 0x2c6   :  { %v20852_v13 = vpop.f32.mrf.mxu1  ;;  %22565 = vmatprep.subr.bf16.mxu0 %v25195_v57  ;;  %21079 = vmatprep.subr.bf16.mxu1 %v23509_v1  ;;  %v23536_v1 = vld [vmem:[#allocation4 + $0x270] sm:$0xff]   ;;  %v5753_v20 = vshrl.u32 %v5655_v6, 16 }
 0x2c7   :  { %v20853_v18 = vadd.f32 %v20852_v13, %v20851_v56  ;;  %v23538_v56 = vld [vmem:[#allocation4 + $0x1c8] sm:$0xff]   ;;  %v5551_v26 = vld [vmem:[#allocation2 + $0x68] sm:$0xff] }
 0x2c8   :  { %v23560_v61 = vld [vmem:[#allocation4 + $0xf0] sm:$0xff]  }
 0x2c9   :  { %22566 = vmatpush3.bf16.msra.mxu0 %v23510_v8  ;;  %21080 = vmatpush3.bf16.msra.mxu1 %v23511_v11  ;;  %v3625_v25 = vadd.f32 %v20853_v18, %v20831_v17  ;;  %v23540_v11 = vld [vmem:[#allocation4 + $0x200] sm:$0xff]  }
 0x2ca   :  { %22567 = vmatprep.subr.bf16.mxu0 %v25195_v57  ;;  %21081 = vmatprep.subr.bf16.mxu1 %v23512_v15  ;;  %v5755_v15 = vshll.u32 %v5655_v6, 16  ;;  %v23541_v18 = vld [vmem:[#allocation4 + $0x1c0] sm:$0xff]   ;;  %v23565_v6 = vld [vmem:[#allocation4 + $0x8] sm:$0xff]  }
 0x2cc   :  { %v5757_v22 = vrot.slane %v5755_v15, 1  ;;  %v5553_v15 = vld [vmem:[#allocation2 + $0x110] sm:$0x3f] }
 0x2cd   :  { %22568 = vmatpush3.bf16.msra.mxu0 %v23513_v19  ;;  %21082 = vmatpush3.bf16.msra.mxu1 %v23514_v34  ;;  %v23542_v19 = vld [vmem:[#allocation4 + $0x260] sm:$0xff]   ;;  %v23543_v34 = vld [vmem:[#allocation4 + $0x78] sm:$0xff]  }
 0x2ce   :  { %21083 = vmatprep.subr.bf16.mxu1 %v23515_v24  ;;  %21097 = vmatprep.subr.bf16.mxu0 %v23516_v31  ;;  %v23544_v24 = vld [vmem:[#allocation4 + $0x258] sm:$0xff]   ;;  %v5758_v46 = vor.u32 %v5757_v22, %v5753_v20  ;;  %v23574_v20 = vld [vmem:[#allocation4 + $0xd0] sm:$0xff]  }
 0x2cf   :  { %v5647_v31 = vld [vmem:[#allocation2 + $0x30] sm:$0xfe] }
 0x2d0   :  { %v3662_v14 = vpop.f32.mrf.mxu0  ;;  %22570 = vmatmul.mubr.bf16.vlgmr.msra.gmra.mxu0 %v5171_v29  ;;  %v23548_v29 = vld [vmem:[#allocation4 + $0x30] sm:$0xff]  }
 0x2d1   :  { %v3663_v43 = vadd.f32 %v3662_v14, %v3622_v12  ;;  %21084 = vmatpush3.bf16.msra.mxu1 %v23517_v27  ;;  %21098 = vmatpush3.bf16.msra.mxu0 %v23518_v33  ;;  %v23546_v27 = vld [vmem:[#allocation4 + $0x70] sm:$0xff]  }
 0x2d2   :  { %6091 = vmatprep.mubr.bf16.mxu0 %v5765_v23  ;;  %v22491_v45 = vpop.f32.mrf.mxu0  ;;  %21085 = vmatprep.subr.bf16.mxu1 %v23519_v59  ;;  %v5652_v33 = vld [vmem:[#allocation2 + $0xc8] sm:$0x7f]  ;;  %v5559_v59 = vpack.c.bf16 %v5554_v28, %v5549_v35  ;;  %v23577_v28 = vld [vmem:[#allocation4 + $0xc8] sm:$0xff]  }
 0x2d3   :  { %21099 = vmatprep.subr.bf16.mxu0 %v23520_v36  ;;  %v23547_v36 = vld [vmem:[#allocation4 + $0x250] sm:$0xff]   ;;  %v5657_v37 = vpack.c.bf16 %v5652_v33, %v5647_v31  ;;  %v23579_v33 = vld [vmem:[#allocation4 + $0x128] sm:$0xff]  }
 0x2d4   :  { %v3665_v50 = vpop.f32.mrf.mxu0 }
 0x2d5   :  { %v3666_v53 = vadd.f32 %v3665_v50, %v3625_v25  ;;  %21086 = vmatpush3.bf16.msra.mxu1 %v23521_v38  ;;  %21100 = vmatpush3.bf16.msra.mxu0 %v23522_v41  ;;  %v23545_v25 = vld [vmem:[#allocation4 + $0x38] sm:$0xff]   ;;  %v5769_v41 = vshll.u32 %v5657_v37, 16 }
 0x2d6   :  { %v22492_v47 = vpop.f32.mrf.mxu0  ;;  %21087 = vmatprep.subr.bf16.mxu1 %v23523_v42  ;;  %21101 = vmatprep.subr.bf16.mxu0 %v23524_v44  ;;  %v23550_v42 = vld [vmem:[#allocation4 + $0x248] sm:$0xff]  }
 0x2d7   :  { %v23555_v47 = vld [vmem:[#allocation4 + $0x58] sm:$0xff]  }
 0x2d9   :  { %21088 = vmatpush3.bf16.msra.mxu1 %v23525_v49  ;;  %21102 = vmatpush3.bf16.msra.mxu0 %v23526_v51  ;;  %v23553_v49 = vld [vmem:[#allocation4 + $0x240] sm:$0xff]   ;;  %v5767_v51 = vshrl.u32 %v5657_v37, 16  ;;  %v5550_v37 = vld [vmem:[#allocation2 + $0x108] sm:$0xff] }
 0x2da   :  { %21089 = vmatprep.subr.bf16.mxu1 %v23527_v54  ;;  %21103 = vmatprep.subr.bf16.mxu0 %v23528_v4  ;;  %v23554_v54 = vld [vmem:[#allocation4 + $0x20] sm:$0xff]  }
 0x2dd   :  { %21090 = vmatpush3.bf16.msra.mxu1 %v23529_v0  ;;  %21104 = vmatpush3.bf16.msra.mxu0 %v23530_v55  ;;  %v23557_v0 = vld [vmem:[#allocation4 + $0x18] sm:$0xff]  }
 0x2de   :  { %21105 = vmatprep.subr.bf16.mxu0 %v23531_v32  ;;  %22573 = vmatprep.subr.bf16.mxu1 %v25195_v57  ;;  %v23558_v55 = vld [vmem:[#allocation4 + $0xb8] sm:$0xff]   ;;  %v5556_v32 = vld [vmem:[#allocation2 + $0x20] sm:$0x3f] }
 0x2df   :  { %v5561_v2 = vpack.c.bf16 %v5556_v32, %v5551_v26  ;;  %v5557_v26 = vld [vmem:[#allocation2 + $0xc8] sm:$0x3f]  ;;  %v25232_v32 = vld [vmem:[#allocation2 + $0x20] sm:$0xff] }
 0x2e0   :  { %v20879_v3 = vpop.f32.mrf.mxu1  ;;  %6051 = vmatmul.mubr.bf16.vlgmr.msra.gmra.mxu1 %v5744_v62  ;;  %v23562_v62 = vld [vmem:[#allocation4 + $0xb0] sm:$0xff]  }
 0x2e1   :  { %21106 = vmatpush3.bf16.msra.mxu0 %v23532_v52  ;;  %22574 = vmatpush3.bf16.msra.mxu1 %v23533_v58  ;;  %v23559_v58 = vld [vmem:[#allocation4 + $0x50] sm:$0xff]  }
 0x2e2   :  { %v20880_v5 = vpop.f32.mrf.mxu1  ;;  %21107 = vmatprep.subr.bf16.mxu0 %v23534_v60  ;;  %22575 = vmatprep.subr.bf16.mxu1 %v25195_v57 }
 0x2e3   :  { %v20881_v7 = vadd.f32 %v20880_v5, %v20879_v3  ;;  %22589 = vmatprep.mubr.msk.bf16.mxu1 %vm24771_vm3, %v25195_v57 }
 0x2e4   :  { %v20882_v8 = vpop.f32.mrf.mxu1 }
 0x2e5   :  { %v3944_v12 = vadd.f32 %v20881_v7, %v3663_v43  ;;  %21108 = vmatpush3.bf16.msra.mxu0 %v23535_v63  ;;  %22576 = vmatpush3.bf16.msra.mxu1 %v23536_v1  ;;  %v23551_v43 = vld [vmem:[#allocation4 + $0x28] sm:$0xff]  }
 0x2e6   :  { %v20883_v13 = vpop.f32.mrf.mxu1  ;;  %21109 = vmatprep.subr.bf16.mxu0 %v23537_v40  ;;  %22577 = vmatprep.subr.bf16.mxu1 %v25195_v57  ;;  %v23563_v1 = vld [vmem:[#allocation4 + $0x48] sm:$0xff]  }
 0x2e7   :  { %v20884_v16 = vadd.f32 %v20883_v13, %v20882_v8  ;;  %v23564_v40 = vld [vmem:[#allocation4 + $0xe8] sm:$0xff]   ;;  %v23567_v8 = vld [vmem:[#allocation4 + $0x40] sm:$0xff]  }
 0x2e8   :  { %v23566_v7 = vld [vmem:[#allocation4 + $0xa8] sm:$0xff]   ;;  %v23570_v13 = vld [vmem:[#allocation4 + $0xa0] sm:$0xff]  }
 0x2e9   :  { %v3947_v17 = vadd.f32 %v20884_v16, %v3666_v53  ;;  %21110 = vmatpush3.bf16.msra.mxu0 %v23538_v56  ;;  %22578 = vmatpush3.bf16.msra.mxu1 %v23539_v10  ;;  %v5771_v53 = vrot.slane %v5769_v41, 1  ;;  %v23571_v16 = vld [vmem:[#allocation4 + $0xd8] sm:$0xff]  }
 0x2ea   :  { %21111 = vmatprep.subr.bf16.mxu0 %v23540_v11  ;;  %22579 = vmatprep.subr.bf16.mxu1 %v25195_v57  ;;  %v23568_v11 = vld [vmem:[#allocation4 + $0xe0] sm:$0xff]   ;;  %v23585_v41 = vld [vmem:[#allocation4 + $0x2b8] sm:$0xff]  }
 0x2eb   :  { %v5772_v52 = vor.u32 %v5771_v53, %v5767_v51  ;;  %v23590_v53 = vld [vmem:[#allocation4 + $0x108] sm:$0xff]  }
 0x2ed   :  { %21112 = vmatpush3.bf16.msra.mxu0 %v23541_v18  ;;  %22580 = vmatpush3.bf16.msra.mxu1 %v23542_v19  ;;  %v23572_v18 = vld [vmem:[#allocation4 + $0x98] sm:$0xff]  }
 0x2ee   :  { %22581 = vmatprep.subr.bf16.mxu1 %v25195_v57  ;;  %21128 = vmatprep.subr.bf16.mxu0 %v23543_v34  ;;  %v23573_v19 = vld [vmem:[#allocation4 + $0x138] sm:$0xff]   ;;  %v23575_v34 = vld [vmem:[#allocation4 + $0x90] sm:$0xff]  }
 0x2f0   :  { %v20901_v30 = vpop.f32.mrf.mxu0  ;;  %6092 = vmatmul.mubr.bf16.vlgmr.msra.gmra.mxu0 %v5758_v46  ;;  %v23580_v46 = vld [vmem:[#allocation4 + $0xc0] sm:$0xff]  }
 0x2f1   :  { %22582 = vmatpush3.bf16.msra.mxu1 %v23544_v24  ;;  %21129 = vmatpush3.bf16.msra.mxu0 %v23545_v25  ;;  %v23576_v24 = vld [vmem:[#allocation4 + $0x130] sm:$0xff]  }
 0x2f2   :  { %6413 = vmatprep.mubr.bf16.mxu0 %v5559_v59  ;;  %v20902_v38 = vpop.f32.mrf.mxu0  ;;  %22583 = vmatprep.subr.bf16.mxu1 %v25195_v57  ;;  %v23582_v59 = vld [vmem:[#allocation4 + $0x120] sm:$0xff]  }
 0x2f3   :  { %v20903_v14 = vadd.f32 %v20902_v38, %v20901_v30  ;;  %21130 = vmatprep.subr.bf16.mxu0 %v23546_v27  ;;  %v23578_v27 = vld [vmem:[#allocation4 + $0x88] sm:$0xff]   ;;  %v23581_v30 = vld [vmem:[#allocation4 + $0x80] sm:$0xff]   ;;  %v5555_v38 = vld [vmem:[#allocation2 + $0xf0] sm:$0x3f] }
 0x2f4   :  { %v20904_v23 = vpop.f32.mrf.mxu0 }
 0x2f5   :  { %22584 = vmatpush3.bf16.msra.mxu1 %v23547_v36  ;;  %21131 = vmatpush3.bf16.msra.mxu0 %v23548_v29  ;;  %v3985_v44 = vadd.f32 %v20903_v14, %v3944_v12  ;;  %v23569_v12 = vld [vmem:[#allocation4] sm:$0xff]   ;;  %v25225_v36 = vld [vmem:[#allocation2 + $0x90] sm:$0xff] }
 0x2f6   :  { %v20905_v45 = vpop.f32.mrf.mxu0  ;;  %22585 = vmatprep.subr.bf16.mxu1 %v25195_v57  ;;  %21132 = vmatprep.subr.bf16.mxu0 %v23549_v39  ;;  %v23583_v29 = vld [vmem:[#allocation4 + $0x2f8] sm:$0xff]   ;;  %v6505_v39 = vld [vmem:[#allocation2 + $0x48] sm:$0xfc] }
 0x2f7   :  { %v20906_v50 = vadd.f32 %v20905_v45, %v20904_v23  ;;  %v6515_v14 = vpack.c.bf16 %v25225_v36, %v6505_v39  ;;  %v23584_v23 = vld [vmem:[#allocation4 + $0x118] sm:$0xff]  }
 0x2f8   :  { %v23613_v39 = vld [vmem:[#allocation4 + $0x3b8] sm:$0xff]  }
 0x2f9   :  { %22586 = vmatpush3.bf16.msra.mxu1 %v23550_v42  ;;  %21133 = vmatpush3.bf16.msra.mxu0 %v23551_v43  ;;  %v3988_v4 = vadd.f32 %v20906_v50, %v3947_v17  ;;  %v5548_v17 = vld [vmem:[#allocation2 + $0x10] sm:$0xff]  ;;  %v5560_v42 = vpack.c.bf16 %v5555_v38, %v5550_v37  ;;  %v23586_v43 = vld [vmem:[#allocation4 + $0x2f0] sm:$0xff]   ;;  %v6605_v45 = vrot.slane %v6515_v14, 1 }
 0x2fa   :  { %22587 = vmatprep.subr.bf16.mxu1 %v25195_v57  ;;  %21134 = vmatprep.subr.bf16.mxu0 %v23552_v48  ;;  %v5558_v22 = vpack.c.bf16 %v5553_v15, %v5548_v17  ;;  %v23587_v48 = vld [vmem:[#allocation4 + $0x110] sm:$0xff]   ;;  %v23603_v17 = vld [vmem:[#allocation4 + $0x2c8] sm:$0xff]   ;;  %v23612_v38 = vld [vmem:[#allocation4 + $0x318] sm:$0xff]  }
 0x2fb   :  { %v23588_v50 = vld [vmem:[#allocation4 + $0x2b0] sm:$0xff]  }
 0x2fd   :  { %22588 = vmatpush3.bf16.msra.mxu1 %v23553_v49  ;;  %21135 = vmatpush3.bf16.msra.mxu0 %v23554_v54  ;;  %v23589_v49 = vld [vmem:[#allocation4 + $0x2e8] sm:$0xff]  }
 0x2fe   :  { %21136 = vmatprep.subr.bf16.mxu0 %v23555_v47  ;;  %21150 = vmatprep.subr.bf16.mxu1 %v23556_v9  ;;  %v23591_v54 = vld [vmem:[#allocation4 + $0x2a8] sm:$0xff]   ;;  %v23592_v47 = vld [vmem:[#allocation4 + $0x2e0] sm:$0xff]   ;;  %v6507_v9 = vld [vmem:[#allocation2 + $0x68] sm:$0xfc] }
 0x300   :  { %v4025_v60 = vpop.f32.mrf.mxu1  ;;  %22590 = vmatmul.mubr.bf16.vlgmr.msra.gmra.mxu1 %v5772_v52 }
 0x301   :  { %v25214_v63 = vadd.f32 %v4025_v60, %v3985_v44  ;;  %21137 = vmatpush3.bf16.msra.mxu0 %v23557_v0  ;;  %21151 = vmatpush3.bf16.msra.mxu1 %v23558_v55  ;;  %v23594_v55 = vld [vmem:[#allocation4 + $0x2a0] sm:$0xff]   ;;  %v23596_v60 = vld [vmem:[#allocation4 + $0x378] sm:$0xff]  }
 0x302   :  { %6454 = vmatprep.mubr.bf16.mxu1 %v5561_v2  ;;  %v22511_v3 = vpop.f32.mrf.mxu1  ;;  %21138 = vmatprep.subr.bf16.mxu0 %v23559_v58  ;;  %v25234_v58 = vld [vmem:[#allocation2 + $0xb0] sm:$0xff] }
 0x303   :  { %21152 = vmatprep.subr.bf16.mxu1 %v23560_v61  ;;  %v23595_v61 = vld [vmem:[#allocation4 + $0x2d8] sm:$0xff]  }
 0x304   :  { %v4028_v5 = vpop.f32.mrf.mxu1  ;;  %v23598_v3 = vld [vmem:[#allocation4 + $0x338] sm:$0xff]  }
 0x305   :  { %v25216_v56 = vadd.f32 %v4028_v5, %v3988_v4  ;;  %21139 = vmatpush3.bf16.msra.mxu0 %v23561_v21  ;;  %21153 = vmatpush3.bf16.msra.mxu1 %v23562_v62  ;;  %v23593_v4 = vld [vmem:[#allocation4 + $0x100] sm:$0xff]   ;;  %v5562_v62 = vpack.c.bf16 %v5557_v26, %v25234_v58  ;;  %v23599_v5 = vld [vmem:[#allocation4 + $0x2d0] sm:$0xff]  }
 0x306   :  { %v22512_v10 = vpop.f32.mrf.mxu1  ;;  %21140 = vmatprep.subr.bf16.mxu0 %v23563_v1  ;;  %21154 = vmatprep.subr.bf16.mxu1 %v23564_v40  ;;  %v6517_v1 = vpack.c.bf16 %v25232_v32, %v6507_v9  ;;  %v23622_v9 = vld [vmem:[#allocation4 + $0x3a0] sm:$0xff]  }
 0x309   :  { %21141 = vmatpush3.bf16.msra.mxu0 %v23565_v6  ;;  %21155 = vmatpush3.bf16.msra.mxu1 %v23566_v7 }
 0x30a   :  { %21142 = vmatprep.subr.bf16.mxu0 %v23567_v8  ;;  %21156 = vmatprep.subr.bf16.mxu1 %v23568_v11  ;;  %v23600_v8 = vld [vmem:[#allocation4 + $0x370] sm:$0xff]   ;;  %v6607_v11 = vrot.slane %v6517_v1, 1 }
 0x30b   :  { %v6982_v1 = vld [vmem:[#allocation2 + $0x68] sm:$0xf8] }
 0x30d   :  { %21143 = vmatpush3.bf16.msra.mxu0 %v23569_v12  ;;  %21157 = vmatpush3.bf16.msra.mxu1 %v23570_v13  ;;  %v23601_v12 = vld [vmem:[#allocation4 + $0x290] sm:$0xff]  }
 0x30e   :  { %21158 = vmatprep.subr.bf16.mxu1 %v23571_v16  ;;  %22593 = vmatprep.subr.bf16.mxu0 %v25195_v57  ;;  %v23602_v13 = vld [vmem:[#allocation4 + $0x330] sm:$0xff]  }
 0x310   :  { %v20932_v25 = vpop.f32.mrf.mxu0  ;;  %6414 = vmatmul.mubr.bf16.vlgmr.msra.gmra.mxu0 %v5558_v22 }
 0x311   :  { %21159 = vmatpush3.bf16.msra.mxu1 %v23572_v18  ;;  %22594 = vmatpush3.bf16.msra.mxu0 %v23573_v19  ;;  %v23604_v19 = vld [vmem:[#allocation4 + $0x368] sm:$0xff]  }
 0x312   :  { %v20933_v31 = vpop.f32.mrf.mxu0  ;;  %21160 = vmatprep.subr.bf16.mxu1 %v23574_v20  ;;  %22595 = vmatprep.subr.bf16.mxu0 %v25195_v57 }
 0x313   :  { %v25220_v35 = vadd.f32 %v20933_v31, %v20932_v25  ;;  %22609 = vmatprep.mubr.msk.bf16.mxu0 %vm24771_vm3, %v25195_v57  ;;  %v23606_v25 = vld [vmem:[#allocation4 + $0x328] sm:$0xff]   ;;  %v25243_v31 = vld [vmem:[#allocation2 + $0x110] sm:$0xff] }
 0x314   :  { %v20935_v52 = vpop.f32.mrf.mxu0 }
 0x315   :  { %21161 = vmatpush3.bf16.msra.mxu1 %v23575_v34  ;;  %22596 = vmatpush3.bf16.msra.mxu0 %v23576_v24  ;;  %v23605_v34 = vld [vmem:[#allocation4 + $0x288] sm:$0xff]  }
 0x316   :  { %21162 = vmatprep.subr.bf16.mxu1 %v23577_v28  ;;  %22597 = vmatprep.subr.bf16.mxu0 %v25195_v57  ;;  %v20936_v40 = vpop.f32.mrf.mxu0  ;;  %v23607_v28 = vld [vmem:[#allocation4 + $0x2c0] sm:$0xff]  }
 0x317   :  { %v20937_v15 = vadd.f32 %v20936_v40, %v20935_v52  ;;  %v23626_v40 = vld [vmem:[#allocation4 + $0x430] sm:$0xff]  }
 0x319   :  { %21163 = vmatpush3.bf16.msra.mxu1 %v23578_v27  ;;  %22598 = vmatpush3.bf16.msra.mxu0 %v23579_v33  ;;  %v23608_v27 = vld [vmem:[#allocation4 + $0x360] sm:$0xff]  }
 0x31a   :  { %21164 = vmatprep.subr.bf16.mxu1 %v23580_v46  ;;  %22599 = vmatprep.subr.bf16.mxu0 %v25195_v57 }
 0x31d   :  { %21165 = vmatpush3.bf16.msra.mxu1 %v23581_v30  ;;  %22600 = vmatpush3.bf16.msra.mxu0 %v23582_v59  ;;  %v6504_v30 = vld [vmem:[#allocation2 + $0x10] sm:$0xfc]  ;;  %v23610_v59 = vld [vmem:[#allocation4 + $0x320] sm:$0xff]  }
 0x31e   :  { %22601 = vmatprep.subr.bf16.mxu0 %v25195_v57  ;;  %21181 = vmatprep.subr.bf16.mxu1 %v23583_v29  ;;  %v6514_v37 = vpack.c.bf16 %v25243_v31, %v6504_v30  ;;  %v23611_v29 = vld [vmem:[#allocation4 + $0x358] sm:$0xff]  }
 0x31f   :  { %v23635_v30 = vld [vmem:[#allocation4 + $0x418] sm:$0xff]  }
 0x320   :  { %v20954_v44 = vpop.f32.mrf.mxu1  ;;  %6455 = vmatmul.mubr.bf16.vlgmr.msra.gmra.mxu1 %v5560_v42  ;;  %v6604_v14 = vrot.slane %v6514_v37, 1  ;;  %v23616_v42 = vld [vmem:[#allocation4 + $0x3b0] sm:$0xff]   ;;  %v6979_v37 = vld [vmem:[#allocation2 + $0x10] sm:$0xf8] }
 0x321   :  { %22602 = vmatpush3.bf16.msra.mxu0 %v23584_v23  ;;  %21182 = vmatpush3.bf16.msra.mxu1 %v23585_v41  ;;  %v23614_v23 = vld [vmem:[#allocation4 + $0x350] sm:$0xff]  }
 0x322   :  { %6886 = vmatprep.mubr.bf16.mxu1 %v6605_v45  ;;  %22603 = vmatprep.subr.bf16.mxu0 %v25195_v57  ;;  %v20955_v51 = vpop.f32.mrf.mxu1  ;;  %v23615_v41 = vld [vmem:[#allocation4 + $0x310] sm:$0xff]  }
 0x323   :  { %21183 = vmatprep.subr.bf16.mxu1 %v23586_v43  ;;  %v20956_v2 = vadd.f32 %v20955_v51, %v20954_v44  ;;  %v23617_v44 = vld [vmem:[#allocation4 + $0x348] sm:$0xff]   ;;  %v6990_v45 = vld [vmem:[#allocation2 + $0x88] sm:$0x1] }
 0x324   :  { %v20957_v0 = vpop.f32.mrf.mxu1 }
 0x325   :  { %22604 = vmatpush3.bf16.msra.mxu0 %v23587_v48  ;;  %21184 = vmatpush3.bf16.msra.mxu1 %v23588_v50  ;;  %v4458_v7 = vadd.f32 %v20956_v2, %v25220_v35  ;;  %v23618_v48 = vld [vmem:[#allocation4 + $0x308] sm:$0xff]   ;;  %v23624_v2 = vld [vmem:[#allocation4 + $0x398] sm:$0xff]  }
 0x326   :  { %22605 = vmatprep.subr.bf16.mxu0 %v25195_v57  ;;  %21185 = vmatprep.subr.bf16.mxu1 %v23589_v49  ;;  %v23597_v57 = vld [vmem:[#allocation4 + $0x298] sm:$0xff]   ;;  %v20958_v21 = vpop.f32.mrf.mxu1  ;;  %v23619_v50 = vld [vmem:[#allocation4 + $0x3a8] sm:$0xff]  }
 0x327   :  { %v20959_v6 = vadd.f32 %v20958_v21, %v20957_v0  ;;  %v25255_v0 = vld [vmem:[#allocation2 + $0xf0] sm:$0xff] }
 0x329   :  { %22606 = vmatpush3.bf16.msra.mxu0 %v23590_v53  ;;  %21186 = vmatpush3.bf16.msra.mxu1 %v23591_v54  ;;  %v4461_v22 = vadd.f32 %v20959_v6, %v20937_v15  ;;  %v23620_v53 = vld [vmem:[#allocation4 + $0x340] sm:$0xff]   ;;  %v7000_v54 = vpack.c.bf16 %v6990_v45, %v6990_v45  ;;  %v6992_v6 = vld [vmem:[#allocation2 + $0x28] sm:$0x1]  ;;  %v23630_v15 = vld [vmem:[#allocation4 + $0x388] sm:$0xff]  }
 0x32a   :  { %22607 = vmatprep.subr.bf16.mxu0 %v25234_v58  ;;  %21187 = vmatprep.subr.bf16.mxu1 %v23592_v47  ;;  %v6506_v47 = vld [vmem:[#allocation2 + $0x108] sm:$0xfc] }
 0x32b   :  { %v6516_v52 = vpack.c.bf16 %v25255_v0, %v6506_v47  ;;  %v23641_v45 = vld [vmem:[#allocation4 + $0x3d0] sm:$0xff]   ;;  %v23644_v47 = vld [vmem:[#allocation4 + $0x4a8] sm:$0xff]  }
 0x32d   :  { %22608 = vmatpush3.bf16.msra.mxu0 %v23593_v4  ;;  %21188 = vmatpush3.bf16.msra.mxu1 %v23594_v55  ;;  %v23621_v4 = vld [vmem:[#allocation4 + $0x300] sm:$0xff]  }
 0x32e   :  { %21189 = vmatprep.subr.bf16.mxu1 %v23595_v61  ;;  %21203 = vmatprep.subr.bf16.mxu0 %v23596_v60  ;;  %v23623_v61 = vld [vmem:[#allocation4 + $0x438] sm:$0xff]   ;;  %v7106_v60 = vshll.u32 %v7000_v54, 16 }
 0x330   :  { %v4498_v10 = vpop.f32.mrf.mxu0  ;;  %22610 = vmatmul.mubr.bf16.vlgmr.msra.gmra.mxu0 %v5562_v62  ;;  %v6606_v62 = vrot.slane %v6516_v52, 1  ;;  %v23647_v52 = vld [vmem:[#allocation4 + $0x400] sm:$0xff]  }
 0x331   :  { %v4499_v16 = vadd.f32 %v4498_v10, %v4458_v7  ;;  %21190 = vmatpush3.bf16.msra.mxu1 %v23597_v57  ;;  %21204 = vmatpush3.bf16.msra.mxu0 %v23598_v3  ;;  %v23625_v57 = vld [vmem:[#allocation4 + $0x3f8] sm:$0xff]   ;;  %v7108_v3 = vrot.slane %v7106_v60, 2  ;;  %v23629_v10 = vld [vmem:[#allocation4 + $0x428] sm:$0xff]  }
 0x332   :  { %6927 = vmatprep.mubr.bf16.mxu0 %v6607_v11  ;;  %v22531_v18 = vpop.f32.mrf.mxu0  ;;  %21191 = vmatprep.subr.bf16.mxu1 %v23599_v5  ;;  %v23627_v5 = vld [vmem:[#allocation4 + $0x390] sm:$0xff]   ;;  %v6997_v11 = vpack.c.bf16 %v25232_v32, %v6982_v1  ;;  %v23650_v1 = vld [vmem:[#allocation4 + $0x460] sm:$0xff]  }
 0x333   :  { %v25241_v20 = vadd.f32 %v4499_v16, %v25214_v63  ;;  %21205 = vmatprep.subr.bf16.mxu0 %v23600_v8  ;;  %v23609_v63 = vld [vmem:[#allocation4 + $0x280] sm:$0xff]   ;;  %v23628_v8 = vld [vmem:[#allocation4 + $0x3f0] sm:$0xff]   ;;  %v23631_v16 = vld [vmem:[#allocation4 + $0x3e8] sm:$0xff]   ;;  %v7002_v18 = vpack.c.bf16 %v6992_v6, %v6992_v6 }
 0x334   :  { %v4501_v24 = vpop.f32.mrf.mxu0 }
 0x335   :  { %v4502_v35 = vadd.f32 %v4501_v24, %v4461_v22  ;;  %21192 = vmatpush3.bf16.msra.mxu1 %v23601_v12  ;;  %21206 = vmatpush3.bf16.msra.mxu0 %v23602_v13  ;;  %v6508_v13 = vld [vmem:[#allocation2 + $0x30] sm:$0xfc]  ;;  %v7127_v22 = vshll.u32 %v6997_v11, 16 }
 0x336   :  { %v22532_v33 = vpop.f32.mrf.mxu0  ;;  %21193 = vmatprep.subr.bf16.mxu1 %v23603_v17  ;;  %21207 = vmatprep.subr.bf16.mxu0 %v23604_v19  ;;  %v23632_v17 = vld [vmem:[#allocation4 + $0x420] sm:$0xff]   ;;  %v7124_v19 = vshrl.u32 %v6997_v11, 16  ;;  %v6518_v24 = vpack.c.bf16 %v25234_v58, %v6508_v13  ;;  %v23654_v11 = vld [vmem:[#allocation4 + $0x490] sm:$0xff]  }
 0x337   :  { %v25246_v46 = vadd.f32 %v4502_v35, %v25216_v56  ;;  %v6980_v56 = vld [vmem:[#allocation2 + $0x48] sm:$0xf8]  ;;  %v7132_v33 = vshll.u32 %v7002_v18, 16  ;;  %v6991_v13 = vld [vmem:[#allocation2 + $0x98] sm:$0x1] }
 0x338   :  { %v6995_v43 = vpack.c.bf16 %v25225_v36, %v6980_v56  ;;  %v7126_v35 = vrot.slane %v7124_v19, 1  ;;  %v6994_v56 = vpack.c.bf16 %v25243_v31, %v6979_v37  ;;  %v23656_v18 = vld [vmem:[#allocation4 + $0x4f0] sm:$0xff]  }
 0x339   :  { %21194 = vmatpush3.bf16.msra.mxu1 %v23605_v34  ;;  %21208 = vmatpush3.bf16.msra.mxu0 %v23606_v25  ;;  %v23633_v25 = vld [vmem:[#allocation4 + $0x380] sm:$0xff]   ;;  %v7520_v37 = vld [vmem:[#allocation2 + $0x48] sm:$0xf0] }
 0x33a   :  { %21195 = vmatprep.subr.bf16.mxu1 %v23607_v28  ;;  %21209 = vmatprep.subr.bf16.mxu0 %v23608_v27  ;;  %v7098_v49 = vshrl.u32 %v6995_v43, 16  ;;  %v7101_v51 = vshll.u32 %v6995_v43, 16  ;;  %v23634_v28 = vld [vmem:[#allocation4 + $0x3e0] sm:$0xff]   ;;  %v7129_v27 = vrot.slane %v7127_v22, 2  ;;  %v23640_v43 = vld [vmem:[#allocation4 + $0x4b0] sm:$0xff]   ;;  %v23657_v22 = vld [vmem:[#allocation4 + $0x488] sm:$0xff]  }
 0x33c   :  { %v7100_v55 = vrot.slane %v7098_v49, 1  ;;  %v7103_v26 = vrot.slane %v7101_v51, 2  ;;  %v23643_v51 = vld [vmem:[#allocation4 + $0x408] sm:$0xff]  }
 0x33d   :  { %21196 = vmatpush3.bf16.msra.mxu1 %v23609_v63  ;;  %21210 = vmatpush3.bf16.msra.mxu0 %v23610_v59  ;;  %v23636_v59 = vld [vmem:[#allocation4 + $0x4b8] sm:$0xff]  }
 0x33e   :  { %21211 = vmatprep.subr.bf16.mxu0 %v23611_v29  ;;  %22613 = vmatprep.subr.bf16.mxu1 %v25234_v58  ;;  %v7104_v21 = vor.u32 %v7103_v26, %v7100_v55  ;;  %v6608_v29 = vrot.slane %v6518_v24, 1  ;;  %v23646_v26 = vld [vmem:[#allocation4 + $0x468] sm:$0xff]   ;;  %v7001_v24 = vpack.c.bf16 %v6991_v13, %v6991_v13 }
 0x340   :  { %6887 = vmatmul.mubr.bf16.vlgmr.msra.gmra.mxu1 %v6604_v14  ;;  %v7109_v7 = vsel %vm2131_vm4, %v7104_v21, %v7108_v3  ;;  %v25262_v12 = vpop.f32.mrf.mxu1  ;;  %v7130_v14 = vor.u32 %v7129_v27, %v7126_v35  ;;  %v23658_v35 = vld [vmem:[#allocation4 + $0x448] sm:$0xff]  }
 0x341   :  { %21212 = vmatpush3.bf16.msra.mxu0 %v23612_v38  ;;  %22614 = vmatpush3.bf16.msra.mxu1 %v23613_v39  ;;  %v23637_v38 = vld [vmem:[#allocation4 + $0x3d8] sm:$0xff]   ;;  %v23659_v27 = vld [vmem:[#allocation4 + $0x4e8] sm:$0xff]  }
 0x342   :  { %21213 = vmatprep.subr.bf16.mxu0 %v23614_v23  ;;  %22615 = vmatprep.subr.bf16.mxu1 %v25234_v58  ;;  %v25265_v34 = vpop.f32.mrf.mxu1  ;;  %v23638_v39 = vld [vmem:[#allocation4 + $0x478] sm:$0xff]   ;;  %v7134_v23 = vrot.slane %v7132_v33, 2  ;;  %v7525_v33 = vld [vmem:[#allocation2 + $0x88] sm:$0x3] }
 0x343   :  { %22629 = vmatprep.mubr.msk.bf16.mxu1 %vm24771_vm3, %v25234_v58 }
 0x344   :  { %v25269_v63 = vpop.f32.mrf.mxu1  ;;  %v7135_v49 = vsel %vm2131_vm4, %v7130_v14, %v7134_v23  ;;  %v7530_v14 = vpack.c.bf16 %v25225_v36, %v7520_v37  ;;  %v7535_v23 = vpack.c.bf16 %v7525_v33, %v7525_v33  ;;  %v6993_v36 = vld [vmem:[#allocation2 + $0x50] sm:$0x1] }
 0x345   :  { %21214 = vmatpush3.bf16.msra.mxu0 %v23615_v41  ;;  %22616 = vmatpush3.bf16.msra.mxu1 %v23616_v42  ;;  %v23639_v42 = vld [vmem:[#allocation4 + $0x410] sm:$0xff]  }
 0x346   :  { %21215 = vmatprep.subr.bf16.mxu0 %v23617_v44  ;;  %22617 = vmatprep.subr.bf16.mxu1 %v25234_v58  ;;  %v25273_v41 = vpop.f32.mrf.mxu1 }
 0x349   :  { %21216 = vmatpush3.bf16.msra.mxu0 %v23618_v48  ;;  %22618 = vmatpush3.bf16.msra.mxu1 %v23619_v50  ;;  %v23642_v48 = vld [vmem:[#allocation4 + $0x470] sm:$0xff]   ;;  %v6989_v50 = vld [vmem:[#allocation2 + $0xc0] sm:$0x1] }
 0x34a   :  { %21217 = vmatprep.subr.bf16.mxu0 %v23620_v53  ;;  %22619 = vmatprep.subr.bf16.mxu1 %v25234_v58  ;;  %v7085_v53 = vshrl.u32 %v6994_v56, 16  ;;  %v6999_v60 = vpack.c.bf16 %v6989_v50, %v6989_v50 }
 0x34c   :  { %v7087_v21 = vrot.slane %v7085_v53, 1  ;;  %v7093_v3 = vshll.u32 %v6999_v60, 16  ;;  %v23665_v53 = vld [vmem:[#allocation4 + $0x538] sm:$0xff]   ;;  %v23667_v60 = vld [vmem:[#allocation4 + $0x4d0] sm:$0xff]  }
 0x34d   :  { %21218 = vmatpush3.bf16.msra.mxu0 %v23621_v4  ;;  %22620 = vmatpush3.bf16.msra.mxu1 %v23622_v9  ;;  %v7088_v4 = vshll.u32 %v6994_v56, 16  ;;  %v23645_v9 = vld [vmem:[#allocation4 + $0x3c8] sm:$0xff]   ;;  %v23661_v56 = vld [vmem:[#allocation4 + $0x440] sm:$0xff]  }
 0x34e   :  { %22621 = vmatprep.subr.bf16.mxu1 %v25234_v58  ;;  %21234 = vmatprep.subr.bf16.mxu0 %v23623_v61  ;;  %v23648_v61 = vld [vmem:[#allocation4 + $0x4a0] sm:$0xff]  }
 0x350   :  { %6928 = vmatmul.mubr.bf16.vlgmr.msra.gmra.mxu0 %v6606_v62  ;;  %v7090_v62 = vrot.slane %v7088_v4, 2 }
 0x351   :  { %22622 = vmatpush3.bf16.msra.mxu1 %v23624_v2  ;;  %21235 = vmatpush3.bf16.msra.mxu0 %v23625_v57  ;;  %v23649_v57 = vld [vmem:[#allocation4 + $0x3c0] sm:$0xff]  }
 0x352   :  { %7426 = vmatprep.mubr.bf16.mxu0 %v7109_v7  ;;  %22623 = vmatprep.subr.bf16.mxu1 %v25234_v58  ;;  %v7091_v6 = vor.u32 %v7090_v62, %v7087_v21  ;;  %v23652_v7 = vld [vmem:[#allocation4 + $0x458] sm:$0xff]   ;;  %v23668_v21 = vld [vmem:[#allocation4 + $0x530] sm:$0xff]   ;;  %v23669_v62 = vld [vmem:[#allocation4 + $0x568] sm:$0xff]  }
 0x353   :  { %21236 = vmatprep.subr.bf16.mxu0 %v23626_v40  ;;  %v23651_v40 = vld [vmem:[#allocation4 + $0x498] sm:$0xff]  }
 0x355   :  { %22624 = vmatpush3.bf16.msra.mxu1 %v23627_v5  ;;  %21237 = vmatpush3.bf16.msra.mxu0 %v23628_v8  ;;  %v6981_v5 = vld [vmem:[#allocation2 + $0x108] sm:$0xf8]  ;;  %v23653_v8 = vld [vmem:[#allocation4 + $0x4f8] sm:$0xff]  }
 0x356   :  { %22625 = vmatprep.subr.bf16.mxu1 %v25234_v58  ;;  %21238 = vmatprep.subr.bf16.mxu0 %v23629_v10  ;;  %v7095_v10 = vrot.slane %v7093_v3, 2 }
 0x359   :  { %22626 = vmatpush3.bf16.msra.mxu1 %v23630_v15  ;;  %21239 = vmatpush3.bf16.msra.mxu0 %v23631_v16  ;;  %v6996_v15 = vpack.c.bf16 %v25255_v0, %v6981_v5  ;;  %v7096_v16 = vsel %vm2131_vm4, %v7091_v6, %v7095_v10  ;;  %v23670_v5 = vld [vmem:[#allocation4 + $0x4c8] sm:$0xff]   ;;  %v7522_v6 = vld [vmem:[#allocation2 + $0x68] sm:$0xf0] }
 0x35a   :  { %22627 = vmatprep.subr.bf16.mxu1 %v25234_v58  ;;  %21240 = vmatprep.subr.bf16.mxu0 %v23632_v17  ;;  %v23655_v17 = vld [vmem:[#allocation4 + $0x450] sm:$0xff]   ;;  %v23671_v10 = vld [vmem:[#allocation4 + $0x528] sm:$0xff]  }
 0x35b   :  { %v7111_v19 = vshrl.u32 %v6996_v15, 16 }
 0x35d   :  { %22628 = vmatpush3.bf16.msra.mxu1 %v23633_v25  ;;  %21241 = vmatpush3.bf16.msra.mxu0 %v23634_v28  ;;  %v7114_v25 = vshll.u32 %v6996_v15, 16  ;;  %v25286_v28 = vpop.f32.mrf.mxu0 }
 0x35e   :  { %21242 = vmatprep.subr.bf16.mxu0 %v23635_v30  ;;  %21256 = vmatprep.subr.bf16.mxu1 %v23636_v59  ;;  %v23660_v30 = vld [vmem:[#allocation4 + $0x480] sm:$0xff]   ;;  %v7119_v59 = vshll.u32 %v7001_v24, 16 }
 0x35f   :  { %v23673_v24 = vld [vmem:[#allocation4 + $0x4c0] sm:$0xff]  }
 0x360   :  { %v25275_v44 = vpop.f32.mrf.mxu1  ;;  %22630 = vmatmul.mubr.bf16.vlgmr.msra.gmra.mxu1 %v6608_v29  ;;  %v7113_v29 = vrot.slane %v7111_v19, 1  ;;  %v7121_v50 = vrot.slane %v7119_v59, 2  ;;  %v20987_v19 = vadd.f32 %v25265_v34, %v25262_v12  ;;  %v23675_v59 = vld [vmem:[#allocation4 + $0x558] sm:$0xff]  }
 0x361   :  { %21243 = vmatpush3.bf16.msra.mxu0 %v23637_v38  ;;  %21257 = vmatpush3.bf16.msra.mxu1 %v23638_v39  ;;  %v7116_v38 = vrot.slane %v7114_v25, 2  ;;  %v21008_v39 = vpop.f32.mrf.mxu0  ;;  %v7532_v25 = vpack.c.bf16 %v25232_v32, %v7522_v6  ;;  %v23678_v32 = vld [vmem:[#allocation4 + $0x5b8] sm:$0xff]  }
 0x362   :  { %7467 = vmatprep.mubr.bf16.mxu1 %v7135_v49  ;;  %v22551_v54 = vpop.f32.mrf.mxu1  ;;  %21244 = vmatprep.subr.bf16.mxu0 %v23639_v42  ;;  %v23662_v42 = vld [vmem:[#allocation4 + $0x4e0] sm:$0xff]  }
 0x363   :  { %21258 = vmatprep.subr.bf16.mxu1 %v23640_v43  ;;  %v23663_v43 = vld [vmem:[#allocation4 + $0x578] sm:$0xff]   ;;  %v21010_v49 = vpop.f32.mrf.mxu0  ;;  %v7632_v54 = vrot.slane %v7530_v14, 2 }
 0x364   :  { %v25278_v55 = vpop.f32.mrf.mxu1  ;;  %v23677_v14 = vld [vmem:[#allocation4 + $0x518] sm:$0xff]  }
 0x365   :  { %21245 = vmatpush3.bf16.msra.mxu0 %v23641_v45  ;;  %21259 = vmatpush3.bf16.msra.mxu1 %v23642_v48  ;;  %v6983_v45 = vld [vmem:[#allocation2 + $0x30] sm:$0xf8]  ;;  %v7117_v48 = vor.u32 %v7116_v38, %v7113_v29 }
 0x366   :  { %v22552_v2 = vpop.f32.mrf.mxu1  ;;  %21246 = vmatprep.subr.bf16.mxu0 %v23643_v51  ;;  %21260 = vmatprep.subr.bf16.mxu1 %v23644_v47  ;;  %v23664_v51 = vld [vmem:[#allocation4 + $0x4d8] sm:$0xff]   ;;  %v7633_v47 = vrot.slane %v7535_v23, 2  ;;  %v6998_v4 = vpack.c.bf16 %v25234_v58, %v6983_v45  ;;  %v7638_v23 = vrot.slane %v7532_v25, 2 }
 0x367   :  { %v7003_v2 = vpack.c.bf16 %v6993_v36, %v6993_v36  ;;  %v23676_v29 = vld [vmem:[#allocation4 + $0x5f8] sm:$0xff]  }
 0x368   :  { %v7140_v3 = vshll.u32 %v6998_v4, 16 }
 0x369   :  { %21247 = vmatpush3.bf16.msra.mxu0 %v23645_v9  ;;  %21261 = vmatpush3.bf16.msra.mxu1 %v23646_v26  ;;  %v7122_v9 = vsel %vm2131_vm4, %v7117_v48, %v7121_v50  ;;  %v23666_v26 = vld [vmem:[#allocation4 + $0x570] sm:$0xff]   ;;  %v7145_v13 = vshll.u32 %v7003_v2, 16 }
 0x36a   :  { %21248 = vmatprep.subr.bf16.mxu0 %v23647_v52  ;;  %21262 = vmatprep.subr.bf16.mxu1 %v23648_v61  ;;  %v21011_v52 = vpop.f32.mrf.mxu0 }
 0x36b   :  { %v21012_v38 = vadd.f32 %v21011_v52, %v21010_v49  ;;  %v23684_v52 = vld [vmem:[#allocation4 + $0x5e8] sm:$0xff]  }
 0x36d   :  { %21249 = vmatpush3.bf16.msra.mxu0 %v23649_v57  ;;  %21263 = vmatpush3.bf16.msra.mxu1 %v23650_v1  ;;  %v7634_v57 = vsel %vm2678_vm5, %v7632_v54, %v7633_v47  ;;  %v7137_v1 = vshrl.u32 %v6998_v4, 16 }
 0x36e   :  { %21264 = vmatprep.subr.bf16.mxu1 %v23651_v40  ;;  %22633 = vmatprep.subr.bf16.mxu0 %v25234_v58 }
 0x36f   :  { %v7139_v15 = vrot.slane %v7137_v1, 1  ;;  %v23686_v1 = vld [vmem:[#allocation4 + $0x5a8] sm:$0xff]  }
 0x370   :  { %7427 = vmatmul.mubr.bf16.vlgmr.msra.gmra.mxu0 %v7096_v16  ;;  %v21038_v40 = vpop.f32.mrf.mxu0  ;;  %v7142_v16 = vrot.slane %v7140_v3, 2  ;;  %v23687_v3 = vld [vmem:[#allocation4 + $0x540] sm:$0xff]  }
 0x371   :  { %21265 = vmatpush3.bf16.msra.mxu1 %v23652_v7  ;;  %22634 = vmatpush3.bf16.msra.mxu0 %v23653_v8  ;;  %v7527_v7 = vld [vmem:[#allocation2 + $0x28] sm:$0x3] }
 0x372   :  { %21266 = vmatprep.subr.bf16.mxu1 %v23654_v11  ;;  %22635 = vmatprep.subr.bf16.mxu0 %v25234_v58  ;;  %v23672_v11 = vld [vmem:[#allocation4 + $0x560] sm:$0xff]   ;;  %v7143_v33 = vor.u32 %v7142_v16, %v7139_v15 }
 0x373   :  { %22649 = vmatprep.mubr.msk.bf16.mxu0 %vm24771_vm3, %v25234_v58 }
 0x375   :  { %21267 = vmatpush3.bf16.msra.mxu1 %v23655_v17  ;;  %22636 = vmatpush3.bf16.msra.mxu0 %v23656_v18  ;;  %v21009_v17 = vadd.f32 %v21008_v39, %v25286_v28  ;;  %v21039_v18 = vpop.f32.mrf.mxu0 }
 0x376   :  { %21268 = vmatprep.subr.bf16.mxu1 %v23657_v22  ;;  %22637 = vmatprep.subr.bf16.mxu0 %v25234_v58 }
 0x377   :  { %v4998_v37 = vadd.f32 %v21009_v17, %v20987_v19  ;;  %v21041_v28 = vpop.f32.mrf.mxu0  ;;  %v23690_v17 = vld [vmem:[#allocation4 + $0x5a0] sm:$0xff]  }
 0x379   :  { %21269 = vmatpush3.bf16.msra.mxu1 %v23658_v35  ;;  %22638 = vmatpush3.bf16.msra.mxu0 %v23659_v27  ;;  %v7537_v35 = vpack.c.bf16 %v7527_v7, %v7527_v7  ;;  %v23674_v27 = vld [vmem:[#allocation4 + $0x520] sm:$0xff]   ;;  %v5039_v12 = vadd.f32 %v25275_v44, %v4998_v37  ;;  %v21042_v48 = vpop.f32.mrf.mxu0  ;;  %v23695_v37 = vld [vmem:[#allocation4 + $0x590] sm:$0xff]  }
 0x37a   :  { %21270 = vmatprep.subr.bf16.mxu1 %v23660_v30  ;;  %22639 = vmatprep.subr.bf16.mxu0 %v25234_v58  ;;  %v7147_v30 = vrot.slane %v7145_v13, 2  ;;  %v21043_v4 = vadd.f32 %v21042_v48, %v21041_v28  ;;  %v23688_v7 = vld [vmem:[#allocation4 + $0x5e0] sm:$0xff]   ;;  %v23696_v28 = vld [vmem:[#allocation4 + $0x630] sm:$0xff]  }
 0x37b   :  { %v23700_v48 = vld [vmem:[#allocation4 + $0x5c0] sm:$0xff]  }
 0x37c   :  { %v7148_v45 = vsel %vm2131_vm4, %v7143_v33, %v7147_v30  ;;  %v25316_v33 = vld [vmem:[#allocation2 + $0xb0] sm:$0xff]  ;;  %v23694_v30 = vld [vmem:[#allocation4 + $0x5d0] sm:$0xff]  }
 0x37d   :  { %21271 = vmatpush3.bf16.msra.mxu1 %v23661_v56  ;;  %22640 = vmatpush3.bf16.msra.mxu0 %v23662_v42  ;;  %v7639_v56 = vrot.slane %v7537_v35, 2  ;;  %v20990_v42 = vadd.f32 %v25273_v41, %v25269_v63  ;;  %v23681_v63 = vld [vmem:[#allocation4 + $0x510] sm:$0xff]   ;;  %v23692_v35 = vld [vmem:[#allocation4 + $0x598] sm:$0xff]  }
 0x37e   :  { %22641 = vmatprep.subr.bf16.mxu0 %v25234_v58  ;;  %21287 = vmatprep.subr.bf16.mxu1 %v23663_v43  ;;  %v21040_v43 = vadd.f32 %v21039_v18, %v21038_v40  ;;  %v23682_v41 = vld [vmem:[#allocation4 + $0x5b0] sm:$0xff]   ;;  %v24691_v40 = vld [vmem:[%s26586_s4] ss:$0 sm:$0xff] }
 0x37f   :  { %v5001_v50 = vadd.f32 %v21012_v38, %v20990_v42  ;;  %v7640_v47 = vsel %vm2678_vm5, %v7638_v23, %v7639_v56  ;;  %v7521_v23 = vld [vmem:[#allocation2 + $0x108] sm:$0xf0]  ;;  %v7526_v56 = vld [vmem:[#allocation2 + $0x98] sm:$0x3] }
 0x380   :  { %v21060_v61 = vpop.f32.mrf.mxu1  ;;  %7468 = vmatmul.mubr.bf16.vlgmr.msra.gmra.mxu1 %v7122_v9 }
 0x381   :  { %22642 = vmatpush3.bf16.msra.mxu0 %v23664_v51  ;;  %21288 = vmatpush3.bf16.msra.mxu1 %v23665_v53  ;;  %v23680_v51 = vld [vmem:[#allocation4 + $0x5f0] sm:$0xff]   ;;  %v5045_v53 = vadd.f32 %v5039_v12, %v25241_v20  ;;  %v5042_v36 = vadd.f32 %v25278_v55, %v5001_v50  ;;  %v8121_v12 = vld [vmem:[#allocation2] sm:$0x1]  ;;  %v7531_v50 = vpack.c.bf16 %v25255_v0, %v7521_v23  ;;  %v23705_v0 = vld [vmem:[#allocation4 + $0x178] sm:$0xff]  }
 0x382   :  { %7921 = vmatprep.mubr.bf16.mxu1 %v7634_v57  ;;  %22643 = vmatprep.subr.bf16.mxu0 %v25234_v58  ;;  %v21061_v8 = vpop.f32.mrf.mxu1  ;;  %v23685_v57 = vld [vmem:[#allocation4 + $0x508] sm:$0xff]   ;;  %v23717_v23 = vld [vmem:[#allocation4 + $0x158] sm:$0xff]  }
 0x383   :  { %21289 = vmatprep.subr.bf16.mxu1 %v23666_v26  ;;  %v21062_v39 = vadd.f32 %v21061_v8, %v21060_v61  ;;  %v23683_v26 = vld [vmem:[#allocation4 + $0x548] sm:$0xff]   ;;  %v5046_v55 = vadd.f32 %v5042_v36, %v25246_v46  ;;  %v23689_v46 = vld [vmem:[#allocation4 + $0x500] sm:$0xff]   ;;  %v7635_v36 = vrot.slane %v7531_v50, 2 }
 0x384   :  { %v21063_v22 = vpop.f32.mrf.mxu1  ;;  %v7524_v61 = vld [vmem:[#allocation2 + $0xc0] sm:$0x3] }
 0x385   :  { %22644 = vmatpush3.bf16.msra.mxu0 %v23667_v60  ;;  %21290 = vmatpush3.bf16.msra.mxu1 %v23668_v21  ;;  %v5493_v44 = vadd.f32 %v21062_v39, %v21040_v43  ;;  %v7519_v21 = vld [vmem:[#allocation2 + $0x10] sm:$0xf0]  ;;  %v23697_v39 = vld [vmem:[#allocation4 + $0x5c8] sm:$0xff]  }
 0x386   :  { %22645 = vmatprep.subr.bf16.mxu0 %v25234_v58  ;;  %21291 = vmatprep.subr.bf16.mxu1 %v23669_v62  ;;  %v21064_v34 = vpop.f32.mrf.mxu1  ;;  %v23699_v43 = vld [vmem:[#allocation4 + $0x628] sm:$0xff]  }
 0x387   :  { %v21065_v49 = vadd.f32 %v21064_v34, %v21063_v22  ;;  %v23691_v22 = vld [vmem:[#allocation4 + $0x5d8] sm:$0xff]  }
 0x389   :  { %22646 = vmatpush3.bf16.msra.mxu0 %v23670_v5  ;;  %21292 = vmatpush3.bf16.msra.mxu1 %v23671_v10  ;;  %v5496_v20 = vadd.f32 %v21065_v49, %v21043_v4  ;;  %v7529_v10 = vpack.c.bf16 %v25243_v31, %v7519_v21  ;;  %v23693_v31 = vld [vmem:[#allocation4 + $0x638] sm:$0xff]   ;;  %v7536_v49 = vpack.c.bf16 %v7526_v56, %v7526_v56 }
 0x38a   :  { %22647 = vmatprep.subr.bf16.mxu0 %v25234_v58  ;;  %21293 = vmatprep.subr.bf16.mxu1 %v23672_v11  ;;  %v23679_v58 = vld [vmem:[#allocation4 + $0x550] sm:$0xff]   ;;  %v7534_v11 = vpack.c.bf16 %v7524_v61, %v7524_v61  ;;  %v23718_v56 = vld [vmem:[#allocation4 + $0x1f8] sm:$0xff]  }
 0x38b   :  { %v7629_v18 = vrot.slane %v7529_v10, 2  ;;  %v7636_v4 = vrot.slane %v7536_v49, 2 }
 0x38c   :  { %v7630_v19 = vrot.slane %v7534_v11, 2 }
 0x38d   :  { %22648 = vmatpush3.bf16.msra.mxu0 %v23673_v24  ;;  %21294 = vmatpush3.bf16.msra.mxu1 %v23674_v27  ;;  %v25314_v24 = vld [vmem:[#allocation2 + $0x58] sm:$0xff]  ;;  %v8116_v27 = vld [vmem:[#allocation2 + $0x100] sm:$0xf8] }
 0x38e   :  { %21295 = vmatprep.subr.bf16.mxu1 %v23675_v59  ;;  %21309 = vmatprep.subr.bf16.mxu0 %v23676_v29  ;;  %v7631_v59 = vsel %vm2678_vm5, %v7629_v18, %v7630_v19  ;;  %v8126_v29 = vpack.c.bf16 %v25314_v24, %v8116_v27  ;;  %v23712_v18 = vld [vmem:[#allocation4 + $0x1a0] sm:$0xff]  }
 0x390   :  { %v5533_v54 = vpop.f32.mrf.mxu0  ;;  %22650 = vmatmul.mubr.bf16.vlgmr.msra.gmra.mxu0 %v7148_v45  ;;  %v8229_v42 = vshrl.u32 %v8126_v29, 16  ;;  %v8232_v45 = vshll.u32 %v8126_v29, 16 }
 0x391   :  { %v5534_v9 = vadd.f32 %v5533_v54, %v5493_v44  ;;  %21296 = vmatpush3.bf16.msra.mxu1 %v23677_v14  ;;  %21310 = vmatpush3.bf16.msra.mxu0 %v23678_v32  ;;  %v23698_v32 = vld [vmem:[#allocation4 + $0x588] sm:$0xff]   ;;  %v23701_v44 = vld [vmem:[#allocation4 + $0x580] sm:$0xff]  }
 0x392   :  { %7962 = vmatprep.mubr.bf16.mxu0 %v7640_v47  ;;  %v22571_v60 = vpop.f32.mrf.mxu0  ;;  %21297 = vmatprep.subr.bf16.mxu1 %v23679_v58  ;;  %v8131_v58 = vpack.c.bf16 %v8121_v12, %v8121_v12  ;;  %v8234_v54 = vrot.slane %v8232_v45, 2  ;;  %v23715_v12 = vld [vmem:[#allocation4 + $0x198] sm:$0xff]  }
 0x393   :  { %v5540_v2 = vadd.f32 %v5534_v9, %v5045_v53  ;;  %21311 = vmatprep.subr.bf16.mxu0 %v23680_v51  ;;  %v23702_v51 = vld [vmem:[#allocation4 + $0x620] sm:$0xff]   ;;  %v8231_v53 = vrot.slane %v8229_v42, 1  ;;  %v23704_v9 = vld [vmem:[#allocation4 + $0x618] sm:$0xff]   ;;  %v23719_v42 = vld [vmem:[#allocation4 + $0x190] sm:$0xff]  }
 0x394   :  { %v5536_v62 = vpop.f32.mrf.mxu0  ;;  %v8237_v47 = vshll.u32 %v8131_v58, 16  ;;  %v23720_v58 = vld [vmem:[#allocation4 + $0x230] sm:$0xff]  }
 0x395   :  { %v5542_v5 = vadd.f32 %v24691_v40, %v5540_v2  ;;  %v5537_v6 = vadd.f32 %v5536_v62, %v5496_v20  ;;  %21298 = vmatpush3.bf16.msra.mxu1 %v23681_v63  ;;  %21312 = vmatpush3.bf16.msra.mxu0 %v23682_v41  ;;  %v23703_v63 = vld [vmem:[#allocation4 + $0x1b8] sm:$0xff]   ;;  %v25329_v41 = vld [vmem:[#allocation2 + $0x40] sm:$0xff]  ;;  %v8235_v61 = vor.u32 %v8234_v54, %v8231_v53  ;;  %v23706_v2 = vld [vmem:[#allocation4 + $0x1b0] sm:$0xff]  }
 0x396   :  { %v22572_v8 = vpop.f32.mrf.mxu0  ;;  %21299 = vmatprep.subr.bf16.mxu1 %v23683_v26  ;;  %21313 = vmatprep.subr.bf16.mxu0 %v23684_v52  ;;  %v8118_v26 = vld [vmem:[#allocation2 + $0x88] sm:$0xf8]  ;;  %v8123_v52 = vld [vmem:[#allocation2 + $0xf8] sm:$0x1]  ;;  %v8239_v60 = vrot.slane %v8237_v47, 2  ;;  %v7637_v20 = vsel %vm2678_vm5, %v7635_v36, %v7636_v4  ;;  %v23723_v54 = vld [vmem:[#allocation4 + $0x188] sm:$0xff]  }
 0x397   :  { %v5544_v13 = vmax.f32 %v5542_v5, 0.0  ;;  %v5541_v15 = vadd.f32 %v5537_v6, %v5046_v55  ;;  %v23709_v55 = vld [vmem:[#allocation4 + $0x1a8] sm:$0xff]   ;;  %v7523_v5 = vld [vmem:[#allocation2 + $0x30] sm:$0xf0]  ;;  %v7528_v6 = vld [vmem:[#allocation2 + $0x50] sm:$0x3] }
 0x398   :  { %v23724_v47 = vld [vmem:[#allocation4 + $0x228] sm:$0xff]  }
 0x399   :  { %5546 = vst [vmem:[#allocation3 + $0x48] sm:$0xff] %v5544_v13  ;;  %v5543_v16 = vadd.f32 %v24691_v40, %v5541_v15  ;;  %21300 = vmatpush3.bf16.msra.mxu1 %v23685_v57  ;;  %21314 = vmatpush3.bf16.msra.mxu0 %v23686_v1  ;;  %v8128_v57 = vpack.c.bf16 %v25329_v41, %v8118_v26  ;;  %v23707_v1 = vld [vmem:[#allocation4 + $0x610] sm:$0xff]  }
 0x39a   :  { %21301 = vmatprep.subr.bf16.mxu1 %v23687_v3  ;;  %21315 = vmatprep.subr.bf16.mxu0 %v23688_v7  ;;  %v23708_v3 = vld [vmem:[#allocation4 + $0x170] sm:$0xff]   ;;  %v8240_v40 = vsel %vm2131_vm4, %v8235_v61, %v8239_v60  ;;  %v8133_v7 = vpack.c.bf16 %v8123_v52, %v8123_v52  ;;  %v23726_v60 = vld [vmem:[#allocation4 + $0x1e8] sm:$0xff]  }
 0x39b   :  { %v5545_v25 = vmax.f32 %v5543_v16, 0.0  ;;  %v8255_v11 = vshrl.u32 %v8128_v57, 16  ;;  %v8258_v13 = vshll.u32 %v8128_v57, 16 }
 0x39d   :  { %5547 = vst [vmem:[#allocation3 + $0x38] sm:$0x3f] %v5545_v25  ;;  %21302 = vmatpush3.bf16.msra.mxu1 %v23689_v46  ;;  %21316 = vmatpush3.bf16.msra.mxu0 %v23690_v17  ;;  %v23710_v46 = vld [vmem:[#allocation4 + $0x608] sm:$0xff]   ;;  %v7538_v25 = vpack.c.bf16 %v7528_v6, %v7528_v6  ;;  %v8260_v29 = vrot.slane %v8258_v13, 2 }
 0x39e   :  { %21317 = vmatprep.subr.bf16.mxu0 %v23691_v22  ;;  %22653 = vmatprep.subr.bf16.mxu1 %v25316_v33  ;;  %v23711_v17 = vld [vmem:[#allocation4 + $0x168] sm:$0xff]   ;;  %v7533_v22 = vpack.c.bf16 %v25316_v33, %v7523_v5 }
 0x39f   :  { %v8117_v13 = vld [vmem:[#allocation2 + $0xc0] sm:$0xf8] }
 0x3a0   :  { %v21091_v38 = vpop.f32.mrf.mxu1  ;;  %7922 = vmatmul.mubr.bf16.vlgmr.msra.gmra.mxu1 %v7631_v59  ;;  %v23713_v59 = vld [vmem:[#allocation4 + $0x600] sm:$0xff]  }
 0x3a1   :  { %21318 = vmatpush3.bf16.msra.mxu0 %v23692_v35  ;;  %22654 = vmatpush3.bf16.msra.mxu1 %v23693_v31  ;;  %v8263_v35 = vshll.u32 %v8133_v7, 16  ;;  %v23731_v7 = vld [vmem:[#allocation4 + $0x218] sm:$0xff]  }
 0x3a2   :  { %v21092_v34 = vpop.f32.mrf.mxu1  ;;  %21319 = vmatprep.subr.bf16.mxu0 %v23694_v30  ;;  %22655 = vmatprep.subr.bf16.mxu1 %v25316_v33 }
 0x3a3   :  { %v25322_v14 = vadd.f32 %v21092_v34, %v21091_v38  ;;  %22669 = vmatprep.mubr.msk.bf16.mxu1 %vm24771_vm3, %v25316_v33  ;;  %v7641_v38 = vrot.slane %v7533_v22, 2  ;;  %v23716_v34 = vld [vmem:[#allocation4 + $0x238] sm:$0xff]   ;;  %v8265_v49 = vrot.slane %v8263_v35, 2  ;;  %v8122_v22 = vld [vmem:[#allocation2 + $0x60] sm:$0x1] }
 0x3a4   :  { %v21094_v21 = vpop.f32.mrf.mxu1  ;;  %v23737_v35 = vld [vmem:[#allocation4 + $0x208] sm:$0xff]  }
 0x3a5   :  { %21320 = vmatpush3.bf16.msra.mxu0 %v23695_v37  ;;  %22656 = vmatpush3.bf16.msra.mxu1 %v23696_v28  ;;  %v23714_v37 = vld [vmem:[#allocation4 + $0x160] sm:$0xff]   ;;  %v8257_v28 = vrot.slane %v8255_v11, 1  ;;  %v23733_v11 = vld [vmem:[#allocation4 + $0x278] sm:$0xff]  }
 0x3a6   :  { %21321 = vmatprep.subr.bf16.mxu0 %v23697_v39  ;;  %22657 = vmatprep.subr.bf16.mxu1 %v25316_v33  ;;  %v21095_v15 = vpop.f32.mrf.mxu1  ;;  %v7642_v39 = vrot.slane %v7538_v25, 2 }
 0x3a7   :  { %v21096_v31 = vadd.f32 %v21095_v15, %v21094_v21  ;;  %v8261_v45 = vor.u32 %v8260_v29, %v8257_v28  ;;  %v23739_v28 = vld [vmem:[#allocation4 + $0x268] sm:$0xff]   ;;  %v23740_v29 = vld [vmem:[#allocation4 + $0x200] sm:$0xff]  }
 0x3a9   :  { %21322 = vmatpush3.bf16.msra.mxu0 %v23698_v32  ;;  %22658 = vmatpush3.bf16.msra.mxu1 %v23699_v43  ;;  %v8115_v32 = vld [vmem:[#allocation2 + $0x70] sm:$0xf8]  ;;  %v7643_v43 = vsel %vm2678_vm5, %v7641_v38, %v7642_v39  ;;  %v8266_v4 = vsel %vm2131_vm4, %v8261_v45, %v8265_v49  ;;  %v8132_v39 = vpack.c.bf16 %v8122_v22, %v8122_v22  ;;  %v8021_v45 = vld [vmem:[#allocation2 + $0x100] sm:$0xfc] }
 0x3aa   :  { %21323 = vmatprep.subr.bf16.mxu0 %v23700_v48  ;;  %22659 = vmatprep.subr.bf16.mxu1 %v25316_v33  ;;  %v8120_v48 = vld [vmem:[#allocation2 + $0xe8] sm:$0x1]  ;;  %v8125_v50 = vpack.c.bf16 %v25316_v33, %v8115_v32  ;;  %v23757_v22 = vld [vmem:[#allocation4 + $0x18] sm:$0xff]  }
 0x3ac   :  { %v8219_v26 = vshll.u32 %v8125_v50, 16 }
 0x3ad   :  { %21324 = vmatpush3.bf16.msra.mxu0 %v23701_v44  ;;  %22660 = vmatpush3.bf16.msra.mxu1 %v23702_v51  ;;  %v23721_v44 = vld [vmem:[#allocation4 + $0x150] sm:$0xff]  }
 0x3ae   :  { %22661 = vmatprep.subr.bf16.mxu1 %v25316_v33  ;;  %21340 = vmatprep.subr.bf16.mxu0 %v23703_v63  ;;  %v23722_v51 = vld [vmem:[#allocation4 + $0x1f0] sm:$0xff]   ;;  %v8130_v63 = vpack.c.bf16 %v8120_v48, %v8120_v48 }
 0x3af   :  { %v25356_v48 = vld [vmem:[#allocation2 + $0x8] sm:$0xff] }
 0x3b0   :  { %v21113_v62 = vpop.f32.mrf.mxu0  ;;  %7963 = vmatmul.mubr.bf16.vlgmr.msra.gmra.mxu0 %v7637_v20  ;;  %v8224_v20 = vshll.u32 %v8130_v63, 16  ;;  %v8124_v63 = vld [vmem:[#allocation2 + $0xa8] sm:$0x1] }
 0x3b1   :  { %22662 = vmatpush3.bf16.msra.mxu1 %v23704_v9  ;;  %21341 = vmatpush3.bf16.msra.mxu0 %v23705_v0  ;;  %v8216_v9 = vshrl.u32 %v8125_v50, 16  ;;  %v23725_v0 = vld [vmem:[#allocation4 + $0x148] sm:$0xff]   ;;  %v8119_v50 = vld [vmem:[#allocation2 + $0x98] sm:$0xf8] }
 0x3b2   :  { %8557 = vmatprep.mubr.bf16.mxu0 %v8240_v40  ;;  %v21114_v8 = vpop.f32.mrf.mxu0  ;;  %22663 = vmatprep.subr.bf16.mxu1 %v25316_v33  ;;  %v23730_v40 = vld [vmem:[#allocation4 + $0x1e0] sm:$0xff]   ;;  %v8226_v6 = vrot.slane %v8224_v20, 2 }
 0x3b3   :  { %v21115_v10 = vadd.f32 %v21114_v8, %v21113_v62  ;;  %21342 = vmatprep.subr.bf16.mxu0 %v23706_v2  ;;  %v23727_v2 = vld [vmem:[#allocation4 + $0x180] sm:$0xff]   ;;  %v8218_v21 = vrot.slane %v8216_v9, 1  ;;  %v8221_v62 = vrot.slane %v8219_v26, 2  ;;  %v25345_v8 = vld [vmem:[#allocation2 + $0xa0] sm:$0xff] }
 0x3b4   :  { %v21116_v16 = vpop.f32.mrf.mxu0 }
 0x3b5   :  { %22664 = vmatpush3.bf16.msra.mxu1 %v23707_v1  ;;  %21343 = vmatpush3.bf16.msra.mxu0 %v23708_v3  ;;  %v6094_v19 = vadd.f32 %v21115_v10, %v25322_v14  ;;  %v23728_v3 = vld [vmem:[#allocation4 + $0x220] sm:$0xff]   ;;  %v8222_v5 = vor.u32 %v8221_v62, %v8218_v21  ;;  %v23732_v10 = vld [vmem:[#allocation4 + $0x1d8] sm:$0xff]   ;;  %v23750_v62 = vld [vmem:[#allocation4 + $0x248] sm:$0xff]  }
 0x3b6   :  { %v21117_v27 = vpop.f32.mrf.mxu0  ;;  %22665 = vmatprep.subr.bf16.mxu1 %v25316_v33  ;;  %21344 = vmatprep.subr.bf16.mxu0 %v23709_v55  ;;  %v23729_v55 = vld [vmem:[#allocation4 + $0x140] sm:$0xff]  }
 0x3b7   :  { %v21118_v30 = vadd.f32 %v21117_v27, %v21116_v16  ;;  %v8227_v15 = vsel %vm2131_vm4, %v8222_v5, %v8226_v6  ;;  %v23734_v16 = vld [vmem:[#allocation4 + $0x210] sm:$0xff]  }
 0x3b9   :  { %22666 = vmatpush3.bf16.msra.mxu1 %v23710_v46  ;;  %21345 = vmatpush3.bf16.msra.mxu0 %v23711_v17  ;;  %v6097_v14 = vadd.f32 %v21118_v30, %v21096_v31  ;;  %v23735_v46 = vld [vmem:[#allocation4 + $0x1d0] sm:$0xff]   ;;  %v8127_v17 = vpack.c.bf16 %v25345_v8, %v8117_v13  ;;  %v23738_v31 = vld [vmem:[#allocation4 + $0x1c8] sm:$0xff]   ;;  %v23754_v13 = vld [vmem:[#allocation4 + $0x20] sm:$0xff]  }
 0x3ba   :  { %22667 = vmatprep.subr.bf16.mxu1 %v25316_v33  ;;  %21346 = vmatprep.subr.bf16.mxu0 %v23712_v18 }
 0x3bb   :  { %v8242_v30 = vshrl.u32 %v8127_v17, 16 }
 0x3bd   :  { %22668 = vmatpush3.bf16.msra.mxu1 %v23713_v59  ;;  %21347 = vmatpush3.bf16.msra.mxu0 %v23714_v37  ;;  %v8245_v59 = vshll.u32 %v8127_v17, 16 }
 0x3be   :  { %21348 = vmatprep.subr.bf16.mxu0 %v23715_v12  ;;  %21362 = vmatprep.subr.bf16.mxu1 %v23716_v34 }
 0x3bf   :  { %v8247_v32 = vrot.slane %v8245_v59, 2 }
 0x3c0   :  { %v6134_v53 = vpop.f32.mrf.mxu1  ;;  %22670 = vmatmul.mubr.bf16.vlgmr.msra.gmra.mxu1 %v7643_v43  ;;  %v8250_v43 = vshll.u32 %v8132_v39, 16 }
 0x3c1   :  { %v25342_v36 = vadd.f32 %v6134_v53, %v6094_v19  ;;  %21349 = vmatpush3.bf16.msra.mxu0 %v23717_v23  ;;  %21363 = vmatpush3.bf16.msra.mxu1 %v23718_v56  ;;  %v23736_v19 = vld [vmem:[#allocation4 + $0x270] sm:$0xff]   ;;  %v23741_v56 = vld [vmem:[#allocation4 + $0x1c0] sm:$0xff]   ;;  %v8031_v53 = vpack.c.bf16 %v25314_v24, %v8021_v45  ;;  %v23749_v24 = vld [vmem:[#allocation4 + $0x68] sm:$0xff]  }
 0x3c2   :  { %8598 = vmatprep.mubr.bf16.mxu1 %v8266_v4  ;;  %v22591_v52 = vpop.f32.mrf.mxu1  ;;  %21350 = vmatprep.subr.bf16.mxu0 %v23719_v42  ;;  %v23742_v42 = vld [vmem:[#allocation4 + $0x260] sm:$0xff]   ;;  %v8129_v4 = vpack.c.bf16 %v25356_v48, %v8119_v50 }
 0x3c3   :  { %21364 = vmatprep.subr.bf16.mxu1 %v23720_v58  ;;  %v23743_v58 = vld [vmem:[#allocation4 + $0x78] sm:$0xff]   ;;  %v8654_v26 = vrot.slane %v8031_v53, 1  ;;  %v23747_v52 = vld [vmem:[#allocation4 + $0x250] sm:$0xff]   ;;  %v23769_v50 = vld [vmem:[#allocation4] sm:$0xff]  }
 0x3c4   :  { %v6137_v61 = vpop.f32.mrf.mxu1  ;;  %v8268_v20 = vshrl.u32 %v8129_v4, 16  ;;  %v23772_v53 = vld [vmem:[#allocation4 + $0x98] sm:$0xff]  }
 0x3c5   :  { %v6138_v57 = vadd.f32 %v6137_v61, %v6097_v14  ;;  %21351 = vmatpush3.bf16.msra.mxu0 %v23721_v44  ;;  %21365 = vmatpush3.bf16.msra.mxu1 %v23722_v51  ;;  %v8244_v14 = vrot.slane %v8242_v30, 1  ;;  %v23744_v44 = vld [vmem:[#allocation4 + $0x258] sm:$0xff]  }
 0x3c6   :  { %21352 = vmatprep.subr.bf16.mxu0 %v23723_v54  ;;  %21366 = vmatprep.subr.bf16.mxu1 %v23724_v47  ;;  %v22592_v1 = vpop.f32.mrf.mxu1  ;;  %v23745_v51 = vld [vmem:[#allocation4 + $0x38] sm:$0xff]   ;;  %v8252_v54 = vrot.slane %v8250_v43, 2  ;;  %v23746_v47 = vld [vmem:[#allocation4 + $0x70] sm:$0xff]   ;;  %v23768_v43 = vld [vmem:[#allocation4 + $0xe0] sm:$0xff]  }
 0x3c7   :  { %v8248_v49 = vor.u32 %v8247_v32, %v8244_v14  ;;  %v23751_v1 = vld [vmem:[#allocation4 + $0x28] sm:$0xff]  }
 0x3c8   :  { %v23765_v32 = vld [vmem:[#allocation4 + $0x8] sm:$0xff]  }
 0x3c9   :  { %21353 = vmatpush3.bf16.msra.mxu0 %v23725_v0  ;;  %21367 = vmatpush3.bf16.msra.mxu1 %v23726_v60  ;;  %v23748_v0 = vld [vmem:[#allocation4 + $0x30] sm:$0xff]   ;;  %v8134_v60 = vpack.c.bf16 %v8124_v63, %v8124_v63 }
 0x3ca   :  { %21354 = vmatprep.subr.bf16.mxu0 %v23727_v2  ;;  %21368 = vmatprep.subr.bf16.mxu1 %v23728_v3  ;;  %v23775_v63 = vld [vmem:[#allocation4 + $0x90] sm:$0xff]  }
 0x3cb   :  { %v8276_v5 = vshll.u32 %v8134_v60, 16  ;;  %v23780_v60 = vld [vmem:[#allocation4 + $0xc0] sm:$0xff]  }
 0x3cd   :  { %21355 = vmatpush3.bf16.msra.mxu0 %v23729_v55  ;;  %21369 = vmatpush3.bf16.msra.mxu1 %v23730_v40  ;;  %v23752_v40 = vld [vmem:[#allocation4 + $0x60] sm:$0xff]   ;;  %v8278_v17 = vrot.slane %v8276_v5, 2  ;;  %v23784_v5 = vld [vmem:[#allocation4 + $0x118] sm:$0xff]  }
 0x3ce   :  { %21370 = vmatprep.subr.bf16.mxu1 %v23731_v7  ;;  %22673 = vmatprep.subr.bf16.mxu0 %v25316_v33  ;;  %v8270_v7 = vrot.slane %v8268_v20, 1  ;;  %v23781_v20 = vld [vmem:[#allocation4 + $0x80] sm:$0xff]  }
 0x3d0   :  { %v21144_v18 = vpop.f32.mrf.mxu0  ;;  %8558 = vmatmul.mubr.bf16.vlgmr.msra.gmra.mxu0 %v8227_v15  ;;  %v23755_v15 = vld [vmem:[#allocation4 + $0x58] sm:$0xff]  }
 0x3d1   :  { %21371 = vmatpush3.bf16.msra.mxu1 %v23732_v10  ;;  %22674 = vmatpush3.bf16.msra.mxu0 %v23733_v11  ;;  %v23753_v11 = vld [vmem:[#allocation4 + $0x240] sm:$0xff]  }
 0x3d2   :  { %v21145_v25 = vpop.f32.mrf.mxu0  ;;  %21372 = vmatprep.subr.bf16.mxu1 %v23734_v16  ;;  %22675 = vmatprep.subr.bf16.mxu0 %v25316_v33  ;;  %v8023_v16 = vld [vmem:[#allocation2 + $0x88] sm:$0xfc] }
 0x3d3   :  { %v21146_v27 = vadd.f32 %v21145_v25, %v21144_v18  ;;  %22689 = vmatprep.mubr.msk.bf16.mxu0 %vm24771_vm3, %v25316_v33  ;;  %v23756_v18 = vld [vmem:[#allocation4 + $0xf8] sm:$0xff]  }
 0x3d4   :  { %v21147_v37 = vpop.f32.mrf.mxu0  ;;  %v23758_v25 = vld [vmem:[#allocation4 + $0xb8] sm:$0xff]  }
 0x3d5   :  { %v6416_v38 = vadd.f32 %v21146_v27, %v25342_v36  ;;  %21373 = vmatpush3.bf16.msra.mxu1 %v23735_v46  ;;  %22676 = vmatpush3.bf16.msra.mxu0 %v23736_v19  ;;  %v8253_v36 = vsel %vm2131_vm4, %v8248_v49, %v8252_v54  ;;  %v23759_v27 = vld [vmem:[#allocation4 + $0x50] sm:$0xff]   ;;  %v23770_v49 = vld [vmem:[#allocation4 + $0xa0] sm:$0xff]   ;;  %v23773_v54 = vld [vmem:[#allocation4 + $0x138] sm:$0xff]  }
 0x3d6   :  { %v21148_v12 = vpop.f32.mrf.mxu0  ;;  %21374 = vmatprep.subr.bf16.mxu1 %v23737_v35  ;;  %22677 = vmatprep.subr.bf16.mxu0 %v25316_v33  ;;  %v8033_v35 = vpack.c.bf16 %v25329_v41, %v8023_v16  ;;  %v23763_v41 = vld [vmem:[#allocation4 + $0x48] sm:$0xff]  }
 0x3d7   :  { %v21149_v34 = vadd.f32 %v21148_v12, %v21147_v37  ;;  %v23764_v12 = vld [vmem:[#allocation4 + $0xe8] sm:$0xff]  }
 0x3d8   :  { %v8656_v37 = vrot.slane %v8033_v35, 1  ;;  %v23790_v35 = vld [vmem:[#allocation4 + $0x108] sm:$0xff]  }
 0x3d9   :  { %v6419_v23 = vadd.f32 %v21149_v34, %v6138_v57  ;;  %21375 = vmatpush3.bf16.msra.mxu1 %v23738_v31  ;;  %22678 = vmatpush3.bf16.msra.mxu0 %v23739_v28  ;;  %v8271_v57 = vshll.u32 %v8129_v4, 16  ;;  %v23760_v31 = vld [vmem:[#allocation4 + $0xf0] sm:$0xff]   ;;  %v8020_v34 = vld [vmem:[#allocation2 + $0x70] sm:$0xfc] }
 0x3da   :  { %21376 = vmatprep.subr.bf16.mxu1 %v23740_v29  ;;  %22679 = vmatprep.subr.bf16.mxu0 %v25316_v33  ;;  %v23761_v29 = vld [vmem:[#allocation4 + $0x10] sm:$0xff]  }
 0x3db   :  { %v8273_v10 = vrot.slane %v8271_v57, 2  ;;  %v23782_v57 = vld [vmem:[#allocation4 + $0x120] sm:$0xff]  }
 0x3dd   :  { %21377 = vmatpush3.bf16.msra.mxu1 %v23741_v56  ;;  %22680 = vmatpush3.bf16.msra.mxu0 %v23742_v42  ;;  %v8274_v19 = vor.u32 %v8273_v10, %v8270_v7  ;;  %v23767_v56 = vld [vmem:[#allocation4 + $0x40] sm:$0xff]  }
 0x3de   :  { %22681 = vmatprep.subr.bf16.mxu0 %v25316_v33  ;;  %21393 = vmatprep.subr.bf16.mxu1 %v23743_v58  ;;  %v8030_v58 = vpack.c.bf16 %v25316_v33, %v8020_v34 }
 0x3df   :  { %v8279_v30 = vsel %vm2131_vm4, %v8274_v19, %v8278_v17  ;;  %v23788_v17 = vld [vmem:[#allocation4 + $0x2b0] sm:$0xff]  }
 0x3e0   :  { %v21166_v9 = vpop.f32.mrf.mxu1  ;;  %8599 = vmatmul.mubr.bf16.vlgmr.msra.gmra.mxu1 %v8253_v36  ;;  %v23776_v36 = vld [vmem:[#allocation4 + $0x130] sm:$0xff]  }
 0x3e1   :  { %22682 = vmatpush3.bf16.msra.mxu0 %v23744_v44  ;;  %21394 = vmatpush3.bf16.msra.mxu1 %v23745_v51  ;;  %v8653_v44 = vrot.slane %v8030_v58, 1  ;;  %v23771_v51 = vld [vmem:[#allocation4 + $0xd8] sm:$0xff]  }
 0x3e2   :  { %8935 = vmatprep.mubr.bf16.mxu1 %v8654_v26  ;;  %v21167_v61 = vpop.f32.mrf.mxu1  ;;  %22683 = vmatprep.subr.bf16.mxu0 %v25316_v33  ;;  %v25373_v26 = vld [vmem:[#allocation2 + $0xb0] sm:$0xff] }
 0x3e3   :  { %v21168_v2 = vadd.f32 %v21167_v61, %v21166_v9  ;;  %21395 = vmatprep.subr.bf16.mxu1 %v23746_v47  ;;  %v23774_v47 = vld [vmem:[#allocation4 + $0xd0] sm:$0xff]   ;;  %v23779_v61 = vld [vmem:[#allocation4 + $0x128] sm:$0xff]  }
 0x3e4   :  { %v21169_v21 = vpop.f32.mrf.mxu1 }
 0x3e5   :  { %22684 = vmatpush3.bf16.msra.mxu0 %v23747_v52  ;;  %21396 = vmatpush3.bf16.msra.mxu1 %v23748_v0  ;;  %v6457_v3 = vadd.f32 %v21168_v2, %v6416_v38  ;;  %v23762_v38 = vld [vmem:[#allocation4 + $0xb0] sm:$0xff]   ;;  %v23777_v52 = vld [vmem:[#allocation4 + $0xc8] sm:$0xff]  }
 0x3e6   :  { %v21170_v55 = vpop.f32.mrf.mxu1  ;;  %22685 = vmatprep.subr.bf16.mxu0 %v25316_v33  ;;  %21397 = vmatprep.subr.bf16.mxu1 %v23749_v24  ;;  %v23778_v24 = vld [vmem:[#allocation4 + $0x88] sm:$0xff]  }
 0x3e7   :  { %v21171_v6 = vadd.f32 %v21170_v55, %v21169_v21  ;;  %v9027_v2 = vld [vmem:[#allocation2 + $0x100] sm:$0xf0] }
 0x3e8   :  { %v8022_v21 = vld [vmem:[#allocation2 + $0xc0] sm:$0xfc] }
 0x3e9   :  { %22686 = vmatpush3.bf16.msra.mxu0 %v23750_v62  ;;  %21398 = vmatpush3.bf16.msra.mxu1 %v23751_v1  ;;  %v6460_v46 = vadd.f32 %v21171_v6, %v6419_v23  ;;  %v23766_v23 = vld [vmem:[#allocation4 + $0xa8] sm:$0xff]   ;;  %v25381_v62 = vld [vmem:[#allocation2 + $0x58] sm:$0xff]  ;;  %v8032_v55 = vpack.c.bf16 %v25345_v8, %v8022_v21  ;;  %v23785_v6 = vld [vmem:[#allocation4 + $0x2b8] sm:$0xff]  }
 0x3ea   :  { %22687 = vmatprep.subr.bf16.mxu0 %v25316_v33  ;;  %21399 = vmatprep.subr.bf16.mxu1 %v23752_v40  ;;  %v9037_v1 = vpack.c.bf16 %v25381_v62, %v9027_v2  ;;  %v23783_v40 = vld [vmem:[#allocation4 + $0x2f8] sm:$0xff]   ;;  %v23805_v21 = vld [vmem:[#allocation4 + $0x288] sm:$0xff]  }
 0x3ec   :  { %v9139_v7 = vrot.slane %v9037_v1, 2 }
 0x3ed   :  { %22688 = vmatpush3.bf16.msra.mxu0 %v23753_v11  ;;  %21400 = vmatpush3.bf16.msra.mxu1 %v23754_v13  ;;  %v8655_v11 = vrot.slane %v8032_v55, 1  ;;  %v23786_v13 = vld [vmem:[#allocation4 + $0x2f0] sm:$0xff]  }
 0x3ee   :  { %21401 = vmatprep.subr.bf16.mxu1 %v23755_v15  ;;  %21415 = vmatprep.subr.bf16.mxu0 %v23756_v18  ;;  %v23789_v18 = vld [vmem:[#allocation4 + $0x2e8] sm:$0xff]  }
 0x3f0   :  { %v6497_v59 = vpop.f32.mrf.mxu0  ;;  %22690 = vmatmul.mubr.bf16.vlgmr.msra.gmra.mxu0 %v8279_v30 }
 0x3f1   :  { %v25367_v28 = vadd.f32 %v6497_v59, %v6457_v3  ;;  %21402 = vmatpush3.bf16.msra.mxu1 %v23757_v22  ;;  %21416 = vmatpush3.bf16.msra.mxu0 %v23758_v25  ;;  %v8024_v22 = vld [vmem:[#allocation2 + $0x98] sm:$0xfc]  ;;  %v9034_v25 = vld [vmem:[#allocation2 + $0xf8] sm:$0x3]  ;;  %v9029_v59 = vld [vmem:[#allocation2 + $0x88] sm:$0xf0] }
 0x3f2   :  { %8976 = vmatprep.mubr.bf16.mxu0 %v8656_v37  ;;  %v22611_v39 = vpop.f32.mrf.mxu0  ;;  %21403 = vmatprep.subr.bf16.mxu1 %v23759_v27  ;;  %v23791_v27 = vld [vmem:[#allocation4 + $0x2a8] sm:$0xff]   ;;  %v8034_v30 = vpack.c.bf16 %v25356_v48, %v8024_v22  ;;  %v23797_v48 = vld [vmem:[#allocation4 + $0x298] sm:$0xff]  }
 0x3f3   :  { %21417 = vmatprep.subr.bf16.mxu0 %v23760_v31  ;;  %v23792_v31 = vld [vmem:[#allocation4 + $0x2e0] sm:$0xff]  }
 0x3f4   :  { %v6500_v14 = vpop.f32.mrf.mxu0  ;;  %v23793_v39 = vld [vmem:[#allocation4 + $0x100] sm:$0xff]  }
 0x3f5   :  { %v25369_v42 = vadd.f32 %v6500_v14, %v6460_v46  ;;  %21404 = vmatpush3.bf16.msra.mxu1 %v23761_v29  ;;  %21418 = vmatpush3.bf16.msra.mxu0 %v23762_v38  ;;  %v23787_v46 = vld [vmem:[#allocation4 + $0x110] sm:$0xff]   ;;  %v25391_v29 = vld [vmem:[#allocation2 + $0x40] sm:$0xff]  ;;  %v23795_v14 = vld [vmem:[#allocation4 + $0x2d8] sm:$0xff]  }
 0x3f6   :  { %v22612_v45 = vpop.f32.mrf.mxu0  ;;  %21405 = vmatprep.subr.bf16.mxu1 %v23763_v41  ;;  %21419 = vmatprep.subr.bf16.mxu0 %v23764_v12  ;;  %v9039_v38 = vpack.c.bf16 %v25391_v29, %v9029_v59  ;;  %v23794_v41 = vld [vmem:[#allocation4 + $0x2a0] sm:$0xff]   ;;  %v9044_v12 = vpack.c.bf16 %v9034_v25, %v9034_v25  ;;  %v23814_v25 = vld [vmem:[#allocation4 + $0x350] sm:$0xff]  }
 0x3f8   :  { %v9145_v58 = vrot.slane %v9039_v38, 2 }
 0x3f9   :  { %21406 = vmatpush3.bf16.msra.mxu1 %v23765_v32  ;;  %21420 = vmatpush3.bf16.msra.mxu0 %v23766_v23  ;;  %v23796_v32 = vld [vmem:[#allocation4 + $0x378] sm:$0xff]  }
 0x3fa   :  { %21407 = vmatprep.subr.bf16.mxu1 %v23767_v56  ;;  %21421 = vmatprep.subr.bf16.mxu0 %v23768_v43  ;;  %v8657_v56 = vrot.slane %v8034_v30, 1  ;;  %v23798_v43 = vld [vmem:[#allocation4 + $0x338] sm:$0xff]   ;;  %v9033_v30 = vld [vmem:[#allocation2 + $0x60] sm:$0x3] }
 0x3fd   :  { %21408 = vmatpush3.bf16.msra.mxu1 %v23769_v50  ;;  %21422 = vmatpush3.bf16.msra.mxu0 %v23770_v49  ;;  %v23799_v50 = vld [vmem:[#allocation4 + $0x2d0] sm:$0xff]   ;;  %v9146_v49 = vrot.slane %v9044_v12, 2  ;;  %v23818_v12 = vld [vmem:[#allocation4 + $0x308] sm:$0xff]  }
 0x3fe   :  { %21423 = vmatprep.subr.bf16.mxu0 %v23771_v51  ;;  %22693 = vmatprep.subr.bf16.mxu1 %v25316_v33  ;;  %v9032_v33 = vld [vmem:[#allocation2] sm:$0x3] }
 0x3ff   :  { %v9042_v3 = vpack.c.bf16 %v9032_v33, %v9032_v33 }
 0x400   :  { %v21197_v4 = vpop.f32.mrf.mxu1  ;;  %8936 = vmatmul.mubr.bf16.vlgmr.msra.gmra.mxu1 %v8653_v44  ;;  %v23800_v44 = vld [vmem:[#allocation4 + $0x370] sm:$0xff]  }
 0x401   :  { %21424 = vmatpush3.bf16.msra.mxu0 %v23772_v53  ;;  %22694 = vmatpush3.bf16.msra.mxu1 %v23773_v54  ;;  %v9140_v10 = vrot.slane %v9042_v3, 2  ;;  %v23806_v3 = vld [vmem:[#allocation4 + $0x328] sm:$0xff]  }
 0x402   :  { %v21198_v9 = vpop.f32.mrf.mxu1  ;;  %21425 = vmatprep.subr.bf16.mxu0 %v23774_v47  ;;  %22695 = vmatprep.subr.bf16.mxu1 %v25373_v26  ;;  %v23801_v47 = vld [vmem:[#allocation4 + $0x290] sm:$0xff]  }
 0x403   :  { %v25376_v0 = vadd.f32 %v21198_v9, %v21197_v4  ;;  %22709 = vmatprep.mubr.msk.bf16.mxu1 %vm24771_vm3, %v25373_v26  ;;  %v9141_v16 = vsel %vm2678_vm5, %v9139_v7, %v9140_v10  ;;  %v23803_v4 = vld [vmem:[#allocation4 + $0x2c8] sm:$0xff]   ;;  %v23808_v7 = vld [vmem:[#allocation4 + $0x360] sm:$0xff]  }
 0x404   :  { %v21200_v34 = vpop.f32.mrf.mxu1  ;;  %v23804_v9 = vld [vmem:[#allocation4 + $0x368] sm:$0xff]  }
 0x405   :  { %21426 = vmatpush3.bf16.msra.mxu0 %v23775_v63  ;;  %22696 = vmatpush3.bf16.msra.mxu1 %v23776_v36  ;;  %v23802_v63 = vld [vmem:[#allocation4 + $0x330] sm:$0xff]  }
 0x406   :  { %21427 = vmatprep.subr.bf16.mxu0 %v23777_v52  ;;  %22697 = vmatprep.subr.bf16.mxu1 %v25373_v26  ;;  %v21201_v51 = vpop.f32.mrf.mxu1  ;;  %v9026_v52 = vld [vmem:[#allocation2 + $0x70] sm:$0xf0] }
 0x407   :  { %v9036_v55 = vpack.c.bf16 %v25373_v26, %v9026_v52  ;;  %v23826_v52 = vld [vmem:[#allocation4 + $0x430] sm:$0xff]  }
 0x409   :  { %21428 = vmatpush3.bf16.msra.mxu0 %v23778_v24  ;;  %22698 = vmatpush3.bf16.msra.mxu1 %v23779_v61  ;;  %v21202_v24 = vadd.f32 %v21201_v51, %v21200_v34  ;;  %v9147_v61 = vsel %vm2678_vm5, %v9145_v58, %v9146_v49  ;;  %v23819_v34 = vld [vmem:[#allocation4 + $0x3a8] sm:$0xff]   ;;  %v23822_v58 = vld [vmem:[#allocation4 + $0x3a0] sm:$0xff]   ;;  %v23823_v51 = vld [vmem:[#allocation4 + $0x438] sm:$0xff]  }
 0x40a   :  { %21429 = vmatprep.subr.bf16.mxu0 %v23780_v60  ;;  %22699 = vmatprep.subr.bf16.mxu1 %v25373_v26  ;;  %v9031_v60 = vld [vmem:[#allocation2 + $0xe8] sm:$0x3] }
 0x40d   :  { %21430 = vmatpush3.bf16.msra.mxu0 %v23781_v20  ;;  %22700 = vmatpush3.bf16.msra.mxu1 %v23782_v57 }
 0x40e   :  { %22701 = vmatprep.subr.bf16.mxu1 %v25373_v26  ;;  %21446 = vmatprep.subr.bf16.mxu0 %v23783_v40  ;;  %v9041_v40 = vpack.c.bf16 %v9031_v60, %v9031_v60 }
 0x410   :  { %v21219_v15 = vpop.f32.mrf.mxu0  ;;  %8977 = vmatmul.mubr.bf16.vlgmr.msra.gmra.mxu0 %v8655_v11  ;;  %v23810_v11 = vld [vmem:[#allocation4 + $0x320] sm:$0xff]  }
 0x411   :  { %22702 = vmatpush3.bf16.msra.mxu1 %v23784_v5  ;;  %21447 = vmatpush3.bf16.msra.mxu0 %v23785_v6  ;;  %v23807_v6 = vld [vmem:[#allocation4 + $0x2c0] sm:$0xff]  }
 0x412   :  { %9428 = vmatprep.mubr.bf16.mxu0 %v9141_v16  ;;  %22703 = vmatprep.subr.bf16.mxu1 %v25373_v26  ;;  %v21220_v19 = vpop.f32.mrf.mxu0  ;;  %v23811_v16 = vld [vmem:[#allocation4 + $0x358] sm:$0xff]  }
 0x413   :  { %21448 = vmatprep.subr.bf16.mxu0 %v23786_v13  ;;  %v21221_v23 = vadd.f32 %v21220_v19, %v21219_v15  ;;  %v9136_v13 = vrot.slane %v9036_v55, 2  ;;  %v9137_v15 = vrot.slane %v9041_v40, 2  ;;  %v9527_v19 = vld [vmem:[#allocation2] sm:$0x7]  ;;  %v9035_v55 = vld [vmem:[#allocation2 + $0xa8] sm:$0x3] }
 0x414   :  { %v21222_v37 = vpop.f32.mrf.mxu0  ;;  %v9537_v59 = vpack.c.bf16 %v9527_v19, %v9527_v19  ;;  %v23830_v40 = vld [vmem:[#allocation4 + $0x388] sm:$0xff]   ;;  %v23834_v19 = vld [vmem:[#allocation4 + $0x3e0] sm:$0xff]  }
 0x415   :  { %22704 = vmatpush3.bf16.msra.mxu1 %v23787_v46  ;;  %21449 = vmatpush3.bf16.msra.mxu0 %v23788_v17  ;;  %v6930_v54 = vadd.f32 %v21221_v23, %v25376_v0  ;;  %v23812_v46 = vld [vmem:[#allocation4 + $0x318] sm:$0xff]   ;;  %v9138_v22 = vsel %vm2678_vm5, %v9136_v13, %v9137_v15  ;;  %v23820_v23 = vld [vmem:[#allocation4 + $0x340] sm:$0xff]   ;;  %v25423_v15 = vld [vmem:[#allocation2 + $0x8] sm:$0xff] }
 0x416   :  { %22705 = vmatprep.subr.bf16.mxu1 %v25373_v26  ;;  %21450 = vmatprep.subr.bf16.mxu0 %v23789_v18  ;;  %v21223_v45 = vpop.f32.mrf.mxu0  ;;  %v23813_v17 = vld [vmem:[#allocation4 + $0x3b8] sm:$0xff]   ;;  %v9522_v18 = vld [vmem:[#allocation2 + $0x100] sm:$0xe0]  ;;  %v23832_v13 = vld [vmem:[#allocation4 + $0x420] sm:$0xff]  }
 0x417   :  { %v21224_v53 = vadd.f32 %v21223_v45, %v21222_v37  ;;  %v23817_v37 = vld [vmem:[#allocation4 + $0x348] sm:$0xff]   ;;  %v23821_v45 = vld [vmem:[#allocation4 + $0x300] sm:$0xff]  }
 0x419   :  { %22706 = vmatpush3.bf16.msra.mxu1 %v23790_v35  ;;  %21451 = vmatpush3.bf16.msra.mxu0 %v23791_v27  ;;  %v6933_v0 = vadd.f32 %v21224_v53, %v21202_v24  ;;  %v9028_v35 = vld [vmem:[#allocation2 + $0xc0] sm:$0xf0]  ;;  %v23815_v27 = vld [vmem:[#allocation4 + $0x310] sm:$0xff]  }
 0x41a   :  { %22707 = vmatprep.subr.bf16.mxu1 %v25373_v26  ;;  %21452 = vmatprep.subr.bf16.mxu0 %v23792_v31  ;;  %v23816_v31 = vld [vmem:[#allocation4 + $0x3b0] sm:$0xff]   ;;  %v9038_v38 = vpack.c.bf16 %v25345_v8, %v9028_v35 }
 0x41b   :  { %v9524_v53 = vld [vmem:[#allocation2 + $0x88] sm:$0xe0] }
 0x41d   :  { %22708 = vmatpush3.bf16.msra.mxu1 %v23793_v39  ;;  %21453 = vmatpush3.bf16.msra.mxu0 %v23794_v41 }
 0x41e   :  { %21454 = vmatprep.subr.bf16.mxu0 %v23795_v14  ;;  %21468 = vmatprep.subr.bf16.mxu1 %v23796_v32  ;;  %v9648_v14 = vshrl.u32 %v9537_v59, 16  ;;  %v9651_v32 = vshll.u32 %v9537_v59, 16  ;;  %v9526_v59 = vld [vmem:[#allocation2 + $0xe8] sm:$0x7] }
 0x420   :  { %v6970_v36 = vpop.f32.mrf.mxu1  ;;  %22710 = vmatmul.mubr.bf16.vlgmr.msra.gmra.mxu1 %v8657_v56  ;;  %v9043_v56 = vpack.c.bf16 %v9033_v30, %v9033_v30  ;;  %v9653_v49 = vrot.slane %v9651_v32, 3  ;;  %v23836_v30 = vld [vmem:[#allocation4 + $0x4b8] sm:$0xff]   ;;  %v23840_v32 = vld [vmem:[#allocation4 + $0x4b0] sm:$0xff]  }
 0x421   :  { %v6971_v33 = vadd.f32 %v6970_v36, %v6930_v54  ;;  %21455 = vmatpush3.bf16.msra.mxu0 %v23797_v48  ;;  %21469 = vmatpush3.bf16.msra.mxu1 %v23798_v43  ;;  %v9142_v48 = vrot.slane %v9038_v38, 2  ;;  %v23824_v54 = vld [vmem:[#allocation4 + $0x398] sm:$0xff]   ;;  %v9534_v36 = vpack.c.bf16 %v25391_v29, %v9524_v53 }
 0x422   :  { %9469 = vmatprep.mubr.bf16.mxu1 %v9147_v61  ;;  %v22631_v2 = vpop.f32.mrf.mxu1  ;;  %21456 = vmatprep.subr.bf16.mxu0 %v23799_v50  ;;  %v9650_v50 = vrot.slane %v9648_v14, 2  ;;  %v23828_v61 = vld [vmem:[#allocation4 + $0x3f0] sm:$0xff]   ;;  %v23837_v38 = vld [vmem:[#allocation4 + $0x3d8] sm:$0xff]  }
 0x423   :  { %v25398_v20 = vadd.f32 %v6971_v33, %v25367_v28  ;;  %21470 = vmatprep.subr.bf16.mxu1 %v23800_v44  ;;  %v23809_v28 = vld [vmem:[#allocation4 + $0x280] sm:$0xff]   ;;  %v9143_v44 = vrot.slane %v9043_v56, 2  ;;  %v23827_v33 = vld [vmem:[#allocation4 + $0x390] sm:$0xff]   ;;  %v9674_v60 = vshrl.u32 %v9534_v36, 16 }
 0x424   :  { %v6973_v57 = vpop.f32.mrf.mxu1 }
 0x425   :  { %v6974_v1 = vadd.f32 %v6973_v57, %v6933_v0  ;;  %21457 = vmatpush3.bf16.msra.mxu0 %v23801_v47  ;;  %21471 = vmatpush3.bf16.msra.mxu1 %v23802_v63  ;;  %v23825_v47 = vld [vmem:[#allocation4 + $0x3f8] sm:$0xff]   ;;  %v9529_v63 = vld [vmem:[#allocation2 + $0xf8] sm:$0x7]  ;;  %v9144_v24 = vsel %vm2678_vm5, %v9142_v48, %v9143_v44  ;;  %v23829_v0 = vld [vmem:[#allocation4 + $0x428] sm:$0xff]  }
 0x426   :  { %21458 = vmatprep.subr.bf16.mxu0 %v23803_v4  ;;  %21472 = vmatprep.subr.bf16.mxu1 %v23804_v9  ;;  %v22632_v5 = vpop.f32.mrf.mxu1  ;;  %v9654_v9 = vor.u32 %v9653_v49, %v9650_v50  ;;  %v9539_v57 = vpack.c.bf16 %v9529_v63, %v9529_v63  ;;  %v23842_v49 = vld [vmem:[#allocation4 + $0x470] sm:$0xff]   ;;  %v23843_v44 = vld [vmem:[#allocation4 + $0x408] sm:$0xff]  }
 0x427   :  { %v25402_v10 = vadd.f32 %v6974_v1, %v25369_v42  ;;  %v9532_v42 = vpack.c.bf16 %v25381_v62, %v9522_v18  ;;  %v23831_v5 = vld [vmem:[#allocation4 + $0x3e8] sm:$0xff]   ;;  %v23833_v18 = vld [vmem:[#allocation4 + $0x380] sm:$0xff]  }
 0x428   :  { %v23845_v63 = vld [vmem:[#allocation4 + $0x3c8] sm:$0xff]  }
 0x429   :  { %21459 = vmatpush3.bf16.msra.mxu0 %v23805_v21  ;;  %21473 = vmatpush3.bf16.msra.mxu1 %v23806_v3  ;;  %v9640_v39 = vshrl.u32 %v9532_v42, 16  ;;  %v9643_v41 = vshll.u32 %v9532_v42, 16  ;;  %v9677_v21 = vshll.u32 %v9534_v36, 16  ;;  %v9030_v3 = vld [vmem:[#allocation2 + $0x98] sm:$0xf0]  ;;  %v23846_v36 = vld [vmem:[#allocation4 + $0x468] sm:$0xff]  }
 0x42a   :  { %21460 = vmatprep.subr.bf16.mxu0 %v23807_v6  ;;  %21474 = vmatprep.subr.bf16.mxu1 %v23808_v7  ;;  %v9676_v6 = vrot.slane %v9674_v60, 2  ;;  %v9682_v7 = vshrl.u32 %v9539_v57, 16  ;;  %v9521_v42 = vld [vmem:[#allocation2 + $0x70] sm:$0xe0] }
 0x42b   :  { %v9642_v43 = vrot.slane %v9640_v39, 2  ;;  %v9645_v8 = vrot.slane %v9643_v41, 3  ;;  %v23838_v39 = vld [vmem:[#allocation4 + $0x478] sm:$0xff]   ;;  %v23839_v41 = vld [vmem:[#allocation4 + $0x410] sm:$0xff]  }
 0x42d   :  { %21461 = vmatpush3.bf16.msra.mxu0 %v23809_v28  ;;  %21475 = vmatpush3.bf16.msra.mxu1 %v23810_v11  ;;  %v9646_v4 = vor.u32 %v9645_v8, %v9642_v43  ;;  %v9685_v28 = vshll.u32 %v9539_v57, 16  ;;  %v23841_v8 = vld [vmem:[#allocation4 + $0x3d0] sm:$0xff]   ;;  %v9523_v57 = vld [vmem:[#allocation2 + $0xc0] sm:$0xe0] }
 0x42e   :  { %21476 = vmatprep.subr.bf16.mxu1 %v23811_v16  ;;  %22713 = vmatprep.subr.bf16.mxu0 %v25373_v26  ;;  %v9040_v16 = vpack.c.bf16 %v25423_v15, %v9030_v3 }
 0x42f   :  { %v9655_v2 = vsel %vm9621_vm6, %v9646_v4, %v9654_v9  ;;  %v23847_v9 = vld [vmem:[#allocation4 + $0x400] sm:$0xff]  }
 0x430   :  { %9429 = vmatmul.mubr.bf16.vlgmr.msra.gmra.mxu0 %v9138_v22  ;;  %v25417_v1 = vpop.f32.mrf.mxu0  ;;  %v9684_v22 = vrot.slane %v9682_v7, 2 }
 0x431   :  { %21477 = vmatpush3.bf16.msra.mxu1 %v23812_v46  ;;  %22714 = vmatpush3.bf16.msra.mxu0 %v23813_v17  ;;  %v9679_v46 = vrot.slane %v9677_v21, 3  ;;  %v9045_v17 = vpack.c.bf16 %v9035_v55, %v9035_v55  ;;  %v23850_v21 = vld [vmem:[#allocation4 + $0x460] sm:$0xff]  }
 0x432   :  { %21478 = vmatprep.subr.bf16.mxu1 %v23814_v25  ;;  %22715 = vmatprep.subr.bf16.mxu0 %v25373_v26  ;;  %v25420_v11 = vpop.f32.mrf.mxu0  ;;  %v9687_v25 = vrot.slane %v9685_v28, 3  ;;  %v23852_v28 = vld [vmem:[#allocation4 + $0x458] sm:$0xff]  }
 0x433   :  { %22729 = vmatprep.mubr.msk.bf16.mxu0 %vm24771_vm3, %v25373_v26 }
 0x434   :  { %v25426_v35 = vpop.f32.mrf.mxu0  ;;  %v9688_v14 = vor.u32 %v9687_v25, %v9684_v22  ;;  %v23856_v22 = vld [vmem:[#allocation4 + $0x4f0] sm:$0xff]  }
 0x435   :  { %21479 = vmatpush3.bf16.msra.mxu1 %v23815_v27  ;;  %22716 = vmatpush3.bf16.msra.mxu0 %v23816_v31  ;;  %v9148_v27 = vrot.slane %v9040_v16, 2  ;;  %v23835_v31 = vld [vmem:[#allocation4 + $0x418] sm:$0xff]  }
 0x436   :  { %21480 = vmatprep.subr.bf16.mxu1 %v23817_v37  ;;  %22717 = vmatprep.subr.bf16.mxu0 %v25373_v26  ;;  %v9149_v37 = vrot.slane %v9045_v17, 2  ;;  %v25430_v56 = vpop.f32.mrf.mxu0  ;;  %v23853_v16 = vld [vmem:[#allocation4 + $0x4f8] sm:$0xff]  }
 0x438   :  { %v9150_v48 = vsel %vm2678_vm5, %v9148_v27, %v9149_v37  ;;  %v10083_v27 = vld [vmem:[#allocation2] sm:$0xf]  ;;  %v9525_v37 = vld [vmem:[#allocation2 + $0x98] sm:$0xe0] }
 0x439   :  { %21481 = vmatpush3.bf16.msra.mxu1 %v23818_v12  ;;  %22718 = vmatpush3.bf16.msra.mxu0 %v23819_v34  ;;  %v9531_v12 = vpack.c.bf16 %v25373_v26, %v9521_v42  ;;  %v9680_v34 = vor.u32 %v9679_v46, %v9676_v6  ;;  %v25438_v6 = vld [vmem:[#allocation2 + $0xa0] sm:$0xff]  ;;  %v23854_v46 = vld [vmem:[#allocation4 + $0x490] sm:$0xff]  }
 0x43a   :  { %21482 = vmatprep.subr.bf16.mxu1 %v23820_v23  ;;  %22719 = vmatprep.subr.bf16.mxu0 %v25373_v26  ;;  %v9536_v23 = vpack.c.bf16 %v9526_v59, %v9526_v59  ;;  %v9533_v7 = vpack.c.bf16 %v25438_v6, %v9523_v57  ;;  %v23867_v57 = vld [vmem:[#allocation4 + $0x4d0] sm:$0xff]  }
 0x43b   :  { %v9689_v50 = vsel %vm9621_vm6, %v9680_v34, %v9688_v14  ;;  %v10078_v14 = vld [vmem:[#allocation2 + $0x100] sm:$0xc0] }
 0x43c   :  { %v9631_v53 = vshrl.u32 %v9536_v23, 16  ;;  %v9660_v25 = vshll.u32 %v9533_v7, 16 }
 0x43d   :  { %21483 = vmatpush3.bf16.msra.mxu1 %v23821_v45  ;;  %22720 = vmatpush3.bf16.msra.mxu0 %v23822_v58  ;;  %v9623_v45 = vshrl.u32 %v9531_v12, 16  ;;  %v9626_v58 = vshll.u32 %v9531_v12, 16 }
 0x43e   :  { %22721 = vmatprep.subr.bf16.mxu0 %v25373_v26  ;;  %21499 = vmatprep.subr.bf16.mxu1 %v23823_v51  ;;  %v23844_v51 = vld [vmem:[#allocation4 + $0x4a8] sm:$0xff]   ;;  %v9662_v12 = vrot.slane %v9660_v25, 3  ;;  %v23872_v25 = vld [vmem:[#allocation4 + $0x560] sm:$0xff]  }
 0x440   :  { %9470 = vmatmul.mubr.bf16.vlgmr.msra.gmra.mxu1 %v9144_v24  ;;  %v9625_v24 = vrot.slane %v9623_v45, 2  ;;  %v9535_v45 = vpack.c.bf16 %v25423_v15, %v9525_v37 }
 0x441   :  { %22722 = vmatpush3.bf16.msra.mxu0 %v23824_v54  ;;  %21500 = vmatpush3.bf16.msra.mxu1 %v23825_v47  ;;  %v9634_v54 = vshll.u32 %v9536_v23, 16 }
 0x442   :  { %9984 = vmatprep.mubr.bf16.mxu1 %v9655_v2  ;;  %22723 = vmatprep.subr.bf16.mxu0 %v25373_v26 }
 0x443   :  { %21501 = vmatprep.subr.bf16.mxu1 %v23826_v52  ;;  %v23848_v52 = vld [vmem:[#allocation4 + $0x4a0] sm:$0xff]   ;;  %v9636_v60 = vrot.slane %v9634_v54, 3 }
 0x445   :  { %22724 = vmatpush3.bf16.msra.mxu0 %v23827_v33  ;;  %21502 = vmatpush3.bf16.msra.mxu1 %v23828_v61  ;;  %v9628_v33 = vrot.slane %v9626_v58, 3  ;;  %v9633_v61 = vrot.slane %v9631_v53, 2  ;;  %v9530_v58 = vld [vmem:[#allocation2 + $0xa8] sm:$0x7] }
 0x446   :  { %22725 = vmatprep.subr.bf16.mxu0 %v25373_v26  ;;  %21503 = vmatprep.subr.bf16.mxu1 %v23829_v0  ;;  %v23849_v0 = vld [vmem:[#allocation4 + $0x3c0] sm:$0xff]  }
 0x447   :  { %v9629_v3 = vor.u32 %v9628_v33, %v9625_v24  ;;  %v9637_v55 = vor.u32 %v9636_v60, %v9633_v61  ;;  %v9540_v24 = vpack.c.bf16 %v9530_v58, %v9530_v58  ;;  %v23866_v33 = vld [vmem:[#allocation4 + $0x570] sm:$0xff]   ;;  %v9694_v61 = vshll.u32 %v9535_v45, 16 }
 0x449   :  { %22726 = vmatpush3.bf16.msra.mxu0 %v23830_v40  ;;  %21504 = vmatpush3.bf16.msra.mxu1 %v23831_v5  ;;  %v23851_v40 = vld [vmem:[#allocation4 + $0x498] sm:$0xff]   ;;  %v9528_v5 = vld [vmem:[#allocation2 + $0x60] sm:$0x7] }
 0x44a   :  { %22727 = vmatprep.subr.bf16.mxu0 %v25373_v26  ;;  %21505 = vmatprep.subr.bf16.mxu1 %v23832_v13  ;;  %v9638_v13 = vsel %vm9621_vm6, %v9629_v3, %v9637_v55  ;;  %v9538_v17 = vpack.c.bf16 %v9528_v5, %v9528_v5  ;;  %v9699_v3 = vshrl.u32 %v9540_v24, 16  ;;  %v9702_v55 = vshll.u32 %v9540_v24, 16  ;;  %v23869_v5 = vld [vmem:[#allocation4 + $0x568] sm:$0xff]  }
 0x44c   :  { %v9665_v42 = vshrl.u32 %v9538_v17, 16 }
 0x44d   :  { %22728 = vmatpush3.bf16.msra.mxu0 %v23833_v18  ;;  %21506 = vmatpush3.bf16.msra.mxu1 %v23834_v19  ;;  %v9657_v18 = vshrl.u32 %v9533_v7, 16  ;;  %v23855_v19 = vld [vmem:[#allocation4 + $0x450] sm:$0xff]  }
 0x44e   :  { %21507 = vmatprep.subr.bf16.mxu1 %v23835_v31  ;;  %21521 = vmatprep.subr.bf16.mxu0 %v23836_v30  ;;  %v23857_v31 = vld [vmem:[#allocation4 + $0x488] sm:$0xff]   ;;  %v9668_v30 = vshll.u32 %v9538_v17, 16  ;;  %v9667_v34 = vrot.slane %v9665_v42, 2  ;;  %v9704_v42 = vrot.slane %v9702_v55, 3 }
 0x44f   :  { %v9659_v59 = vrot.slane %v9657_v18, 2  ;;  %v23871_v17 = vld [vmem:[#allocation4 + $0x528] sm:$0xff]   ;;  %v9696_v18 = vrot.slane %v9694_v61, 3 }
 0x450   :  { %v25433_v43 = vpop.f32.mrf.mxu0  ;;  %22730 = vmatmul.mubr.bf16.vlgmr.msra.gmra.mxu0 %v9150_v48  ;;  %v9670_v23 = vrot.slane %v9668_v30, 3  ;;  %v10088_v48 = vpack.c.bf16 %v25381_v62, %v10078_v14  ;;  %v23873_v30 = vld [vmem:[#allocation4 + $0x4c0] sm:$0xff]  }
 0x451   :  { %21508 = vmatpush3.bf16.msra.mxu1 %v23837_v38  ;;  %21522 = vmatpush3.bf16.msra.mxu0 %v23838_v39  ;;  %v25446_v38 = vpop.f32.mrf.mxu1  ;;  %v23858_v39 = vld [vmem:[#allocation4 + $0x448] sm:$0xff]   ;;  %v9663_v62 = vor.u32 %v9662_v12, %v9659_v59  ;;  %v23874_v12 = vld [vmem:[#allocation4 + $0x520] sm:$0xff]  }
 0x452   :  { %10025 = vmatprep.mubr.bf16.mxu0 %v9689_v50  ;;  %v22651_v47 = vpop.f32.mrf.mxu0  ;;  %21509 = vmatprep.subr.bf16.mxu1 %v23839_v41  ;;  %v23859_v41 = vld [vmem:[#allocation4 + $0x4e8] sm:$0xff]   ;;  %v10191_v53 = vrot.slane %v10088_v48, 3  ;;  %v23876_v48 = vld [vmem:[#allocation4 + $0x5f8] sm:$0xff]  }
 0x453   :  { %21523 = vmatprep.subr.bf16.mxu0 %v23840_v32  ;;  %v23860_v32 = vld [vmem:[#allocation4 + $0x480] sm:$0xff]   ;;  %v21273_v50 = vpop.f32.mrf.mxu1  ;;  %v9691_v47 = vshrl.u32 %v9535_v45, 16 }
 0x454   :  { %v25436_v4 = vpop.f32.mrf.mxu0 }
 0x455   :  { %21510 = vmatpush3.bf16.msra.mxu1 %v23841_v8  ;;  %21524 = vmatpush3.bf16.msra.mxu0 %v23842_v49  ;;  %v10093_v8 = vpack.c.bf16 %v10083_v27, %v10083_v27  ;;  %v23861_v49 = vld [vmem:[#allocation4 + $0x440] sm:$0xff]   ;;  %v9693_v7 = vrot.slane %v9691_v47, 2  ;;  %v21274_v27 = vadd.f32 %v21273_v50, %v25446_v38  ;;  %v23880_v47 = vld [vmem:[#allocation4 + $0x5f0] sm:$0xff]  }
 0x456   :  { %v22652_v2 = vpop.f32.mrf.mxu0  ;;  %21511 = vmatprep.subr.bf16.mxu1 %v23843_v44  ;;  %21525 = vmatprep.subr.bf16.mxu0 %v23844_v51  ;;  %v23862_v44 = vld [vmem:[#allocation4 + $0x4e0] sm:$0xff]   ;;  %v25451_v51 = vld [vmem:[#allocation2 + $0xb0] sm:$0xff] }
 0x457   :  { %v10192_v54 = vrot.slane %v10093_v8, 3  ;;  %v9697_v38 = vor.u32 %v9696_v18, %v9693_v7  ;;  %v23886_v7 = vld [vmem:[#allocation4 + $0x5a8] sm:$0xff]  }
 0x459   :  { %21512 = vmatpush3.bf16.msra.mxu1 %v23845_v63  ;;  %21526 = vmatpush3.bf16.msra.mxu0 %v23846_v36  ;;  %v9671_v63 = vor.u32 %v9670_v23, %v9667_v34  ;;  %v23864_v36 = vld [vmem:[#allocation4 + $0x4d8] sm:$0xff]  }
 0x45a   :  { %21513 = vmatprep.subr.bf16.mxu1 %v23847_v9  ;;  %21527 = vmatprep.subr.bf16.mxu0 %v23848_v52  ;;  %v23865_v9 = vld [vmem:[#allocation4 + $0x538] sm:$0xff]   ;;  %v21275_v52 = vpop.f32.mrf.mxu1 }
 0x45b   :  { %v9672_v60 = vsel %vm9621_vm6, %v9663_v62, %v9671_v63  ;;  %v23875_v34 = vld [vmem:[#allocation4 + $0x558] sm:$0xff]  }
 0x45c   :  { %v21276_v2 = vpop.f32.mrf.mxu1 }
 0x45d   :  { %21514 = vmatpush3.bf16.msra.mxu1 %v23849_v0  ;;  %21528 = vmatpush3.bf16.msra.mxu0 %v23850_v21  ;;  %v23868_v21 = vld [vmem:[#allocation4 + $0x530] sm:$0xff]   ;;  %v21277_v8 = vadd.f32 %v21276_v2, %v21275_v52 }
 0x45e   :  { %21529 = vmatprep.subr.bf16.mxu0 %v23851_v40  ;;  %22733 = vmatprep.subr.bf16.mxu1 %v25373_v26  ;;  %v10193_v40 = vsel %vm10187_vm7, %v10191_v53, %v10192_v54  ;;  %v23879_v54 = vld [vmem:[#allocation4 + $0x550] sm:$0xff]  }
 0x45f   :  { %v23881_v52 = vld [vmem:[#allocation4 + $0x510] sm:$0xff]  }
 0x460   :  { %9985 = vmatmul.mubr.bf16.vlgmr.msra.gmra.mxu1 %v9638_v13  ;;  %v10085_v13 = vld [vmem:[#allocation2 + $0xf8] sm:$0xf] }
 0x461   :  { %21530 = vmatpush3.bf16.msra.mxu0 %v23852_v28  ;;  %22734 = vmatpush3.bf16.msra.mxu1 %v23853_v16  ;;  %v21303_v28 = vpop.f32.mrf.mxu1  ;;  %v10095_v37 = vpack.c.bf16 %v10085_v13, %v10085_v13 }
 0x462   :  { %21531 = vmatprep.subr.bf16.mxu0 %v23854_v46  ;;  %22735 = vmatprep.subr.bf16.mxu1 %v25373_v26  ;;  %v23870_v46 = vld [vmem:[#allocation4 + $0x4c8] sm:$0xff]  }
 0x463   :  { %22749 = vmatprep.mubr.msk.bf16.mxu1 %vm24771_vm3, %v25373_v26  ;;  %v10198_v50 = vrot.slane %v10095_v37, 3  ;;  %v23891_v37 = vld [vmem:[#allocation4 + $0x5d8] sm:$0xff]  }
 0x465   :  { %21532 = vmatpush3.bf16.msra.mxu0 %v23855_v19  ;;  %22736 = vmatpush3.bf16.msra.mxu1 %v23856_v22  ;;  %v9701_v19 = vrot.slane %v9699_v3, 2  ;;  %v10080_v22 = vld [vmem:[#allocation2 + $0x88] sm:$0xc0]  ;;  %v23884_v3 = vld [vmem:[#allocation4 + $0x5e8] sm:$0xff]  }
 0x466   :  { %21533 = vmatprep.subr.bf16.mxu0 %v23857_v31  ;;  %22737 = vmatprep.subr.bf16.mxu1 %v25373_v26  ;;  %v23863_v26 = vld [vmem:[#allocation4 + $0x578] sm:$0xff]   ;;  %v21304_v31 = vpop.f32.mrf.mxu1  ;;  %v10090_v59 = vpack.c.bf16 %v25391_v29, %v10080_v22 }
 0x467   :  { %v9705_v23 = vor.u32 %v9704_v42, %v9701_v19  ;;  %v23877_v29 = vld [vmem:[#allocation4 + $0x518] sm:$0xff]   ;;  %v23888_v19 = vld [vmem:[#allocation4 + $0x5e0] sm:$0xff]  }
 0x468   :  { %v10197_v58 = vrot.slane %v10090_v59, 3 }
 0x469   :  { %21534 = vmatpush3.bf16.msra.mxu0 %v23858_v39  ;;  %22738 = vmatpush3.bf16.msra.mxu1 %v23859_v41  ;;  %v21252_v39 = vadd.f32 %v25420_v11, %v25417_v1 }
 0x46a   :  { %21535 = vmatprep.subr.bf16.mxu0 %v23860_v32  ;;  %22739 = vmatprep.subr.bf16.mxu1 %v25451_v51  ;;  %v21306_v32 = vpop.f32.mrf.mxu1 }
 0x46b   :  { %v7470_v14 = vadd.f32 %v21274_v27, %v21252_v39  ;;  %v23889_v27 = vld [vmem:[#allocation4 + $0x500] sm:$0xff]   ;;  %v25476_v39 = vld [vmem:[#allocation2 + $0xa0] sm:$0xff] }
 0x46c   :  { %v21307_v53 = vpop.f32.mrf.mxu1 }
 0x46d   :  { %21536 = vmatpush3.bf16.msra.mxu0 %v23861_v49  ;;  %22740 = vmatpush3.bf16.msra.mxu1 %v23862_v44  ;;  %v7511_v1 = vadd.f32 %v25433_v43, %v7470_v14  ;;  %v21255_v49 = vadd.f32 %v25430_v56, %v25426_v35  ;;  %v21305_v44 = vadd.f32 %v21304_v31, %v21303_v28  ;;  %v23882_v56 = vld [vmem:[#allocation4 + $0x5b0] sm:$0xff]   ;;  %v23887_v28 = vld [vmem:[#allocation4 + $0x540] sm:$0xff]  }
 0x46e   :  { %22741 = vmatprep.subr.bf16.mxu1 %v25451_v51  ;;  %21552 = vmatprep.subr.bf16.mxu0 %v23863_v26  ;;  %v23878_v26 = vld [vmem:[#allocation4 + $0x5b8] sm:$0xff]   ;;  %v10199_v35 = vsel %vm10187_vm7, %v10197_v58, %v10198_v50  ;;  %v23890_v31 = vld [vmem:[#allocation4 + $0x5a0] sm:$0xff]   ;;  %v10084_v58 = vld [vmem:[#allocation2 + $0x60] sm:$0xf] }
 0x46f   :  { %v7473_v62 = vadd.f32 %v21277_v8, %v21255_v49  ;;  %v7517_v43 = vadd.f32 %v7511_v1, %v25398_v20  ;;  %v23899_v49 = vld [vmem:[#allocation4 + $0x628] sm:$0xff]  }
 0x470   :  { %v21325_v0 = vpop.f32.mrf.mxu0  ;;  %10026 = vmatmul.mubr.bf16.vlgmr.msra.gmra.mxu0 %v9672_v60  ;;  %v21308_v60 = vadd.f32 %v21307_v53, %v21306_v32  ;;  %v23893_v32 = vld [vmem:[#allocation4 + $0x638] sm:$0xff]  }
 0x471   :  { %22742 = vmatpush3.bf16.msra.mxu1 %v23864_v36  ;;  %21553 = vmatpush3.bf16.msra.mxu0 %v23865_v9  ;;  %v9706_v9 = vsel %vm9621_vm6, %v9697_v38, %v9705_v23  ;;  %v7514_v61 = vadd.f32 %v25436_v4, %v7473_v62  ;;  %v23894_v38 = vld [vmem:[#allocation4 + $0x5d0] sm:$0xff]  }
 0x472   :  { %10480 = vmatprep.mubr.bf16.mxu0 %v10193_v40  ;;  %22743 = vmatprep.subr.bf16.mxu1 %v25451_v51  ;;  %v21326_v16 = vpop.f32.mrf.mxu0  ;;  %v23885_v40 = vld [vmem:[#allocation4 + $0x508] sm:$0xff]   ;;  %v23895_v23 = vld [vmem:[#allocation4 + $0x590] sm:$0xff]  }
 0x473   :  { %21554 = vmatprep.subr.bf16.mxu0 %v23866_v33  ;;  %v21327_v45 = vadd.f32 %v21326_v16, %v21325_v0  ;;  %v23883_v33 = vld [vmem:[#allocation4 + $0x548] sm:$0xff]   ;;  %v10077_v0 = vld [vmem:[#allocation2 + $0x70] sm:$0xc0]  ;;  %v7518_v16 = vadd.f32 %v7514_v61, %v25402_v10 }
 0x474   :  { %v21328_v41 = vpop.f32.mrf.mxu0  ;;  %v10087_v13 = vpack.c.bf16 %v25451_v51, %v10077_v0 }
 0x475   :  { %22744 = vmatpush3.bf16.msra.mxu1 %v23867_v57  ;;  %21555 = vmatpush3.bf16.msra.mxu0 %v23868_v21  ;;  %v7965_v36 = vadd.f32 %v21327_v45, %v21305_v44  ;;  %v10082_v57 = vld [vmem:[#allocation2 + $0xe8] sm:$0xf]  ;;  %v10079_v44 = vld [vmem:[#allocation2 + $0xc0] sm:$0xc0] }
 0x476   :  { %22745 = vmatprep.subr.bf16.mxu1 %v25451_v51  ;;  %21556 = vmatprep.subr.bf16.mxu0 %v23869_v5  ;;  %v21329_v11 = vpop.f32.mrf.mxu0  ;;  %v10092_v4 = vpack.c.bf16 %v10082_v57, %v10082_v57  ;;  %v10188_v10 = vrot.slane %v10087_v13, 3  ;;  %v10089_v62 = vpack.c.bf16 %v25438_v6, %v10079_v44  ;;  %v23905_v6 = vld [vmem:[#allocation4 + $0x178] sm:$0xff]   ;;  %v10081_v57 = vld [vmem:[#allocation2 + $0x98] sm:$0xc0]  ;;  %v23907_v13 = vld [vmem:[#allocation4 + $0x610] sm:$0xff]  }
 0x477   :  { %v21330_v63 = vadd.f32 %v21329_v11, %v21328_v41  ;;  %v23898_v11 = vld [vmem:[#allocation4 + $0x588] sm:$0xff]   ;;  %v23917_v44 = vld [vmem:[#allocation4 + $0x158] sm:$0xff]  }
 0x478   :  { %v10189_v59 = vrot.slane %v10092_v4, 3  ;;  %v23908_v4 = vld [vmem:[#allocation4 + $0x170] sm:$0xff]  }
 0x479   :  { %22746 = vmatpush3.bf16.msra.mxu1 %v23870_v46  ;;  %21557 = vmatpush3.bf16.msra.mxu0 %v23871_v17  ;;  %v7968_v20 = vadd.f32 %v21330_v63, %v21308_v60  ;;  %v24699_v46 = vld [vmem:[%s26586_s4] ss:$0 sm:$0xff]  ;;  %v10094_v63 = vpack.c.bf16 %v10084_v58, %v10084_v58  ;;  %v23904_v60 = vld [vmem:[#allocation4 + $0x618] sm:$0xff]  }
 0x47a   :  { %22747 = vmatprep.subr.bf16.mxu1 %v25451_v51  ;;  %21558 = vmatprep.subr.bf16.mxu0 %v23872_v25  ;;  %v10190_v14 = vsel %vm10187_vm7, %v10188_v10, %v10189_v59 }
 0x47d   :  { %22748 = vmatpush3.bf16.msra.mxu1 %v23873_v30  ;;  %21559 = vmatpush3.bf16.msra.mxu0 %v23874_v12  ;;  %v23892_v12 = vld [vmem:[#allocation4 + $0x598] sm:$0xff]  }
 0x47e   :  { %21560 = vmatprep.subr.bf16.mxu0 %v23875_v34  ;;  %21574 = vmatprep.subr.bf16.mxu1 %v23876_v48  ;;  %v10685_v34 = vld [vmem:[#allocation2 + $0xc0] sm:$0xf8]  ;;  %v23896_v48 = vld [vmem:[#allocation4 + $0x630] sm:$0xff]  }
 0x47f   :  { %v10695_v8 = vpack.c.bf16 %v25476_v39, %v10685_v34 }
 0x480   :  { %v8005_v24 = vpop.f32.mrf.mxu1  ;;  %22750 = vmatmul.mubr.bf16.vlgmr.msra.gmra.mxu1 %v9706_v9  ;;  %v23901_v9 = vld [vmem:[#allocation4 + $0x580] sm:$0xff]  }
 0x481   :  { %v8006_v2 = vadd.f32 %v8005_v24, %v7965_v36  ;;  %21561 = vmatpush3.bf16.msra.mxu0 %v23877_v29  ;;  %21575 = vmatpush3.bf16.msra.mxu1 %v23878_v26  ;;  %v23897_v29 = vld [vmem:[#allocation4 + $0x5c8] sm:$0xff]   ;;  %v10798_v53 = vshrl.u32 %v10695_v8, 16 }
 0x482   :  { %10521 = vmatprep.mubr.bf16.mxu1 %v10199_v35  ;;  %v22671_v21 = vpop.f32.mrf.mxu1  ;;  %21562 = vmatprep.subr.bf16.mxu0 %v23879_v54  ;;  %v10690_v26 = vld [vmem:[#allocation2 + $0x60] sm:$0x1]  ;;  %v23900_v54 = vld [vmem:[#allocation4 + $0x5c0] sm:$0xff]   ;;  %v10194_v35 = vrot.slane %v10089_v62, 3 }
 0x483   :  { %v8012_v55 = vadd.f32 %v8006_v2, %v7517_v43  ;;  %21576 = vmatprep.subr.bf16.mxu1 %v23880_v47  ;;  %v10801_v47 = vshll.u32 %v10695_v8, 16  ;;  %v10700_v36 = vpack.c.bf16 %v10690_v26, %v10690_v26  ;;  %v10800_v43 = vrot.slane %v10798_v53, 1  ;;  %v25489_v2 = vld [vmem:[#allocation2 + $0x8] sm:$0xff]  ;;  %v23914_v8 = vld [vmem:[#allocation4 + $0x160] sm:$0xff]   ;;  %v23918_v26 = vld [vmem:[#allocation4 + $0x1f8] sm:$0xff]  }
 0x484   :  { %v8008_v5 = vpop.f32.mrf.mxu1  ;;  %v23919_v53 = vld [vmem:[#allocation4 + $0x190] sm:$0xff]  }
 0x485   :  { %v8014_v17 = vadd.f32 %v24699_v46, %v8012_v55  ;;  %v8009_v18 = vadd.f32 %v8008_v5, %v7968_v20  ;;  %21563 = vmatpush3.bf16.msra.mxu0 %v23881_v52  ;;  %21577 = vmatpush3.bf16.msra.mxu1 %v23882_v56  ;;  %v23902_v52 = vld [vmem:[#allocation4 + $0x620] sm:$0xff]   ;;  %v10803_v24 = vrot.slane %v10801_v47, 2  ;;  %v10195_v56 = vrot.slane %v10094_v63, 3  ;;  %v23920_v63 = vld [vmem:[#allocation4 + $0x230] sm:$0xff]  }
 0x486   :  { %21564 = vmatprep.subr.bf16.mxu0 %v23883_v33  ;;  %21578 = vmatprep.subr.bf16.mxu1 %v23884_v3  ;;  %v22672_v22 = vpop.f32.mrf.mxu1  ;;  %v23903_v33 = vld [vmem:[#allocation4 + $0x1b8] sm:$0xff]   ;;  %v10806_v61 = vshll.u32 %v10700_v36, 16  ;;  %v23906_v3 = vld [vmem:[#allocation4 + $0x1b0] sm:$0xff]   ;;  %v10687_v55 = vld [vmem:[#allocation2 + $0x98] sm:$0xf8] }
 0x487   :  { %v8016_v25 = vmax.f32 %v8014_v17, 0.0  ;;  %v8013_v42 = vadd.f32 %v8009_v18, %v7518_v16  ;;  %v10804_v0 = vor.u32 %v10803_v24, %v10800_v43  ;;  %v10196_v20 = vsel %vm10187_vm7, %v10194_v35, %v10195_v56  ;;  %v23909_v17 = vld [vmem:[#allocation4 + $0x1a8] sm:$0xff]   ;;  %v10086_v22 = vld [vmem:[#allocation2 + $0xa8] sm:$0xf] }
 0x488   :  { %v10808_v21 = vrot.slane %v10806_v61, 2  ;;  %v10697_v16 = vpack.c.bf16 %v25489_v2, %v10687_v55  ;;  %v10091_v18 = vpack.c.bf16 %v25423_v15, %v10081_v57  ;;  %v10096_v15 = vpack.c.bf16 %v10086_v22, %v10086_v22  ;;  %v23922_v43 = vld [vmem:[#allocation4 + $0x1f0] sm:$0xff]   ;;  %v23923_v24 = vld [vmem:[#allocation4 + $0x188] sm:$0xff]   ;;  %v23927_v55 = vld [vmem:[#allocation4 + $0x180] sm:$0xff]  }
 0x489   :  { %8018 = vst [vmem:[#allocation3 + $0x40] sm:$0xff] %v8016_v25  ;;  %v8015_v30 = vadd.f32 %v24699_v46, %v8013_v42  ;;  %21565 = vmatpush3.bf16.msra.mxu0 %v23885_v40  ;;  %21579 = vmatpush3.bf16.msra.mxu1 %v23886_v7  ;;  %v10692_v7 = vld [vmem:[#allocation2 + $0xa8] sm:$0x1]  ;;  %v10689_v35 = vld [vmem:[#allocation2] sm:$0x1]  ;;  %v23932_v22 = vld [vmem:[#allocation4 + $0x1d8] sm:$0xff]  }
 0x48a   :  { %21566 = vmatprep.subr.bf16.mxu0 %v23887_v28  ;;  %21580 = vmatprep.subr.bf16.mxu1 %v23888_v19  ;;  %v10809_v28 = vsel %vm2131_vm4, %v10804_v0, %v10808_v21  ;;  %v10702_v25 = vpack.c.bf16 %v10692_v7, %v10692_v7  ;;  %v10824_v59 = vshrl.u32 %v10697_v16, 16  ;;  %v10200_v34 = vrot.slane %v10091_v18, 3  ;;  %v23925_v57 = vld [vmem:[#allocation4 + $0x148] sm:$0xff]  }
 0x48b   :  { %v8017_v41 = vmax.f32 %v8015_v30, 0.0  ;;  %v23911_v30 = vld [vmem:[#allocation4 + $0x168] sm:$0xff]  }
 0x48c   :  { %v25507_v18 = vld [vmem:[#allocation2 + $0x40] sm:$0xff] }
 0x48d   :  { %8019 = vst [vmem:[#allocation3 + $0x58] sm:$0x3f] %v8017_v41  ;;  %21567 = vmatpush3.bf16.msra.mxu0 %v23889_v27  ;;  %21581 = vmatpush3.bf16.msra.mxu1 %v23890_v31  ;;  %v23910_v31 = vld [vmem:[#allocation4 + $0x608] sm:$0xff]  }
 0x48e   :  { %21582 = vmatprep.subr.bf16.mxu1 %v23891_v37  ;;  %22753 = vmatprep.subr.bf16.mxu0 %v25451_v51  ;;  %v10827_v37 = vshll.u32 %v10697_v16, 16  ;;  %v23930_v16 = vld [vmem:[#allocation4 + $0x1e0] sm:$0xff]  }
 0x490   :  { %v21356_v45 = vpop.f32.mrf.mxu0  ;;  %10481 = vmatmul.mubr.bf16.vlgmr.msra.gmra.mxu0 %v10190_v14  ;;  %v10829_v58 = vrot.slane %v10827_v37, 2 }
 0x491   :  { %21583 = vmatpush3.bf16.msra.mxu1 %v23892_v12  ;;  %22754 = vmatpush3.bf16.msra.mxu0 %v23893_v32  ;;  %v23912_v12 = vld [vmem:[#allocation4 + $0x1a0] sm:$0xff]  }
 0x492   :  { %v21357_v50 = vpop.f32.mrf.mxu0  ;;  %21584 = vmatprep.subr.bf16.mxu1 %v23894_v38  ;;  %22755 = vmatprep.subr.bf16.mxu0 %v25451_v51  ;;  %v23913_v38 = vld [vmem:[#allocation4 + $0x600] sm:$0xff]  }
 0x493   :  { %v25482_v1 = vadd.f32 %v21357_v50, %v21356_v45  ;;  %22769 = vmatprep.mubr.msk.bf16.mxu0 %vm24771_vm3, %v25451_v51  ;;  %v23915_v45 = vld [vmem:[#allocation4 + $0x198] sm:$0xff]  }
 0x494   :  { %v21359_v40 = vpop.f32.mrf.mxu0 }
 0x495   :  { %21585 = vmatpush3.bf16.msra.mxu1 %v23895_v23  ;;  %22756 = vmatpush3.bf16.msra.mxu0 %v23896_v48  ;;  %v10832_v23 = vshll.u32 %v10702_v25, 16  ;;  %v25499_v48 = vld [vmem:[#allocation2 + $0x58] sm:$0xff]  ;;  %v23933_v25 = vld [vmem:[#allocation4 + $0x278] sm:$0xff]  }
 0x496   :  { %21586 = vmatprep.subr.bf16.mxu1 %v23897_v29  ;;  %22757 = vmatprep.subr.bf16.mxu0 %v25451_v51  ;;  %v21360_v42 = vpop.f32.mrf.mxu0  ;;  %v10826_v29 = vrot.slane %v10824_v59, 1  ;;  %v23936_v59 = vld [vmem:[#allocation4 + $0x270] sm:$0xff]  }
 0x497   :  { %v21361_v14 = vadd.f32 %v21360_v42, %v21359_v40  ;;  %v10834_v62 = vrot.slane %v10832_v23, 2  ;;  %v23928_v40 = vld [vmem:[#allocation4 + $0x220] sm:$0xff]   ;;  %v10686_v42 = vld [vmem:[#allocation2 + $0x88] sm:$0xf8] }
 0x498   :  { %v10830_v47 = vor.u32 %v10829_v58, %v10826_v29  ;;  %v10696_v37 = vpack.c.bf16 %v25507_v18, %v10686_v42  ;;  %v23940_v29 = vld [vmem:[#allocation4 + $0x200] sm:$0xff]  }
 0x499   :  { %21587 = vmatpush3.bf16.msra.mxu1 %v23898_v11  ;;  %22758 = vmatpush3.bf16.msra.mxu0 %v23899_v49  ;;  %v10201_v11 = vrot.slane %v10096_v15, 3  ;;  %v23916_v49 = vld [vmem:[#allocation4 + $0x238] sm:$0xff]   ;;  %v10691_v15 = vld [vmem:[#allocation2 + $0xf8] sm:$0x1] }
 0x49a   :  { %21588 = vmatprep.subr.bf16.mxu1 %v23900_v54  ;;  %22759 = vmatprep.subr.bf16.mxu0 %v25451_v51  ;;  %v10835_v61 = vsel %vm2131_vm4, %v10830_v47, %v10834_v62  ;;  %v10811_v23 = vshrl.u32 %v10696_v37, 16  ;;  %v23942_v47 = vld [vmem:[#allocation4 + $0x260] sm:$0xff]  }
 0x49b   :  { %v10202_v36 = vsel %vm10187_vm7, %v10200_v34, %v10201_v11  ;;  %v25516_v11 = vld [vmem:[#allocation2 + $0xb0] sm:$0xff] }
 0x49d   :  { %21589 = vmatpush3.bf16.msra.mxu1 %v23901_v9  ;;  %22760 = vmatpush3.bf16.msra.mxu0 %v23902_v52  ;;  %v23921_v9 = vld [vmem:[#allocation4 + $0x150] sm:$0xff]  }
 0x49e   :  { %22761 = vmatprep.subr.bf16.mxu0 %v25451_v51  ;;  %21605 = vmatprep.subr.bf16.mxu1 %v23903_v33 }
 0x4a0   :  { %v21378_v5 = vpop.f32.mrf.mxu1  ;;  %10522 = vmatmul.mubr.bf16.vlgmr.msra.gmra.mxu1 %v10196_v20 }
 0x4a1   :  { %22762 = vmatpush3.bf16.msra.mxu0 %v23904_v60  ;;  %21606 = vmatpush3.bf16.msra.mxu1 %v23905_v6  ;;  %v23924_v60 = vld [vmem:[#allocation4 + $0x228] sm:$0xff]  }
 0x4a2   :  { %11126 = vmatprep.mubr.bf16.mxu1 %v10809_v28  ;;  %v21379_v46 = vpop.f32.mrf.mxu1  ;;  %22763 = vmatprep.subr.bf16.mxu0 %v25451_v51 }
 0x4a3   :  { %v21380_v19 = vadd.f32 %v21379_v46, %v21378_v5  ;;  %21607 = vmatprep.subr.bf16.mxu1 %v23906_v3  ;;  %v23926_v3 = vld [vmem:[#allocation4 + $0x1e8] sm:$0xff]   ;;  %v10699_v5 = vpack.c.bf16 %v10689_v35, %v10689_v35 }
 0x4a4   :  { %v21381_v27 = vpop.f32.mrf.mxu1 }
 0x4a5   :  { %22764 = vmatpush3.bf16.msra.mxu0 %v23907_v13  ;;  %21608 = vmatpush3.bf16.msra.mxu1 %v23908_v4  ;;  %v8601_v10 = vadd.f32 %v21380_v19, %v25482_v1  ;;  %v10684_v1 = vld [vmem:[#allocation2 + $0x100] sm:$0xf8]  ;;  %v23929_v4 = vld [vmem:[#allocation4 + $0x140] sm:$0xff]   ;;  %v10793_v46 = vshll.u32 %v10699_v5, 16 }
 0x4a6   :  { %v21382_v41 = vpop.f32.mrf.mxu1  ;;  %22765 = vmatprep.subr.bf16.mxu0 %v25451_v51  ;;  %21609 = vmatprep.subr.bf16.mxu1 %v23909_v17  ;;  %v10694_v54 = vpack.c.bf16 %v25499_v48, %v10684_v1  ;;  %v23931_v17 = vld [vmem:[#allocation4 + $0x218] sm:$0xff]  }
 0x4a7   :  { %v21383_v32 = vadd.f32 %v21382_v41, %v21381_v27  ;;  %v10795_v27 = vrot.slane %v10793_v46, 2 }
 0x4a8   :  { %v10785_v56 = vshrl.u32 %v10694_v54, 16  ;;  %v10788_v6 = vshll.u32 %v10694_v54, 16 }
 0x4a9   :  { %22766 = vmatpush3.bf16.msra.mxu0 %v23910_v31  ;;  %21610 = vmatpush3.bf16.msra.mxu1 %v23911_v30  ;;  %v8604_v50 = vadd.f32 %v21383_v32, %v21361_v14  ;;  %v23934_v31 = vld [vmem:[#allocation4 + $0x210] sm:$0xff]   ;;  %v23938_v32 = vld [vmem:[#allocation4 + $0x1c8] sm:$0xff]  }
 0x4aa   :  { %22767 = vmatprep.subr.bf16.mxu0 %v25451_v51  ;;  %21611 = vmatprep.subr.bf16.mxu1 %v23912_v12  ;;  %v10787_v28 = vrot.slane %v10785_v56, 1  ;;  %v10790_v13 = vrot.slane %v10788_v6, 2  ;;  %v23937_v12 = vld [vmem:[#allocation4 + $0x208] sm:$0xff]  }
 0x4ac   :  { %v10791_v19 = vor.u32 %v10790_v13, %v10787_v28  ;;  %v23950_v13 = vld [vmem:[#allocation4 + $0x248] sm:$0xff]  }
 0x4ad   :  { %22768 = vmatpush3.bf16.msra.mxu0 %v23913_v38  ;;  %21612 = vmatpush3.bf16.msra.mxu1 %v23914_v8  ;;  %v23939_v38 = vld [vmem:[#allocation4 + $0x268] sm:$0xff]   ;;  %v10814_v8 = vshll.u32 %v10696_v37, 16 }
 0x4ae   :  { %21613 = vmatprep.subr.bf16.mxu1 %v23915_v45  ;;  %21627 = vmatprep.subr.bf16.mxu0 %v23916_v49  ;;  %v10796_v30 = vsel %vm2131_vm4, %v10791_v19, %v10795_v27 }
 0x4b0   :  { %v8641_v52 = vpop.f32.mrf.mxu0  ;;  %22770 = vmatmul.mubr.bf16.vlgmr.msra.gmra.mxu0 %v10202_v36  ;;  %v23943_v36 = vld [vmem:[#allocation4 + $0x78] sm:$0xff]  }
 0x4b1   :  { %v25504_v33 = vadd.f32 %v8641_v52, %v8601_v10  ;;  %21614 = vmatpush3.bf16.msra.mxu1 %v23917_v44  ;;  %21628 = vmatpush3.bf16.msra.mxu0 %v23918_v26  ;;  %v23935_v10 = vld [vmem:[#allocation4 + $0x1d0] sm:$0xff]   ;;  %v10813_v44 = vrot.slane %v10811_v23, 1  ;;  %v10816_v26 = vrot.slane %v10814_v8, 2 }
 0x4b2   :  { %11167 = vmatprep.mubr.bf16.mxu0 %v10835_v61  ;;  %v22691_v0 = vpop.f32.mrf.mxu0  ;;  %21615 = vmatprep.subr.bf16.mxu1 %v23919_v53  ;;  %v25519_v53 = vld [vmem:[#allocation2 + $0xb8] sm:$0xff]  ;;  %v23946_v61 = vld [vmem:[#allocation4 + $0x70] sm:$0xff]  }
 0x4b3   :  { %21629 = vmatprep.subr.bf16.mxu0 %v23920_v63  ;;  %v10688_v63 = vld [vmem:[#allocation2 + $0x28] sm:$0xf8]  ;;  %v10817_v52 = vor.u32 %v10816_v26, %v10813_v44  ;;  %v23965_v26 = vld [vmem:[#allocation4 + $0x8] sm:$0xff]  }
 0x4b4   :  { %v8644_v21 = vpop.f32.mrf.mxu0  ;;  %v10698_v35 = vpack.c.bf16 %v25519_v53, %v10688_v63 }
 0x4b5   :  { %v8645_v20 = vadd.f32 %v8644_v21, %v8604_v50  ;;  %21616 = vmatpush3.bf16.msra.mxu1 %v23921_v9  ;;  %21630 = vmatpush3.bf16.msra.mxu0 %v23922_v43  ;;  %v10701_v50 = vpack.c.bf16 %v10691_v15, %v10691_v15  ;;  %v10590_v9 = vld [vmem:[#allocation2 + $0xc0] sm:$0xfc]  ;;  %v23944_v43 = vld [vmem:[#allocation4 + $0x258] sm:$0xff]   ;;  %v23947_v21 = vld [vmem:[#allocation4 + $0x250] sm:$0xff]  }
 0x4b6   :  { %v22692_v7 = vpop.f32.mrf.mxu0  ;;  %21617 = vmatprep.subr.bf16.mxu1 %v23923_v24  ;;  %21631 = vmatprep.subr.bf16.mxu0 %v23924_v60  ;;  %v10600_v24 = vpack.c.bf16 %v25476_v39, %v10590_v9  ;;  %v10693_v60 = vld [vmem:[#allocation2 + $0x78] sm:$0x1]  ;;  %v23949_v39 = vld [vmem:[#allocation4 + $0x68] sm:$0xff]   ;;  %v23957_v15 = vld [vmem:[#allocation4 + $0x18] sm:$0xff]  }
 0x4b7   :  { %v10819_v62 = vshll.u32 %v10701_v50, 16  ;;  %v10703_v5 = vpack.c.bf16 %v10693_v60, %v10693_v60  ;;  %v23962_v50 = vld [vmem:[#allocation4 + $0xb0] sm:$0xff]   ;;  %v10589_v9 = vld [vmem:[#allocation2 + $0x100] sm:$0xfc] }
 0x4b8   :  { %v23975_v60 = vld [vmem:[#allocation4 + $0x90] sm:$0xff]  }
 0x4b9   :  { %21618 = vmatpush3.bf16.msra.mxu1 %v23925_v57  ;;  %21632 = vmatpush3.bf16.msra.mxu0 %v23926_v3  ;;  %v10821_v56 = vrot.slane %v10819_v62, 2  ;;  %v11223_v57 = vrot.slane %v10600_v24, 1  ;;  %v23948_v3 = vld [vmem:[#allocation4 + $0x30] sm:$0xff]   ;;  %v10845_v19 = vshll.u32 %v10703_v5, 16  ;;  %v23968_v62 = vld [vmem:[#allocation4 + $0xe0] sm:$0xff]   ;;  %v23971_v24 = vld [vmem:[#allocation4 + $0xd8] sm:$0xff]  }
 0x4ba   :  { %21619 = vmatprep.subr.bf16.mxu1 %v23927_v55  ;;  %21633 = vmatprep.subr.bf16.mxu0 %v23928_v40  ;;  %v10837_v55 = vshrl.u32 %v10698_v35, 16  ;;  %v23981_v5 = vld [vmem:[#allocation4 + $0x80] sm:$0xff]  }
 0x4bb   :  { %v10822_v6 = vsel %vm2131_vm4, %v10817_v52, %v10821_v56  ;;  %v10847_v37 = vrot.slane %v10845_v19, 2  ;;  %v23970_v52 = vld [vmem:[#allocation4 + $0xa0] sm:$0xff]   ;;  %v23973_v56 = vld [vmem:[#allocation4 + $0x138] sm:$0xff]  }
 0x4bc   :  { %v10839_v42 = vrot.slane %v10837_v55, 1  ;;  %v23979_v55 = vld [vmem:[#allocation4 + $0x128] sm:$0xff]   ;;  %v23984_v19 = vld [vmem:[#allocation4 + $0x118] sm:$0xff]  }
 0x4bd   :  { %21620 = vmatpush3.bf16.msra.mxu1 %v23929_v4  ;;  %21634 = vmatpush3.bf16.msra.mxu0 %v23930_v16  ;;  %v23951_v4 = vld [vmem:[#allocation4 + $0x28] sm:$0xff]  }
 0x4be   :  { %21635 = vmatprep.subr.bf16.mxu0 %v23931_v17  ;;  %22773 = vmatprep.subr.bf16.mxu1 %v25451_v51  ;;  %v23952_v17 = vld [vmem:[#allocation4 + $0x60] sm:$0xff]  }
 0x4c0   :  { %v21409_v41 = vpop.f32.mrf.mxu1  ;;  %11127 = vmatmul.mubr.bf16.vlgmr.msra.gmra.mxu1 %v10796_v30  ;;  %v23954_v30 = vld [vmem:[#allocation4 + $0x20] sm:$0xff]  }
 0x4c1   :  { %21636 = vmatpush3.bf16.msra.mxu0 %v23932_v22  ;;  %22774 = vmatpush3.bf16.msra.mxu1 %v23933_v25  ;;  %v23953_v25 = vld [vmem:[#allocation4 + $0x240] sm:$0xff]  }
 0x4c2   :  { %v21410_v34 = vpop.f32.mrf.mxu1  ;;  %21637 = vmatprep.subr.bf16.mxu0 %v23934_v31  ;;  %22775 = vmatprep.subr.bf16.mxu1 %v25451_v51  ;;  %v10592_v31 = vld [vmem:[#allocation2 + $0x98] sm:$0xfc] }
 0x4c3   :  { %v21411_v14 = vadd.f32 %v21410_v34, %v21409_v41  ;;  %22789 = vmatprep.mubr.msk.bf16.mxu1 %vm24771_vm3, %v25451_v51  ;;  %v23941_v51 = vld [vmem:[#allocation4 + $0x1c0] sm:$0xff]   ;;  %v23956_v41 = vld [vmem:[#allocation4 + $0xf8] sm:$0xff]  }
 0x4c4   :  { %v21412_v45 = vpop.f32.mrf.mxu1  ;;  %v23958_v34 = vld [vmem:[#allocation4 + $0xb8] sm:$0xff]  }
 0x4c5   :  { %v8938_v58 = vadd.f32 %v21411_v14, %v25504_v33  ;;  %21638 = vmatpush3.bf16.msra.mxu0 %v23935_v10  ;;  %22776 = vmatpush3.bf16.msra.mxu1 %v23936_v59  ;;  %v23945_v33 = vld [vmem:[#allocation4 + $0x38] sm:$0xff]   ;;  %v10602_v14 = vpack.c.bf16 %v25489_v2, %v10592_v31  ;;  %v23986_v31 = vld [vmem:[#allocation4 + $0x2f0] sm:$0xff]  }
 0x4c6   :  { %v21413_v1 = vpop.f32.mrf.mxu1  ;;  %21639 = vmatprep.subr.bf16.mxu0 %v23937_v12  ;;  %22777 = vmatprep.subr.bf16.mxu1 %v25516_v11  ;;  %v23955_v10 = vld [vmem:[#allocation4 + $0x58] sm:$0xff]  }
 0x4c7   :  { %v21414_v49 = vadd.f32 %v21413_v1, %v21412_v45  ;;  %v11225_v45 = vrot.slane %v10602_v14, 1  ;;  %v23963_v1 = vld [vmem:[#allocation4 + $0x48] sm:$0xff]  }
 0x4c8   :  { %v23991_v14 = vld [vmem:[#allocation4 + $0x2a8] sm:$0xff]  }
 0x4c9   :  { %v8941_v54 = vadd.f32 %v21414_v49, %v8645_v20  ;;  %21640 = vmatpush3.bf16.msra.mxu0 %v23938_v32  ;;  %22778 = vmatpush3.bf16.msra.mxu1 %v23939_v38  ;;  %v10840_v20 = vshll.u32 %v10698_v35, 16  ;;  %v23959_v32 = vld [vmem:[#allocation4 + $0x50] sm:$0xff]   ;;  %v23964_v49 = vld [vmem:[#allocation4 + $0xe8] sm:$0xff]   ;;  %v23972_v35 = vld [vmem:[#allocation4 + $0x98] sm:$0xff]  }
 0x4ca   :  { %21641 = vmatprep.subr.bf16.mxu0 %v23940_v29  ;;  %22779 = vmatprep.subr.bf16.mxu1 %v25516_v11  ;;  %v23960_v38 = vld [vmem:[#allocation4 + $0xf0] sm:$0xff]  }
 0x4cb   :  { %v10842_v27 = vrot.slane %v10840_v20, 2  ;;  %v23961_v29 = vld [vmem:[#allocation4 + $0x10] sm:$0xff]   ;;  %v11601_v20 = vld [vmem:[#allocation2 + $0x60] sm:$0x3] }
 0x4cd   :  { %21642 = vmatpush3.bf16.msra.mxu0 %v23941_v51  ;;  %22780 = vmatpush3.bf16.msra.mxu1 %v23942_v47  ;;  %v10843_v12 = vor.u32 %v10842_v27, %v10839_v42  ;;  %v23966_v51 = vld [vmem:[#allocation4 + $0xa8] sm:$0xff]   ;;  %v23967_v47 = vld [vmem:[#allocation4 + $0x40] sm:$0xff]  }
 0x4ce   :  { %22781 = vmatprep.subr.bf16.mxu1 %v25516_v11  ;;  %21658 = vmatprep.subr.bf16.mxu0 %v23943_v36  ;;  %v23969_v36 = vld [vmem:[#allocation4] sm:$0xff]  }
 0x4cf   :  { %v10848_v23 = vsel %vm2131_vm4, %v10843_v12, %v10847_v37  ;;  %v23989_v37 = vld [vmem:[#allocation4 + $0x2e8] sm:$0xff]  }
 0x4d0   :  { %v21431_v0 = vpop.f32.mrf.mxu0  ;;  %11168 = vmatmul.mubr.bf16.vlgmr.msra.gmra.mxu0 %v10822_v6  ;;  %v23976_v6 = vld [vmem:[#allocation4 + $0x130] sm:$0xff]  }
 0x4d1   :  { %22782 = vmatpush3.bf16.msra.mxu1 %v23944_v43  ;;  %21659 = vmatpush3.bf16.msra.mxu0 %v23945_v33  ;;  %v10599_v43 = vpack.c.bf16 %v25499_v48, %v10589_v9 }
 0x4d2   :  { %11504 = vmatprep.mubr.bf16.mxu0 %v11223_v57  ;;  %v21432_v40 = vpop.f32.mrf.mxu0  ;;  %22783 = vmatprep.subr.bf16.mxu1 %v25516_v11  ;;  %v23977_v57 = vld [vmem:[#allocation4 + $0xc8] sm:$0xff]  }
 0x4d3   :  { %v21433_v7 = vadd.f32 %v21432_v40, %v21431_v0  ;;  %21660 = vmatprep.subr.bf16.mxu0 %v23946_v61  ;;  %v11222_v33 = vrot.slane %v10599_v43, 1  ;;  %v23974_v61 = vld [vmem:[#allocation4 + $0xd0] sm:$0xff]   ;;  %v11596_v40 = vld [vmem:[#allocation2 + $0xc0] sm:$0xf0] }
 0x4d4   :  { %v21434_v28 = vpop.f32.mrf.mxu0 }
 0x4d5   :  { %22784 = vmatpush3.bf16.msra.mxu1 %v23947_v21  ;;  %21661 = vmatpush3.bf16.msra.mxu0 %v23948_v3  ;;  %v8979_v16 = vadd.f32 %v21433_v7, %v8938_v58  ;;  %v23978_v3 = vld [vmem:[#allocation4 + $0x88] sm:$0xff]   ;;  %v10591_v7 = vld [vmem:[#allocation2 + $0x88] sm:$0xfc] }
 0x4d6   :  { %v21435_v46 = vpop.f32.mrf.mxu0  ;;  %22785 = vmatprep.subr.bf16.mxu1 %v25516_v11  ;;  %21662 = vmatprep.subr.bf16.mxu0 %v23949_v39  ;;  %v23980_v39 = vld [vmem:[#allocation4 + $0xc0] sm:$0xff]  }
 0x4d7   :  { %v21436_v22 = vadd.f32 %v21435_v46, %v21434_v28  ;;  %v23982_v28 = vld [vmem:[#allocation4 + $0x120] sm:$0xff]   ;;  %v10601_v46 = vpack.c.bf16 %v25507_v18, %v10591_v7  ;;  %v23988_v18 = vld [vmem:[#allocation4 + $0x2b0] sm:$0xff]   ;;  %v24005_v7 = vld [vmem:[#allocation4 + $0x288] sm:$0xff]  }
 0x4d9   :  { %22786 = vmatpush3.bf16.msra.mxu1 %v23950_v13  ;;  %21663 = vmatpush3.bf16.msra.mxu0 %v23951_v4  ;;  %v8982_v59 = vadd.f32 %v21436_v22, %v8941_v54  ;;  %v25543_v13 = vld [vmem:[#allocation2 + $0xa0] sm:$0xff]  ;;  %v23985_v22 = vld [vmem:[#allocation4 + $0x2b8] sm:$0xff]   ;;  %v11224_v27 = vrot.slane %v10601_v46, 1 }
 0x4da   :  { %22787 = vmatprep.subr.bf16.mxu1 %v25516_v11  ;;  %21664 = vmatprep.subr.bf16.mxu0 %v23952_v17  ;;  %v11606_v4 = vpack.c.bf16 %v25543_v13, %v11596_v40  ;;  %v23983_v17 = vld [vmem:[#allocation4 + $0x2f8] sm:$0xff]   ;;  %v11600_v40 = vld [vmem:[#allocation2] sm:$0x3] }
 0x4dd   :  { %22788 = vmatpush3.bf16.msra.mxu1 %v23953_v25  ;;  %21665 = vmatpush3.bf16.msra.mxu0 %v23954_v30  ;;  %v11708_v25 = vrot.slane %v11606_v4, 2 }
 0x4de   :  { %21666 = vmatprep.subr.bf16.mxu0 %v23955_v10  ;;  %21680 = vmatprep.subr.bf16.mxu1 %v23956_v41  ;;  %v11598_v41 = vld [vmem:[#allocation2 + $0x98] sm:$0xf0] }
 0x4e0   :  { %v9019_v8 = vpop.f32.mrf.mxu1  ;;  %22790 = vmatmul.mubr.bf16.vlgmr.msra.gmra.mxu1 %v10848_v23 }
 0x4e1   :  { %v25531_v58 = vadd.f32 %v9019_v8, %v8979_v16  ;;  %21667 = vmatpush3.bf16.msra.mxu0 %v23957_v15  ;;  %21681 = vmatpush3.bf16.msra.mxu1 %v23958_v34  ;;  %v11611_v16 = vpack.c.bf16 %v11601_v20, %v11601_v20  ;;  %v11603_v15 = vld [vmem:[#allocation2 + $0xa8] sm:$0x3]  ;;  %v23990_v34 = vld [vmem:[#allocation4 + $0x108] sm:$0xff]   ;;  %v23993_v8 = vld [vmem:[#allocation4 + $0x100] sm:$0xff]  }
 0x4e2   :  { %11545 = vmatprep.mubr.bf16.mxu1 %v11225_v45  ;;  %v22711_v2 = vpop.f32.mrf.mxu1  ;;  %21668 = vmatprep.subr.bf16.mxu0 %v23959_v32  ;;  %v23992_v32 = vld [vmem:[#allocation4 + $0x2e0] sm:$0xff]   ;;  %v10593_v45 = vld [vmem:[#allocation2 + $0x28] sm:$0xfc] }
 0x4e3   :  { %21682 = vmatprep.subr.bf16.mxu1 %v23960_v38  ;;  %v11709_v42 = vrot.slane %v11611_v16, 2  ;;  %v25552_v38 = vld [vmem:[#allocation2 + $0x8] sm:$0xff]  ;;  %v11613_v2 = vpack.c.bf16 %v11603_v15, %v11603_v15  ;;  %v24007_v16 = vld [vmem:[#allocation4 + $0x2c0] sm:$0xff]  }
 0x4e4   :  { %v9022_v44 = vpop.f32.mrf.mxu1  ;;  %v11608_v23 = vpack.c.bf16 %v25552_v38, %v11598_v41  ;;  %v24014_v41 = vld [vmem:[#allocation4 + $0x350] sm:$0xff]  }
 0x4e5   :  { %v25533_v54 = vadd.f32 %v9022_v44, %v8982_v59  ;;  %21669 = vmatpush3.bf16.msra.mxu0 %v23961_v29  ;;  %21683 = vmatpush3.bf16.msra.mxu1 %v23962_v50  ;;  %v11710_v10 = vsel %vm2678_vm5, %v11708_v25, %v11709_v42  ;;  %v23987_v59 = vld [vmem:[#allocation4 + $0x110] sm:$0xff]   ;;  %v23994_v50 = vld [vmem:[#allocation4 + $0x2a0] sm:$0xff]   ;;  %v10603_v44 = vpack.c.bf16 %v25519_v53, %v10593_v45  ;;  %v11715_v9 = vrot.slane %v11613_v2, 2  ;;  %v24017_v45 = vld [vmem:[#allocation4 + $0x348] sm:$0xff]  }
 0x4e6   :  { %v22712_v63 = vpop.f32.mrf.mxu1  ;;  %21670 = vmatprep.subr.bf16.mxu0 %v23963_v1  ;;  %21684 = vmatprep.subr.bf16.mxu1 %v23964_v49  ;;  %v23995_v1 = vld [vmem:[#allocation4 + $0x2d8] sm:$0xff]   ;;  %v24009_v42 = vld [vmem:[#allocation4 + $0x280] sm:$0xff]   ;;  %v11597_v15 = vld [vmem:[#allocation2 + $0x88] sm:$0xf0] }
 0x4e7   :  { %v11226_v43 = vrot.slane %v10603_v44, 1  ;;  %v24018_v2 = vld [vmem:[#allocation4 + $0x308] sm:$0xff]  }
 0x4e9   :  { %21671 = vmatpush3.bf16.msra.mxu0 %v23965_v26  ;;  %21685 = vmatpush3.bf16.msra.mxu1 %v23966_v51  ;;  %v23996_v26 = vld [vmem:[#allocation4 + $0x378] sm:$0xff]   ;;  %v11714_v51 = vrot.slane %v11608_v23, 2  ;;  %v11602_v23 = vld [vmem:[#allocation2 + $0xf8] sm:$0x3] }
 0x4ea   :  { %21672 = vmatprep.subr.bf16.mxu0 %v23967_v47  ;;  %21686 = vmatprep.subr.bf16.mxu1 %v23968_v62  ;;  %v23997_v62 = vld [vmem:[#allocation4 + $0x298] sm:$0xff]  }
 0x4ed   :  { %21673 = vmatpush3.bf16.msra.mxu0 %v23969_v36  ;;  %21687 = vmatpush3.bf16.msra.mxu1 %v23970_v52  ;;  %v23998_v36 = vld [vmem:[#allocation4 + $0x338] sm:$0xff]  }
 0x4ee   :  { %21688 = vmatprep.subr.bf16.mxu1 %v23971_v24  ;;  %22793 = vmatprep.subr.bf16.mxu0 %v25516_v11  ;;  %v23999_v24 = vld [vmem:[#allocation4 + $0x2d0] sm:$0xff]  }
 0x4f0   :  { %v21462_v0 = vpop.f32.mrf.mxu0  ;;  %11505 = vmatmul.mubr.bf16.vlgmr.msra.gmra.mxu0 %v11222_v33 }
 0x4f1   :  { %21689 = vmatpush3.bf16.msra.mxu1 %v23972_v35  ;;  %22794 = vmatpush3.bf16.msra.mxu0 %v23973_v56  ;;  %v24000_v35 = vld [vmem:[#allocation4 + $0x370] sm:$0xff]  }
 0x4f2   :  { %v21463_v48 = vpop.f32.mrf.mxu0  ;;  %21690 = vmatprep.subr.bf16.mxu1 %v23974_v61  ;;  %22795 = vmatprep.subr.bf16.mxu0 %v25516_v11 }
 0x4f3   :  { %v25538_v21 = vadd.f32 %v21463_v48, %v21462_v0  ;;  %22809 = vmatprep.mubr.msk.bf16.mxu0 %vm24771_vm3, %v25516_v11  ;;  %v24001_v0 = vld [vmem:[#allocation4 + $0x290] sm:$0xff]  }
 0x4f4   :  { %v21465_v49 = vpop.f32.mrf.mxu0 }
 0x4f5   :  { %21691 = vmatpush3.bf16.msra.mxu1 %v23975_v60  ;;  %22796 = vmatpush3.bf16.msra.mxu0 %v23976_v6  ;;  %v11716_v6 = vsel %vm2678_vm5, %v11714_v51, %v11715_v9 }
 0x4f6   :  { %21692 = vmatprep.subr.bf16.mxu1 %v23977_v57  ;;  %22797 = vmatprep.subr.bf16.mxu0 %v25516_v11  ;;  %v21466_v52 = vpop.f32.mrf.mxu0  ;;  %v24002_v57 = vld [vmem:[#allocation4 + $0x330] sm:$0xff]  }
 0x4f7   :  { %v21467_v53 = vadd.f32 %v21466_v52, %v21465_v49  ;;  %v24019_v49 = vld [vmem:[#allocation4 + $0x3a8] sm:$0xff]   ;;  %v24021_v52 = vld [vmem:[#allocation4 + $0x300] sm:$0xff]  }
 0x4f9   :  { %21693 = vmatpush3.bf16.msra.mxu1 %v23978_v3  ;;  %22798 = vmatpush3.bf16.msra.mxu0 %v23979_v55  ;;  %v24003_v3 = vld [vmem:[#allocation4 + $0x2c8] sm:$0xff]  }
 0x4fa   :  { %21694 = vmatprep.subr.bf16.mxu1 %v23980_v39  ;;  %22799 = vmatprep.subr.bf16.mxu0 %v25516_v11  ;;  %v24004_v55 = vld [vmem:[#allocation4 + $0x368] sm:$0xff]  }
 0x4fd   :  { %21695 = vmatpush3.bf16.msra.mxu1 %v23981_v5  ;;  %22800 = vmatpush3.bf16.msra.mxu0 %v23982_v28  ;;  %v24006_v28 = vld [vmem:[#allocation4 + $0x328] sm:$0xff]  }
 0x4fe   :  { %22801 = vmatprep.subr.bf16.mxu0 %v25516_v11  ;;  %21711 = vmatprep.subr.bf16.mxu1 %v23983_v17  ;;  %v24008_v17 = vld [vmem:[#allocation4 + $0x360] sm:$0xff]  }
 0x500   :  { %v21484_v30 = vpop.f32.mrf.mxu1  ;;  %11546 = vmatmul.mubr.bf16.vlgmr.msra.gmra.mxu1 %v11224_v27  ;;  %v24010_v27 = vld [vmem:[#allocation4 + $0x320] sm:$0xff]  }
 0x501   :  { %22802 = vmatpush3.bf16.msra.mxu0 %v23984_v19  ;;  %21712 = vmatpush3.bf16.msra.mxu1 %v23985_v22  ;;  %v25562_v19 = vld [vmem:[#allocation2 + $0x58] sm:$0xff]  ;;  %v11610_v22 = vpack.c.bf16 %v11600_v40, %v11600_v40  ;;  %v24028_v40 = vld [vmem:[#allocation4 + $0x3f0] sm:$0xff]  }
 0x502   :  { %11997 = vmatprep.mubr.bf16.mxu1 %v11710_v10  ;;  %22803 = vmatprep.subr.bf16.mxu0 %v25516_v11  ;;  %v21485_v12 = vpop.f32.mrf.mxu1  ;;  %v24011_v10 = vld [vmem:[#allocation4 + $0x358] sm:$0xff]  }
 0x503   :  { %21713 = vmatprep.subr.bf16.mxu1 %v23986_v31  ;;  %v21486_v47 = vadd.f32 %v21485_v12, %v21484_v30  ;;  %v11706_v30 = vrot.slane %v11610_v22, 2  ;;  %v12091_v12 = vld [vmem:[#allocation2 + $0xc0] sm:$0xe0] }
 0x504   :  { %v21487_v29 = vpop.f32.mrf.mxu1  ;;  %v24030_v22 = vld [vmem:[#allocation4 + $0x388] sm:$0xff]  }
 0x505   :  { %22804 = vmatpush3.bf16.msra.mxu0 %v23987_v59  ;;  %21714 = vmatpush3.bf16.msra.mxu1 %v23988_v18  ;;  %v9472_v33 = vadd.f32 %v21486_v47, %v25538_v21  ;;  %v11595_v21 = vld [vmem:[#allocation2 + $0x100] sm:$0xf0]  ;;  %v24012_v59 = vld [vmem:[#allocation4 + $0x318] sm:$0xff]   ;;  %v24020_v47 = vld [vmem:[#allocation4 + $0x340] sm:$0xff]  }
 0x506   :  { %22805 = vmatprep.subr.bf16.mxu0 %v25516_v11  ;;  %21715 = vmatprep.subr.bf16.mxu1 %v23989_v37  ;;  %v21488_v63 = vpop.f32.mrf.mxu1  ;;  %v24013_v18 = vld [vmem:[#allocation4 + $0x3b8] sm:$0xff]   ;;  %v12096_v37 = vld [vmem:[#allocation2 + $0x60] sm:$0x7] }
 0x507   :  { %v21489_v56 = vadd.f32 %v21488_v63, %v21487_v29  ;;  %v25572_v29 = vld [vmem:[#allocation2 + $0x40] sm:$0xff] }
 0x509   :  { %22806 = vmatpush3.bf16.msra.mxu0 %v23990_v34  ;;  %21716 = vmatpush3.bf16.msra.mxu1 %v23991_v14  ;;  %v9475_v20 = vadd.f32 %v21489_v56, %v21467_v53  ;;  %v12101_v34 = vpack.c.bf16 %v25543_v13, %v12091_v12  ;;  %v24015_v14 = vld [vmem:[#allocation4 + $0x310] sm:$0xff]   ;;  %v12090_v12 = vld [vmem:[#allocation2 + $0x100] sm:$0xe0] }
 0x50a   :  { %22807 = vmatprep.subr.bf16.mxu0 %v25516_v11  ;;  %21717 = vmatprep.subr.bf16.mxu1 %v23992_v32  ;;  %v24016_v32 = vld [vmem:[#allocation4 + $0x3b0] sm:$0xff]  }
 0x50b   :  { %v12211_v44 = vshll.u32 %v12101_v34, 16  ;;  %v12098_v53 = vld [vmem:[#allocation2 + $0xa8] sm:$0x7] }
 0x50d   :  { %22808 = vmatpush3.bf16.msra.mxu0 %v23993_v8  ;;  %21718 = vmatpush3.bf16.msra.mxu1 %v23994_v50  ;;  %v12106_v8 = vpack.c.bf16 %v12096_v37, %v12096_v37  ;;  %v11607_v50 = vpack.c.bf16 %v25572_v29, %v11597_v15  ;;  %v24034_v15 = vld [vmem:[#allocation4 + $0x3e0] sm:$0xff]  }
 0x50e   :  { %21719 = vmatprep.subr.bf16.mxu1 %v23995_v1  ;;  %21733 = vmatprep.subr.bf16.mxu0 %v23996_v26  ;;  %v12208_v1 = vshrl.u32 %v12101_v34, 16 }
 0x50f   :  { %v12216_v26 = vshrl.u32 %v12106_v8, 16  ;;  %v12219_v51 = vshll.u32 %v12106_v8, 16  ;;  %v11711_v63 = vrot.slane %v11607_v50, 2  ;;  %v24035_v8 = vld [vmem:[#allocation4 + $0x418] sm:$0xff]   ;;  %v12100_v50 = vpack.c.bf16 %v25562_v19, %v12090_v12  ;;  %v24055_v12 = vld [vmem:[#allocation4 + $0x450] sm:$0xff]  }
 0x510   :  { %v9512_v61 = vpop.f32.mrf.mxu0  ;;  %22810 = vmatmul.mubr.bf16.vlgmr.msra.gmra.mxu0 %v11226_v43  ;;  %v12210_v9 = vrot.slane %v12208_v1, 2  ;;  %v24022_v43 = vld [vmem:[#allocation4 + $0x3a0] sm:$0xff]  }
 0x511   :  { %v9513_v60 = vadd.f32 %v9512_v61, %v9472_v33  ;;  %21720 = vmatpush3.bf16.msra.mxu1 %v23997_v62  ;;  %21734 = vmatpush3.bf16.msra.mxu0 %v23998_v36  ;;  %v11612_v62 = vpack.c.bf16 %v11602_v23, %v11602_v23  ;;  %v12093_v36 = vld [vmem:[#allocation2 + $0x98] sm:$0xe0]  ;;  %v12221_v56 = vrot.slane %v12219_v51, 3  ;;  %v24023_v61 = vld [vmem:[#allocation4 + $0x438] sm:$0xff]  }
 0x512   :  { %12038 = vmatprep.mubr.bf16.mxu0 %v11716_v6  ;;  %v22731_v48 = vpop.f32.mrf.mxu0  ;;  %21721 = vmatprep.subr.bf16.mxu1 %v23999_v24  ;;  %v12213_v24 = vrot.slane %v12211_v44, 3  ;;  %v12103_v6 = vpack.c.bf16 %v25552_v38, %v12093_v36  ;;  %v24038_v44 = vld [vmem:[#allocation4 + $0x478] sm:$0xff]   ;;  %v24040_v36 = vld [vmem:[#allocation4 + $0x4b0] sm:$0xff]  }
 0x513   :  { %v25560_v39 = vadd.f32 %v9513_v60, %v25531_v58  ;;  %21735 = vmatprep.subr.bf16.mxu0 %v24000_v35  ;;  %v11605_v58 = vpack.c.bf16 %v25562_v19, %v11595_v21  ;;  %v12218_v35 = vrot.slane %v12216_v26, 2  ;;  %v11712_v33 = vrot.slane %v11612_v62, 2  ;;  %v24024_v60 = vld [vmem:[#allocation4 + $0x398] sm:$0xff]   ;;  %v24027_v21 = vld [vmem:[#allocation4 + $0x390] sm:$0xff]  }
 0x514   :  { %v9515_v5 = vpop.f32.mrf.mxu0  ;;  %v24039_v62 = vld [vmem:[#allocation4 + $0x410] sm:$0xff]  }
 0x515   :  { %v9516_v4 = vadd.f32 %v9515_v5, %v9475_v20  ;;  %21722 = vmatpush3.bf16.msra.mxu1 %v24001_v0  ;;  %21736 = vmatpush3.bf16.msra.mxu0 %v24002_v57  ;;  %v11705_v31 = vrot.slane %v11605_v58, 2  ;;  %v24025_v0 = vld [vmem:[#allocation4 + $0x3f8] sm:$0xff]   ;;  %v12214_v57 = vor.u32 %v12213_v24, %v12210_v9  ;;  %v12222_v48 = vor.u32 %v12221_v56, %v12218_v35  ;;  %v24026_v20 = vld [vmem:[#allocation4 + $0x430] sm:$0xff]   ;;  %v24043_v35 = vld [vmem:[#allocation4 + $0x408] sm:$0xff]  }
 0x516   :  { %v22732_v46 = vpop.f32.mrf.mxu0  ;;  %21723 = vmatprep.subr.bf16.mxu1 %v24003_v3  ;;  %21737 = vmatprep.subr.bf16.mxu0 %v24004_v55  ;;  %v12108_v3 = vpack.c.bf16 %v12098_v53, %v12098_v53  ;;  %v11713_v55 = vsel %vm2678_vm5, %v11711_v63, %v11712_v33  ;;  %v12242_v5 = vshrl.u32 %v12103_v6, 16  ;;  %v12191_v9 = vshrl.u32 %v12100_v50, 16  ;;  %v24042_v24 = vld [vmem:[#allocation4 + $0x470] sm:$0xff]   ;;  %v24044_v53 = vld [vmem:[#allocation4 + $0x4a8] sm:$0xff]  }
 0x517   :  { %v25566_v25 = vadd.f32 %v9516_v4, %v25533_v54  ;;  %v11707_v54 = vsel %vm2678_vm5, %v11705_v31, %v11706_v30  ;;  %v12245_v4 = vshll.u32 %v12103_v6, 16  ;;  %v25585_v46 = vld [vmem:[#allocation2 + $0xb0] sm:$0xff]  ;;  %v12194_v56 = vshll.u32 %v12100_v50, 16  ;;  %v24058_v50 = vld [vmem:[#allocation4 + $0x448] sm:$0xff]  }
 0x518   :  { %v12250_v58 = vshrl.u32 %v12108_v3, 16  ;;  %v12244_v31 = vrot.slane %v12242_v5, 2 }
 0x519   :  { %21724 = vmatpush3.bf16.msra.mxu1 %v24005_v7  ;;  %21738 = vmatpush3.bf16.msra.mxu0 %v24006_v28  ;;  %v12223_v7 = vsel %vm9621_vm6, %v12214_v57, %v12222_v48  ;;  %v24029_v28 = vld [vmem:[#allocation4 + $0x428] sm:$0xff]   ;;  %v12247_v30 = vrot.slane %v12245_v4, 3  ;;  %v12196_v5 = vrot.slane %v12194_v56, 3  ;;  %v24050_v4 = vld [vmem:[#allocation4 + $0x460] sm:$0xff]  }
 0x51a   :  { %21725 = vmatprep.subr.bf16.mxu1 %v24007_v16  ;;  %21739 = vmatprep.subr.bf16.mxu0 %v24008_v17  ;;  %v11604_v17 = vld [vmem:[#allocation2 + $0x78] sm:$0x3]  ;;  %v12252_v34 = vrot.slane %v12250_v58, 2  ;;  %v24046_v48 = vld [vmem:[#allocation4 + $0x468] sm:$0xff]  }
 0x51b   :  { %v12248_v51 = vor.u32 %v12247_v30, %v12244_v31  ;;  %v12097_v58 = vld [vmem:[#allocation2 + $0xf8] sm:$0x7]  ;;  %v24053_v31 = vld [vmem:[#allocation4 + $0x4f8] sm:$0xff]   ;;  %v24054_v30 = vld [vmem:[#allocation4 + $0x490] sm:$0xff]  }
 0x51d   :  { %21726 = vmatpush3.bf16.msra.mxu1 %v24009_v42  ;;  %21740 = vmatpush3.bf16.msra.mxu0 %v24010_v27  ;;  %v24031_v42 = vld [vmem:[#allocation4 + $0x3e8] sm:$0xff]   ;;  %v24032_v27 = vld [vmem:[#allocation4 + $0x420] sm:$0xff]  }
 0x51e   :  { %21741 = vmatprep.subr.bf16.mxu0 %v24011_v10  ;;  %22813 = vmatprep.subr.bf16.mxu1 %v25516_v11  ;;  %v12253_v10 = vshll.u32 %v12108_v3, 16  ;;  %v24047_v3 = vld [vmem:[#allocation4 + $0x400] sm:$0xff]  }
 0x520   :  { %11998 = vmatmul.mubr.bf16.vlgmr.msra.gmra.mxu1 %v11707_v54  ;;  %v25583_v16 = vpop.f32.mrf.mxu1  ;;  %v24033_v54 = vld [vmem:[#allocation4 + $0x380] sm:$0xff]  }
 0x521   :  { %21742 = vmatpush3.bf16.msra.mxu0 %v24012_v59  ;;  %22814 = vmatpush3.bf16.msra.mxu1 %v24013_v18  ;;  %v25591_v18 = vld [vmem:[#allocation2 + $0xb8] sm:$0xff] }
 0x522   :  { %21743 = vmatprep.subr.bf16.mxu0 %v24014_v41  ;;  %22815 = vmatprep.subr.bf16.mxu1 %v25516_v11  ;;  %v25588_v59 = vpop.f32.mrf.mxu1  ;;  %v11614_v41 = vpack.c.bf16 %v11604_v17, %v11604_v17  ;;  %v12092_v17 = vld [vmem:[#allocation2 + $0x88] sm:$0xe0] }
 0x523   :  { %22829 = vmatprep.mubr.msk.bf16.mxu1 %vm24771_vm3, %v25516_v11 }
 0x524   :  { %v25594_v23 = vpop.f32.mrf.mxu1 }
 0x525   :  { %21744 = vmatpush3.bf16.msra.mxu0 %v24015_v14  ;;  %22816 = vmatpush3.bf16.msra.mxu1 %v24016_v32  ;;  %v12255_v14 = vrot.slane %v12253_v10, 3  ;;  %v12095_v32 = vld [vmem:[#allocation2] sm:$0x7]  ;;  %v12102_v10 = vpack.c.bf16 %v25572_v29, %v12092_v17 }
 0x526   :  { %21745 = vmatprep.subr.bf16.mxu0 %v24017_v45  ;;  %22817 = vmatprep.subr.bf16.mxu1 %v25516_v11  ;;  %v24036_v45 = vld [vmem:[#allocation4 + $0x4b8] sm:$0xff]   ;;  %v12105_v26 = vpack.c.bf16 %v12095_v32, %v12095_v32  ;;  %v25598_v63 = vpop.f32.mrf.mxu1  ;;  %v12651_v29 = vld [vmem:[#allocation2 + $0x60] sm:$0xf] }
 0x528   :  { %v12199_v33 = vshrl.u32 %v12105_v26, 16 }
 0x529   :  { %21746 = vmatpush3.bf16.msra.mxu0 %v24018_v2  ;;  %22818 = vmatpush3.bf16.msra.mxu1 %v24019_v49  ;;  %v11718_v2 = vrot.slane %v11614_v41, 2  ;;  %v24037_v49 = vld [vmem:[#allocation4 + $0x3d8] sm:$0xff]  }
 0x52a   :  { %21747 = vmatprep.subr.bf16.mxu0 %v24020_v47  ;;  %22819 = vmatprep.subr.bf16.mxu1 %v25516_v11  ;;  %v12256_v47 = vor.u32 %v12255_v14, %v12252_v34  ;;  %v24057_v34 = vld [vmem:[#allocation4 + $0x488] sm:$0xff]   ;;  %v12228_v14 = vshll.u32 %v12102_v10, 16 }
 0x52d   :  { %21748 = vmatpush3.bf16.msra.mxu0 %v24021_v52  ;;  %22820 = vmatpush3.bf16.msra.mxu1 %v24022_v43  ;;  %v24041_v43 = vld [vmem:[#allocation4 + $0x3d0] sm:$0xff]  }
 0x52e   :  { %22821 = vmatprep.subr.bf16.mxu1 %v25516_v11  ;;  %21764 = vmatprep.subr.bf16.mxu0 %v24023_v61  ;;  %v11599_v11 = vld [vmem:[#allocation2 + $0x28] sm:$0xf0]  ;;  %v12257_v61 = vsel %vm9621_vm6, %v12248_v51, %v12256_v47 }
 0x52f   :  { %v11609_v37 = vpack.c.bf16 %v25591_v18, %v11599_v11  ;;  %v24051_v11 = vld [vmem:[#allocation4 + $0x498] sm:$0xff]  }
 0x530   :  { %12039 = vmatmul.mubr.bf16.vlgmr.msra.gmra.mxu0 %v11713_v55  ;;  %v24048_v55 = vld [vmem:[#allocation4 + $0x4a0] sm:$0xff]  }
 0x531   :  { %22822 = vmatpush3.bf16.msra.mxu1 %v24024_v60  ;;  %21765 = vmatpush3.bf16.msra.mxu0 %v24025_v0  ;;  %v11717_v1 = vrot.slane %v11609_v37, 2  ;;  %v12202_v60 = vshll.u32 %v12105_v26, 16  ;;  %v24045_v0 = vld [vmem:[#allocation4 + $0x3c8] sm:$0xff]   ;;  %v12107_v37 = vpack.c.bf16 %v12097_v58, %v12097_v58  ;;  %v12230_v26 = vrot.slane %v12228_v14, 3  ;;  %v24073_v14 = vld [vmem:[#allocation4 + $0x4c0] sm:$0xff]  }
 0x532   :  { %12552 = vmatprep.mubr.bf16.mxu0 %v12223_v7  ;;  %22823 = vmatprep.subr.bf16.mxu1 %v25585_v46  ;;  %v12201_v7 = vrot.slane %v12199_v33, 2  ;;  %v24063_v33 = vld [vmem:[#allocation4 + $0x578] sm:$0xff]   ;;  %v24069_v58 = vld [vmem:[#allocation4 + $0x568] sm:$0xff]  }
 0x533   :  { %21766 = vmatprep.subr.bf16.mxu0 %v24026_v20  ;;  %v11719_v52 = vsel %vm2678_vm5, %v11717_v1, %v11718_v2  ;;  %v12193_v20 = vrot.slane %v12191_v9, 2  ;;  %v12233_v32 = vshrl.u32 %v12107_v37, 16  ;;  %v24059_v1 = vld [vmem:[#allocation4 + $0x4e8] sm:$0xff]  }
 0x535   :  { %22824 = vmatpush3.bf16.msra.mxu1 %v24027_v21  ;;  %21767 = vmatpush3.bf16.msra.mxu0 %v24028_v40  ;;  %v24049_v40 = vld [vmem:[#allocation4 + $0x3c0] sm:$0xff]   ;;  %v12235_v51 = vrot.slane %v12233_v32, 2 }
 0x536   :  { %22825 = vmatprep.subr.bf16.mxu1 %v25585_v46  ;;  %21768 = vmatprep.subr.bf16.mxu0 %v24029_v28  ;;  %v12204_v28 = vrot.slane %v12202_v60, 3 }
 0x539   :  { %22826 = vmatpush3.bf16.msra.mxu1 %v24030_v22  ;;  %21769 = vmatpush3.bf16.msra.mxu0 %v24031_v42  ;;  %v12197_v22 = vor.u32 %v12196_v5, %v12193_v20  ;;  %v12205_v42 = vor.u32 %v12204_v28, %v12201_v7  ;;  %v24067_v5 = vld [vmem:[#allocation4 + $0x4d0] sm:$0xff]  }
 0x53a   :  { %22827 = vmatprep.subr.bf16.mxu1 %v25585_v46  ;;  %21770 = vmatprep.subr.bf16.mxu0 %v24032_v27  ;;  %v24052_v27 = vld [vmem:[#allocation4 + $0x458] sm:$0xff]   ;;  %v24068_v7 = vld [vmem:[#allocation4 + $0x530] sm:$0xff]  }
 0x53b   :  { %v12206_v41 = vsel %vm9621_vm6, %v12197_v22, %v12205_v42  ;;  %v12653_v42 = vld [vmem:[#allocation2 + $0xa8] sm:$0xf] }
 0x53d   :  { %22828 = vmatpush3.bf16.msra.mxu1 %v24033_v54  ;;  %21771 = vmatpush3.bf16.msra.mxu0 %v24034_v15  ;;  %v24056_v54 = vld [vmem:[#allocation4 + $0x4f0] sm:$0xff]   ;;  %v12225_v15 = vshrl.u32 %v12102_v10, 16  ;;  %v24071_v10 = vld [vmem:[#allocation4 + $0x528] sm:$0xff]  }
 0x53e   :  { %21772 = vmatprep.subr.bf16.mxu0 %v24035_v8  ;;  %21786 = vmatprep.subr.bf16.mxu1 %v24036_v45  ;;  %v12236_v8 = vshll.u32 %v12107_v37, 16  ;;  %v25612_v45 = vpop.f32.mrf.mxu0  ;;  %v24072_v37 = vld [vmem:[#allocation4 + $0x560] sm:$0xff]  }
 0x53f   :  { %v12227_v2 = vrot.slane %v12225_v15, 2 }
 0x540   :  { %v25601_v19 = vpop.f32.mrf.mxu1  ;;  %22830 = vmatmul.mubr.bf16.vlgmr.msra.gmra.mxu1 %v11719_v52  ;;  %v12238_v9 = vrot.slane %v12236_v8, 3  ;;  %v12099_v52 = vld [vmem:[#allocation2 + $0x78] sm:$0x7] }
 0x541   :  { %21773 = vmatpush3.bf16.msra.mxu0 %v24037_v49  ;;  %21787 = vmatpush3.bf16.msra.mxu1 %v24038_v44  ;;  %v12646_v49 = vld [vmem:[#allocation2 + $0xc0] sm:$0xc0]  ;;  %v24060_v44 = vld [vmem:[#allocation4 + $0x480] sm:$0xff]   ;;  %v12231_v60 = vor.u32 %v12230_v26, %v12227_v2  ;;  %v24076_v26 = vld [vmem:[#allocation4 + $0x5f8] sm:$0xff]  }
 0x542   :  { %12593 = vmatprep.mubr.bf16.mxu1 %v12257_v61  ;;  %v22751_v6 = vpop.f32.mrf.mxu1  ;;  %21774 = vmatprep.subr.bf16.mxu0 %v24039_v62  ;;  %v12656_v47 = vpack.c.bf16 %v25543_v13, %v12646_v49  ;;  %v12661_v62 = vpack.c.bf16 %v12651_v29, %v12651_v29  ;;  %v24064_v13 = vld [vmem:[#allocation4 + $0x4d8] sm:$0xff]   ;;  %v24074_v2 = vld [vmem:[#allocation4 + $0x520] sm:$0xff]  }
 0x543   :  { %21788 = vmatprep.subr.bf16.mxu1 %v24040_v36  ;;  %v12094_v36 = vld [vmem:[#allocation2 + $0x28] sm:$0xe0]  ;;  %v12239_v6 = vor.u32 %v12238_v9, %v12235_v51  ;;  %v24075_v49 = vld [vmem:[#allocation4 + $0x558] sm:$0xff]  }
 0x544   :  { %v25604_v57 = vpop.f32.mrf.mxu1  ;;  %v12104_v56 = vpack.c.bf16 %v25591_v18, %v12094_v36  ;;  %v12758_v61 = vrot.slane %v12656_v47, 3 }
 0x545   :  { %21775 = vmatpush3.bf16.msra.mxu0 %v24041_v43  ;;  %21789 = vmatpush3.bf16.msra.mxu1 %v24042_v24  ;;  %v21538_v43 = vpop.f32.mrf.mxu0  ;;  %v24061_v24 = vld [vmem:[#allocation4 + $0x440] sm:$0xff]   ;;  %v12240_v18 = vsel %vm9621_vm6, %v12231_v60, %v12239_v6 }
 0x546   :  { %v22752_v21 = vpop.f32.mrf.mxu1  ;;  %21776 = vmatprep.subr.bf16.mxu0 %v24043_v35  ;;  %21790 = vmatprep.subr.bf16.mxu1 %v24044_v53  ;;  %v24062_v35 = vld [vmem:[#allocation4 + $0x4e0] sm:$0xff]   ;;  %v12759_v53 = vrot.slane %v12661_v62, 3  ;;  %v12259_v20 = vshrl.u32 %v12104_v56, 16  ;;  %v12262_v28 = vshll.u32 %v12104_v56, 16 }
 0x548   :  { %v12760_v17 = vsel %vm10187_vm7, %v12758_v61, %v12759_v53  ;;  %v12264_v32 = vrot.slane %v12262_v28, 3 }
 0x549   :  { %21777 = vmatpush3.bf16.msra.mxu0 %v24045_v0  ;;  %21791 = vmatpush3.bf16.msra.mxu1 %v24046_v48  ;;  %v24065_v0 = vld [vmem:[#allocation4 + $0x538] sm:$0xff]   ;;  %v21540_v48 = vpop.f32.mrf.mxu0 }
 0x54a   :  { %21778 = vmatprep.subr.bf16.mxu0 %v24047_v3  ;;  %21792 = vmatprep.subr.bf16.mxu1 %v24048_v55  ;;  %v12109_v3 = vpack.c.bf16 %v12099_v52, %v12099_v52  ;;  %v24066_v55 = vld [vmem:[#allocation4 + $0x570] sm:$0xff]   ;;  %v24077_v52 = vld [vmem:[#allocation4 + $0x518] sm:$0xff]  }
 0x54b   :  { %v21541_v21 = vpop.f32.mrf.mxu0 }
 0x54c   :  { %v12270_v22 = vshll.u32 %v12109_v3, 16  ;;  %v21542_v47 = vadd.f32 %v21541_v21, %v21540_v48  ;;  %v24084_v21 = vld [vmem:[#allocation4 + $0x5e8] sm:$0xff]  }
 0x54d   :  { %21779 = vmatpush3.bf16.msra.mxu0 %v24049_v40  ;;  %21793 = vmatpush3.bf16.msra.mxu1 %v24050_v4  ;;  %v12267_v4 = vshrl.u32 %v12109_v3, 16 }
 0x54e   :  { %21794 = vmatprep.subr.bf16.mxu1 %v24051_v11  ;;  %22833 = vmatprep.subr.bf16.mxu0 %v25585_v46  ;;  %v12648_v11 = vld [vmem:[#allocation2 + $0x98] sm:$0xc0]  ;;  %v12272_v29 = vrot.slane %v12270_v22, 3 }
 0x54f   :  { %v12269_v8 = vrot.slane %v12267_v4, 2  ;;  %v12645_v4 = vld [vmem:[#allocation2 + $0x100] sm:$0xc0] }
 0x550   :  { %12553 = vmatmul.mubr.bf16.vlgmr.msra.gmra.mxu0 %v12206_v41  ;;  %v12261_v41 = vrot.slane %v12259_v20, 2 }
 0x551   :  { %21795 = vmatpush3.bf16.msra.mxu1 %v24052_v27  ;;  %22834 = vmatpush3.bf16.msra.mxu0 %v24053_v31  ;;  %v21568_v27 = vpop.f32.mrf.mxu0  ;;  %v12273_v9 = vor.u32 %v12272_v29, %v12269_v8  ;;  %v24091_v29 = vld [vmem:[#allocation4 + $0x5d8] sm:$0xff]  }
 0x552   :  { %21796 = vmatprep.subr.bf16.mxu1 %v24054_v30  ;;  %22835 = vmatprep.subr.bf16.mxu0 %v25585_v46  ;;  %v24070_v30 = vld [vmem:[#allocation4 + $0x4c8] sm:$0xff]   ;;  %v12265_v36 = vor.u32 %v12264_v32, %v12261_v41 }
 0x553   :  { %22849 = vmatprep.mubr.msk.bf16.mxu0 %vm24771_vm3, %v25585_v46  ;;  %v21569_v15 = vpop.f32.mrf.mxu0 }
 0x554   :  { %v21570_v56 = vadd.f32 %v21569_v15, %v21568_v27  ;;  %v24089_v15 = vld [vmem:[#allocation4 + $0x500] sm:$0xff]  }
 0x555   :  { %21797 = vmatpush3.bf16.msra.mxu1 %v24055_v12  ;;  %22836 = vmatpush3.bf16.msra.mxu0 %v24056_v54  ;;  %v12658_v12 = vpack.c.bf16 %v25552_v38, %v12648_v11  ;;  %v21539_v54 = vadd.f32 %v21538_v43, %v25612_v45  ;;  %v21571_v45 = vpop.f32.mrf.mxu0  ;;  %v24078_v43 = vld [vmem:[#allocation4 + $0x5b8] sm:$0xff]  }
 0x556   :  { %21798 = vmatprep.subr.bf16.mxu1 %v24057_v34  ;;  %22837 = vmatprep.subr.bf16.mxu0 %v25585_v46  ;;  %v12663_v34 = vpack.c.bf16 %v12653_v42, %v12653_v42 }
 0x557   :  { %v12764_v38 = vrot.slane %v12658_v12, 3  ;;  %v21572_v61 = vpop.f32.mrf.mxu0 }
 0x558   :  { %v12765_v51 = vrot.slane %v12663_v34, 3  ;;  %v21573_v20 = vadd.f32 %v21572_v61, %v21571_v45  ;;  %v13251_v45 = vld [vmem:[#allocation2 + $0x88] sm:$0xf8]  ;;  %v24100_v61 = vld [vmem:[#allocation4 + $0x5c0] sm:$0xff]  }
 0x559   :  { %21799 = vmatpush3.bf16.msra.mxu1 %v24058_v50  ;;  %22838 = vmatpush3.bf16.msra.mxu0 %v24059_v1  ;;  %v21517_v50 = vadd.f32 %v25588_v59, %v25583_v16 }
 0x55a   :  { %21800 = vmatprep.subr.bf16.mxu1 %v24060_v44  ;;  %22839 = vmatprep.subr.bf16.mxu0 %v25585_v46  ;;  %v12766_v3 = vsel %vm10187_vm7, %v12764_v38, %v12765_v51 }
 0x55b   :  { %v10028_v44 = vadd.f32 %v21539_v54, %v21517_v50 }
 0x55d   :  { %21801 = vmatpush3.bf16.msra.mxu1 %v24061_v24  ;;  %22840 = vmatpush3.bf16.msra.mxu0 %v24062_v35  ;;  %v10069_v16 = vadd.f32 %v25601_v19, %v10028_v44  ;;  %v24079_v24 = vld [vmem:[#allocation4 + $0x550] sm:$0xff]   ;;  %v21520_v35 = vadd.f32 %v25598_v63, %v25594_v23  ;;  %v24083_v63 = vld [vmem:[#allocation4 + $0x548] sm:$0xff]  }
 0x55e   :  { %22841 = vmatprep.subr.bf16.mxu0 %v25585_v46  ;;  %21817 = vmatprep.subr.bf16.mxu1 %v24063_v33  ;;  %v24080_v33 = vld [vmem:[#allocation4 + $0x5f0] sm:$0xff]  }
 0x55f   :  { %v10031_v53 = vadd.f32 %v21542_v47, %v21520_v35  ;;  %v10075_v19 = vadd.f32 %v10069_v16, %v25560_v39  ;;  %v24082_v23 = vld [vmem:[#allocation4 + $0x5b0] sm:$0xff]   ;;  %v24085_v39 = vld [vmem:[#allocation4 + $0x508] sm:$0xff]   ;;  %v13256_v35 = vld [vmem:[#allocation2 + $0xf8] sm:$0x1] }
 0x560   :  { %v21590_v40 = vpop.f32.mrf.mxu1  ;;  %12594 = vmatmul.mubr.bf16.vlgmr.msra.gmra.mxu1 %v12240_v18  ;;  %v24094_v44 = vld [vmem:[#allocation4 + $0x5d0] sm:$0xff]  }
 0x561   :  { %22842 = vmatpush3.bf16.msra.mxu0 %v24064_v13  ;;  %21818 = vmatpush3.bf16.msra.mxu1 %v24065_v0  ;;  %v12274_v13 = vsel %vm9621_vm6, %v12265_v36, %v12273_v9  ;;  %v24081_v0 = vld [vmem:[#allocation4 + $0x510] sm:$0xff]   ;;  %v24097_v9 = vld [vmem:[#allocation4 + $0x5c8] sm:$0xff]  }
 0x562   :  { %13047 = vmatprep.mubr.bf16.mxu1 %v12760_v17  ;;  %22843 = vmatprep.subr.bf16.mxu0 %v25585_v46  ;;  %v21591_v31 = vpop.f32.mrf.mxu1  ;;  %v24086_v17 = vld [vmem:[#allocation4 + $0x5a8] sm:$0xff]   ;;  %v24095_v47 = vld [vmem:[#allocation4 + $0x590] sm:$0xff]  }
 0x563   :  { %21819 = vmatprep.subr.bf16.mxu1 %v24066_v55  ;;  %v21592_v62 = vadd.f32 %v21591_v31, %v21590_v40  ;;  %v10072_v55 = vadd.f32 %v25604_v57, %v10031_v53  ;;  %v12650_v40 = vld [vmem:[#allocation2] sm:$0xf]  ;;  %v24088_v31 = vld [vmem:[#allocation4 + $0x5e0] sm:$0xff]   ;;  %v12647_v53 = vld [vmem:[#allocation2 + $0x88] sm:$0xc0] }
 0x564   :  { %v21593_v1 = vpop.f32.mrf.mxu1  ;;  %v24707_v57 = vld [vmem:[%s26586_s4] ss:$0 sm:$0xff]  ;;  %v12660_v41 = vpack.c.bf16 %v12650_v40, %v12650_v40 }
 0x565   :  { %22844 = vmatpush3.bf16.msra.mxu0 %v24067_v5  ;;  %21820 = vmatpush3.bf16.msra.mxu1 %v24068_v7  ;;  %v10524_v6 = vadd.f32 %v21592_v62, %v21570_v56  ;;  %v10076_v22 = vadd.f32 %v10072_v55, %v25566_v25  ;;  %v24096_v62 = vld [vmem:[#allocation4 + $0x630] sm:$0xff]   ;;  %v24102_v55 = vld [vmem:[#allocation4 + $0x620] sm:$0xff]  }
 0x566   :  { %22845 = vmatprep.subr.bf16.mxu0 %v25585_v46  ;;  %21821 = vmatprep.subr.bf16.mxu1 %v24069_v58  ;;  %v21594_v59 = vpop.f32.mrf.mxu1  ;;  %v24087_v58 = vld [vmem:[#allocation4 + $0x540] sm:$0xff]   ;;  %v12756_v8 = vrot.slane %v12660_v41, 3 }
 0x567   :  { %v21595_v60 = vadd.f32 %v21594_v59, %v21593_v1  ;;  %v24092_v1 = vld [vmem:[#allocation4 + $0x598] sm:$0xff]   ;;  %v24098_v59 = vld [vmem:[#allocation4 + $0x588] sm:$0xff]  }
 0x569   :  { %22846 = vmatpush3.bf16.msra.mxu0 %v24070_v30  ;;  %21822 = vmatpush3.bf16.msra.mxu1 %v24071_v10  ;;  %v10527_v28 = vadd.f32 %v21595_v60, %v21573_v20  ;;  %v24708_v10 = vld [vmem:[#allocation2 + $0x58] sm:$0xff] }
 0x56a   :  { %22847 = vmatprep.subr.bf16.mxu0 %v25585_v46  ;;  %21823 = vmatprep.subr.bf16.mxu1 %v24072_v37  ;;  %v12655_v37 = vpack.c.bf16 %v24708_v10, %v12645_v4  ;;  %v25654_v4 = vld [vmem:[#allocation2 + $0xb8] sm:$0xff] }
 0x56c   :  { %v12755_v32 = vrot.slane %v12655_v37, 3  ;;  %v24109_v37 = vld [vmem:[#allocation4 + $0x1a8] sm:$0xff]  }
 0x56d   :  { %22848 = vmatpush3.bf16.msra.mxu0 %v24073_v14  ;;  %21824 = vmatpush3.bf16.msra.mxu1 %v24074_v2  ;;  %v24090_v14 = vld [vmem:[#allocation4 + $0x5a0] sm:$0xff]   ;;  %v24093_v2 = vld [vmem:[#allocation4 + $0x638] sm:$0xff]  }
 0x56e   :  { %21825 = vmatprep.subr.bf16.mxu1 %v24075_v49  ;;  %21839 = vmatprep.subr.bf16.mxu0 %v24076_v26  ;;  %v25639_v49 = vld [vmem:[#allocation2 + $0x40] sm:$0xff]  ;;  %v12757_v51 = vsel %vm10187_vm7, %v12755_v32, %v12756_v8  ;;  %v24112_v8 = vld [vmem:[#allocation4 + $0x1a0] sm:$0xff]  }
 0x56f   :  { %v24111_v32 = vld [vmem:[#allocation4 + $0x168] sm:$0xff]  }
 0x570   :  { %v10564_v48 = vpop.f32.mrf.mxu0  ;;  %22850 = vmatmul.mubr.bf16.vlgmr.msra.gmra.mxu0 %v12274_v13 }
 0x571   :  { %v10565_v18 = vadd.f32 %v10564_v48, %v10524_v6  ;;  %21826 = vmatpush3.bf16.msra.mxu1 %v24077_v52  ;;  %21840 = vmatpush3.bf16.msra.mxu0 %v24078_v43  ;;  %v13261_v52 = vpack.c.bf16 %v25639_v49, %v13251_v45  ;;  %v24113_v45 = vld [vmem:[#allocation4 + $0x600] sm:$0xff]  }
 0x572   :  { %13088 = vmatprep.mubr.bf16.mxu0 %v12766_v3  ;;  %v22771_v5 = vpop.f32.mrf.mxu0  ;;  %21827 = vmatprep.subr.bf16.mxu1 %v24079_v24  ;;  %v12652_v24 = vld [vmem:[#allocation2 + $0xf8] sm:$0xf] }
 0x573   :  { %v10571_v7 = vadd.f32 %v10565_v18, %v10075_v19  ;;  %21841 = vmatprep.subr.bf16.mxu0 %v24080_v33  ;;  %v24099_v33 = vld [vmem:[#allocation4 + $0x628] sm:$0xff]   ;;  %v13364_v60 = vshrl.u32 %v13261_v52, 16  ;;  %v13367_v6 = vshll.u32 %v13261_v52, 16  ;;  %v12662_v3 = vpack.c.bf16 %v12652_v24, %v12652_v24 }
 0x574   :  { %v10567_v11 = vpop.f32.mrf.mxu0  ;;  %v24709_v19 = vld [vmem:[#allocation2 + $0x40] sm:$0xff] }
 0x575   :  { %v10573_v42 = vadd.f32 %v24707_v57, %v10571_v7  ;;  %v10568_v27 = vadd.f32 %v10567_v11, %v10527_v28  ;;  %21828 = vmatpush3.bf16.msra.mxu1 %v24081_v0  ;;  %21842 = vmatpush3.bf16.msra.mxu0 %v24082_v23  ;;  %v12657_v48 = vpack.c.bf16 %v24709_v19, %v12647_v53  ;;  %v13366_v20 = vrot.slane %v13364_v60, 1  ;;  %v24104_v7 = vld [vmem:[#allocation4 + $0x618] sm:$0xff]   ;;  %v13253_v11 = vld [vmem:[#allocation2 + $0x28] sm:$0xf8]  ;;  %v25667_v24 = vld [vmem:[#allocation2 + $0xa0] sm:$0xff] }
 0x576   :  { %v22772_v30 = vpop.f32.mrf.mxu0  ;;  %21829 = vmatprep.subr.bf16.mxu1 %v24083_v63  ;;  %21843 = vmatprep.subr.bf16.mxu0 %v24084_v21  ;;  %v13266_v23 = vpack.c.bf16 %v13256_v35, %v13256_v35  ;;  %v24101_v63 = vld [vmem:[#allocation4 + $0x580] sm:$0xff]   ;;  %v13369_v18 = vrot.slane %v13367_v6, 2  ;;  %v24103_v21 = vld [vmem:[#allocation4 + $0x1b8] sm:$0xff]   ;;  %v12762_v5 = vrot.slane %v12662_v3, 3  ;;  %v13263_v41 = vpack.c.bf16 %v25654_v4, %v13253_v11  ;;  %v24119_v53 = vld [vmem:[#allocation4 + $0x190] sm:$0xff]  }
 0x577   :  { %v10575_v12 = vmax.f32 %v10573_v42, 0.0  ;;  %v10572_v54 = vadd.f32 %v10568_v27, %v10076_v22  ;;  %v12761_v40 = vrot.slane %v12657_v48, 3  ;;  %v24105_v28 = vld [vmem:[#allocation4 + $0x178] sm:$0xff]   ;;  %v24107_v27 = vld [vmem:[#allocation4 + $0x610] sm:$0xff]   ;;  %v13258_v30 = vld [vmem:[#allocation2 + $0x78] sm:$0x1] }
 0x578   :  { %v25656_v22 = vld [vmem:[#allocation2 + $0xb0] sm:$0xff]  ;;  %v13250_v60 = vld [vmem:[#allocation2 + $0xc0] sm:$0xf8]  ;;  %v24120_v19 = vld [vmem:[#allocation4 + $0x230] sm:$0xff]  }
 0x579   :  { %v10580_v34 = vrot.slane %v10575_v12, 2  ;;  %v10574_v25 = vadd.f32 %v24707_v57, %v10572_v54  ;;  %21830 = vmatpush3.bf16.msra.mxu1 %v24085_v39  ;;  %21844 = vmatpush3.bf16.msra.mxu0 %v24086_v17  ;;  %v13372_v39 = vshll.u32 %v13266_v23, 16  ;;  %v13370_v17 = vor.u32 %v13369_v18, %v13366_v20  ;;  %v12649_v54 = vld [vmem:[#allocation2 + $0x28] sm:$0xc0]  ;;  %v13255_v20 = vld [vmem:[#allocation2 + $0x60] sm:$0x1] }
 0x57a   :  { %21831 = vmatprep.subr.bf16.mxu1 %v24087_v58  ;;  %21845 = vmatprep.subr.bf16.mxu0 %v24088_v31  ;;  %v24106_v58 = vld [vmem:[#allocation4 + $0x1b0] sm:$0xff]   ;;  %v13260_v3 = vpack.c.bf16 %v25667_v24, %v13250_v60 }
 0x57b   :  { %10586 = vst [vmem:[#allocation3 + $0x50] sm:$0xc0] %v10580_v34  ;;  %v10576_v50 = vmax.f32 %v10574_v25, 0.0  ;;  %v13374_v57 = vrot.slane %v13372_v39, 2  ;;  %v24108_v31 = vld [vmem:[#allocation4 + $0x170] sm:$0xff]  }
 0x57c   :  { %v24121_v48 = vld [vmem:[#allocation4 + $0x150] sm:$0xff]   ;;  %v13354_v39 = vshll.u32 %v13260_v3, 16 }
 0x57d   :  { %v10581_v38 = vrot.slane %v10576_v50, 2  ;;  %21832 = vmatpush3.bf16.msra.mxu1 %v24089_v15  ;;  %21846 = vmatpush3.bf16.msra.mxu0 %v24090_v14  ;;  %v13375_v10 = vsel %vm2131_vm4, %v13370_v17, %v13374_v57  ;;  %v12654_v15 = vld [vmem:[#allocation2 + $0x78] sm:$0xf]  ;;  %v24110_v14 = vld [vmem:[#allocation4 + $0x608] sm:$0xff]   ;;  %v13268_v50 = vpack.c.bf16 %v13258_v30, %v13258_v30 }
 0x57e   :  { %21847 = vmatprep.subr.bf16.mxu0 %v24091_v29  ;;  %22853 = vmatprep.subr.bf16.mxu1 %v25585_v46  ;;  %v24126_v17 = vld [vmem:[#allocation4 + $0x1e8] sm:$0xff]   ;;  %v24128_v57 = vld [vmem:[#allocation4 + $0x220] sm:$0xff]  }
 0x57f   :  { %v10582_v26 = vsel %vm2678_vm5, %v10580_v34, %v10581_v38  ;;  %10588 = vst [vmem:[#allocation3 + $0x10] sm:$0xf] %v10581_v38 }
 0x580   :  { %10587 = vst [vmem:[#allocation3 + $0x20] sm:$0xff] %v10582_v26  ;;  %v21621_v36 = vpop.f32.mrf.mxu1  ;;  %13048 = vmatmul.mubr.bf16.vlgmr.msra.gmra.mxu1 %v12757_v51  ;;  %v24711_v26 = vld [vmem:[#allocation2 + $0xb8] sm:$0xff] }
 0x581   :  { %21848 = vmatpush3.bf16.msra.mxu0 %v24092_v1  ;;  %22854 = vmatpush3.bf16.msra.mxu1 %v24093_v2  ;;  %v13390_v1 = vshrl.u32 %v13263_v41, 16  ;;  %v13393_v2 = vshll.u32 %v13263_v41, 16  ;;  %v12659_v51 = vpack.c.bf16 %v24711_v26, %v12649_v54  ;;  %v25674_v54 = vld [vmem:[#allocation2 + $0x8] sm:$0xff] }
 0x582   :  { %v21622_v43 = vpop.f32.mrf.mxu1  ;;  %21849 = vmatprep.subr.bf16.mxu0 %v24094_v44  ;;  %22855 = vmatprep.subr.bf16.mxu1 %v25585_v46 }
 0x583   :  { %v25646_v16 = vadd.f32 %v21622_v43, %v21621_v36  ;;  %22869 = vmatprep.mubr.msk.bf16.mxu1 %vm24771_vm3, %v25585_v46  ;;  %v24115_v36 = vld [vmem:[#allocation4 + $0x198] sm:$0xff]   ;;  %v13395_v52 = vrot.slane %v13393_v2, 2  ;;  %v13398_v43 = vshll.u32 %v13268_v50, 16  ;;  %v12767_v35 = vrot.slane %v12659_v51, 3  ;;  %v24136_v2 = vld [vmem:[#allocation4 + $0x270] sm:$0xff]  }
 0x584   :  { %v21624_v56 = vpop.f32.mrf.mxu1 }
 0x585   :  { %21850 = vmatpush3.bf16.msra.mxu0 %v24095_v47  ;;  %22856 = vmatpush3.bf16.msra.mxu1 %v24096_v62  ;;  %v12664_v47 = vpack.c.bf16 %v12654_v15, %v12654_v15  ;;  %v24114_v62 = vld [vmem:[#allocation4 + $0x160] sm:$0xff]  }
 0x586   :  { %v21625_v13 = vpop.f32.mrf.mxu1  ;;  %21851 = vmatprep.subr.bf16.mxu0 %v24097_v9  ;;  %22857 = vmatprep.subr.bf16.mxu1 %v25585_v46  ;;  %v13392_v9 = vrot.slane %v13390_v1, 1  ;;  %v13252_v15 = vld [vmem:[#allocation2 + $0x98] sm:$0xf8]  ;;  %v24135_v1 = vld [vmem:[#allocation4 + $0x1d0] sm:$0xff]  }
 0x587   :  { %v25651_v0 = vadd.f32 %v21625_v13, %v21624_v56  ;;  %v12768_v56 = vrot.slane %v12664_v47, 3  ;;  %v13400_v13 = vrot.slane %v13398_v43, 2  ;;  %v24139_v43 = vld [vmem:[#allocation4 + $0x268] sm:$0xff]  }
 0x588   :  { %v13396_v6 = vor.u32 %v13395_v52, %v13392_v9  ;;  %v24138_v52 = vld [vmem:[#allocation4 + $0x1c8] sm:$0xff]  }
 0x589   :  { %21852 = vmatpush3.bf16.msra.mxu0 %v24098_v59  ;;  %22858 = vmatpush3.bf16.msra.mxu1 %v24099_v33  ;;  %v24116_v59 = vld [vmem:[#allocation4 + $0x238] sm:$0xff]  }
 0x58a   :  { %21853 = vmatprep.subr.bf16.mxu0 %v24100_v61  ;;  %22859 = vmatprep.subr.bf16.mxu1 %v25585_v46  ;;  %v12763_v46 = vsel %vm10187_vm7, %v12761_v40, %v12762_v5  ;;  %v24117_v33 = vld [vmem:[#allocation4 + $0x158] sm:$0xff]   ;;  %v24124_v40 = vld [vmem:[#allocation4 + $0x228] sm:$0xff]  }
 0x58b   :  { %v24118_v61 = vld [vmem:[#allocation4 + $0x1f8] sm:$0xff]  }
 0x58d   :  { %21854 = vmatpush3.bf16.msra.mxu0 %v24101_v63  ;;  %22860 = vmatpush3.bf16.msra.mxu1 %v24102_v55  ;;  %v24122_v63 = vld [vmem:[#allocation4 + $0x1f0] sm:$0xff]   ;;  %v24123_v55 = vld [vmem:[#allocation4 + $0x188] sm:$0xff]  }
 0x58e   :  { %22861 = vmatprep.subr.bf16.mxu1 %v25656_v22  ;;  %21870 = vmatprep.subr.bf16.mxu0 %v24103_v21  ;;  %v13401_v21 = vsel %vm2131_vm4, %v13396_v6, %v13400_v13  ;;  %v24141_v6 = vld [vmem:[#allocation4 + $0x1c0] sm:$0xff]  }
 0x58f   :  { %v24142_v13 = vld [vmem:[#allocation4 + $0x260] sm:$0xff]  }
 0x590   :  { %v21643_v42 = vpop.f32.mrf.mxu0  ;;  %13089 = vmatmul.mubr.bf16.vlgmr.msra.gmra.mxu0 %v12763_v46 }
 0x591   :  { %22862 = vmatpush3.bf16.msra.mxu1 %v24104_v7  ;;  %21871 = vmatpush3.bf16.msra.mxu0 %v24105_v28  ;;  %v24125_v7 = vld [vmem:[#allocation4 + $0x148] sm:$0xff]   ;;  %v13351_v28 = vshrl.u32 %v13260_v3, 16  ;;  %v13254_v3 = vld [vmem:[#allocation2 + $0x50] sm:$0xf8] }
 0x592   :  { %13692 = vmatprep.mubr.bf16.mxu0 %v13375_v10  ;;  %v21644_v12 = vpop.f32.mrf.mxu0  ;;  %22863 = vmatprep.subr.bf16.mxu1 %v25656_v22  ;;  %v13356_v10 = vrot.slane %v13354_v39, 2 }
 0x593   :  { %v21645_v34 = vadd.f32 %v21644_v12, %v21643_v42  ;;  %21872 = vmatprep.subr.bf16.mxu0 %v24106_v58  ;;  %v24127_v58 = vld [vmem:[#allocation4 + $0x180] sm:$0xff]   ;;  %v13265_v42 = vpack.c.bf16 %v13255_v20, %v13255_v20  ;;  %v13353_v30 = vrot.slane %v13351_v28, 1  ;;  %v24131_v12 = vld [vmem:[#allocation4 + $0x218] sm:$0xff]  }
 0x594   :  { %v21646_v25 = vpop.f32.mrf.mxu0 }
 0x595   :  { %22864 = vmatpush3.bf16.msra.mxu1 %v24107_v27  ;;  %21873 = vmatpush3.bf16.msra.mxu0 %v24108_v31  ;;  %v11170_v29 = vadd.f32 %v21645_v34, %v25646_v16  ;;  %v24129_v31 = vld [vmem:[#allocation4 + $0x140] sm:$0xff]   ;;  %v13359_v41 = vshll.u32 %v13265_v42, 16  ;;  %v13357_v34 = vor.u32 %v13356_v10, %v13353_v30  ;;  %v24150_v30 = vld [vmem:[#allocation4 + $0x248] sm:$0xff]  }
 0x596   :  { %v21647_v38 = vpop.f32.mrf.mxu0  ;;  %22865 = vmatprep.subr.bf16.mxu1 %v25656_v22  ;;  %21874 = vmatprep.subr.bf16.mxu0 %v24109_v37  ;;  %v24130_v37 = vld [vmem:[#allocation4 + $0x1e0] sm:$0xff]   ;;  %v24151_v10 = vld [vmem:[#allocation4 + $0x28] sm:$0xff]  }
 0x597   :  { %v21648_v44 = vadd.f32 %v21647_v38, %v21646_v25  ;;  %v24132_v25 = vld [vmem:[#allocation4 + $0x1d8] sm:$0xff]   ;;  %v13262_v38 = vpack.c.bf16 %v25674_v54, %v13252_v15 }
 0x599   :  { %22866 = vmatpush3.bf16.msra.mxu1 %v24110_v14  ;;  %21875 = vmatpush3.bf16.msra.mxu0 %v24111_v32  ;;  %v11173_v16 = vadd.f32 %v21648_v44, %v25651_v0  ;;  %v12769_v0 = vsel %vm10187_vm7, %v12767_v35, %v12768_v56  ;;  %v24133_v14 = vld [vmem:[#allocation4 + $0x278] sm:$0xff]   ;;  %v13361_v32 = vrot.slane %v13359_v41, 2  ;;  %v24140_v35 = vld [vmem:[#allocation4 + $0x200] sm:$0xff]  }
 0x59a   :  { %22867 = vmatprep.subr.bf16.mxu1 %v25656_v22  ;;  %21876 = vmatprep.subr.bf16.mxu0 %v24112_v8  ;;  %v24134_v8 = vld [vmem:[#allocation4 + $0x210] sm:$0xff]  }
 0x59b   :  { %v13362_v50 = vsel %vm2131_vm4, %v13357_v34, %v13361_v32  ;;  %v24153_v32 = vld [vmem:[#allocation4 + $0x240] sm:$0xff]  }
 0x59d   :  { %22868 = vmatpush3.bf16.msra.mxu1 %v24113_v45  ;;  %21877 = vmatpush3.bf16.msra.mxu0 %v24114_v62  ;;  %v24137_v45 = vld [vmem:[#allocation4 + $0x208] sm:$0xff]   ;;  %v13377_v62 = vshrl.u32 %v13262_v38, 16 }
 0x59e   :  { %21878 = vmatprep.subr.bf16.mxu0 %v24115_v36  ;;  %21892 = vmatprep.subr.bf16.mxu1 %v24116_v59  ;;  %v13380_v36 = vshll.u32 %v13262_v38, 16  ;;  %v24155_v38 = vld [vmem:[#allocation4 + $0x58] sm:$0xff]  }
 0x5a0   :  { %v11210_v23 = vpop.f32.mrf.mxu1  ;;  %22870 = vmatmul.mubr.bf16.vlgmr.msra.gmra.mxu1 %v12769_v0 }
 0x5a1   :  { %v25671_v18 = vadd.f32 %v11210_v23, %v11170_v29  ;;  %21879 = vmatpush3.bf16.msra.mxu0 %v24117_v33  ;;  %21893 = vmatpush3.bf16.msra.mxu1 %v24118_v61  ;;  %v13257_v29 = vld [vmem:[#allocation2 + $0xa8] sm:$0x1]  ;;  %v13379_v61 = vrot.slane %v13377_v62, 1 }
 0x5a2   :  { %13733 = vmatprep.mubr.bf16.mxu1 %v13401_v21  ;;  %v22791_v5 = vpop.f32.mrf.mxu1  ;;  %21880 = vmatprep.subr.bf16.mxu0 %v24119_v53  ;;  %v13267_v51 = vpack.c.bf16 %v13257_v29, %v13257_v29  ;;  %v13382_v53 = vrot.slane %v13380_v36, 2  ;;  %v13259_v21 = vld [vmem:[#allocation2 + $0xe0] sm:$0x1]  ;;  %v24159_v62 = vld [vmem:[#allocation4 + $0x50] sm:$0xff]  }
 0x5a3   :  { %21894 = vmatprep.subr.bf16.mxu1 %v24120_v19  ;;  %v13156_v19 = vld [vmem:[#allocation2 + $0x88] sm:$0xfc] }
 0x5a4   :  { %v11213_v11 = vpop.f32.mrf.mxu1  ;;  %v13385_v56 = vshll.u32 %v13267_v51, 16  ;;  %v13383_v23 = vor.u32 %v13382_v53, %v13379_v61  ;;  %v13166_v20 = vpack.c.bf16 %v25639_v49, %v13156_v19  ;;  %v24157_v51 = vld [vmem:[#allocation4 + $0x18] sm:$0xff]   ;;  %v24160_v36 = vld [vmem:[#allocation4 + $0xf0] sm:$0xff]   ;;  %v24167_v19 = vld [vmem:[#allocation4 + $0x40] sm:$0xff]  }
 0x5a5   :  { %v11214_v46 = vadd.f32 %v11213_v11, %v11173_v16  ;;  %21881 = vmatpush3.bf16.msra.mxu0 %v24121_v48  ;;  %21895 = vmatpush3.bf16.msra.mxu1 %v24122_v63  ;;  %v24143_v48 = vld [vmem:[#allocation4 + $0x78] sm:$0xff]   ;;  %v24148_v11 = vld [vmem:[#allocation4 + $0x30] sm:$0xff]  }
 0x5a6   :  { %v22792_v27 = vpop.f32.mrf.mxu1  ;;  %21882 = vmatprep.subr.bf16.mxu0 %v24123_v55  ;;  %21896 = vmatprep.subr.bf16.mxu1 %v24124_v40  ;;  %v13387_v0 = vrot.slane %v13385_v56, 2  ;;  %v24144_v63 = vld [vmem:[#allocation4 + $0x258] sm:$0xff]   ;;  %v13264_v40 = vpack.c.bf16 %v25656_v22, %v13254_v3  ;;  %v13789_v39 = vrot.slane %v13166_v20, 1  ;;  %v24163_v56 = vld [vmem:[#allocation4 + $0x48] sm:$0xff]   ;;  %v24170_v3 = vld [vmem:[#allocation4 + $0xa0] sm:$0xff]  }
 0x5a7   :  { %v24145_v55 = vld [vmem:[#allocation4 + $0x38] sm:$0xff]  }
 0x5a8   :  { %v13388_v5 = vsel %vm2131_vm4, %v13383_v23, %v13387_v0  ;;  %v24168_v0 = vld [vmem:[#allocation4 + $0xe0] sm:$0xff]   ;;  %v13155_v23 = vld [vmem:[#allocation2 + $0xc0] sm:$0xfc]  ;;  %v24172_v20 = vld [vmem:[#allocation4 + $0x98] sm:$0xff]  }
 0x5a9   :  { %21883 = vmatpush3.bf16.msra.mxu0 %v24125_v7  ;;  %21897 = vmatpush3.bf16.msra.mxu1 %v24126_v17  ;;  %v24147_v7 = vld [vmem:[#allocation4 + $0x250] sm:$0xff]   ;;  %v24149_v17 = vld [vmem:[#allocation4 + $0x68] sm:$0xff]  }
 0x5aa   :  { %21884 = vmatprep.subr.bf16.mxu0 %v24127_v58  ;;  %21898 = vmatprep.subr.bf16.mxu1 %v24128_v57  ;;  %v13269_v58 = vpack.c.bf16 %v13259_v21, %v13259_v21  ;;  %v13406_v57 = vshll.u32 %v13264_v40, 16 }
 0x5ac   :  { %v13411_v15 = vshll.u32 %v13269_v58, 16 }
 0x5ad   :  { %21885 = vmatpush3.bf16.msra.mxu0 %v24129_v31  ;;  %21899 = vmatpush3.bf16.msra.mxu1 %v24130_v37 }
 0x5ae   :  { %21900 = vmatprep.subr.bf16.mxu1 %v24131_v12  ;;  %22873 = vmatprep.subr.bf16.mxu0 %v25656_v22  ;;  %v13408_v12 = vrot.slane %v13406_v57, 2  ;;  %v24179_v57 = vld [vmem:[#allocation4 + $0x128] sm:$0xff]  }
 0x5b0   :  { %v21674_v44 = vpop.f32.mrf.mxu0  ;;  %13693 = vmatmul.mubr.bf16.vlgmr.msra.gmra.mxu0 %v13362_v50  ;;  %v13413_v50 = vrot.slane %v13411_v15, 2 }
 0x5b1   :  { %21901 = vmatpush3.bf16.msra.mxu1 %v24132_v25  ;;  %22874 = vmatpush3.bf16.msra.mxu0 %v24133_v14  ;;  %v24152_v25 = vld [vmem:[#allocation4 + $0x60] sm:$0xff]  }
 0x5b2   :  { %v21675_v26 = vpop.f32.mrf.mxu0  ;;  %21902 = vmatprep.subr.bf16.mxu1 %v24134_v8  ;;  %22875 = vmatprep.subr.bf16.mxu0 %v25656_v22  ;;  %v24154_v8 = vld [vmem:[#allocation4 + $0x20] sm:$0xff]  }
 0x5b3   :  { %v21676_v47 = vadd.f32 %v21675_v26, %v21674_v44  ;;  %22889 = vmatprep.mubr.msk.bf16.mxu0 %vm24771_vm3, %v25656_v22  ;;  %v24156_v44 = vld [vmem:[#allocation4 + $0xf8] sm:$0xff]  }
 0x5b4   :  { %v21677_v9 = vpop.f32.mrf.mxu0 }
 0x5b5   :  { %v11507_v16 = vadd.f32 %v21676_v47, %v25671_v18  ;;  %21903 = vmatpush3.bf16.msra.mxu1 %v24135_v1  ;;  %22876 = vmatpush3.bf16.msra.mxu0 %v24136_v2  ;;  %v24146_v18 = vld [vmem:[#allocation4 + $0x70] sm:$0xff]   ;;  %v24158_v47 = vld [vmem:[#allocation4 + $0xb8] sm:$0xff]  }
 0x5b6   :  { %v21678_v59 = vpop.f32.mrf.mxu0  ;;  %21904 = vmatprep.subr.bf16.mxu1 %v24137_v45  ;;  %22877 = vmatprep.subr.bf16.mxu0 %v25656_v22  ;;  %v13158_v1 = vld [vmem:[#allocation2 + $0x28] sm:$0xfc] }
 0x5b7   :  { %v21679_v33 = vadd.f32 %v21678_v59, %v21677_v9  ;;  %v13168_v45 = vpack.c.bf16 %v25654_v4, %v13158_v1  ;;  %v24162_v59 = vld [vmem:[#allocation4 + $0xb0] sm:$0xff]  }
 0x5b9   :  { %v11510_v60 = vadd.f32 %v21679_v33, %v11214_v46  ;;  %21905 = vmatpush3.bf16.msra.mxu1 %v24138_v52  ;;  %22878 = vmatpush3.bf16.msra.mxu0 %v24139_v43  ;;  %v13403_v46 = vshrl.u32 %v13264_v40, 16  ;;  %v13791_v52 = vrot.slane %v13168_v45, 1  ;;  %v24164_v33 = vld [vmem:[#allocation4 + $0xe8] sm:$0xff]   ;;  %v24174_v40 = vld [vmem:[#allocation4 + $0xd0] sm:$0xff]  }
 0x5ba   :  { %21906 = vmatprep.subr.bf16.mxu1 %v24140_v35  ;;  %22879 = vmatprep.subr.bf16.mxu0 %v25656_v22  ;;  %v24188_v45 = vld [vmem:[#allocation4 + $0x2b0] sm:$0xff]  }
 0x5bb   :  { %v13405_v41 = vrot.slane %v13403_v46, 1  ;;  %v24178_v46 = vld [vmem:[#allocation4 + $0x88] sm:$0xff]  }
 0x5bd   :  { %21907 = vmatpush3.bf16.msra.mxu1 %v24141_v6  ;;  %22880 = vmatpush3.bf16.msra.mxu0 %v24142_v13  ;;  %v13409_v29 = vor.u32 %v13408_v12, %v13405_v41  ;;  %v24166_v6 = vld [vmem:[#allocation4 + $0xa8] sm:$0xff]   ;;  %v24181_v41 = vld [vmem:[#allocation4 + $0x80] sm:$0xff]  }
 0x5be   :  { %22881 = vmatprep.subr.bf16.mxu0 %v25656_v22  ;;  %21923 = vmatprep.subr.bf16.mxu1 %v24143_v48  ;;  %v24169_v48 = vld [vmem:[#allocation4] sm:$0xff]  }
 0x5bf   :  { %v13414_v26 = vsel %vm2131_vm4, %v13409_v29, %v13413_v50  ;;  %v24182_v12 = vld [vmem:[#allocation4 + $0x120] sm:$0xff]  }
 0x5c0   :  { %v21696_v28 = vpop.f32.mrf.mxu1  ;;  %13734 = vmatmul.mubr.bf16.vlgmr.msra.gmra.mxu1 %v13388_v5 }
 0x5c1   :  { %22882 = vmatpush3.bf16.msra.mxu0 %v24144_v63  ;;  %21924 = vmatpush3.bf16.msra.mxu1 %v24145_v55  ;;  %v13165_v63 = vpack.c.bf16 %v25667_v24, %v13155_v23  ;;  %v24171_v55 = vld [vmem:[#allocation4 + $0xd8] sm:$0xff]  }
 0x5c2   :  { %14070 = vmatprep.mubr.bf16.mxu1 %v13789_v39  ;;  %v21697_v42 = vpop.f32.mrf.mxu1  ;;  %22883 = vmatprep.subr.bf16.mxu0 %v25656_v22  ;;  %v24198_v23 = vld [vmem:[#allocation4 + $0x338] sm:$0xff]  }
 0x5c3   :  { %v21698_v27 = vadd.f32 %v21697_v42, %v21696_v28  ;;  %21925 = vmatprep.subr.bf16.mxu1 %v24146_v18  ;;  %v24173_v18 = vld [vmem:[#allocation4 + $0x138] sm:$0xff]   ;;  %v13788_v21 = vrot.slane %v13165_v63, 1  ;;  %v24176_v28 = vld [vmem:[#allocation4 + $0x130] sm:$0xff]  }
 0x5c4   :  { %v21699_v31 = vpop.f32.mrf.mxu1 }
 0x5c5   :  { %22884 = vmatpush3.bf16.msra.mxu0 %v24147_v7  ;;  %21926 = vmatpush3.bf16.msra.mxu1 %v24148_v11  ;;  %v11548_v37 = vadd.f32 %v21698_v27, %v11507_v16  ;;  %v24161_v16 = vld [vmem:[#allocation4 + $0x10] sm:$0xff]   ;;  %v24177_v11 = vld [vmem:[#allocation4 + $0xc8] sm:$0xff]   ;;  %v24180_v27 = vld [vmem:[#allocation4 + $0xc0] sm:$0xff]  }
 0x5c6   :  { %v21700_v34 = vpop.f32.mrf.mxu1  ;;  %22885 = vmatprep.subr.bf16.mxu0 %v25656_v22  ;;  %21927 = vmatprep.subr.bf16.mxu1 %v24149_v17  ;;  %v24175_v7 = vld [vmem:[#allocation4 + $0x90] sm:$0xff]  }
 0x5c7   :  { %v21701_v14 = vadd.f32 %v21700_v34, %v21699_v31  ;;  %v14167_v31 = vld [vmem:[#allocation2 + $0xf8] sm:$0x3] }
 0x5c8   :  { %v14177_v34 = vpack.c.bf16 %v14167_v31, %v14167_v31  ;;  %v24205_v31 = vld [vmem:[#allocation4 + $0x288] sm:$0xff]  }
 0x5c9   :  { %22886 = vmatpush3.bf16.msra.mxu0 %v24150_v30  ;;  %21928 = vmatpush3.bf16.msra.mxu1 %v24151_v10  ;;  %v11551_v2 = vadd.f32 %v21701_v14, %v11510_v60  ;;  %v24165_v60 = vld [vmem:[#allocation4 + $0x8] sm:$0xff]   ;;  %v13157_v10 = vld [vmem:[#allocation2 + $0x98] sm:$0xfc]  ;;  %v24183_v14 = vld [vmem:[#allocation4 + $0x2f8] sm:$0xff]  }
 0x5ca   :  { %22887 = vmatprep.subr.bf16.mxu0 %v25656_v22  ;;  %21929 = vmatprep.subr.bf16.mxu1 %v24152_v25  ;;  %v13167_v25 = vpack.c.bf16 %v25674_v54, %v13157_v10  ;;  %v14275_v50 = vrot.slane %v14177_v34, 2  ;;  %v24206_v10 = vld [vmem:[#allocation4 + $0x328] sm:$0xff]  }
 0x5cc   :  { %v13790_v1 = vrot.slane %v13167_v25, 1  ;;  %v24209_v25 = vld [vmem:[#allocation4 + $0x280] sm:$0xff]  }
 0x5cd   :  { %22888 = vmatpush3.bf16.msra.mxu0 %v24153_v32  ;;  %21930 = vmatpush3.bf16.msra.mxu1 %v24154_v8  ;;  %v24184_v32 = vld [vmem:[#allocation4 + $0x118] sm:$0xff]  }
 0x5ce   :  { %21931 = vmatprep.subr.bf16.mxu1 %v24155_v38  ;;  %21945 = vmatprep.subr.bf16.mxu0 %v24156_v44  ;;  %v24185_v8 = vld [vmem:[#allocation4 + $0x2b8] sm:$0xff]   ;;  %v24187_v44 = vld [vmem:[#allocation4 + $0x110] sm:$0xff]  }
 0x5d0   :  { %v11588_v9 = vpop.f32.mrf.mxu0  ;;  %22890 = vmatmul.mubr.bf16.vlgmr.msra.gmra.mxu0 %v13414_v26  ;;  %v24189_v26 = vld [vmem:[#allocation4 + $0x2e8] sm:$0xff]  }
 0x5d1   :  { %v25694_v43 = vadd.f32 %v11588_v9, %v11548_v37  ;;  %21932 = vmatpush3.bf16.msra.mxu1 %v24157_v51  ;;  %21946 = vmatpush3.bf16.msra.mxu0 %v24158_v47  ;;  %v14162_v37 = vld [vmem:[#allocation2 + $0x88] sm:$0xf0]  ;;  %v24190_v47 = vld [vmem:[#allocation4 + $0x108] sm:$0xff]   ;;  %v24192_v9 = vld [vmem:[#allocation4 + $0x2e0] sm:$0xff]  }
 0x5d2   :  { %14111 = vmatprep.mubr.bf16.mxu0 %v13791_v52  ;;  %v22811_v35 = vpop.f32.mrf.mxu0  ;;  %21933 = vmatprep.subr.bf16.mxu1 %v24159_v62  ;;  %v14172_v15 = vpack.c.bf16 %v25639_v49, %v14162_v37  ;;  %v24191_v62 = vld [vmem:[#allocation4 + $0x2a8] sm:$0xff]   ;;  %v14164_v52 = vld [vmem:[#allocation2 + $0x28] sm:$0xf0] }
 0x5d3   :  { %21947 = vmatprep.subr.bf16.mxu0 %v24160_v36  ;;  %v13159_v36 = vld [vmem:[#allocation2 + $0x50] sm:$0xfc] }
 0x5d4   :  { %v11591_v61 = vpop.f32.mrf.mxu0  ;;  %v14274_v29 = vrot.slane %v14172_v15, 2  ;;  %v13169_v35 = vpack.c.bf16 %v25656_v22, %v13159_v36  ;;  %v14161_v15 = vld [vmem:[#allocation2 + $0xc0] sm:$0xf0]  ;;  %v14163_v36 = vld [vmem:[#allocation2 + $0x98] sm:$0xf0] }
 0x5d5   :  { %v25696_v53 = vadd.f32 %v11591_v61, %v11551_v2  ;;  %21934 = vmatpush3.bf16.msra.mxu1 %v24161_v16  ;;  %21948 = vmatpush3.bf16.msra.mxu0 %v24162_v59  ;;  %v24186_v2 = vld [vmem:[#allocation4 + $0x2f0] sm:$0xff]   ;;  %v14169_v16 = vld [vmem:[#allocation2 + $0x78] sm:$0x3]  ;;  %v14174_v61 = vpack.c.bf16 %v25654_v4, %v14164_v52  ;;  %v24218_v52 = vld [vmem:[#allocation4 + $0x308] sm:$0xff]  }
 0x5d6   :  { %v22812_v13 = vpop.f32.mrf.mxu0  ;;  %21935 = vmatprep.subr.bf16.mxu1 %v24163_v56  ;;  %21949 = vmatprep.subr.bf16.mxu0 %v24164_v33  ;;  %v14276_v49 = vsel %vm2678_vm5, %v14274_v29, %v14275_v50  ;;  %v24193_v56 = vld [vmem:[#allocation4 + $0x100] sm:$0xff]   ;;  %v24212_v50 = vld [vmem:[#allocation4 + $0x318] sm:$0xff]  }
 0x5d7   :  { %v24194_v33 = vld [vmem:[#allocation4 + $0x2a0] sm:$0xff]   ;;  %v24196_v13 = vld [vmem:[#allocation4 + $0x378] sm:$0xff]   ;;  %v14280_v63 = vrot.slane %v14174_v61, 2 }
 0x5d8   :  { %v24220_v61 = vld [vmem:[#allocation4 + $0x340] sm:$0xff]  }
 0x5d9   :  { %21936 = vmatpush3.bf16.msra.mxu1 %v24165_v60  ;;  %21950 = vmatpush3.bf16.msra.mxu0 %v24166_v6  ;;  %v14179_v60 = vpack.c.bf16 %v14169_v16, %v14169_v16  ;;  %v24195_v6 = vld [vmem:[#allocation4 + $0x2d8] sm:$0xff]   ;;  %v24219_v16 = vld [vmem:[#allocation4 + $0x3a8] sm:$0xff]  }
 0x5da   :  { %21937 = vmatprep.subr.bf16.mxu1 %v24167_v19  ;;  %21951 = vmatprep.subr.bf16.mxu0 %v24168_v0 }
 0x5dd   :  { %21938 = vmatpush3.bf16.msra.mxu1 %v24169_v48  ;;  %21952 = vmatpush3.bf16.msra.mxu0 %v24170_v3  ;;  %v13792_v48 = vrot.slane %v13169_v35, 1  ;;  %v24197_v3 = vld [vmem:[#allocation4 + $0x298] sm:$0xff]  }
 0x5de   :  { %21953 = vmatprep.subr.bf16.mxu0 %v24171_v55  ;;  %22893 = vmatprep.subr.bf16.mxu1 %v25656_v22  ;;  %v14281_v55 = vrot.slane %v14179_v60, 2  ;;  %v14173_v60 = vpack.c.bf16 %v25674_v54, %v14163_v36 }
 0x5e0   :  { %v21727_v5 = vpop.f32.mrf.mxu1  ;;  %14071 = vmatmul.mubr.bf16.vlgmr.msra.gmra.mxu1 %v13788_v21  ;;  %v24200_v21 = vld [vmem:[#allocation4 + $0x370] sm:$0xff]  }
 0x5e1   :  { %21954 = vmatpush3.bf16.msra.mxu0 %v24172_v20  ;;  %22894 = vmatpush3.bf16.msra.mxu1 %v24173_v18  ;;  %v24199_v20 = vld [vmem:[#allocation4 + $0x2d0] sm:$0xff]  }
 0x5e2   :  { %v21728_v39 = vpop.f32.mrf.mxu1  ;;  %21955 = vmatprep.subr.bf16.mxu0 %v24174_v40  ;;  %22895 = vmatprep.subr.bf16.mxu1 %v25656_v22 }
 0x5e3   :  { %v25701_v17 = vadd.f32 %v21728_v39, %v21727_v5  ;;  %22909 = vmatprep.mubr.msk.bf16.mxu1 %vm24771_vm3, %v25656_v22  ;;  %v14282_v5 = vsel %vm2678_vm5, %v14280_v63, %v14281_v55  ;;  %v24223_v63 = vld [vmem:[#allocation4 + $0x438] sm:$0xff]   ;;  %v14277_v55 = vrot.slane %v14173_v60, 2  ;;  %v25760_v60 = vld [vmem:[#allocation2 + $0xa0] sm:$0xff] }
 0x5e4   :  { %v21730_v58 = vpop.f32.mrf.mxu1 }
 0x5e5   :  { %21956 = vmatpush3.bf16.msra.mxu0 %v24175_v7  ;;  %22896 = vmatpush3.bf16.msra.mxu1 %v24176_v28  ;;  %v24201_v7 = vld [vmem:[#allocation4 + $0x290] sm:$0xff]  }
 0x5e6   :  { %v21731_v42 = vpop.f32.mrf.mxu1  ;;  %21957 = vmatprep.subr.bf16.mxu0 %v24177_v11  ;;  %22897 = vmatprep.subr.bf16.mxu1 %v25656_v22  ;;  %v24202_v28 = vld [vmem:[#allocation4 + $0x330] sm:$0xff]   ;;  %v24203_v11 = vld [vmem:[#allocation4 + $0x2c8] sm:$0xff]  }
 0x5e7   :  { %v25706_v30 = vadd.f32 %v21731_v42, %v21730_v58  ;;  %v24204_v58 = vld [vmem:[#allocation4 + $0x368] sm:$0xff]  }
 0x5e8   :  { %v14166_v42 = vld [vmem:[#allocation2 + $0x60] sm:$0x3] }
 0x5e9   :  { %21958 = vmatpush3.bf16.msra.mxu0 %v24178_v46  ;;  %22898 = vmatpush3.bf16.msra.mxu1 %v24179_v57 }
 0x5ea   :  { %21959 = vmatprep.subr.bf16.mxu0 %v24180_v27  ;;  %22899 = vmatprep.subr.bf16.mxu1 %v25656_v22 }
 0x5ed   :  { %21960 = vmatpush3.bf16.msra.mxu0 %v24181_v41  ;;  %22900 = vmatpush3.bf16.msra.mxu1 %v24182_v12  ;;  %v24207_v41 = vld [vmem:[#allocation4 + $0x2c0] sm:$0xff]  }
 0x5ee   :  { %22901 = vmatprep.subr.bf16.mxu1 %v25656_v22  ;;  %21976 = vmatprep.subr.bf16.mxu0 %v24183_v14  ;;  %v24208_v12 = vld [vmem:[#allocation4 + $0x360] sm:$0xff]  }
 0x5ef   :  { %v24210_v14 = vld [vmem:[#allocation4 + $0x320] sm:$0xff]  }
 0x5f0   :  { %v21749_v38 = vpop.f32.mrf.mxu0  ;;  %14112 = vmatmul.mubr.bf16.vlgmr.msra.gmra.mxu0 %v13790_v1  ;;  %v24213_v1 = vld [vmem:[#allocation4 + $0x3b8] sm:$0xff]  }
 0x5f1   :  { %22902 = vmatpush3.bf16.msra.mxu1 %v24184_v32  ;;  %21977 = vmatpush3.bf16.msra.mxu0 %v24185_v8  ;;  %v24211_v32 = vld [vmem:[#allocation4 + $0x358] sm:$0xff]  }
 0x5f2   :  { %14563 = vmatprep.mubr.bf16.mxu0 %v14276_v49  ;;  %22903 = vmatprep.subr.bf16.mxu1 %v25656_v22  ;;  %v21750_v51 = vpop.f32.mrf.mxu0  ;;  %v14657_v49 = vld [vmem:[#allocation2 + $0x88] sm:$0xe0] }
 0x5f3   :  { %21978 = vmatprep.subr.bf16.mxu0 %v24186_v2  ;;  %v21751_v19 = vadd.f32 %v21750_v51, %v21749_v38  ;;  %v25728_v2 = vld [vmem:[#allocation2 + $0xb0] sm:$0xff] }
 0x5f4   :  { %v21752_v59 = vpop.f32.mrf.mxu0 }
 0x5f5   :  { %22904 = vmatpush3.bf16.msra.mxu1 %v24187_v44  ;;  %21979 = vmatpush3.bf16.msra.mxu0 %v24188_v45  ;;  %v12041_v4 = vadd.f32 %v21751_v19, %v25701_v17  ;;  %v24215_v44 = vld [vmem:[#allocation4 + $0x310] sm:$0xff]   ;;  %v24222_v19 = vld [vmem:[#allocation4 + $0x3a0] sm:$0xff]  }
 0x5f6   :  { %22905 = vmatprep.subr.bf16.mxu1 %v25656_v22  ;;  %21980 = vmatprep.subr.bf16.mxu0 %v24189_v26  ;;  %v21753_v0 = vpop.f32.mrf.mxu0  ;;  %v24216_v45 = vld [vmem:[#allocation4 + $0x3b0] sm:$0xff]   ;;  %v25732_v26 = vld [vmem:[#allocation2 + $0x40] sm:$0xff] }
 0x5f7   :  { %v21754_v18 = vadd.f32 %v21753_v0, %v21752_v59  ;;  %v14667_v51 = vpack.c.bf16 %v25732_v26, %v14657_v49 }
 0x5f9   :  { %22906 = vmatpush3.bf16.msra.mxu1 %v24190_v47  ;;  %21981 = vmatpush3.bf16.msra.mxu0 %v24191_v62  ;;  %v12044_v17 = vadd.f32 %v21754_v18, %v25706_v30  ;;  %v14176_v30 = vpack.c.bf16 %v14166_v42, %v14166_v42  ;;  %v24217_v62 = vld [vmem:[#allocation4 + $0x348] sm:$0xff]   ;;  %v14774_v59 = vshrl.u32 %v14667_v51, 16  ;;  %v14777_v35 = vshll.u32 %v14667_v51, 16  ;;  %v24224_v18 = vld [vmem:[#allocation4 + $0x398] sm:$0xff]  }
 0x5fa   :  { %22907 = vmatprep.subr.bf16.mxu1 %v25656_v22  ;;  %21982 = vmatprep.subr.bf16.mxu0 %v24192_v9  ;;  %v14168_v9 = vld [vmem:[#allocation2 + $0xa8] sm:$0x3]  ;;  %v24235_v51 = vld [vmem:[#allocation4 + $0x418] sm:$0xff]  }
 0x5fb   :  { %v14272_v29 = vrot.slane %v14176_v30, 2  ;;  %v14776_v0 = vrot.slane %v14774_v59, 2 }
 0x5fd   :  { %22908 = vmatpush3.bf16.msra.mxu1 %v24193_v56  ;;  %21983 = vmatpush3.bf16.msra.mxu0 %v24194_v33 }
 0x5fe   :  { %21984 = vmatprep.subr.bf16.mxu0 %v24195_v6  ;;  %21998 = vmatprep.subr.bf16.mxu1 %v24196_v13  ;;  %v14178_v6 = vpack.c.bf16 %v14168_v9, %v14168_v9  ;;  %v24221_v13 = vld [vmem:[#allocation4 + $0x300] sm:$0xff]   ;;  %v24237_v9 = vld [vmem:[#allocation4 + $0x3d8] sm:$0xff]  }
 0x600   :  { %v12081_v22 = vpop.f32.mrf.mxu1  ;;  %22910 = vmatmul.mubr.bf16.vlgmr.msra.gmra.mxu1 %v13792_v48  ;;  %v14779_v48 = vrot.slane %v14777_v35, 3 }
 0x601   :  { %v12082_v40 = vadd.f32 %v12081_v22, %v12041_v4  ;;  %21985 = vmatpush3.bf16.msra.mxu0 %v24197_v3  ;;  %21999 = vmatpush3.bf16.msra.mxu1 %v24198_v23  ;;  %v24225_v4 = vld [vmem:[#allocation4 + $0x3f8] sm:$0xff]   ;;  %v14659_v22 = vld [vmem:[#allocation2 + $0x28] sm:$0xe0] }
 0x602   :  { %14604 = vmatprep.mubr.bf16.mxu1 %v14282_v5  ;;  %v22831_v39 = vpop.f32.mrf.mxu1  ;;  %21986 = vmatprep.subr.bf16.mxu0 %v24199_v20  ;;  %v14278_v20 = vrot.slane %v14178_v6, 2  ;;  %v14780_v54 = vor.u32 %v14779_v48, %v14776_v0  ;;  %v24241_v48 = vld [vmem:[#allocation4 + $0x3d0] sm:$0xff]  }
 0x603   :  { %v25721_v46 = vadd.f32 %v12082_v40, %v25694_v43  ;;  %22000 = vmatprep.subr.bf16.mxu1 %v24200_v21  ;;  %v14171_v43 = vpack.c.bf16 %v25667_v24, %v14161_v15  ;;  %v24214_v24 = vld [vmem:[#allocation4 + $0x350] sm:$0xff]   ;;  %v14664_v40 = vld [vmem:[#allocation2 + $0x78] sm:$0x7]  ;;  %v24231_v15 = vld [vmem:[#allocation4 + $0x3e8] sm:$0xff]  }
 0x604   :  { %v12084_v57 = vpop.f32.mrf.mxu1  ;;  %v14279_v5 = vsel %vm2678_vm5, %v14277_v55, %v14278_v20  ;;  %v24244_v55 = vld [vmem:[#allocation4 + $0x4a8] sm:$0xff]  }
 0x605   :  { %v12085_v27 = vadd.f32 %v12084_v57, %v12044_v17  ;;  %21987 = vmatpush3.bf16.msra.mxu0 %v24201_v7  ;;  %22001 = vmatpush3.bf16.msra.mxu1 %v24202_v28  ;;  %v14271_v8 = vrot.slane %v14171_v43, 2  ;;  %v24226_v7 = vld [vmem:[#allocation4 + $0x430] sm:$0xff]   ;;  %v25743_v28 = vld [vmem:[#allocation2 + $0xb8] sm:$0xff]  ;;  %v14674_v57 = vpack.c.bf16 %v14664_v40, %v14664_v40  ;;  %v24246_v40 = vld [vmem:[#allocation4 + $0x468] sm:$0xff]  }
 0x606   :  { %v22832_v37 = vpop.f32.mrf.mxu1  ;;  %21988 = vmatprep.subr.bf16.mxu0 %v24203_v11  ;;  %22002 = vmatprep.subr.bf16.mxu1 %v24204_v58  ;;  %v14669_v39 = vpack.c.bf16 %v25743_v28, %v14659_v22  ;;  %v24227_v58 = vld [vmem:[#allocation4 + $0x390] sm:$0xff]   ;;  %v24245_v22 = vld [vmem:[#allocation4 + $0x3c8] sm:$0xff]  }
 0x607   :  { %v25725_v34 = vadd.f32 %v12085_v27, %v25696_v53  ;;  %v14662_v53 = vld [vmem:[#allocation2 + $0xf8] sm:$0x7]  ;;  %v14273_v38 = vsel %vm2678_vm5, %v14271_v8, %v14272_v29  ;;  %v24228_v17 = vld [vmem:[#allocation4 + $0x3f0] sm:$0xff]   ;;  %v24229_v27 = vld [vmem:[#allocation4 + $0x428] sm:$0xff]  }
 0x608   :  { %v14672_v47 = vpack.c.bf16 %v14662_v53, %v14662_v53  ;;  %v14808_v37 = vshrl.u32 %v14669_v39, 16  ;;  %v24232_v8 = vld [vmem:[#allocation4 + $0x420] sm:$0xff]  }
 0x609   :  { %21989 = vmatpush3.bf16.msra.mxu0 %v24205_v31  ;;  %22003 = vmatpush3.bf16.msra.mxu1 %v24206_v10  ;;  %v14165_v31 = vld [vmem:[#allocation2 + $0x50] sm:$0xf0]  ;;  %v14170_v10 = vld [vmem:[#allocation2 + $0xe0] sm:$0x3] }
 0x60a   :  { %21990 = vmatprep.subr.bf16.mxu0 %v24207_v41  ;;  %22004 = vmatprep.subr.bf16.mxu1 %v24208_v12  ;;  %v14782_v56 = vshrl.u32 %v14672_v47, 16  ;;  %v14785_v33 = vshll.u32 %v14672_v47, 16  ;;  %v14811_v41 = vshll.u32 %v14669_v39, 16  ;;  %v24230_v12 = vld [vmem:[#allocation4 + $0x388] sm:$0xff]   ;;  %v14175_v43 = vpack.c.bf16 %v25728_v2, %v14165_v31  ;;  %v24236_v47 = vld [vmem:[#allocation4 + $0x4b8] sm:$0xff]   ;;  %v24248_v39 = vld [vmem:[#allocation4 + $0x4a0] sm:$0xff]  }
 0x60b   :  { %v14180_v30 = vpack.c.bf16 %v14170_v10, %v14170_v10  ;;  %v14810_v29 = vrot.slane %v14808_v37, 2  ;;  %v24250_v31 = vld [vmem:[#allocation4 + $0x460] sm:$0xff]   ;;  %v24251_v10 = vld [vmem:[#allocation4 + $0x498] sm:$0xff]  }
 0x60c   :  { %v14784_v3 = vrot.slane %v14782_v56, 2  ;;  %v14787_v23 = vrot.slane %v14785_v33, 3  ;;  %v14283_v53 = vrot.slane %v14175_v43, 2  ;;  %v24239_v56 = vld [vmem:[#allocation4 + $0x410] sm:$0xff]   ;;  %v14656_v33 = vld [vmem:[#allocation2 + $0xc0] sm:$0xe0] }
 0x60d   :  { %21991 = vmatpush3.bf16.msra.mxu0 %v24209_v25  ;;  %22005 = vmatpush3.bf16.msra.mxu1 %v24210_v14  ;;  %v14816_v25 = vshrl.u32 %v14674_v57, 16  ;;  %v14819_v14 = vshll.u32 %v14674_v57, 16  ;;  %v14666_v6 = vpack.c.bf16 %v25760_v60, %v14656_v33  ;;  %v24252_v43 = vld [vmem:[#allocation4 + $0x458] sm:$0xff]  }
 0x60e   :  { %22006 = vmatprep.subr.bf16.mxu1 %v24211_v32  ;;  %22913 = vmatprep.subr.bf16.mxu0 %v25728_v2  ;;  %v14788_v21 = vor.u32 %v14787_v23, %v14784_v3  ;;  %v24242_v3 = vld [vmem:[#allocation4 + $0x470] sm:$0xff]  }
 0x60f   :  { %v14818_v49 = vrot.slane %v14816_v25, 2  ;;  %v14757_v20 = vshrl.u32 %v14666_v6, 16  ;;  %v24254_v25 = vld [vmem:[#allocation4 + $0x490] sm:$0xff]  }
 0x610   :  { %14564 = vmatmul.mubr.bf16.vlgmr.msra.gmra.mxu0 %v14273_v38  ;;  %v14789_v11 = vsel %vm9621_vm6, %v14780_v54, %v14788_v21  ;;  %v25747_v42 = vpop.f32.mrf.mxu0  ;;  %v14284_v38 = vrot.slane %v14180_v30, 2  ;;  %v24253_v30 = vld [vmem:[#allocation4 + $0x4f8] sm:$0xff]  }
 0x611   :  { %22007 = vmatpush3.bf16.msra.mxu1 %v24212_v50  ;;  %22914 = vmatpush3.bf16.msra.mxu0 %v24213_v1  ;;  %v14813_v50 = vrot.slane %v14811_v41, 3  ;;  %v24233_v1 = vld [vmem:[#allocation4 + $0x380] sm:$0xff]  }
 0x612   :  { %22008 = vmatprep.subr.bf16.mxu1 %v24214_v24  ;;  %22915 = vmatprep.subr.bf16.mxu0 %v25728_v2  ;;  %v25751_v32 = vpop.f32.mrf.mxu0  ;;  %v24234_v24 = vld [vmem:[#allocation4 + $0x3e0] sm:$0xff]   ;;  %v14285_v36 = vsel %vm2678_vm5, %v14283_v53, %v14284_v38  ;;  %v24257_v53 = vld [vmem:[#allocation4 + $0x488] sm:$0xff]  }
 0x613   :  { %22929 = vmatprep.mubr.msk.bf16.mxu0 %vm24771_vm3, %v25728_v2 }
 0x615   :  { %22009 = vmatpush3.bf16.msra.mxu1 %v24215_v44  ;;  %22916 = vmatpush3.bf16.msra.mxu0 %v24216_v45  ;;  %v14821_v44 = vrot.slane %v14819_v14, 3  ;;  %v25754_v45 = vpop.f32.mrf.mxu0 }
 0x616   :  { %22010 = vmatprep.subr.bf16.mxu1 %v24217_v62  ;;  %22917 = vmatprep.subr.bf16.mxu0 %v25728_v2  ;;  %v14661_v62 = vld [vmem:[#allocation2 + $0x60] sm:$0x7] }
 0x617   :  { %v14822_v59 = vor.u32 %v14821_v44, %v14818_v49  ;;  %v25758_v35 = vpop.f32.mrf.mxu0 }
 0x619   :  { %22011 = vmatpush3.bf16.msra.mxu1 %v24218_v52  ;;  %22918 = vmatpush3.bf16.msra.mxu0 %v24219_v16  ;;  %v24238_v52 = vld [vmem:[#allocation4 + $0x478] sm:$0xff]   ;;  %v14814_v16 = vor.u32 %v14813_v50, %v14810_v29 }
 0x61a   :  { %22012 = vmatprep.subr.bf16.mxu1 %v24220_v61  ;;  %22919 = vmatprep.subr.bf16.mxu0 %v25728_v2  ;;  %v24240_v61 = vld [vmem:[#allocation4 + $0x4b0] sm:$0xff]  }
 0x61b   :  { %v14823_v0 = vsel %vm9621_vm6, %v14814_v16, %v14822_v59 }
 0x61d   :  { %22013 = vmatpush3.bf16.msra.mxu1 %v24221_v13  ;;  %22920 = vmatpush3.bf16.msra.mxu0 %v24222_v19  ;;  %v14671_v13 = vpack.c.bf16 %v14661_v62, %v14661_v62  ;;  %v24258_v62 = vld [vmem:[#allocation4 + $0x448] sm:$0xff]  }
 0x61e   :  { %22921 = vmatprep.subr.bf16.mxu0 %v25728_v2  ;;  %22029 = vmatprep.subr.bf16.mxu1 %v24223_v63  ;;  %v24243_v63 = vld [vmem:[#allocation4 + $0x408] sm:$0xff]  }
 0x61f   :  { %v14768_v54 = vshll.u32 %v14671_v13, 16 }
 0x620   :  { %14605 = vmatmul.mubr.bf16.vlgmr.msra.gmra.mxu1 %v14279_v5 }
 0x621   :  { %22922 = vmatpush3.bf16.msra.mxu0 %v24224_v18  ;;  %22030 = vmatpush3.bf16.msra.mxu1 %v24225_v4  ;;  %v14760_v18 = vshll.u32 %v14666_v6, 16  ;;  %v14765_v4 = vshrl.u32 %v14671_v13, 16  ;;  %v14770_v57 = vrot.slane %v14768_v54, 3 }
 0x622   :  { %15118 = vmatprep.mubr.bf16.mxu1 %v14789_v11  ;;  %22923 = vmatprep.subr.bf16.mxu0 %v25728_v2  ;;  %v14759_v11 = vrot.slane %v14757_v20, 2 }
 0x623   :  { %22031 = vmatprep.subr.bf16.mxu1 %v24226_v7  ;;  %v24247_v7 = vld [vmem:[#allocation4 + $0x400] sm:$0xff]  }
 0x625   :  { %22924 = vmatpush3.bf16.msra.mxu0 %v24227_v58  ;;  %22032 = vmatpush3.bf16.msra.mxu1 %v24228_v17  ;;  %v14762_v58 = vrot.slane %v14760_v18, 3  ;;  %v14767_v17 = vrot.slane %v14765_v4, 2 }
 0x626   :  { %22925 = vmatprep.subr.bf16.mxu0 %v25728_v2  ;;  %22033 = vmatprep.subr.bf16.mxu1 %v24229_v27  ;;  %v24249_v27 = vld [vmem:[#allocation4 + $0x3c0] sm:$0xff]  }
 0x627   :  { %v14763_v37 = vor.u32 %v14762_v58, %v14759_v11  ;;  %v14771_v41 = vor.u32 %v14770_v57, %v14767_v17  ;;  %v24266_v11 = vld [vmem:[#allocation4 + $0x570] sm:$0xff]  }
 0x629   :  { %22926 = vmatpush3.bf16.msra.mxu0 %v24230_v12  ;;  %22034 = vmatpush3.bf16.msra.mxu1 %v24231_v15  ;;  %v14658_v12 = vld [vmem:[#allocation2 + $0x98] sm:$0xe0]  ;;  %v14663_v15 = vld [vmem:[#allocation2 + $0xa8] sm:$0x7]  ;;  %v14772_v14 = vsel %vm9621_vm6, %v14763_v37, %v14771_v41 }
 0x62a   :  { %22927 = vmatprep.subr.bf16.mxu0 %v25728_v2  ;;  %22035 = vmatprep.subr.bf16.mxu1 %v24232_v8  ;;  %v25770_v8 = vld [vmem:[#allocation2 + $0x8] sm:$0xff]  ;;  %v14673_v50 = vpack.c.bf16 %v14663_v15, %v14663_v15 }
 0x62b   :  { %v14668_v29 = vpack.c.bf16 %v25770_v8, %v14658_v12 }
 0x62c   :  { %v14799_v44 = vshrl.u32 %v14673_v50, 16 }
 0x62d   :  { %22928 = vmatpush3.bf16.msra.mxu0 %v24233_v1  ;;  %22036 = vmatpush3.bf16.msra.mxu1 %v24234_v24  ;;  %v24255_v1 = vld [vmem:[#allocation4 + $0x450] sm:$0xff]   ;;  %v14791_v38 = vshrl.u32 %v14668_v29, 16  ;;  %v14794_v49 = vshll.u32 %v14668_v29, 16  ;;  %v24270_v29 = vld [vmem:[#allocation4 + $0x4c8] sm:$0xff]  }
 0x62e   :  { %22037 = vmatprep.subr.bf16.mxu1 %v24235_v51  ;;  %22051 = vmatprep.subr.bf16.mxu0 %v24236_v47  ;;  %v24256_v24 = vld [vmem:[#allocation4 + $0x4f0] sm:$0xff]   ;;  %v14802_v51 = vshll.u32 %v14673_v50, 16  ;;  %v25776_v47 = vpop.f32.mrf.mxu1  ;;  %v24271_v50 = vld [vmem:[#allocation4 + $0x528] sm:$0xff]  }
 0x62f   :  { %v14793_v16 = vrot.slane %v14791_v38, 2  ;;  %v14796_v59 = vrot.slane %v14794_v49, 3 }
 0x630   :  { %v25763_v19 = vpop.f32.mrf.mxu0  ;;  %22930 = vmatmul.mubr.bf16.vlgmr.msra.gmra.mxu0 %v14285_v36  ;;  %v24259_v36 = vld [vmem:[#allocation4 + $0x4e8] sm:$0xff]   ;;  %v14804_v33 = vrot.slane %v14802_v51, 3  ;;  %v21803_v6 = vpop.f32.mrf.mxu1  ;;  %v24272_v51 = vld [vmem:[#allocation4 + $0x560] sm:$0xff]  }
 0x631   :  { %22038 = vmatpush3.bf16.msra.mxu1 %v24237_v9  ;;  %22052 = vmatpush3.bf16.msra.mxu0 %v24238_v52  ;;  %v15217_v9 = vld [vmem:[#allocation2 + $0xf8] sm:$0xf]  ;;  %v14797_v20 = vor.u32 %v14796_v59, %v14793_v16  ;;  %v21804_v49 = vadd.f32 %v21803_v6, %v25776_v47  ;;  %v24275_v6 = vld [vmem:[#allocation4 + $0x558] sm:$0xff]  }
 0x632   :  { %15159 = vmatprep.mubr.bf16.mxu0 %v14823_v0  ;;  %v22851_v23 = vpop.f32.mrf.mxu0  ;;  %22039 = vmatprep.subr.bf16.mxu1 %v24239_v56  ;;  %v24260_v52 = vld [vmem:[#allocation4 + $0x480] sm:$0xff]   ;;  %v14801_v56 = vrot.slane %v14799_v44, 2  ;;  %v15227_v0 = vpack.c.bf16 %v15217_v9, %v15217_v9  ;;  %v21805_v4 = vpop.f32.mrf.mxu1 }
 0x633   :  { %22053 = vmatprep.subr.bf16.mxu0 %v24240_v61  ;;  %v15212_v61 = vld [vmem:[#allocation2 + $0x88] sm:$0xc0]  ;;  %v24263_v23 = vld [vmem:[#allocation4 + $0x578] sm:$0xff]   ;;  %v24273_v16 = vld [vmem:[#allocation4 + $0x4c0] sm:$0xff]  }
 0x634   :  { %v25766_v21 = vpop.f32.mrf.mxu0  ;;  %v15222_v13 = vpack.c.bf16 %v25732_v26, %v15212_v61  ;;  %v14805_v18 = vor.u32 %v14804_v33, %v14801_v56  ;;  %v24265_v26 = vld [vmem:[#allocation4 + $0x538] sm:$0xff]   ;;  %v21806_v58 = vpop.f32.mrf.mxu1  ;;  %v24274_v59 = vld [vmem:[#allocation4 + $0x520] sm:$0xff]  }
 0x635   :  { %22040 = vmatpush3.bf16.msra.mxu1 %v24241_v48  ;;  %22054 = vmatpush3.bf16.msra.mxu0 %v24242_v3  ;;  %v24261_v48 = vld [vmem:[#allocation4 + $0x440] sm:$0xff]  }
 0x636   :  { %v22852_v5 = vpop.f32.mrf.mxu0  ;;  %22041 = vmatprep.subr.bf16.mxu1 %v24243_v63  ;;  %22055 = vmatprep.subr.bf16.mxu0 %v24244_v55  ;;  %v24262_v3 = vld [vmem:[#allocation4 + $0x4e0] sm:$0xff]   ;;  %v14660_v63 = vld [vmem:[#allocation2 + $0x50] sm:$0xe0]  ;;  %v14665_v55 = vld [vmem:[#allocation2 + $0xe0] sm:$0x7]  ;;  %v15324_v54 = vrot.slane %v15222_v13, 3 }
 0x637   :  { %v14670_v5 = vpack.c.bf16 %v25728_v2, %v14660_v63  ;;  %v24276_v13 = vld [vmem:[#allocation4 + $0x5f8] sm:$0xff]  }
 0x639   :  { %22042 = vmatpush3.bf16.msra.mxu1 %v24245_v22  ;;  %22056 = vmatpush3.bf16.msra.mxu0 %v24246_v40  ;;  %v15325_v22 = vrot.slane %v15227_v0, 3  ;;  %v24264_v40 = vld [vmem:[#allocation4 + $0x4d8] sm:$0xff]   ;;  %v14828_v37 = vshll.u32 %v14670_v5, 16  ;;  %v21807_v0 = vadd.f32 %v21806_v58, %v21805_v4  ;;  %v24279_v4 = vld [vmem:[#allocation4 + $0x550] sm:$0xff]  }
 0x63a   :  { %22043 = vmatprep.subr.bf16.mxu1 %v24247_v7  ;;  %22057 = vmatprep.subr.bf16.mxu0 %v24248_v39  ;;  %v14675_v7 = vpack.c.bf16 %v14665_v55, %v14665_v55  ;;  %v14806_v39 = vsel %vm9621_vm6, %v14797_v20, %v14805_v18  ;;  %v24277_v20 = vld [vmem:[#allocation4 + $0x518] sm:$0xff]   ;;  %v24281_v58 = vld [vmem:[#allocation4 + $0x510] sm:$0xff]  }
 0x63b   :  { %v15326_v57 = vsel %vm10187_vm7, %v15324_v54, %v15325_v22  ;;  %v24278_v18 = vld [vmem:[#allocation4 + $0x5b8] sm:$0xff]  }
 0x63c   :  { %v14833_v41 = vshrl.u32 %v14675_v7, 16  ;;  %v14836_v12 = vshll.u32 %v14675_v7, 16 }
 0x63d   :  { %22044 = vmatpush3.bf16.msra.mxu1 %v24249_v27  ;;  %22058 = vmatpush3.bf16.msra.mxu0 %v24250_v31  ;;  %v24267_v27 = vld [vmem:[#allocation4 + $0x4d0] sm:$0xff]  }
 0x63e   :  { %22059 = vmatprep.subr.bf16.mxu0 %v24251_v10  ;;  %22933 = vmatprep.subr.bf16.mxu1 %v25728_v2  ;;  %v24268_v31 = vld [vmem:[#allocation4 + $0x530] sm:$0xff]   ;;  %v14825_v10 = vshrl.u32 %v14670_v5, 16  ;;  %v14838_v38 = vrot.slane %v14836_v12, 3 }
 0x640   :  { %15119 = vmatmul.mubr.bf16.vlgmr.msra.gmra.mxu1 %v14772_v14  ;;  %v21833_v15 = vpop.f32.mrf.mxu1  ;;  %v15219_v14 = vld [vmem:[#allocation2 + $0x78] sm:$0xf] }
 0x641   :  { %22060 = vmatpush3.bf16.msra.mxu0 %v24252_v43  ;;  %22934 = vmatpush3.bf16.msra.mxu1 %v24253_v30  ;;  %v24269_v43 = vld [vmem:[#allocation4 + $0x568] sm:$0xff]  }
 0x642   :  { %22061 = vmatprep.subr.bf16.mxu0 %v24254_v25  ;;  %22935 = vmatprep.subr.bf16.mxu1 %v25728_v2  ;;  %v15214_v25 = vld [vmem:[#allocation2 + $0x28] sm:$0xc0]  ;;  %v21834_v44 = vpop.f32.mrf.mxu1 }
 0x643   :  { %22949 = vmatprep.mubr.msk.bf16.mxu1 %vm24771_vm3, %v25728_v2  ;;  %v15224_v9 = vpack.c.bf16 %v25743_v28, %v15214_v25  ;;  %v21835_v63 = vadd.f32 %v21834_v44, %v21833_v15  ;;  %v24286_v25 = vld [vmem:[#allocation4 + $0x5a8] sm:$0xff]  }
 0x644   :  { %v21836_v47 = vpop.f32.mrf.mxu1 }
 0x645   :  { %22062 = vmatpush3.bf16.msra.mxu0 %v24255_v1  ;;  %22936 = vmatpush3.bf16.msra.mxu1 %v24256_v24  ;;  %v14827_v1 = vrot.slane %v14825_v10, 2  ;;  %v14830_v24 = vrot.slane %v14828_v37, 3  ;;  %v15330_v28 = vrot.slane %v15224_v9, 3 }
 0x646   :  { %22063 = vmatprep.subr.bf16.mxu0 %v24257_v53  ;;  %22937 = vmatprep.subr.bf16.mxu1 %v25728_v2  ;;  %v14835_v53 = vrot.slane %v14833_v41, 2  ;;  %v21837_v54 = vpop.f32.mrf.mxu1  ;;  %v15216_v41 = vld [vmem:[#allocation2 + $0x60] sm:$0xf] }
 0x647   :  { %v14831_v56 = vor.u32 %v14830_v24, %v14827_v1  ;;  %v15211_v1 = vld [vmem:[#allocation2 + $0xc0] sm:$0xc0] }
 0x648   :  { %v14839_v33 = vor.u32 %v14838_v38, %v14835_v53  ;;  %v15226_v38 = vpack.c.bf16 %v15216_v41, %v15216_v41  ;;  %v25835_v41 = vld [vmem:[%s26587_s5 + $0xf0] sm:$0xff]  }
 0x649   :  { %22064 = vmatpush3.bf16.msra.mxu0 %v24258_v62  ;;  %22938 = vmatpush3.bf16.msra.mxu1 %v24259_v36  ;;  %v21782_v62 = vadd.f32 %v25751_v32, %v25747_v42 }
 0x64a   :  { %22065 = vmatprep.subr.bf16.mxu0 %v24260_v52  ;;  %22939 = vmatprep.subr.bf16.mxu1 %v25728_v2  ;;  %v15229_v52 = vpack.c.bf16 %v15219_v14, %v15219_v14  ;;  %v14840_v55 = vsel %vm9621_vm6, %v14831_v56, %v14839_v33  ;;  %v24292_v56 = vld [vmem:[#allocation4 + $0x598] sm:$0xff]  }
 0x64b   :  { %v12596_v61 = vadd.f32 %v21804_v49, %v21782_v62  ;;  %v24290_v62 = vld [vmem:[#allocation4 + $0x5a0] sm:$0xff]   ;;  %v24293_v33 = vld [vmem:[#allocation4 + $0x638] sm:$0xff]  }
 0x64d   :  { %22066 = vmatpush3.bf16.msra.mxu0 %v24261_v48  ;;  %22940 = vmatpush3.bf16.msra.mxu1 %v24262_v3  ;;  %v12637_v42 = vadd.f32 %v25763_v19, %v12596_v61  ;;  %v15331_v3 = vrot.slane %v15229_v52, 3 }
 0x64e   :  { %22941 = vmatprep.subr.bf16.mxu1 %v25728_v2  ;;  %22082 = vmatprep.subr.bf16.mxu0 %v24263_v23  ;;  %v21785_v23 = vadd.f32 %v25758_v35, %v25754_v45 }
 0x64f   :  { %v12643_v5 = vadd.f32 %v12637_v42, %v25721_v46  ;;  %v15332_v45 = vsel %vm10187_vm7, %v15330_v28, %v15331_v3  ;;  %v15780_v3 = vld [vmem:[#allocation3 + $0x48] sm:$0xfe] }
 0x650   :  { %v21855_v17 = vpop.f32.mrf.mxu0  ;;  %15160 = vmatmul.mubr.bf16.vlgmr.msra.gmra.mxu0 %v14806_v39  ;;  %v12599_v22 = vadd.f32 %v21807_v0, %v21785_v23  ;;  %v21838_v39 = vadd.f32 %v21837_v54, %v21836_v47  ;;  %v24296_v0 = vld [vmem:[#allocation4 + $0x630] sm:$0xff]   ;;  %v24299_v54 = vld [vmem:[#allocation4 + $0x628] sm:$0xff]  }
 0x651   :  { %22942 = vmatpush3.bf16.msra.mxu1 %v24264_v40  ;;  %22083 = vmatpush3.bf16.msra.mxu0 %v24265_v26  ;;  %v24280_v26 = vld [vmem:[#allocation4 + $0x5f0] sm:$0xff]  }
 0x652   :  { %15613 = vmatprep.mubr.bf16.mxu0 %v15326_v57  ;;  %22943 = vmatprep.subr.bf16.mxu1 %v25728_v2  ;;  %v21856_v30 = vpop.f32.mrf.mxu0  ;;  %v12640_v35 = vadd.f32 %v25766_v21, %v12599_v22  ;;  %v24717_v21 = vld [vmem:[%s26586_s4] ss:$0 sm:$0xff]  ;;  %v24300_v22 = vld [vmem:[#allocation4 + $0x5c0] sm:$0xff]  }
 0x653   :  { %22084 = vmatprep.subr.bf16.mxu0 %v24266_v11  ;;  %v21857_v48 = vadd.f32 %v21856_v30, %v21855_v17  ;;  %v24282_v17 = vld [vmem:[#allocation4 + $0x5b0] sm:$0xff]   ;;  %v24285_v30 = vld [vmem:[#allocation4 + $0x508] sm:$0xff]  }
 0x654   :  { %v21858_v36 = vpop.f32.mrf.mxu0  ;;  %v12644_v12 = vadd.f32 %v12640_v35, %v25725_v34  ;;  %v15221_v34 = vpack.c.bf16 %v25760_v60, %v15211_v1  ;;  %v24294_v60 = vld [vmem:[#allocation4 + $0x5d0] sm:$0xff]   ;;  %v25816_v35 = vld [vmem:[%s26587_s5 + $0x138] sm:$0xff]  }
 0x655   :  { %22944 = vmatpush3.bf16.msra.mxu1 %v24267_v27  ;;  %22085 = vmatpush3.bf16.msra.mxu0 %v24268_v31  ;;  %v13091_v19 = vadd.f32 %v21857_v48, %v21835_v63  ;;  %v24283_v27 = vld [vmem:[#allocation4 + $0x548] sm:$0xff]   ;;  %v15783_v48 = vld [vmem:[#allocation3 + $0x38] sm:$0x1f]  ;;  %v15213_v63 = vld [vmem:[#allocation2 + $0x98] sm:$0xc0] }
 0x656   :  { %22945 = vmatprep.subr.bf16.mxu1 %v25728_v2  ;;  %22086 = vmatprep.subr.bf16.mxu0 %v24269_v43  ;;  %v21859_v32 = vpop.f32.mrf.mxu0  ;;  %v24284_v31 = vld [vmem:[#allocation4 + $0x5e8] sm:$0xff]   ;;  %v15321_v52 = vrot.slane %v15221_v34, 3 }
 0x657   :  { %v21860_v40 = vadd.f32 %v21859_v32, %v21858_v36  ;;  %v24291_v36 = vld [vmem:[#allocation4 + $0x5d8] sm:$0xff]   ;;  %v24297_v32 = vld [vmem:[#allocation4 + $0x5c8] sm:$0xff]  }
 0x658   :  { %v25856_v34 = vld [vmem:[%s26587_s5 + $0x120] sm:$0xff]  }
 0x659   :  { %22946 = vmatpush3.bf16.msra.mxu1 %v24270_v29  ;;  %22087 = vmatpush3.bf16.msra.mxu0 %v24271_v50  ;;  %v13094_v37 = vadd.f32 %v21860_v40, %v21838_v39  ;;  %v24287_v29 = vld [vmem:[#allocation4 + $0x540] sm:$0xff]  }
 0x65a   :  { %22947 = vmatprep.subr.bf16.mxu1 %v25728_v2  ;;  %22088 = vmatprep.subr.bf16.mxu0 %v24272_v51  ;;  %v24288_v50 = vld [vmem:[#allocation4 + $0x5e0] sm:$0xff]  }
 0x65b   :  { %v24289_v51 = vld [vmem:[#allocation4 + $0x500] sm:$0xff]  }
 0x65d   :  { %22948 = vmatpush3.bf16.msra.mxu1 %v24273_v16  ;;  %22089 = vmatpush3.bf16.msra.mxu0 %v24274_v59  ;;  %v15322_v16 = vrot.slane %v15226_v38, 3 }
 0x65e   :  { %22090 = vmatprep.subr.bf16.mxu0 %v24275_v6  ;;  %22104 = vmatprep.subr.bf16.mxu1 %v24276_v13  ;;  %v24295_v13 = vld [vmem:[#allocation4 + $0x590] sm:$0xff]  }
 0x65f   :  { %v15323_v47 = vsel %vm10187_vm7, %v15321_v52, %v15322_v16  ;;  %v25876_v16 = vld [vmem:[%s26587_s5 + $0xd8] sm:$0xff]  }
 0x660   :  { %v13131_v7 = vpop.f32.mrf.mxu1  ;;  %22950 = vmatmul.mubr.bf16.vlgmr.msra.gmra.mxu1 %v14840_v55  ;;  %v15218_v55 = vld [vmem:[#allocation2 + $0xa8] sm:$0xf] }
 0x661   :  { %v13132_v11 = vadd.f32 %v13131_v7, %v13091_v19  ;;  %22091 = vmatpush3.bf16.msra.mxu0 %v24277_v20  ;;  %22105 = vmatpush3.bf16.msra.mxu1 %v24278_v18  ;;  %v15786_v20 = vpack.c.bf16 %v15783_v48, %v15780_v3  ;;  %v24298_v18 = vld [vmem:[#allocation4 + $0x588] sm:$0xff]   ;;  %v15223_v19 = vpack.c.bf16 %v25770_v8, %v15213_v63  ;;  %v24301_v7 = vld [vmem:[#allocation4 + $0x580] sm:$0xff]   ;;  %v24304_v8 = vld [vmem:[#allocation4 + $0x618] sm:$0xff]  }
 0x662   :  { %15654 = vmatprep.mubr.bf16.mxu1 %v15332_v45  ;;  %v22871_v57 = vpop.f32.mrf.mxu1  ;;  %22092 = vmatprep.subr.bf16.mxu0 %v24279_v4  ;;  %v24302_v45 = vld [vmem:[#allocation4 + $0x620] sm:$0xff]   ;;  %v25907_v48 = vld [vmem:[%s26587_s5 + $0x108] sm:$0xff]  }
 0x663   :  { %v13138_v10 = vadd.f32 %v13132_v11, %v12643_v5  ;;  %22106 = vmatprep.subr.bf16.mxu1 %v24280_v26  ;;  %v15228_v26 = vpack.c.bf16 %v15218_v55, %v15218_v55  ;;  %v15847_v5 = vshll.u32 %v15786_v20, 16  ;;  %v15327_v39 = vrot.slane %v15223_v19, 3  ;;  %v25916_v3 = vld [vmem:[%s26587_s5 + $0xc8] sm:$0xff]   ;;  %v25928_v55 = vld [vmem:[%s26587_s5 + $0x100] sm:$0xff]   ;;  %v25954_v19 = vld [vmem:[%s26587_s5 + $0x158] sm:$0xff]  }
 0x664   :  { %v13134_v46 = vpop.f32.mrf.mxu1  ;;  %v15845_v57 = vshrl.u32 %v15786_v20, 16 }
 0x665   :  { %v13140_v15 = vadd.f32 %v24717_v21, %v13138_v10  ;;  %v13135_v43 = vadd.f32 %v13134_v46, %v13094_v37  ;;  %22093 = vmatpush3.bf16.msra.mxu0 %v24281_v58  ;;  %22107 = vmatpush3.bf16.msra.mxu1 %v24282_v17  ;;  %v15328_v11 = vrot.slane %v15228_v26, 3  ;;  %v15849_v58 = vrot.slane %v15847_v5, 1  ;;  %v25821_v17 = vld [vmem:[%s26587_s5 + $0xf8] sm:$0xff]   ;;  %v24307_v46 = vld [vmem:[#allocation4 + $0x610] sm:$0xff]   ;;  %v15726_v5 = vld [vmem:[#allocation3 + $0x38] sm:$0xf] }
 0x666   :  { %v22872_v14 = vpop.f32.mrf.mxu1  ;;  %22094 = vmatprep.subr.bf16.mxu0 %v24283_v27  ;;  %22108 = vmatprep.subr.bf16.mxu1 %v24284_v31  ;;  %v25829_v31 = vld [vmem:[%s26587_s5 + $0x130] sm:$0xff]   ;;  %v25959_v26 = vld [vmem:[%s26587_s5 + $0x38] sm:$0xff]  }
 0x667   :  { %v13142_v24 = vmax.f32 %v13140_v15, 0.0  ;;  %v13139_v53 = vadd.f32 %v13135_v43, %v12644_v12  ;;  %v15329_v27 = vsel %vm10187_vm7, %v15327_v39, %v15328_v11  ;;  %v15850_v37 = vor.u32 %v15849_v58, %v15845_v57  ;;  %v15215_v15 = vld [vmem:[#allocation2 + $0x50] sm:$0xc0]  ;;  %v15220_v43 = vld [vmem:[#allocation2 + $0xe0] sm:$0xf] }
 0x668   :  { %v24310_v14 = vld [vmem:[#allocation4 + $0x608] sm:$0xff]   ;;  %v15225_v1 = vpack.c.bf16 %v25728_v2, %v15215_v15  ;;  %v25966_v39 = vld [vmem:[%s26587_s5 + $0x70] sm:$0xff]  }
 0x669   :  { %v13146_v49 = vrot.slane %v13142_v24, 2  ;;  %v13141_v44 = vadd.f32 %v24717_v21, %v13139_v53  ;;  %22095 = vmatpush3.bf16.msra.mxu0 %v24285_v30  ;;  %22109 = vmatpush3.bf16.msra.mxu1 %v24286_v25  ;;  %v25841_v21 = vld [vmem:[%s26587_s5 + $0x128] sm:$0xff]   ;;  %v15230_v24 = vpack.c.bf16 %v15220_v43, %v15220_v43  ;;  %v15784_v11 = vld [vmem:[#allocation3 + $0x58] sm:$0x1f] }
 0x66a   :  { %22096 = vmatprep.subr.bf16.mxu0 %v24287_v29  ;;  %22110 = vmatprep.subr.bf16.mxu1 %v24288_v50  ;;  %v25848_v29 = vld [vmem:[%s26587_s5 + $0xe8] sm:$0xff]   ;;  %v25973_v57 = vld [vmem:[%s26587_s5 + $0x150] sm:$0xff]  }
 0x66b   :  { %13152 = vst [vmem:[#allocation3 + $0x38] sm:$0xc0] %v13146_v49  ;;  %v13143_v9 = vmax.f32 %v13141_v44, 0.0  ;;  %v25862_v44 = vld [vmem:[%s26587_s5 + $0xe0] sm:$0xff]  }
 0x66d   :  { %v13147_v59 = vrot.slane %v13143_v9, 2  ;;  %22097 = vmatpush3.bf16.msra.mxu0 %v24289_v51  ;;  %22111 = vmatpush3.bf16.msra.mxu1 %v24290_v62  ;;  %v15333_v51 = vrot.slane %v15225_v1, 3  ;;  %v15334_v62 = vrot.slane %v15230_v24, 3  ;;  %v25869_v9 = vld [vmem:[%s26587_s5 + $0x118] sm:$0xff]   ;;  %v26006_v1 = vld [vmem:[%s26587_s5 + $0x60] sm:$0xff]  }
 0x66e   :  { %22112 = vmatprep.subr.bf16.mxu1 %v24291_v36  ;;  %22953 = vmatprep.subr.bf16.mxu0 %v25728_v2 }
 0x66f   :  { %v13148_v61 = vsel %vm2678_vm5, %v13146_v49, %v13147_v59  ;;  %13154 = vst [vmem:[#allocation3 + $0x18] sm:$0xf] %v13147_v59  ;;  %v24313_v49 = vld [vmem:[#allocation4 + $0x600] sm:$0xff]   ;;  %v15335_v52 = vsel %vm10187_vm7, %v15333_v51, %v15334_v62  ;;  %v26018_v51 = vld [vmem:[%s26587_s5 + $0x20] sm:$0xff]  }
 0x670   :  { %13153 = vst [vmem:[#allocation3 + $0x28] sm:$0xff] %v13148_v61  ;;  %v21886_v6 = vpop.f32.mrf.mxu0  ;;  %15614 = vmatmul.mubr.bf16.vlgmr.msra.gmra.mxu0 %v15323_v47  ;;  %v25881_v59 = vld [vmem:[%s26587_s5 + $0x178] sm:$0xff]   ;;  %v25895_v47 = vld [vmem:[%s26587_s5 + $0xd0] sm:$0xff]  }
 0x671   :  { %22113 = vmatpush3.bf16.msra.mxu1 %v24292_v56  ;;  %22954 = vmatpush3.bf16.msra.mxu0 %v24293_v33  ;;  %v25888_v56 = vld [vmem:[%s26587_s5 + $0x110] sm:$0xff]   ;;  %v15782_v33 = vld [vmem:[#allocation3 + $0x50] sm:$0x1f] }
 0x672   :  { %v21887_v42 = vpop.f32.mrf.mxu0  ;;  %22114 = vmatprep.subr.bf16.mxu1 %v24294_v60  ;;  %22955 = vmatprep.subr.bf16.mxu0 %v25728_v2 }
 0x673   :  { %v21888_v28 = vadd.f32 %v21887_v42, %v21886_v6  ;;  %22969 = vmatprep.mubr.msk.bf16.mxu0 %vm24771_vm3, %v25728_v2  ;;  %v25900_v6 = vld [vmem:[%s26587_s5 + $0x170] sm:$0xff]  }
 0x674   :  { %v21889_v23 = vpop.f32.mrf.mxu0 }
 0x675   :  { %22115 = vmatpush3.bf16.msra.mxu1 %v24295_v13  ;;  %22956 = vmatpush3.bf16.msra.mxu0 %v24296_v0  ;;  %v15779_v13 = vld [vmem:[#allocation3] sm:$0xfe] }
 0x676   :  { %v21890_v4 = vpop.f32.mrf.mxu0  ;;  %22116 = vmatprep.subr.bf16.mxu1 %v24297_v32  ;;  %22957 = vmatprep.subr.bf16.mxu0 %v25728_v2  ;;  %v15785_v42 = vpack.c.bf16 %v15782_v33, %v15779_v13  ;;  %v26032_v33 = vld [vmem:[%s26587_s5 + $0x18] sm:$0xff]   ;;  %v26044_v13 = vld [vmem:[%s26587_s5 + $0x50] sm:$0xff]  }
 0x677   :  { %v21891_v40 = vadd.f32 %v21890_v4, %v21889_v23  ;;  %v25921_v23 = vld [vmem:[%s26587_s5 + $0x168] sm:$0xff]  }
 0x678   :  { %v15840_v20 = vshll.u32 %v15785_v42, 16 }
 0x679   :  { %22117 = vmatpush3.bf16.msra.mxu1 %v24298_v18  ;;  %22958 = vmatpush3.bf16.msra.mxu0 %v24299_v54  ;;  %v25935_v18 = vld [vmem:[%s26587_s5 + $0xc0] sm:$0xff]  }
 0x67a   :  { %22118 = vmatprep.subr.bf16.mxu1 %v24300_v22  ;;  %22959 = vmatprep.subr.bf16.mxu0 %v25728_v2  ;;  %v25940_v54 = vld [vmem:[%s26587_s5 + $0x160] sm:$0xff]   ;;  %v15842_v4 = vrot.slane %v15840_v20, 1  ;;  %v25947_v22 = vld [vmem:[%s26587_s5 + $0x78] sm:$0xff]  }
 0x67d   :  { %22119 = vmatpush3.bf16.msra.mxu1 %v24301_v7  ;;  %22960 = vmatpush3.bf16.msra.mxu0 %v24302_v45  ;;  %v15723_v45 = vld [vmem:[#allocation3 + $0x48] sm:$0xff] }
 0x67e   :  { %22961 = vmatprep.subr.bf16.mxu0 %v25728_v2  ;;  %22135 = vmatprep.subr.bf16.mxu1 %v25816_v35 }
 0x680   :  { %v21908_v10 = vpop.f32.mrf.mxu1  ;;  %15655 = vmatmul.mubr.bf16.vlgmr.msra.gmra.mxu1 %v15329_v27  ;;  %v25978_v27 = vld [vmem:[%s26587_s5 + $0x30] sm:$0xff]  }
 0x681   :  { %22962 = vmatpush3.bf16.msra.mxu0 %v24304_v8  ;;  %22136 = vmatpush3.bf16.msra.mxu1 %v25821_v17  ;;  %v15729_v8 = vpack.c.bf16 %v15726_v5, %v15723_v45  ;;  %v26077_v5 = vld [vmem:[%s26587_s5 + $0xa8] sm:$0xff]  }
 0x682   :  { %16037 = vmatprep.mubr.bf16.mxu1 %v15850_v37  ;;  %v21909_v12 = vpop.f32.mrf.mxu1  ;;  %22963 = vmatprep.subr.bf16.mxu0 %v25728_v2  ;;  %26620 = vst [vmem:[#allocation12_spill] sm:$0xff] %v26077_v5 }
 0x683   :  { %v21910_v30 = vadd.f32 %v21909_v12, %v21908_v10  ;;  %22137 = vmatprep.subr.bf16.mxu1 %v25829_v31  ;;  %v15781_v10 = vld [vmem:[#allocation3 + $0x40] sm:$0xfe] }
 0x684   :  { %v21911_v25 = vpop.f32.mrf.mxu1  ;;  %v15787_v12 = vpack.c.bf16 %v15784_v11, %v15781_v10  ;;  %v26084_v11 = vld [vmem:[%s26587_s5 + $0x40] sm:$0xff]  }
 0x685   :  { %22964 = vmatpush3.bf16.msra.mxu0 %v24307_v46  ;;  %22138 = vmatpush3.bf16.msra.mxu1 %v25835_v41  ;;  %v13736_v50 = vadd.f32 %v21910_v30, %v21888_v28  ;;  %v25984_v46 = vld [vmem:[%s26587_s5 + $0x68] sm:$0xff]   ;;  %v26096_v10 = vld [vmem:[%s26587_s5 + $0xa0] sm:$0xff]  }
 0x686   :  { %v21912_v53 = vpop.f32.mrf.mxu1  ;;  %22965 = vmatprep.subr.bf16.mxu0 %v25728_v2  ;;  %22139 = vmatprep.subr.bf16.mxu1 %v25841_v21  ;;  %v15854_v24 = vshll.u32 %v15787_v12, 16  ;;  %26621 = vst [vmem:[#allocation13_spill] sm:$0xff] %v26096_v10 }
 0x687   :  { %v21913_v38 = vadd.f32 %v21912_v53, %v21911_v25  ;;  %v25992_v25 = vld [vmem:[%s26587_s5 + $0x148] sm:$0xff]  }
 0x688   :  { %v15856_v62 = vrot.slane %v15854_v24, 1  ;;  %v15722_v24 = vld [vmem:[#allocation3] sm:$0xff] }
 0x689   :  { %22966 = vmatpush3.bf16.msra.mxu0 %v24310_v14  ;;  %22140 = vmatpush3.bf16.msra.mxu1 %v25848_v29  ;;  %v13739_v36 = vadd.f32 %v21913_v38, %v21891_v40  ;;  %v15838_v40 = vshrl.u32 %v15785_v42, 16  ;;  %v26051_v42 = vld [vmem:[%s26587_s5 + $0x10] sm:$0xff]  }
 0x68a   :  { %22967 = vmatprep.subr.bf16.mxu0 %v25728_v2  ;;  %22141 = vmatprep.subr.bf16.mxu1 %v25856_v34 }
 0x68b   :  { %v15843_v7 = vor.u32 %v15842_v4, %v15838_v40  ;;  %v26072_v40 = vld [vmem:[%s26587_s5 + $0x8] sm:$0xff]  }
 0x68d   :  { %22968 = vmatpush3.bf16.msra.mxu0 %v24313_v49  ;;  %22142 = vmatpush3.bf16.msra.mxu1 %v25862_v44  ;;  %v26013_v49 = vld [vmem:[%s26587_s5 + $0x140] sm:$0xff]  }
 0x68e   :  { %22143 = vmatprep.subr.bf16.mxu1 %v25869_v9  ;;  %22973 = vmatprep.subr.bf16.mxu0 %v25728_v2 }
 0x690   :  { %v13776_v60 = vpop.f32.mrf.mxu0  ;;  %22970 = vmatmul.mubr.bf16.vlgmr.msra.gmra.mxu0 %v15335_v52  ;;  %v15852_v52 = vshrl.u32 %v15787_v12, 16 }
 0x691   :  { %v13777_v61 = vadd.f32 %v13776_v60, %v13736_v50  ;;  %22144 = vmatpush3.bf16.msra.mxu1 %v25876_v16  ;;  %22974 = vmatpush3.bf16.msra.mxu0 %v25881_v59  ;;  %v25999_v50 = vld [vmem:[#allocation2 + $0xb0] sm:$0xff]  ;;  %v26037_v60 = vld [vmem:[%s26587_s5 + $0xb8] sm:$0xff]  }
 0x692   :  { %v22891_v0 = vpop.f32.mrf.mxu0  ;;  %22145 = vmatprep.subr.bf16.mxu1 %v25888_v56  ;;  %22975 = vmatprep.subr.bf16.mxu0 %v25728_v2  ;;  %26618 = vst [vmem:[#allocation10_spill] sm:$0xff] %v26037_v60 }
 0x693   :  { %22989 = vmatprep.mubr.msk.bf16.mxu0 %vm24771_vm3, %v25728_v2 }
 0x694   :  { %v13779_v32 = vpop.f32.mrf.mxu0 }
 0x695   :  { %v13780_v28 = vadd.f32 %v13779_v32, %v13739_v36  ;;  %22146 = vmatpush3.bf16.msra.mxu1 %v25895_v47  ;;  %22976 = vmatpush3.bf16.msra.mxu0 %v25900_v6  ;;  %v26025_v36 = vld [vmem:[%s26587_s5 + $0x58] sm:$0xff]   ;;  %v26056_v32 = vld [vmem:[%s26587_s5 + $0xb0] sm:$0xff]  }
 0x696   :  { %v22892_v63 = vpop.f32.mrf.mxu0  ;;  %22147 = vmatprep.subr.bf16.mxu1 %v25907_v48  ;;  %22977 = vmatprep.subr.bf16.mxu0 %v25728_v2  ;;  %26619 = vst [vmem:[#allocation11_spill] sm:$0xff] %v26056_v32 }
 0x697   :  { %v26063_v63 = vld [vmem:[%s26587_s5 + $0x48] sm:$0xff]  }
 0x699   :  { %22148 = vmatpush3.bf16.msra.mxu1 %v25916_v3  ;;  %22978 = vmatpush3.bf16.msra.mxu0 %v25921_v23 }
 0x69a   :  { %22149 = vmatprep.subr.bf16.mxu1 %v25928_v55  ;;  %22979 = vmatprep.subr.bf16.mxu0 %v25728_v2 }
 0x69d   :  { %22150 = vmatpush3.bf16.msra.mxu1 %v25935_v18  ;;  %22980 = vmatpush3.bf16.msra.mxu0 %v25940_v54 }
 0x69e   :  { %22981 = vmatprep.subr.bf16.mxu0 %v25728_v2  ;;  %22166 = vmatprep.subr.bf16.mxu1 %v25947_v22 }
 0x6a0   :  { %v21939_v58 = vpop.f32.mrf.mxu1  ;;  %16038 = vmatmul.mubr.bf16.vlgmr.msra.gmra.mxu1 %v15843_v7 }
 0x6a1   :  { %22982 = vmatpush3.bf16.msra.mxu0 %v25954_v19  ;;  %22167 = vmatpush3.bf16.msra.mxu1 %v25959_v26 }
 0x6a2   :  { %16263 = vmatprep.mubr.bf16.mxu1 %v15729_v8  ;;  %v21940_v37 = vpop.f32.mrf.mxu1  ;;  %22983 = vmatprep.subr.bf16.mxu0 %v25728_v2  ;;  %v25997_v2 = vld [vmem:[%s26587_s5 + $0x28] sm:$0xff]   ;;  %v26091_v8 = vld [vmem:[%s26587_s5] sm:$0xff]  }
 0x6a3   :  { %v21941_v15 = vadd.f32 %v21940_v37, %v21939_v58  ;;  %22168 = vmatprep.subr.bf16.mxu1 %v25966_v39  ;;  %v16317_v37 = vld [vmem:[#allocation3 + $0x38] sm:$0x3f] }
 0x6a4   :  { %v21942_v43 = vpop.f32.mrf.mxu1 }
 0x6a5   :  { %v14073_v30 = vadd.f32 %v21941_v15, %v13777_v61  ;;  %22984 = vmatpush3.bf16.msra.mxu0 %v25973_v57  ;;  %22169 = vmatpush3.bf16.msra.mxu1 %v25978_v27  ;;  %v15857_v61 = vor.u32 %v15856_v62, %v15852_v52  ;;  %v26103_v15 = vld [vmem:[%s26587_s5 + $0x1f8] sm:$0xff]   ;;  %v26122_v52 = vld [vmem:[%s26587_s5 + $0x1f0] sm:$0xff]  }
 0x6a6   :  { %v21943_v14 = vpop.f32.mrf.mxu1  ;;  %22985 = vmatprep.subr.bf16.mxu0 %v25999_v50  ;;  %22170 = vmatprep.subr.bf16.mxu1 %v25984_v46  ;;  %26624 = vst [vmem:[#allocation16_spill] sm:$0xff] %v26122_v52 }
 0x6a7   :  { %v21944_v53 = vadd.f32 %v21943_v14, %v21942_v43  ;;  %v15725_v43 = vld [vmem:[#allocation3 + $0x50] sm:$0xf] }
 0x6a8   :  { %v15728_v62 = vpack.c.bf16 %v15725_v43, %v15722_v24  ;;  %v26152_v43 = vld [vmem:[%s26587_s5 + $0x88] sm:$0xff]   ;;  %v26171_v24 = vld [vmem:[%s26587_s5 + $0x80] sm:$0xff]  }
 0x6a9   :  { %v14076_v38 = vadd.f32 %v21944_v53, %v13780_v28  ;;  %22986 = vmatpush3.bf16.msra.mxu0 %v25992_v25  ;;  %22171 = vmatpush3.bf16.msra.mxu1 %v25997_v2  ;;  %v26110_v53 = vld [vmem:[%s26587_s5 + $0x98] sm:$0xff]   ;;  %26628 = vst [vmem:[#allocation20_spill] sm:$0xff] %v26152_v43  ;;  %26631 = vst [vmem:[#allocation23_spill] sm:$0xff] %v26171_v24 }
 0x6aa   :  { %22987 = vmatprep.subr.bf16.mxu0 %v25999_v50  ;;  %22172 = vmatprep.subr.bf16.mxu1 %v26006_v1  ;;  %26622 = vst [vmem:[#allocation14_spill] sm:$0xff] %v26110_v53 }
 0x6ad   :  { %22988 = vmatpush3.bf16.msra.mxu0 %v26013_v49  ;;  %22173 = vmatpush3.bf16.msra.mxu1 %v26018_v51 }
 0x6ae   :  { %22174 = vmatprep.subr.bf16.mxu1 %v26025_v36  ;;  %22993 = vmatprep.subr.bf16.mxu0 %v25999_v50 }
 0x6b0   :  { %v21961_v0 = vpop.f32.mrf.mxu0  ;;  %22990 = vmatmul.mubr.bf16.vlgmr.msra.gmra.mxu0 %v15857_v61 }
 0x6b1   :  { %22175 = vmatpush3.bf16.msra.mxu1 %v26032_v33  ;;  %22994 = vmatpush3.bf16.msra.mxu0 %v26037_v60 }
 0x6b2   :  { %v21962_v28 = vpop.f32.mrf.mxu0  ;;  %22176 = vmatprep.subr.bf16.mxu1 %v26044_v13  ;;  %22995 = vmatprep.subr.bf16.mxu0 %v25999_v50 }
 0x6b3   :  { %v21963_v20 = vadd.f32 %v21962_v28, %v21961_v0  ;;  %23009 = vmatprep.mubr.msk.bf16.mxu0 %vm24771_vm3, %v25999_v50 }
 0x6b4   :  { %v21964_v4 = vpop.f32.mrf.mxu0 }
 0x6b5   :  { %22177 = vmatpush3.bf16.msra.mxu1 %v26051_v42  ;;  %22996 = vmatpush3.bf16.msra.mxu0 %v26056_v32  ;;  %v14114_v7 = vadd.f32 %v21963_v20, %v14073_v30  ;;  %v16314_v30 = vld [vmem:[#allocation3 + $0x48] sm:$0xfc]  ;;  %v26131_v20 = vld [vmem:[%s26587_s5 + $0x90] sm:$0xff]  }
 0x6b6   :  { %v21965_v45 = vpop.f32.mrf.mxu0  ;;  %22178 = vmatprep.subr.bf16.mxu1 %v26063_v63  ;;  %22997 = vmatprep.subr.bf16.mxu0 %v25999_v50  ;;  %v16320_v14 = vpack.c.bf16 %v16317_v37, %v16314_v30  ;;  %26625 = vst [vmem:[#allocation17_spill] sm:$0xff] %v26131_v20  ;;  %v26157_v30 = vld [vmem:[%s26587_s5 + $0x1a8] sm:$0xff]  }
 0x6b7   :  { %v21966_v58 = vadd.f32 %v21965_v45, %v21964_v4  ;;  %v26136_v4 = vld [vmem:[%s26587_s5 + $0x1b0] sm:$0xff]   ;;  %26629 = vst [vmem:[#allocation21_spill] sm:$0xff] %v26157_v30 }
 0x6b8   :  { %v16375_v0 = vrot.slane %v16320_v14, 1  ;;  %26626 = vst [vmem:[#allocation18_spill] sm:$0xff] %v26136_v4  ;;  %v26164_v14 = vld [vmem:[%s26587_s5 + $0x1e0] sm:$0xff]  }
 0x6b9   :  { %22179 = vmatpush3.bf16.msra.mxu1 %v26072_v40  ;;  %22998 = vmatpush3.bf16.msra.mxu0 %v26077_v5  ;;  %v14117_v12 = vadd.f32 %v21966_v58, %v14076_v38  ;;  %v26115_v38 = vld [vmem:[%s26587_s5 + $0x1b8] sm:$0xff]   ;;  %26630 = vst [vmem:[#allocation22_spill] sm:$0xff] %v26164_v14  ;;  %v16634_v5 = vld [vmem:[#allocation3 + $0x38] sm:$0x80] }
 0x6ba   :  { %22180 = vmatprep.subr.bf16.mxu1 %v26084_v11  ;;  %22999 = vmatprep.subr.bf16.mxu0 %v25999_v50  ;;  %26623 = vst [vmem:[#allocation15_spill] sm:$0xff] %v26115_v38 }
 0x6bd   :  { %22181 = vmatpush3.bf16.msra.mxu1 %v26091_v8  ;;  %23000 = vmatpush3.bf16.msra.mxu0 %v26096_v10 }
 0x6be   :  { %23001 = vmatprep.subr.bf16.mxu0 %v25999_v50  ;;  %22197 = vmatprep.subr.bf16.mxu1 %v26103_v15 }
 0x6c0   :  { %v14154_v61 = vpop.f32.mrf.mxu1  ;;  %16264 = vmatmul.mubr.bf16.vlgmr.msra.gmra.mxu1 %v15728_v62  ;;  %v26176_v62 = vld [vmem:[%s26587_s5 + $0x1a0] sm:$0xff]  }
 0x6c1   :  { %v26124_v28 = vadd.f32 %v14154_v61, %v14114_v7  ;;  %23002 = vmatpush3.bf16.msra.mxu0 %v26110_v53  ;;  %22198 = vmatpush3.bf16.msra.mxu1 %v26115_v38  ;;  %v26142_v7 = vld [vmem:[%s26587_s5 + $0x1e8] sm:$0xff]   ;;  %26632 = vst [vmem:[#allocation24_spill] sm:$0xff] %v26176_v62  ;;  %v26183_v61 = vld [vmem:[%s26587_s5 + $0x1d8] sm:$0xff]   ;;  %v16637_v53 = vld [vmem:[#allocation3 + $0x18] sm:$0x7] }
 0x6c2   :  { %16556 = vmatprep.mubr.bf16.mxu1 %v16375_v0  ;;  %v22911_v45 = vpop.f32.mrf.mxu1  ;;  %23003 = vmatprep.subr.bf16.mxu0 %v25999_v50  ;;  %26627 = vst [vmem:[#allocation19_spill] sm:$0xff] %v26142_v7  ;;  %26633 = vst [vmem:[#allocation25_spill] sm:$0xff] %v26183_v61  ;;  %v15727_v0 = vld [vmem:[#allocation3 + $0x58] sm:$0xf]  ;;  %v16643_v60 = vpack.c.bf16 %v16637_v53, %v16637_v53  ;;  %v26240_v53 = vld [vmem:[%s26587_s5 + $0x228] sm:$0xff]  }
 0x6c3   :  { %22199 = vmatprep.subr.bf16.mxu1 %v26122_v52  ;;  %v15724_v45 = vld [vmem:[#allocation3 + $0x40] sm:$0xff]  ;;  %26641 = vst [vmem:[#allocation33_spill] sm:$0xff] %v26240_v53 }
 0x6c4   :  { %v14157_v58 = vpop.f32.mrf.mxu1 }
 0x6c5   :  { %v26145_v37 = vadd.f32 %v14157_v58, %v14117_v12  ;;  %23004 = vmatpush3.bf16.msra.mxu0 %v26131_v20  ;;  %22200 = vmatpush3.bf16.msra.mxu1 %v26136_v4  ;;  %v26190_v58 = vld [vmem:[%s26587_s5 + $0x198] sm:$0xff]   ;;  %v26204_v20 = vld [vmem:[#allocation3 + $0x28] sm:$0xff] }
 0x6c6   :  { %23005 = vmatprep.subr.bf16.mxu0 %v25999_v50  ;;  %22201 = vmatprep.subr.bf16.mxu1 %v26142_v7  ;;  %v22912_v12 = vpop.f32.mrf.mxu1  ;;  %26634 = vst [vmem:[#allocation26_spill] sm:$0xff] %v26190_v58  ;;  %v16640_v32 = vpack.c.bf16 %v26204_v20, %v16634_v5  ;;  %v26235_v5 = vld [vmem:[%s26587_s5 + $0x188] sm:$0xff]   ;;  %v26254_v7 = vld [vmem:[%s26587_s5 + $0x180] sm:$0xff]  }
 0x6c7   :  { %v26195_v12 = vld [vmem:[%s26587_s5 + $0x238] sm:$0xff]   ;;  %26640 = vst [vmem:[#allocation32_spill] sm:$0xff] %v26235_v5 }
 0x6c8   :  { %26635 = vst [vmem:[#allocation27_spill] sm:$0xff] %v26195_v12 }
 0x6c9   :  { %23006 = vmatpush3.bf16.msra.mxu0 %v26152_v43  ;;  %22202 = vmatpush3.bf16.msra.mxu1 %v26157_v30  ;;  %v15730_v43 = vpack.c.bf16 %v15727_v0, %v15724_v45  ;;  %v26211_v0 = vld [vmem:[%s26587_s5 + $0x190] sm:$0xff]   ;;  %v16316_v30 = vld [vmem:[#allocation3 + $0x50] sm:$0x3f] }
 0x6ca   :  { %23007 = vmatprep.subr.bf16.mxu0 %v25999_v50  ;;  %22203 = vmatprep.subr.bf16.mxu1 %v26164_v14  ;;  %26637 = vst [vmem:[#allocation29_spill] sm:$0xff] %v26211_v0  ;;  %v26216_v45 = vld [vmem:[%s26587_s5 + $0x230] sm:$0xff]  }
 0x6cb   :  { %26638 = vst [vmem:[#allocation30_spill] sm:$0xff] %v26216_v45 }
 0x6cd   :  { %23008 = vmatpush3.bf16.msra.mxu0 %v26171_v24  ;;  %22204 = vmatpush3.bf16.msra.mxu1 %v26176_v62  ;;  %v26202_v24 = vld [vmem:[%s26587_s5 + $0x1d0] sm:$0xff]   ;;  %v16675_v62 = vshll.u32 %v16643_v60, 16 }
 0x6ce   :  { %22205 = vmatprep.subr.bf16.mxu1 %v26183_v61  ;;  %23013 = vmatprep.subr.bf16.mxu0 %v25999_v50  ;;  %26636 = vst [vmem:[#allocation28_spill] sm:$0xff] %v26202_v24 }
 0x6d0   :  { %v21992_v10 = vpop.f32.mrf.mxu0  ;;  %23010 = vmatmul.mubr.bf16.vlgmr.msra.gmra.mxu0 %v15730_v43  ;;  %v26224_v43 = vld [vmem:[%s26587_s5 + $0x1c8] sm:$0xff]  }
 0x6d1   :  { %22206 = vmatpush3.bf16.msra.mxu1 %v26190_v58  ;;  %23014 = vmatpush3.bf16.msra.mxu0 %v26195_v12  ;;  %26639 = vst [vmem:[#allocation31_spill] sm:$0xff] %v26224_v43 }
 0x6d2   :  { %v21993_v61 = vpop.f32.mrf.mxu0  ;;  %22207 = vmatprep.subr.bf16.mxu1 %v26202_v24  ;;  %23015 = vmatprep.subr.bf16.mxu0 %v25999_v50  ;;  %v16672_v24 = vshrl.u32 %v16643_v60, 16  ;;  %v26259_v60 = vld [vmem:[%s26587_s5 + $0x220] sm:$0xff]  }
 0x6d3   :  { %v26226_v12 = vadd.f32 %v21993_v61, %v21992_v10  ;;  %23029 = vmatprep.mubr.msk.bf16.mxu0 %vm24771_vm3, %v25999_v50  ;;  %v16664_v10 = vshrl.u32 %v16640_v32, 16  ;;  %v16667_v61 = vshll.u32 %v16640_v32, 16  ;;  %v16313_v32 = vld [vmem:[#allocation3] sm:$0xfc] }
 0x6d4   :  { %v21995_v58 = vpop.f32.mrf.mxu0  ;;  %v16319_v52 = vpack.c.bf16 %v16316_v30, %v16313_v32 }
 0x6d5   :  { %22208 = vmatpush3.bf16.msra.mxu1 %v26211_v0  ;;  %23016 = vmatpush3.bf16.msra.mxu0 %v26216_v45  ;;  %v26247_v45 = vld [vmem:[%s26587_s5 + $0x1c0] sm:$0xff]   ;;  %v16669_v4 = vrot.slane %v16667_v61, 4  ;;  %v16636_v61 = vld [vmem:[#allocation3 + $0x10] sm:$0x7] }
 0x6d6   :  { %v21996_v14 = vpop.f32.mrf.mxu0  ;;  %22209 = vmatprep.subr.bf16.mxu1 %v26224_v43  ;;  %23017 = vmatprep.subr.bf16.mxu0 %v25999_v50  ;;  %v16666_v43 = vrot.slane %v16664_v10, 3  ;;  %v16374_v10 = vrot.slane %v16319_v52, 1 }
 0x6d7   :  { %v26249_v0 = vadd.f32 %v21996_v14, %v21995_v58  ;;  %v16674_v14 = vrot.slane %v16672_v24, 3  ;;  %v16677_v58 = vrot.slane %v16675_v62, 4  ;;  %v26280_v62 = vld [vmem:[%s26587_s5 + $0x210] sm:$0xff]  }
 0x6d9   :  { %22210 = vmatpush3.bf16.msra.mxu1 %v26235_v5  ;;  %23018 = vmatpush3.bf16.msra.mxu0 %v26240_v53  ;;  %v26270_v5 = vld [vmem:[%s26587_s5 + $0x218] sm:$0xff]   ;;  %v16670_v53 = vor.u32 %v16669_v4, %v16666_v43  ;;  %v16678_v38 = vor.u32 %v16677_v58, %v16674_v14 }
 0x6da   :  { %22211 = vmatprep.subr.bf16.mxu1 %v26247_v45  ;;  %23019 = vmatprep.subr.bf16.mxu0 %v25999_v50 }
 0x6db   :  { %v16679_v30 = vsel %vm16645_vm8, %v16670_v53, %v16678_v38  ;;  %v16318_v38 = vld [vmem:[#allocation3 + $0x58] sm:$0x3f]  ;;  %v26302_v53 = vld [vmem:[#allocation3 + $0x20] sm:$0xff] }
 0x6dd   :  { %22212 = vmatpush3.bf16.msra.mxu1 %v26254_v7  ;;  %23020 = vmatpush3.bf16.msra.mxu0 %v26259_v60 }
 0x6de   :  { %23021 = vmatprep.subr.bf16.mxu0 %v25999_v50  ;;  %22228 = vmatprep.subr.bf16.mxu1 %v25816_v35 }
 0x6e0   :  { %v22014_v24 = vpop.f32.mrf.mxu1  ;;  %16557 = vmatmul.mubr.bf16.vlgmr.msra.gmra.mxu1 %v16374_v10  ;;  %v16642_v10 = vpack.c.bf16 %v16636_v61, %v16636_v61 }
 0x6e1   :  { %23022 = vmatpush3.bf16.msra.mxu0 %v26270_v5  ;;  %22229 = vmatpush3.bf16.msra.mxu1 %v25821_v17  ;;  %v26289_v17 = vld [vmem:[%s26587_s5 + $0x208] sm:$0xff]  }
 0x6e2   :  { %16732 = vmatprep.mubr.bf16.mxu1 %v16679_v30  ;;  %23023 = vmatprep.subr.bf16.mxu0 %v25999_v50  ;;  %v22015_v35 = vpop.f32.mrf.mxu1 }
 0x6e3   :  { %22230 = vmatprep.subr.bf16.mxu1 %v25829_v31  ;;  %v26298_v31 = vld [vmem:[%s26587_s5 + $0x200] sm:$0xff]   ;;  %v22016_v43 = vadd.f32 %v22015_v35, %v22014_v24 }
 0x6e4   :  { %v22017_v52 = vpop.f32.mrf.mxu1 }
 0x6e5   :  { %23024 = vmatpush3.bf16.msra.mxu0 %v26280_v62  ;;  %22231 = vmatpush3.bf16.msra.mxu1 %v25835_v41  ;;  %v16315_v41 = vld [vmem:[#allocation3 + $0x40] sm:$0xfc] }
 0x6e6   :  { %23025 = vmatprep.subr.bf16.mxu0 %v25999_v50  ;;  %22232 = vmatprep.subr.bf16.mxu1 %v25841_v21  ;;  %v16321_v4 = vpack.c.bf16 %v16318_v38, %v16315_v41  ;;  %v22018_v21 = vpop.f32.mrf.mxu1  ;;  %v16658_v41 = vshll.u32 %v16642_v10, 16 }
 0x6e7   :  { %v22019_v58 = vadd.f32 %v22018_v21, %v22017_v52  ;;  %v16655_v52 = vshrl.u32 %v16642_v10, 16 }
 0x6e8   :  { %v16376_v32 = vrot.slane %v16321_v4, 1  ;;  %v16660_v61 = vrot.slane %v16658_v41, 4 }
 0x6e9   :  { %23026 = vmatpush3.bf16.msra.mxu0 %v26289_v17  ;;  %22233 = vmatpush3.bf16.msra.mxu1 %v25848_v29  ;;  %v16633_v29 = vld [vmem:[#allocation3 + $0x50] sm:$0x80]  ;;  %v16657_v21 = vrot.slane %v16655_v52, 3 }
 0x6ea   :  { %23027 = vmatprep.subr.bf16.mxu0 %v25999_v50  ;;  %22234 = vmatprep.subr.bf16.mxu1 %v25856_v34  ;;  %v16639_v14 = vpack.c.bf16 %v26302_v53, %v16633_v29  ;;  %v14607_v34 = vadd.f32 %v22016_v43, %v26226_v12  ;;  %v14610_v12 = vadd.f32 %v22019_v58, %v26249_v0  ;;  %v16619_v29 = vld [vmem:[#allocation3 + $0x38] sm:$0xc0]  ;;  %v26650_v58 = vld [vmem:[#allocation26_spill] sm:$0xff] }
 0x6ec   :  { %v16647_v35 = vshrl.u32 %v16639_v14, 16 }
 0x6ed   :  { %23028 = vmatpush3.bf16.msra.mxu0 %v26298_v31  ;;  %22235 = vmatpush3.bf16.msra.mxu1 %v25862_v44 }
 0x6ee   :  { %22236 = vmatprep.subr.bf16.mxu1 %v25869_v9  ;;  %23033 = vmatprep.subr.bf16.mxu0 %v25999_v50  ;;  %v16650_v9 = vshll.u32 %v16639_v14, 16  ;;  %v16649_v43 = vrot.slane %v16647_v35, 3  ;;  %v26654_v35 = vld [vmem:[#allocation32_spill] sm:$0xff] }
 0x6f0   :  { %v14647_v24 = vpop.f32.mrf.mxu0  ;;  %23030 = vmatmul.mubr.bf16.vlgmr.msra.gmra.mxu0 %v16376_v32  ;;  %v16652_v0 = vrot.slane %v16650_v9, 4  ;;  %v16628_v32 = vpack.c.bf16 %v26204_v20, %v16619_v29  ;;  %v16882_v9 = vld [vmem:[#allocation3 + $0x10] sm:$0xf] }
 0x6f1   :  { %v14648_v30 = vadd.f32 %v14647_v24, %v14607_v34  ;;  %22237 = vmatpush3.bf16.msra.mxu1 %v25876_v16  ;;  %23034 = vmatpush3.bf16.msra.mxu0 %v25881_v59  ;;  %v16625_v59 = vld [vmem:[#allocation3 + $0x18] sm:$0x3]  ;;  %v26651_v34 = vld [vmem:[#allocation28_spill] sm:$0xff]  ;;  %v16885_v52 = vpack.c.bf16 %v16882_v9, %v26302_v53 }
 0x6f2   :  { %v22931_v44 = vpop.f32.mrf.mxu0  ;;  %22238 = vmatprep.subr.bf16.mxu1 %v25888_v56  ;;  %23035 = vmatprep.subr.bf16.mxu0 %v25999_v50  ;;  %v16631_v14 = vpack.c.bf16 %v16625_v59, %v16625_v59  ;;  %v26652_v24 = vld [vmem:[#allocation29_spill] sm:$0xff] }
 0x6f3   :  { %v26315_v38 = vadd.f32 %v14648_v30, %v26124_v28  ;;  %23049 = vmatprep.mubr.msk.bf16.mxu0 %vm24771_vm3, %v25999_v50  ;;  %v26653_v30 = vld [vmem:[#allocation31_spill] sm:$0xff] }
 0x6f4   :  { %v14650_v16 = vpop.f32.mrf.mxu0 }
 0x6f5   :  { %v14651_v4 = vadd.f32 %v14650_v16, %v14610_v12  ;;  %22239 = vmatpush3.bf16.msra.mxu1 %v25895_v47  ;;  %23036 = vmatpush3.bf16.msra.mxu0 %v25900_v6  ;;  %v16653_v47 = vor.u32 %v16652_v0, %v16649_v43  ;;  %v16661_v6 = vor.u32 %v16660_v61, %v16657_v21 }
 0x6f6   :  { %v22932_v56 = vpop.f32.mrf.mxu0  ;;  %22240 = vmatprep.subr.bf16.mxu1 %v25907_v48  ;;  %23037 = vmatprep.subr.bf16.mxu0 %v25999_v50  ;;  %v16791_v48 = vrot.slane %v16628_v32, 3 }
 0x6f7   :  { %v26325_v28 = vadd.f32 %v14651_v4, %v26145_v37  ;;  %v16792_v37 = vrot.slane %v16631_v14, 3 }
 0x6f9   :  { %22241 = vmatpush3.bf16.msra.mxu1 %v25916_v3  ;;  %23038 = vmatpush3.bf16.msra.mxu0 %v25921_v23  ;;  %v16662_v3 = vsel %vm16645_vm8, %v16653_v47, %v16661_v6  ;;  %v16793_v23 = vsel %vm10187_vm7, %v16791_v48, %v16792_v37 }
 0x6fa   :  { %22242 = vmatprep.subr.bf16.mxu1 %v25928_v55  ;;  %23039 = vmatprep.subr.bf16.mxu0 %v25999_v50 }
 0x6fd   :  { %22243 = vmatpush3.bf16.msra.mxu1 %v25935_v18  ;;  %23040 = vmatpush3.bf16.msra.mxu0 %v25940_v54  ;;  %v16624_v18 = vld [vmem:[#allocation3 + $0x10] sm:$0x3] }
 0x6fe   :  { %22259 = vmatprep.subr.bf16.mxu1 %v25947_v22  ;;  %23041 = vmatprep.subr.bf16.mxu0 %v25999_v50  ;;  %v16618_v22 = vld [vmem:[#allocation3 + $0x50] sm:$0xc0] }
 0x700   :  { %16733 = vmatmul.mubr.bf16.vlgmr.msra.gmra.mxu1 %v16662_v3  ;;  %v22045_v55 = vpop.f32.mrf.mxu1 }
 0x701   :  { %22260 = vmatpush3.bf16.msra.mxu1 %v25959_v26  ;;  %16832 = vmatprep.mubr.bf16.mxu1 %v16793_v23  ;;  %v16630_v26 = vpack.c.bf16 %v16624_v18, %v16624_v18 }
 0x702   :  { %22261 = vmatprep.subr.bf16.mxu1 %v25966_v39  ;;  %23042 = vmatpush3.bf16.msra.mxu0 %v25954_v19  ;;  %v22046_v54 = vpop.f32.mrf.mxu1  ;;  %v16627_v19 = vpack.c.bf16 %v26302_v53, %v16618_v22 }
 0x703   :  { %23043 = vmatprep.subr.bf16.mxu0 %v25999_v50  ;;  %v22047_v21 = vadd.f32 %v22046_v54, %v22045_v55 }
 0x704   :  { %v22048_v39 = vpop.f32.mrf.mxu1 }
 0x705   :  { %22262 = vmatpush3.bf16.msra.mxu1 %v25978_v27  ;;  %v16789_v27 = vrot.slane %v16630_v26, 3 }
 0x706   :  { %22263 = vmatprep.subr.bf16.mxu1 %v25984_v46  ;;  %23044 = vmatpush3.bf16.msra.mxu0 %v25973_v57  ;;  %v16788_v57 = vrot.slane %v16627_v19, 3  ;;  %v16883_v46 = vld [vmem:[#allocation3 + $0x18] sm:$0xf] }
 0x707   :  { %23045 = vmatprep.subr.bf16.mxu0 %v25999_v50 }
 0x709   :  { %22264 = vmatpush3.bf16.msra.mxu1 %v25997_v2  ;;  %v16790_v2 = vsel %vm10187_vm7, %v16788_v57, %v16789_v27 }
 0x70a   :  { %22265 = vmatprep.subr.bf16.mxu1 %v26006_v1  ;;  %23046 = vmatpush3.bf16.msra.mxu0 %v25992_v25  ;;  %v22049_v25 = vpop.f32.mrf.mxu1  ;;  %v16886_v1 = vpack.c.bf16 %v16883_v46, %v26204_v20  ;;  %v26649_v20 = vld [vmem:[#allocation25_spill] sm:$0xff] }
 0x70b   :  { %23047 = vmatprep.subr.bf16.mxu0 %v25999_v50  ;;  %v22050_v47 = vadd.f32 %v22049_v25, %v22048_v39  ;;  %v24719_v39 = vld [vmem:[%s26586_s4] ss:$0 sm:$0xff] }
 0x70d   :  { %22266 = vmatpush3.bf16.msra.mxu1 %v26018_v51  ;;  %v26642_v51 = vld [vmem:[#allocation15_spill] sm:$0xff] }
 0x70e   :  { %22267 = vmatprep.subr.bf16.mxu1 %v26025_v36  ;;  %23048 = vmatpush3.bf16.msra.mxu0 %v26013_v49 }
 0x70f   :  { %23053 = vmatprep.subr.bf16.mxu0 %v25999_v50 }
 0x710   :  { %v22067_v10 = vpop.f32.mrf.mxu0 }
 0x711   :  { %22268 = vmatpush3.bf16.msra.mxu1 %v26032_v33  ;;  %v26643_v33 = vld [vmem:[#allocation16_spill] sm:$0xff] }
 0x712   :  { %22269 = vmatprep.subr.bf16.mxu1 %v26044_v13  ;;  %v22068_v44 = vpop.f32.mrf.mxu0 }
 0x713   :  { %v22069_v43 = vadd.f32 %v22068_v44, %v22067_v10 }
 0x714   :  { %v22070_v12 = vpop.f32.mrf.mxu0 }
 0x715   :  { %22270 = vmatpush3.bf16.msra.mxu1 %v26051_v42  ;;  %v26644_v42 = vld [vmem:[#allocation18_spill] sm:$0xff]  ;;  %v15162_v32 = vadd.f32 %v22069_v43, %v22047_v21 }
 0x716   :  { %22271 = vmatprep.subr.bf16.mxu1 %v26063_v63  ;;  %v26645_v63 = vld [vmem:[#allocation19_spill] sm:$0xff]  ;;  %v22071_v41 = vpop.f32.mrf.mxu0 }
 0x717   :  { %v22072_v29 = vadd.f32 %v22071_v41, %v22070_v12 }
 0x719   :  { %22272 = vmatpush3.bf16.msra.mxu1 %v26072_v40  ;;  %v15165_v37 = vadd.f32 %v22072_v29, %v22050_v47  ;;  %v26659_v47 = vld [vmem:[#allocation14_spill] sm:$0xff] }
 0x71a   :  { %22273 = vmatprep.subr.bf16.mxu1 %v26084_v11  ;;  %v26646_v11 = vld [vmem:[#allocation21_spill] sm:$0xff] }
 0x71d   :  { %22274 = vmatpush3.bf16.msra.mxu1 %v26091_v8  ;;  %v26647_v8 = vld [vmem:[#allocation22_spill] sm:$0xff] }
 0x71e   :  { %22290 = vmatprep.subr.bf16.mxu1 %v26103_v15  ;;  %v26648_v15 = vld [vmem:[#allocation24_spill] sm:$0xff] }
 0x720   :  { %v15202_v49 = vpop.f32.mrf.mxu1  ;;  %16833 = vmatmul.mubr.bf16.vlgmr.msra.gmra.mxu1 %v16790_v2 }
 0x721   :  { %22291 = vmatpush3.bf16.msra.mxu1 %v26642_v51  ;;  %16920 = vmatprep.mubr.bf16.mxu1 %v16886_v1  ;;  %v15203_v6 = vadd.f32 %v15202_v49, %v15162_v32  ;;  %v26657_v32 = vld [vmem:[#allocation12_spill] sm:$0xff] }
 0x722   :  { %v22951_v36 = vpop.f32.mrf.mxu1  ;;  %22292 = vmatprep.subr.bf16.mxu1 %v26643_v33 }
 0x723   :  { %v15209_v18 = vadd.f32 %v15203_v6, %v26315_v38 }
 0x724   :  { %v15205_v13 = vpop.f32.mrf.mxu1 }
 0x725   :  { %22293 = vmatpush3.bf16.msra.mxu1 %v26644_v42  ;;  %v15206_v22 = vadd.f32 %v15205_v13, %v15165_v37  ;;  %v26660_v37 = vld [vmem:[#allocation17_spill] sm:$0xff] }
 0x726   :  { %22294 = vmatprep.subr.bf16.mxu1 %v26645_v63  ;;  %v22952_v40 = vpop.f32.mrf.mxu1 }
 0x727   :  { %v15210_v46 = vadd.f32 %v15206_v22, %v26325_v28  ;;  %v26661_v22 = vld [vmem:[#allocation20_spill] sm:$0xff] }
 0x729   :  { %22295 = vmatpush3.bf16.msra.mxu1 %v26646_v11 }
 0x72a   :  { %22296 = vmatprep.subr.bf16.mxu1 %v26647_v8 }
 0x72d   :  { %22297 = vmatpush3.bf16.msra.mxu1 %v26648_v15 }
 0x72e   :  { %22298 = vmatprep.subr.bf16.mxu1 %v26649_v20 }
 0x730   :  { %v22098_v4 = vpop.f32.mrf.mxu0 }
 0x731   :  { %22299 = vmatpush3.bf16.msra.mxu1 %v26650_v58 }
 0x732   :  { %22300 = vmatprep.subr.bf16.mxu1 %v26651_v34  ;;  %v22099_v56 = vpop.f32.mrf.mxu0 }
 0x733   :  { %v22100_v48 = vadd.f32 %v22099_v56, %v22098_v4  ;;  %v26655_v56 = vld [vmem:[#allocation10_spill] sm:$0xff] }
 0x734   :  { %v22101_v61 = vpop.f32.mrf.mxu0 }
 0x735   :  { %22301 = vmatpush3.bf16.msra.mxu1 %v26652_v24 }
 0x736   :  { %22302 = vmatprep.subr.bf16.mxu1 %v26653_v30 }
 0x739   :  { %22303 = vmatpush3.bf16.msra.mxu1 %v26654_v35 }
 0x73a   :  { %22304 = vmatprep.subr.bf16.mxu1 %v26247_v45 }
 0x73d   :  { %22305 = vmatpush3.bf16.msra.mxu1 %v26254_v7  ;;  %v22102_v7 = vpop.f32.mrf.mxu0 }
 0x73e   :  { %v22103_v19 = vadd.f32 %v22102_v7, %v22101_v61  ;;  %v26656_v61 = vld [vmem:[#allocation11_spill] sm:$0xff] }
 0x740   :  { %v22120_v16 = vpop.f32.mrf.mxu1  ;;  %16921 = vmatmul.mubr.bf16.vlgmr.msra.gmra.mxu1 %v16885_v52 }
 0x742   :  { %v22121_v59 = vpop.f32.mrf.mxu1 }
 0x743   :  { %v22122_v14 = vadd.f32 %v22121_v59, %v22120_v16 }
 0x744   :  { %v22123_v0 = vpop.f32.mrf.mxu1 }
 0x745   :  { %v15657_v3 = vadd.f32 %v22122_v14, %v22100_v48  ;;  %v26658_v14 = vld [vmem:[#allocation13_spill] sm:$0xff] }
 0x746   :  { %v22124_v45 = vpop.f32.mrf.mxu1 }
 0x747   :  { %v22125_v53 = vadd.f32 %v22124_v45, %v22123_v0 }
 0x749   :  { %v15660_v54 = vadd.f32 %v22125_v53, %v22103_v19 }
 0x750   :  { %v15697_v23 = vpop.f32.mrf.mxu0 }
 0x751   :  { %v15698_v26 = vadd.f32 %v15697_v23, %v15657_v3 }
 0x752   :  { %v22971_v57 = vpop.f32.mrf.mxu0 }
 0x753   :  { %v15704_v55 = vadd.f32 %v15698_v26, %v15209_v18 }
 0x754   :  { %v15700_v27 = vpop.f32.mrf.mxu0 }
 0x755   :  { %v15706_v25 = vadd.f32 %v24719_v39, %v15704_v55  ;;  %v15701_v2 = vadd.f32 %v15700_v27, %v15660_v54 }
 0x756   :  { %v22972_v1 = vpop.f32.mrf.mxu0 }
 0x757   :  { %v15708_v49 = vmax.f32 %v15706_v25, 0.0  ;;  %v15705_v51 = vadd.f32 %v15701_v2, %v15210_v46  ;;  %v26662_v46 = vld [vmem:[#allocation23_spill] sm:$0xff] }
 0x759   :  { %v15712_v36 = vrot.slane %v15708_v49, 2  ;;  %v15707_v38 = vadd.f32 %v24719_v39, %v15705_v51  ;;  %v26663_v51 = vld [vmem:[#allocation27_spill] sm:$0xff] }
 0x75b   :  { %15718 = vst [vmem:[#allocation3 + $0x58] sm:$0xc0] %v15712_v36  ;;  %v15709_v33 = vmax.f32 %v15707_v38, 0.0 }
 0x75d   :  { %v15713_v13 = vrot.slane %v15709_v33, 2 }
 0x75f   :  { %v26387_v42 = vsel %vm2678_vm5, %v15712_v36, %v15713_v13  ;;  %15720 = vst [vmem:[#allocation3 + $0x30] sm:$0xf] %v15713_v13  ;;  %v26664_v13 = vld [vmem:[#allocation30_spill] sm:$0xff] }
 0x760   :  { %v22151_v63 = vpop.f32.mrf.mxu1 }
 0x762   :  { %v22152_v28 = vpop.f32.mrf.mxu1  ;;  %v16635_v40 = vld [vmem:[#allocation3 + $0x58] sm:$0x80] }
 0x763   :  { %v16641_v11 = vpack.c.bf16 %v26387_v42, %v16635_v40  ;;  %v16620_v3 = vld [vmem:[#allocation3 + $0x58] sm:$0xc0]  ;;  %v22153_v57 = vadd.f32 %v22152_v28, %v22151_v63 }
 0x764   :  { %v22154_v8 = vpop.f32.mrf.mxu1  ;;  %v16629_v19 = vpack.c.bf16 %v26387_v42, %v16620_v3  ;;  %v26665_v28 = vld [vmem:[#allocation33_spill] sm:$0xff] }
 0x765   :  { %v16681_v15 = vshrl.u32 %v16641_v11, 16  ;;  %v16684_v20 = vshll.u32 %v16641_v11, 16 }
 0x766   :  { %v22155_v58 = vpop.f32.mrf.mxu1  ;;  %v16638_v34 = vld [vmem:[#allocation3 + $0x30] sm:$0x7]  ;;  %v16794_v39 = vrot.slane %v16629_v19, 3  ;;  %v24411_v19 = vld [vmem:[#allocation6 + $0xa4] ss:$8 sps:$4 sm:$0xff]  }
 0x767   :  { %v22156_v10 = vadd.f32 %v22155_v58, %v22154_v8  ;;  %v16644_v24 = vpack.c.bf16 %v16638_v34, %v16638_v34  ;;  %v16683_v30 = vrot.slane %v16681_v15, 3  ;;  %v16686_v44 = vrot.slane %v16684_v20, 4  ;;  %v16626_v7 = vld [vmem:[#allocation3 + $0x30] sm:$0x3] }
 0x768   :  { %v16632_v18 = vpack.c.bf16 %v16626_v7, %v16626_v7  ;;  %v24400_v7 = vld [vmem:[#allocation6 + $0x40] ss:$8 sps:$4 sm:$0xff]  }
 0x769   :  { %v16689_v35 = vshrl.u32 %v16644_v24, 16  ;;  %v16692_v9 = vshll.u32 %v16644_v24, 16  ;;  %v16687_v41 = vor.u32 %v16686_v44, %v16683_v30 }
 0x76a   :  { %v16795_v54 = vrot.slane %v16632_v18, 3 }
 0x76b   :  { %v16691_v12 = vrot.slane %v16689_v35, 3  ;;  %v16694_v52 = vrot.slane %v16692_v9, 4 }
 0x76c   :  { %v16796_v2 = vsel %vm10187_vm7, %v16794_v39, %v16795_v54  ;;  %v24414_v54 = vld [vmem:[#allocation6 + $0x24] ss:$8 sps:$4 sm:$0xff]   ;;  %v24418_v39 = vld [vmem:[#allocation6 + $0x10] ss:$8 sps:$4 sm:$0xff]  }
 0x76d   :  { %v16695_v16 = vor.u32 %v16694_v52, %v16691_v12 }
 0x76f   :  { %v16696_v4 = vsel %vm16645_vm8, %v16687_v41, %v16695_v16  ;;  %v24381_v41 = vld [vmem:[#allocation6 + $0xf4] ss:$8 sps:$4 sm:$0xff]   ;;  %v24382_v16 = vld [vmem:[#allocation6 + $0x70] ss:$8 sps:$4 sm:$0xff]  }
 0x770   :  { %v16080_v59 = vpop.f32.mrf.mxu0  ;;  %23050 = vmatmul.mubr.bf16.vlgmr.msra.gmra.mxu0 %v16696_v4  ;;  %v24384_v4 = vld [vmem:[#allocation6 + $0x74] ss:$8 sps:$4 sm:$0xff]   ;;  %17099 = vmatprep.subr.bf16.mxu1 %v24381_v41 }
 0x771   :  { %23054 = vmatpush3.bf16.msra.mxu0 %v26655_v56  ;;  %23069 = vmatprep.mubr.msk.bf16.mxu0 %vm24771_vm3, %v25999_v50  ;;  %v16081_v27 = vadd.f32 %v22153_v57, %v16080_v59  ;;  %v24387_v59 = vld [vmem:[#allocation6 + $0xe4] ss:$8 sps:$4 sm:$0xff]   ;;  %v24409_v57 = vld [vmem:[#allocation6 + $0xa0] ss:$8 sps:$4 sm:$0xff]  }
 0x772   :  { %v22991_v43 = vpop.f32.mrf.mxu0  ;;  %23055 = vmatprep.subr.bf16.mxu0 %v25999_v50  ;;  %v24390_v56 = vld [vmem:[#allocation6 + $0x64] ss:$8 sps:$4 sm:$0xff]  }
 0x773   :  { %v24385_v43 = vld [vmem:[#allocation6 + $0xe0] ss:$8 sps:$4 sm:$0xff]  }
 0x774   :  { %v16083_v0 = vpop.f32.mrf.mxu0 }
 0x775   :  { %v16084_v21 = vadd.f32 %v22156_v10, %v16083_v0  ;;  %23056 = vmatpush3.bf16.msra.mxu0 %v26656_v61  ;;  %v24388_v0 = vld [vmem:[#allocation6 + $0x60] ss:$8 sps:$4 sm:$0xff]   ;;  %v24396_v61 = vld [vmem:[#allocation6 + $0x54] ss:$8 sps:$4 sm:$0xff]  }
 0x776   :  { %v22992_v29 = vpop.f32.mrf.mxu0  ;;  %23057 = vmatprep.subr.bf16.mxu0 %v25999_v50 }
 0x777   :  { %v24391_v29 = vld [vmem:[#allocation6 + $0xd0] ss:$8 sps:$4 sm:$0xff]  }
 0x779   :  { %23058 = vmatpush3.bf16.msra.mxu0 %v26657_v32  ;;  %v24394_v32 = vld [vmem:[#allocation6 + $0x50] ss:$8 sps:$4 sm:$0xff]  }
 0x77a   :  { %23059 = vmatprep.subr.bf16.mxu0 %v25999_v50 }
 0x77d   :  { %23060 = vmatpush3.bf16.msra.mxu0 %v26658_v14  ;;  %v24399_v14 = vld [vmem:[#allocation6 + $0xc4] ss:$8 sps:$4 sm:$0xff]  }
 0x77e   :  { %23061 = vmatprep.subr.bf16.mxu0 %v25999_v50 }
 0x780   :  { %v22182_v45 = vpop.f32.mrf.mxu1 }
 0x781   :  { %23062 = vmatpush3.bf16.msra.mxu0 %v26659_v47 }
 0x782   :  { %v22183_v6 = vpop.f32.mrf.mxu1  ;;  %23063 = vmatprep.subr.bf16.mxu0 %v25999_v50 }
 0x783   :  { %v22184_v55 = vadd.f32 %v22183_v6, %v22182_v45  ;;  %v24402_v45 = vld [vmem:[#allocation6 + $0x44] ss:$8 sps:$4 sm:$0xff]   ;;  %v24397_v6 = vld [vmem:[#allocation6 + $0xc0] ss:$8 sps:$4 sm:$0xff]  }
 0x784   :  { %v22185_v48 = vpop.f32.mrf.mxu1 }
 0x785   :  { %23064 = vmatpush3.bf16.msra.mxu0 %v26660_v37  ;;  %v16266_v25 = vadd.f32 %v22184_v55, %v16081_v27  ;;  %v24405_v37 = vld [vmem:[#allocation6 + $0xb4] ss:$8 sps:$4 sm:$0xff]   ;;  %v24412_v55 = vld [vmem:[#allocation6 + $0x20] ss:$8 sps:$4 sm:$0xff]   ;;  %v24415_v27 = vld [vmem:[#allocation6 + $0x90] ss:$8 sps:$4 sm:$0xff]  }
 0x786   :  { %v22186_v53 = vpop.f32.mrf.mxu1  ;;  %23065 = vmatprep.subr.bf16.mxu0 %v25999_v50 }
 0x787   :  { %v22187_v23 = vadd.f32 %v22186_v53, %v22185_v48  ;;  %v24408_v53 = vld [vmem:[#allocation6 + $0x34] ss:$8 sps:$4 sm:$0xff]  }
 0x789   :  { %23066 = vmatpush3.bf16.msra.mxu0 %v26661_v22  ;;  %v16269_v26 = vadd.f32 %v22187_v23, %v16084_v21  ;;  %v24393_v21 = vld [vmem:[#allocation6 + $0xd4] ss:$8 sps:$4 sm:$0xff]   ;;  %v24403_v23 = vld [vmem:[#allocation6 + $0xb0] ss:$8 sps:$4 sm:$0xff]  }
 0x78a   :  { %23067 = vmatprep.subr.bf16.mxu0 %v25999_v50  ;;  %v24406_v22 = vld [vmem:[#allocation6 + $0x30] ss:$8 sps:$4 sm:$0xff]  }
 0x78d   :  { %23068 = vmatpush3.bf16.msra.mxu0 %v26662_v46  ;;  %v24417_v46 = vld [vmem:[#allocation6 + $0x94] ss:$8 sps:$4 sm:$0xff]  }
 0x78e   :  { %23073 = vmatprep.subr.bf16.mxu0 %v25999_v50 }
 0x790   :  { %v16306_v1 = vpop.f32.mrf.mxu0  ;;  %23070 = vmatmul.mubr.bf16.vlgmr.msra.gmra.mxu0 %v16796_v2  ;;  %v24421_v2 = vld [vmem:[#allocation6 + $0x80] ss:$8 sps:$4 sm:$0xff]  }
 0x791   :  { %v16307_v49 = vadd.f32 %v16306_v1, %v16266_v25  ;;  %23074 = vmatpush3.bf16.msra.mxu0 %v26663_v51  ;;  %23089 = vmatprep.mubr.msk.bf16.mxu0 %vm24771_vm3, %v25999_v50  ;;  %v24420_v25 = vld [vmem:[#allocation6 + $0x14] ss:$8 sps:$4 sm:$0xff]   ;;  %v24423_v1 = vld [vmem:[#allocation6 + $0x84] ss:$8 sps:$4 sm:$0xff]  }
 0x792   :  { %v23011_v36 = vpop.f32.mrf.mxu0  ;;  %23075 = vmatprep.subr.bf16.mxu0 %v25999_v50  ;;  %v24429_v51 = vld [vmem:[#allocation6 + $0x174] ss:$8 sps:$4 sm:$0xff]  }
 0x793   :  { %v24424_v36 = vld [vmem:[#allocation6] ss:$8 sps:$4 sm:$0xff]  }
 0x794   :  { %v16309_v38 = vpop.f32.mrf.mxu0 }
 0x795   :  { %v16310_v33 = vadd.f32 %v16309_v38, %v16269_v26  ;;  %23076 = vmatpush3.bf16.msra.mxu0 %v26664_v13  ;;  %v24432_v38 = vld [vmem:[#allocation6 + $0x1f4] ss:$8 sps:$4 sm:$0xff]  }
 0x796   :  { %v23012_v63 = vpop.f32.mrf.mxu0  ;;  %23077 = vmatprep.subr.bf16.mxu0 %v25999_v50 }
 0x799   :  { %23078 = vmatpush3.bf16.msra.mxu0 %v26665_v28 }
 0x79a   :  { %23079 = vmatprep.subr.bf16.mxu0 %v25999_v50 }
 0x79d   :  { %23080 = vmatpush3.bf16.msra.mxu0 %v26259_v60  ;;  %v16884_v60 = vld [vmem:[#allocation3 + $0x30] sm:$0xf] }
 0x79e   :  { %23081 = vmatprep.subr.bf16.mxu0 %v25999_v50  ;;  %v16887_v58 = vpack.c.bf16 %v16884_v60, %v26387_v42  ;;  %v24379_v42 = vld [vmem:[#allocation6 + $0xf0] ss:$8 sps:$4 sm:$0xff]  }
 0x79f   :  { %17100 = vmatpush1.bf16.msra.mxu1 %v24379_v42 }
 0x7a0   :  { %v22213_v40 = vpop.f32.mrf.mxu1  ;;  %17101 = vmatprep.subr.bf16.mxu1 %v24387_v59 }
 0x7a1   :  { %23082 = vmatpush3.bf16.msra.mxu0 %v26270_v5 }
 0x7a2   :  { %v22214_v11 = vpop.f32.mrf.mxu1  ;;  %23083 = vmatprep.subr.bf16.mxu0 %v25999_v50 }
 0x7a3   :  { %v22215_v5 = vadd.f32 %v22214_v11, %v22213_v40  ;;  %17102 = vmatpush1.bf16.msra.mxu1 %v24385_v43 }
 0x7a4   :  { %v22216_v8 = vpop.f32.mrf.mxu1  ;;  %17103 = vmatprep.subr.bf16.mxu1 %v24393_v21 }
 0x7a5   :  { %23084 = vmatpush3.bf16.msra.mxu0 %v26280_v62 }
 0x7a6   :  { %v22217_v15 = vpop.f32.mrf.mxu1  ;;  %23085 = vmatprep.subr.bf16.mxu0 %v25999_v50 }
 0x7a7   :  { %v22218_v20 = vadd.f32 %v22217_v15, %v22216_v8  ;;  %17104 = vmatpush1.bf16.msra.mxu1 %v24391_v29 }
 0x7a8   :  { %17105 = vmatprep.subr.bf16.mxu1 %v24399_v14 }
 0x7a9   :  { %23086 = vmatpush3.bf16.msra.mxu0 %v26289_v17 }
 0x7aa   :  { %23087 = vmatprep.subr.bf16.mxu0 %v25999_v50 }
 0x7ab   :  { %17106 = vmatpush1.bf16.msra.mxu1 %v24397_v6  ;;  %v24427_v6 = vld [vmem:[#allocation6 + $0x170] ss:$8 sps:$4 sm:$0xff]  }
 0x7ac   :  { %17107 = vmatprep.subr.bf16.mxu1 %v24405_v37 }
 0x7ad   :  { %23088 = vmatpush3.bf16.msra.mxu0 %v26298_v31 }
 0x7ae   :  { %17220 = vmatprep.subr.bf16.mxu0 %v24384_v4 }
 0x7af   :  { %17108 = vmatpush1.bf16.msra.mxu1 %v24403_v23 }
 0x7b0   :  { %v16599_v34 = vpop.f32.mrf.mxu0  ;;  %23090 = vmatmul.mubr.bf16.vlgmr.msra.gmra.mxu0 %v16887_v58  ;;  %17109 = vmatprep.subr.bf16.mxu1 %v24411_v19  ;;  %v24438_v19 = vld [vmem:[#allocation6 + $0x1e4] ss:$8 sps:$4 sm:$0xff]  }
 0x7b1   :  { %v16600_v10 = vadd.f32 %v22215_v5, %v16599_v34  ;;  %17221 = vmatpush1.bf16.msra.mxu0 %v24382_v16 }
 0x7b2   :  { %v23031_v24 = vpop.f32.mrf.mxu0  ;;  %17222 = vmatprep.subr.bf16.mxu0 %v24390_v56 }
 0x7b3   :  { %v26429_v30 = vadd.f32 %v16600_v10, %v16307_v49  ;;  %17110 = vmatpush1.bf16.msra.mxu1 %v24409_v57  ;;  %v24426_v49 = vld [vmem:[#allocation6 + $0x4] ss:$8 sps:$4 sm:$0xff]   ;;  %v24433_v57 = vld [vmem:[#allocation6 + $0x160] ss:$8 sps:$4 sm:$0xff]  }
 0x7b4   :  { %v16602_v62 = vpop.f32.mrf.mxu0  ;;  %17111 = vmatprep.subr.bf16.mxu1 %v24417_v46 }
 0x7b5   :  { %v16603_v44 = vadd.f32 %v22218_v20, %v16602_v62  ;;  %17223 = vmatpush1.bf16.msra.mxu0 %v24388_v0 }
 0x7b6   :  { %v23032_v35 = vpop.f32.mrf.mxu0  ;;  %17224 = vmatprep.subr.bf16.mxu0 %v24396_v61 }
 0x7b7   :  { %v26431_v9 = vadd.f32 %v16603_v44, %v16310_v33  ;;  %17112 = vmatpush1.bf16.msra.mxu1 %v24415_v27  ;;  %v24772_v33 = vmov 0   ;;  %v20320_v44 = vld [vmem:[%s26588_s6] ss:$0 sm:$0xff] }
 0x7b8   :  { %17113 = vmatprep.subr.bf16.mxu1 %v24423_v1  ;;  %17131 = vmatprep.mubr.bf16.mxu1 %v24772_v33  ;;  %v24436_v27 = vld [vmem:[#allocation6 + $0x1e0] ss:$8 sps:$4 sm:$0xff]   ;;  %v24447_v1 = vld [vmem:[#allocation6 + $0x144] ss:$8 sps:$4 sm:$0xff]  }
 0x7b9   :  { %17225 = vmatpush1.bf16.msra.mxu0 %v24394_v32  ;;  %17252 = vmatprep.mubr.bf16.mxu0 %v24772_v33  ;;  %v16615_v29 = vadd.f32 %v20320_v44, %v26431_v9  ;;  %v24430_v9 = vld [vmem:[#allocation6 + $0x1f0] ss:$8 sps:$4 sm:$0xff]  }
 0x7ba   :  { %17226 = vmatprep.subr.bf16.mxu0 %v24402_v45 }
 0x7bb   :  { %17114 = vmatpush1.bf16.msra.mxu1 %v24421_v2  ;;  %v26463_v37 = vmax.f32 %v16615_v29, 0.0  ;;  %v24439_v2 = vld [vmem:[#allocation6 + $0x150] ss:$8 sps:$4 sm:$0xff]  }
 0x7bc   :  { %17364 = vmatprep.subr.bf16.mxu1 %v24429_v51  ;;  %v24450_v51 = vld [vmem:[#allocation6 + $0x1c4] ss:$8 sps:$4 sm:$0xff]   ;;  %v24478_v29 = vld [vmem:[#allocation6 + $0x2f0] ss:$8 sps:$4 sm:$0xff]  }
 0x7bd   :  { %17227 = vmatpush1.bf16.msra.mxu0 %v24400_v7 }
 0x7be   :  { %17228 = vmatprep.subr.bf16.mxu0 %v24408_v53 }
 0x7c0   :  { %v26433_v17 = vpop.f32.mrf.mxu1 }
 0x7c1   :  { %17229 = vmatpush1.bf16.msra.mxu0 %v24406_v22 }
 0x7c2   :  { %v26435_v50 = vpop.f32.mrf.mxu1  ;;  %17230 = vmatprep.subr.bf16.mxu0 %v24414_v54  ;;  %v24441_v54 = vld [vmem:[#allocation6 + $0x154] ss:$8 sps:$4 sm:$0xff]  }
 0x7c3   :  { %v22246_v24 = vadd.f32 %v26435_v50, %v26433_v17 }
 0x7c4   :  { %v22247_v12 = vpop.f32.mrf.mxu1 }
 0x7c5   :  { %17231 = vmatpush1.bf16.msra.mxu0 %v24412_v55  ;;  %v18283_v55 = vrot.slane %v26463_v37, 1 }
 0x7c6   :  { %v22248_v31 = vpop.f32.mrf.mxu1  ;;  %17232 = vmatprep.subr.bf16.mxu0 %v24420_v25 }
 0x7c7   :  { %v26437_v52 = vadd.f32 %v22248_v31, %v22247_v12  ;;  %v16614_v31 = vadd.f32 %v20320_v44, %v26429_v30 }
 0x7c9   :  { %17233 = vmatpush1.bf16.msra.mxu0 %v24418_v39  ;;  %v26454_v43 = vmax.f32 %v16614_v31, 0.0  ;;  %v24444_v39 = vld [vmem:[#allocation6 + $0x1d4] ss:$8 sps:$4 sm:$0xff]  }
 0x7ca   :  { %17234 = vmatprep.subr.bf16.mxu0 %v24426_v49  ;;  %v24442_v49 = vld [vmem:[#allocation6 + $0x1d0] ss:$8 sps:$4 sm:$0xff]   ;;  %v24477_v31 = vld [vmem:[#allocation6 + $0x274] ss:$8 sps:$4 sm:$0xff]  }
 0x7cb   :  { %v16998_v45 = vrot.slane %v26454_v43, 1 }
 0x7cd   :  { %17235 = vmatpush1.bf16.msra.mxu0 %v24424_v36  ;;  %v24445_v36 = vld [vmem:[#allocation6 + $0x140] ss:$8 sps:$4 sm:$0xff]  }
 0x7ce   :  { %17510 = vmatprep.subr.bf16.mxu0 %v24432_v38  ;;  %v24453_v38 = vld [vmem:[#allocation6 + $0x134] ss:$8 sps:$4 sm:$0xff]  }
 0x7e0   :  { %v26439_v47 = vpop.f32.mrf.mxu1 }
 0x7e2   :  { %v26441_v48 = vpop.f32.mrf.mxu1 }
 0x7e3   :  { %v22277_v12 = vadd.f32 %v26441_v48, %v26439_v47 }
 0x7e4   :  { %v22278_v3 = vpop.f32.mrf.mxu1 }
 0x7e6   :  { %v22279_v18 = vpop.f32.mrf.mxu1 }
 0x7e7   :  { %v22280_v26 = vadd.f32 %v22279_v18, %v22278_v3  ;;  %v24435_v3 = vld [vmem:[#allocation6 + $0x164] ss:$8 sps:$4 sm:$0xff]  }
 0x800   :  { %v22306_v34 = vpop.f32.mrf.mxu1 }
 0x802   :  { %v22307_v10 = vpop.f32.mrf.mxu1 }
 0x804   :  { %v22309_v35 = vpop.f32.mrf.mxu1 }
 0x806   :  { %v22310_v41 = vpop.f32.mrf.mxu1 }
 0x807   :  { %v22311_v17 = vadd.f32 %v22310_v41, %v22309_v35  ;;  %v17261_v35 = vrot.slane %v26454_v43, 2 }
 0x830   :  { %v16775_v13 = vpop.f32.mrf.mxu0 }
 0x831   :  { %v16776_v62 = vadd.f32 %v22246_v24, %v16775_v13  ;;  %v24448_v13 = vld [vmem:[#allocation6 + $0x1c0] ss:$8 sps:$4 sm:$0xff]  }
 0x832   :  { %v23051_v63 = vpop.f32.mrf.mxu0 }
 0x833   :  { %v16835_v42 = vadd.f32 %v22277_v12, %v16776_v62  ;;  %v24456_v63 = vld [vmem:[#allocation6 + $0x1b4] ss:$8 sps:$4 sm:$0xff]   ;;  %v24474_v62 = vld [vmem:[#allocation6 + $0x184] ss:$8 sps:$4 sm:$0xff]  }
 0x834   :  { %v16778_v28 = vpop.f32.mrf.mxu0 }
 0x835   :  { %v16779_v40 = vadd.f32 %v26437_v52, %v16778_v28  ;;  %v22308_v52 = vadd.f32 %v22307_v10, %v22306_v34  ;;  %v24451_v28 = vld [vmem:[#allocation6 + $0x130] ss:$8 sps:$4 sm:$0xff]   ;;  %v24471_v34 = vld [vmem:[#allocation6 + $0x104] ss:$8 sps:$4 sm:$0xff]  }
 0x836   :  { %v23052_v11 = vpop.f32.mrf.mxu0  ;;  %v24466_v10 = vld [vmem:[#allocation6 + $0x190] ss:$8 sps:$4 sm:$0xff]  }
 0x837   :  { %v16838_v8 = vadd.f32 %v22280_v26, %v16779_v40  ;;  %v24459_v40 = vld [vmem:[#allocation6 + $0x124] ss:$8 sps:$4 sm:$0xff]   ;;  %v24454_v11 = vld [vmem:[#allocation6 + $0x1b0] ss:$8 sps:$4 sm:$0xff]  }
 0x850   :  { %v16875_v15 = vpop.f32.mrf.mxu0 }
 0x851   :  { %v16876_v4 = vadd.f32 %v16875_v15, %v16835_v42  ;;  %v24457_v15 = vld [vmem:[#allocation6 + $0x120] ss:$8 sps:$4 sm:$0xff]  }
 0x852   :  { %v23071_v20 = vpop.f32.mrf.mxu0  ;;  %v24472_v42 = vld [vmem:[#allocation6 + $0x180] ss:$8 sps:$4 sm:$0xff]  }
 0x853   :  { %v24465_v20 = vld [vmem:[#allocation6 + $0x114] ss:$8 sps:$4 sm:$0xff]  }
 0x854   :  { %v16878_v60 = vpop.f32.mrf.mxu0 }
 0x855   :  { %v16879_v58 = vadd.f32 %v16878_v60, %v16838_v8  ;;  %v24462_v8 = vld [vmem:[#allocation6 + $0x1a4] ss:$8 sps:$4 sm:$0xff]   ;;  %v24460_v60 = vld [vmem:[#allocation6 + $0x1a0] ss:$8 sps:$4 sm:$0xff]  }
 0x856   :  { %v23072_v5 = vpop.f32.mrf.mxu0 }
 0x857   :  { %v24463_v5 = vld [vmem:[#allocation6 + $0x110] ss:$8 sps:$4 sm:$0xff]  }
 0x870   :  { %v16963_v16 = vpop.f32.mrf.mxu0 }
 0x871   :  { %v16964_v59 = vadd.f32 %v22308_v52, %v16963_v16  ;;  %v17407_v16 = vrot.slane %v26454_v43, 3 }
 0x872   :  { %v23091_v56 = vpop.f32.mrf.mxu0 }
 0x873   :  { %v16970_v50 = vadd.f32 %v16964_v59, %v16876_v4  ;;  %v24480_v59 = vld [vmem:[#allocation6 + $0x2f4] ss:$8 sps:$4 sm:$0xff]   ;;  %v18427_v56 = vrot.slane %v26463_v37, 2 }
 0x874   :  { %v16966_v0 = vpop.f32.mrf.mxu0 }
 0x875   :  { %v16972_v21 = vadd.f32 %v20320_v44, %v16970_v50  ;;  %v16967_v61 = vadd.f32 %v22311_v17, %v16966_v0  ;;  %v24475_v17 = vld [vmem:[#allocation6 + $0x270] ss:$8 sps:$4 sm:$0xff]   ;;  %v18573_v0 = vrot.slane %v26463_v37, 3 }
 0x876   :  { %v23092_v32 = vpop.f32.mrf.mxu0 }
 0x877   :  { %v26457_v14 = vmax.f32 %v16972_v21, 0.0  ;;  %v16971_v30 = vadd.f32 %v16967_v61, %v16879_v58  ;;  %v24468_v58 = vld [vmem:[#allocation6 + $0x194] ss:$8 sps:$4 sm:$0xff]   ;;  %v24483_v61 = vld [vmem:[#allocation6 + $0x264] ss:$8 sps:$4 sm:$0xff]  }
 0x879   :  { %v16973_v47 = vadd.f32 %v20320_v44, %v16971_v30  ;;  %v17000_v48 = vsel %vm185_vm2, %v16998_v45, %v26457_v14  ;;  %v16977_v7 = vrot.slane %v26457_v14, 7  ;;  %v17263_v24 = vrot.slane %v26457_v14, 1  ;;  %v24469_v44 = vld [vmem:[#allocation6 + $0x100] ss:$8 sps:$4 sm:$0xff]   ;;  %v24486_v45 = vld [vmem:[#allocation6 + $0x2e4] ss:$8 sps:$4 sm:$0xff]  }
 0x87a   :  { %v17001_v53 = vpack.c.bf16 %v17000_v48, %v17000_v48  ;;  %v17409_v12 = vrot.slane %v26457_v14, 2  ;;  %v24489_v48 = vld [vmem:[#allocation6 + $0x254] ss:$8 sps:$4 sm:$0xff]  }
 0x87b   :  { %v26465_v23 = vmax.f32 %v16973_v47, 0.0  ;;  %v16979_v18 = vsel %vm185_vm2, %v26454_v43, %v16977_v7  ;;  %v17265_v41 = vsel %vm185_vm2, %v17261_v35, %v17263_v24  ;;  %v24484_v7 = vld [vmem:[#allocation6 + $0x2e0] ss:$8 sps:$4 sm:$0xff]   ;;  %v24531_v24 = vld [vmem:[#allocation6 + $0x364] ss:$8 sps:$4 sm:$0xff]  }
 0x87c   :  { %17132 = vmatmul.mubr.bf16.vlgmr.msra.gmra.mxu1 %v17001_v53  ;;  %v16980_v22 = vpack.c.bf16 %v16979_v18, %v16979_v18  ;;  %v17411_v50 = vsel %vm185_vm2, %v17407_v16, %v17409_v12  ;;  %v17266_v21 = vpack.c.bf16 %v17265_v41, %v17265_v41  ;;  %v24487_v53 = vld [vmem:[#allocation6 + $0x250] ss:$8 sps:$4 sm:$0xff]   ;;  %v24493_v18 = vld [vmem:[#allocation6 + $0x240] ss:$8 sps:$4 sm:$0xff]   ;;  %v24534_v35 = vld [vmem:[#allocation6 + $0x3e4] ss:$8 sps:$4 sm:$0xff]  }
 0x87d   :  { %v18138_v26 = vrot.slane %v26465_v23, 7  ;;  %17365 = vmatpush1.bf16.msra.mxu1 %v24427_v6  ;;  %17396 = vmatprep.mubr.bf16.mxu1 %v24772_v33  ;;  %v26479_v25 = vsel %vm185_vm2, %v18283_v55, %v26465_v23  ;;  %v18429_v52 = vrot.slane %v26465_v23, 1  ;;  %v18575_v4 = vrot.slane %v26465_v23, 2  ;;  %v24481_v6 = vld [vmem:[#allocation6 + $0x260] ss:$8 sps:$4 sm:$0xff]  }
 0x87e   :  { %17253 = vmatmul.mubr.bf16.vlgmr.msra.gmra.mxu0 %v16980_v22  ;;  %17366 = vmatprep.subr.bf16.mxu1 %v24435_v3  ;;  %v17412_v30 = vpack.c.bf16 %v17411_v50, %v17411_v50  ;;  %v24495_v3 = vld [vmem:[#allocation6 + $0x244] ss:$8 sps:$4 sm:$0xff]   ;;  %v24490_v23 = vld [vmem:[#allocation6 + $0x2d0] ss:$8 sps:$4 sm:$0xff]   ;;  %v24501_v22 = vld [vmem:[#allocation6 + $0x234] ss:$8 sps:$4 sm:$0xff]  }
 0x87f   :  { %17511 = vmatpush1.bf16.msra.mxu0 %v24430_v9  ;;  %17542 = vmatprep.mubr.bf16.mxu0 %v24772_v33  ;;  %v26475_v46 = vsel %vm185_vm2, %v26463_v37, %v18138_v26  ;;  %v26492_v32 = vsel %vm185_vm2, %v18427_v56, %v18429_v52  ;;  %v26495_v47 = vsel %vm185_vm2, %v18573_v0, %v18575_v4  ;;  %v24492_v37 = vld [vmem:[#allocation6 + $0x2d4] ss:$8 sps:$4 sm:$0xff]   ;;  %v24498_v9 = vld [vmem:[#allocation6 + $0x2c4] ss:$8 sps:$4 sm:$0xff]   ;;  %v24529_v12 = vld [vmem:[#allocation6 + $0x360] ss:$8 sps:$4 sm:$0xff]  }
 0x880   :  { %17512 = vmatprep.subr.bf16.mxu0 %v24438_v19  ;;  %v24496_v19 = vld [vmem:[#allocation6 + $0x2c0] ss:$8 sps:$4 sm:$0xff]   ;;  %v24504_v26 = vld [vmem:[#allocation6 + $0x2b4] ss:$8 sps:$4 sm:$0xff]   ;;  %v24507_v55 = vld [vmem:[#allocation6 + $0x224] ss:$8 sps:$4 sm:$0xff]  }
 0x881   :  { %17367 = vmatpush1.bf16.msra.mxu1 %v24433_v57  ;;  %v24499_v57 = vld [vmem:[#allocation6 + $0x230] ss:$8 sps:$4 sm:$0xff]   ;;  %v24532_v52 = vld [vmem:[#allocation6 + $0x3e0] ss:$8 sps:$4 sm:$0xff]   ;;  %v24543_v16 = vld [vmem:[#allocation6 + $0x344] ss:$8 sps:$4 sm:$0xff]  }
 0x882   :  { %17368 = vmatprep.subr.bf16.mxu1 %v24441_v54  ;;  %v24502_v54 = vld [vmem:[#allocation6 + $0x2b0] ss:$8 sps:$4 sm:$0xff]   ;;  %v24541_v56 = vld [vmem:[#allocation6 + $0x340] ss:$8 sps:$4 sm:$0xff]   ;;  %v24552_v0 = vld [vmem:[#allocation6 + $0x3b4] ss:$8 sps:$4 sm:$0xff]  }
 0x883   :  { %17513 = vmatpush1.bf16.msra.mxu0 %v24436_v27  ;;  %v24510_v27 = vld [vmem:[#allocation6 + $0x2a4] ss:$8 sps:$4 sm:$0xff]   ;;  %v24535_v41 = vld [vmem:[#allocation6 + $0x350] ss:$8 sps:$4 sm:$0xff]   ;;  %v24544_v50 = vld [vmem:[#allocation6 + $0x3c0] ss:$8 sps:$4 sm:$0xff]  }
 0x884   :  { %17514 = vmatprep.subr.bf16.mxu0 %v24444_v39  ;;  %v24505_v39 = vld [vmem:[#allocation6 + $0x220] ss:$8 sps:$4 sm:$0xff]   ;;  %v24538_v4 = vld [vmem:[#allocation6 + $0x3d0] ss:$8 sps:$4 sm:$0xff]  }
 0x885   :  { %17369 = vmatpush1.bf16.msra.mxu1 %v24439_v2  ;;  %v24513_v2 = vld [vmem:[#allocation6 + $0x214] ss:$8 sps:$4 sm:$0xff]  }
 0x886   :  { %17370 = vmatprep.subr.bf16.mxu1 %v24447_v1  ;;  %v24508_v1 = vld [vmem:[#allocation6 + $0x2a0] ss:$8 sps:$4 sm:$0xff]  }
 0x887   :  { %17515 = vmatpush1.bf16.msra.mxu0 %v24442_v49  ;;  %v24516_v49 = vld [vmem:[#allocation6 + $0x294] ss:$8 sps:$4 sm:$0xff]  }
 0x888   :  { %17516 = vmatprep.subr.bf16.mxu0 %v24450_v51  ;;  %v24511_v51 = vld [vmem:[#allocation6 + $0x210] ss:$8 sps:$4 sm:$0xff]  }
 0x889   :  { %17371 = vmatpush1.bf16.msra.mxu1 %v24445_v36  ;;  %v24519_v36 = vld [vmem:[#allocation6 + $0x204] ss:$8 sps:$4 sm:$0xff]  }
 0x88a   :  { %17372 = vmatprep.subr.bf16.mxu1 %v24453_v38  ;;  %v24514_v38 = vld [vmem:[#allocation6 + $0x290] ss:$8 sps:$4 sm:$0xff]  }
 0x88b   :  { %17517 = vmatpush1.bf16.msra.mxu0 %v24448_v13  ;;  %v17555_v13 = vrot.slane %v26457_v14, 3 }
 0x88c   :  { %17518 = vmatprep.subr.bf16.mxu0 %v24456_v63  ;;  %v24522_v63 = vld [vmem:[#allocation6 + $0x284] ss:$8 sps:$4 sm:$0xff]  }
 0x88d   :  { %17373 = vmatpush1.bf16.msra.mxu1 %v24451_v28  ;;  %v24517_v28 = vld [vmem:[#allocation6 + $0x200] ss:$8 sps:$4 sm:$0xff]  }
 0x88e   :  { %17374 = vmatprep.subr.bf16.mxu1 %v24459_v40  ;;  %v17553_v40 = vrot.slane %v26454_v43, 4 }
 0x88f   :  { %17519 = vmatpush1.bf16.msra.mxu0 %v24454_v11  ;;  %v17701_v11 = vrot.slane %v26457_v14, 4 }
 0x890   :  { %17520 = vmatprep.subr.bf16.mxu0 %v24462_v8  ;;  %v24525_v8 = vld [vmem:[#allocation6 + $0x374] ss:$8 sps:$4 sm:$0xff]  }
 0x891   :  { %17375 = vmatpush1.bf16.msra.mxu1 %v24457_v15  ;;  %v24520_v15 = vld [vmem:[#allocation6 + $0x280] ss:$8 sps:$4 sm:$0xff]  }
 0x892   :  { %17376 = vmatprep.subr.bf16.mxu1 %v24465_v20  ;;  %v17557_v20 = vsel %vm185_vm2, %v17553_v40, %v17555_v13  ;;  %v24580_v13 = vld [vmem:[#allocation6 + $0x4e0] ss:$8 sps:$4 sm:$0xff]   ;;  %v24591_v40 = vld [vmem:[#allocation6 + $0x444] ss:$8 sps:$4 sm:$0xff]  }
 0x893   :  { %17521 = vmatpush1.bf16.msra.mxu0 %v24460_v60  ;;  %v17699_v60 = vrot.slane %v26454_v43, 5 }
 0x894   :  { %17522 = vmatprep.subr.bf16.mxu0 %v24468_v58  ;;  %v24528_v58 = vld [vmem:[#allocation6 + $0x3f4] ss:$8 sps:$4 sm:$0xff]  }
 0x895   :  { %17377 = vmatpush1.bf16.msra.mxu1 %v24463_v5  ;;  %v24523_v5 = vld [vmem:[#allocation6 + $0x370] ss:$8 sps:$4 sm:$0xff]  }
 0x896   :  { %17378 = vmatprep.subr.bf16.mxu1 %v24471_v34  ;;  %v17703_v34 = vsel %vm185_vm2, %v17699_v60, %v17701_v11  ;;  %v24586_v11 = vld [vmem:[#allocation6 + $0x4d0] ss:$8 sps:$4 sm:$0xff]   ;;  %v24592_v60 = vld [vmem:[#allocation6 + $0x4c0] ss:$8 sps:$4 sm:$0xff]  }
 0x897   :  { %17523 = vmatpush1.bf16.msra.mxu0 %v24466_v10  ;;  %v17558_v10 = vpack.c.bf16 %v17557_v20, %v17557_v20  ;;  %v24597_v20 = vld [vmem:[#allocation6 + $0x434] ss:$8 sps:$4 sm:$0xff]  }
 0x898   :  { %17524 = vmatprep.subr.bf16.mxu0 %v24474_v62  ;;  %v24526_v62 = vld [vmem:[#allocation6 + $0x3f0] ss:$8 sps:$4 sm:$0xff]  }
 0x899   :  { %17379 = vmatpush1.bf16.msra.mxu1 %v24469_v44  ;;  %v17704_v44 = vpack.c.bf16 %v17703_v34, %v17703_v34  ;;  %v24603_v34 = vld [vmem:[#allocation6 + $0x424] ss:$8 sps:$4 sm:$0xff]  }
 0x89a   :  { %17656 = vmatprep.subr.bf16.mxu1 %v24477_v31  ;;  %v24537_v31 = vld [vmem:[#allocation6 + $0x354] ss:$8 sps:$4 sm:$0xff]  }
 0x89b   :  { %17525 = vmatpush1.bf16.msra.mxu0 %v24472_v42  ;;  %v24540_v42 = vld [vmem:[#allocation6 + $0x3d4] ss:$8 sps:$4 sm:$0xff]  }
 0x89c   :  { %17397 = vmatmul.mubr.bf16.vlgmr.msra.gmra.mxu1 %v17266_v21  ;;  %17802 = vmatprep.subr.bf16.mxu0 %v24480_v59  ;;  %v24546_v59 = vld [vmem:[#allocation6 + $0x3c4] ss:$8 sps:$4 sm:$0xff]   ;;  %v24547_v21 = vld [vmem:[#allocation6 + $0x330] ss:$8 sps:$4 sm:$0xff]  }
 0x89d   :  { %17657 = vmatpush1.bf16.msra.mxu1 %v24475_v17  ;;  %17688 = vmatprep.mubr.bf16.mxu1 %v24772_v33  ;;  %v24549_v17 = vld [vmem:[#allocation6 + $0x334] ss:$8 sps:$4 sm:$0xff]  }
 0x89e   :  { %17543 = vmatmul.mubr.bf16.vlgmr.msra.gmra.mxu0 %v17412_v30  ;;  %17658 = vmatprep.subr.bf16.mxu1 %v24483_v61  ;;  %v24555_v61 = vld [vmem:[#allocation6 + $0x324] ss:$8 sps:$4 sm:$0xff]  }
 0x89f   :  { %17803 = vmatpush1.bf16.msra.mxu0 %v24478_v29  ;;  %17834 = vmatprep.mubr.bf16.mxu0 %v24772_v33  ;;  %v24550_v29 = vld [vmem:[#allocation6 + $0x3b0] ss:$8 sps:$4 sm:$0xff]   ;;  %v24558_v30 = vld [vmem:[#allocation6 + $0x3a4] ss:$8 sps:$4 sm:$0xff]  }
 0x8a0   :  { %17804 = vmatprep.subr.bf16.mxu0 %v24486_v45  ;;  %v24553_v45 = vld [vmem:[#allocation6 + $0x320] ss:$8 sps:$4 sm:$0xff]  }
 0x8a1   :  { %17659 = vmatpush1.bf16.msra.mxu1 %v24481_v6  ;;  %v24561_v6 = vld [vmem:[#allocation6 + $0x314] ss:$8 sps:$4 sm:$0xff]  }
 0x8a2   :  { %17660 = vmatprep.subr.bf16.mxu1 %v24489_v48  ;;  %v24556_v48 = vld [vmem:[#allocation6 + $0x3a0] ss:$8 sps:$4 sm:$0xff]  }
 0x8a3   :  { %17805 = vmatpush1.bf16.msra.mxu0 %v24484_v7  ;;  %v24564_v7 = vld [vmem:[#allocation6 + $0x394] ss:$8 sps:$4 sm:$0xff]  }
 0x8a4   :  { %17806 = vmatprep.subr.bf16.mxu0 %v24492_v37  ;;  %v24559_v37 = vld [vmem:[#allocation6 + $0x310] ss:$8 sps:$4 sm:$0xff]  }
 0x8a5   :  { %17661 = vmatpush1.bf16.msra.mxu1 %v24487_v53  ;;  %v24567_v53 = vld [vmem:[#allocation6 + $0x304] ss:$8 sps:$4 sm:$0xff]  }
 0x8a6   :  { %17662 = vmatprep.subr.bf16.mxu1 %v24495_v3  ;;  %v24562_v3 = vld [vmem:[#allocation6 + $0x390] ss:$8 sps:$4 sm:$0xff]  }
 0x8a7   :  { %17807 = vmatpush1.bf16.msra.mxu0 %v24490_v23  ;;  %v17847_v23 = vrot.slane %v26457_v14, 5 }
 0x8a8   :  { %17808 = vmatprep.subr.bf16.mxu0 %v24498_v9  ;;  %v24570_v9 = vld [vmem:[#allocation6 + $0x384] ss:$8 sps:$4 sm:$0xff]  }
 0x8a9   :  { %17663 = vmatpush1.bf16.msra.mxu1 %v24493_v18  ;;  %v24565_v18 = vld [vmem:[#allocation6 + $0x300] ss:$8 sps:$4 sm:$0xff]  }
 0x8aa   :  { %17664 = vmatprep.subr.bf16.mxu1 %v24501_v22  ;;  %v17845_v22 = vrot.slane %v26454_v43, 6 }
 0x8ab   :  { %17809 = vmatpush1.bf16.msra.mxu0 %v24496_v19  ;;  %v17993_v19 = vrot.slane %v26457_v14, 6 }
 0x8ac   :  { %17810 = vmatprep.subr.bf16.mxu0 %v24504_v26  ;;  %v24573_v26 = vld [vmem:[#allocation6 + $0x474] ss:$8 sps:$4 sm:$0xff]  }
 0x8ad   :  { %17665 = vmatpush1.bf16.msra.mxu1 %v24499_v57  ;;  %v24568_v57 = vld [vmem:[#allocation6 + $0x380] ss:$8 sps:$4 sm:$0xff]  }
 0x8ae   :  { %17666 = vmatprep.subr.bf16.mxu1 %v24507_v55  ;;  %v17849_v55 = vsel %vm185_vm2, %v17845_v22, %v17847_v23  ;;  %v24640_v23 = vld [vmem:[#allocation6 + $0x5c0] ss:$8 sps:$4 sm:$0xff]   ;;  %v24646_v22 = vld [vmem:[#allocation6 + $0x5b0] ss:$8 sps:$4 sm:$0xff]  }
 0x8af   :  { %17811 = vmatpush1.bf16.msra.mxu0 %v24502_v54  ;;  %v17991_v54 = vrot.slane %v26454_v43, 7  ;;  %v24585_v43 = vld [vmem:[#allocation6 + $0x454] ss:$8 sps:$4 sm:$0xff]  }
 0x8b0   :  { %17812 = vmatprep.subr.bf16.mxu0 %v24510_v27  ;;  %v24576_v27 = vld [vmem:[#allocation6 + $0x4f4] ss:$8 sps:$4 sm:$0xff]  }
 0x8b1   :  { %17667 = vmatpush1.bf16.msra.mxu1 %v24505_v39  ;;  %v24571_v39 = vld [vmem:[#allocation6 + $0x470] ss:$8 sps:$4 sm:$0xff]  }
 0x8b2   :  { %17668 = vmatprep.subr.bf16.mxu1 %v24513_v2  ;;  %v17995_v2 = vsel %vm185_vm2, %v17991_v54, %v17993_v19  ;;  %v24654_v19 = vld [vmem:[#allocation6 + $0x5a4] ss:$8 sps:$4 sm:$0xff]   ;;  %v24660_v54 = vld [vmem:[#allocation6 + $0x594] ss:$8 sps:$4 sm:$0xff]  }
 0x8b3   :  { %17813 = vmatpush1.bf16.msra.mxu0 %v24508_v1  ;;  %v17850_v1 = vpack.c.bf16 %v17849_v55, %v17849_v55  ;;  %v17996_v14 = vpack.c.bf16 %v17995_v2, %v17995_v2  ;;  %v24652_v55 = vld [vmem:[#allocation6 + $0x5a0] ss:$8 sps:$4 sm:$0xff]   ;;  %v24658_v2 = vld [vmem:[#allocation6 + $0x590] ss:$8 sps:$4 sm:$0xff]  }
 0x8b4   :  { %17814 = vmatprep.subr.bf16.mxu0 %v24516_v49  ;;  %v24579_v49 = vld [vmem:[#allocation6 + $0x464] ss:$8 sps:$4 sm:$0xff]  }
 0x8b5   :  { %17669 = vmatpush1.bf16.msra.mxu1 %v24511_v51  ;;  %v24574_v51 = vld [vmem:[#allocation6 + $0x4f0] ss:$8 sps:$4 sm:$0xff]  }
 0x8b6   :  { %17670 = vmatprep.subr.bf16.mxu1 %v24519_v36  ;;  %v24582_v36 = vld [vmem:[#allocation6 + $0x4e4] ss:$8 sps:$4 sm:$0xff]  }
 0x8b7   :  { %17815 = vmatpush1.bf16.msra.mxu0 %v24514_v38  ;;  %v24577_v38 = vld [vmem:[#allocation6 + $0x460] ss:$8 sps:$4 sm:$0xff]  }
 0x8b8   :  { %17816 = vmatprep.subr.bf16.mxu0 %v24522_v63  ;;  %v24588_v63 = vld [vmem:[#allocation6 + $0x4d4] ss:$8 sps:$4 sm:$0xff]  }
 0x8b9   :  { %17671 = vmatpush1.bf16.msra.mxu1 %v24517_v28  ;;  %v24583_v28 = vld [vmem:[#allocation6 + $0x450] ss:$8 sps:$4 sm:$0xff]  }
 0x8ba   :  { %17948 = vmatprep.subr.bf16.mxu1 %v24525_v8  ;;  %v24594_v8 = vld [vmem:[#allocation6 + $0x4c4] ss:$8 sps:$4 sm:$0xff]  }
 0x8bb   :  { %17817 = vmatpush1.bf16.msra.mxu0 %v24520_v15  ;;  %v24589_v15 = vld [vmem:[#allocation6 + $0x440] ss:$8 sps:$4 sm:$0xff]  }
 0x8bc   :  { %17689 = vmatmul.mubr.bf16.vlgmr.msra.gmra.mxu1 %v17558_v10  ;;  %18094 = vmatprep.subr.bf16.mxu0 %v24528_v58  ;;  %v24600_v58 = vld [vmem:[#allocation6 + $0x4b4] ss:$8 sps:$4 sm:$0xff]   ;;  %v24598_v10 = vld [vmem:[#allocation6 + $0x4b0] ss:$8 sps:$4 sm:$0xff]  }
 0x8bd   :  { %17949 = vmatpush1.bf16.msra.mxu1 %v24523_v5  ;;  %17980 = vmatprep.mubr.bf16.mxu1 %v24772_v33  ;;  %v24595_v5 = vld [vmem:[#allocation6 + $0x430] ss:$8 sps:$4 sm:$0xff]  }
 0x8be   :  { %17835 = vmatmul.mubr.bf16.vlgmr.msra.gmra.mxu0 %v17704_v44  ;;  %17950 = vmatprep.subr.bf16.mxu1 %v24531_v24  ;;  %v24606_v24 = vld [vmem:[#allocation6 + $0x4a4] ss:$8 sps:$4 sm:$0xff]   ;;  %v24609_v44 = vld [vmem:[#allocation6 + $0x414] ss:$8 sps:$4 sm:$0xff]  }
 0x8bf   :  { %18095 = vmatpush1.bf16.msra.mxu0 %v24526_v62  ;;  %18126 = vmatprep.mubr.bf16.mxu0 %v24772_v33  ;;  %v24601_v62 = vld [vmem:[#allocation6 + $0x420] ss:$8 sps:$4 sm:$0xff]  }
 0x8c0   :  { %18096 = vmatprep.subr.bf16.mxu0 %v24534_v35  ;;  %v24604_v35 = vld [vmem:[#allocation6 + $0x4a0] ss:$8 sps:$4 sm:$0xff]  }
 0x8c1   :  { %17951 = vmatpush1.bf16.msra.mxu1 %v24529_v12  ;;  %v24612_v12 = vld [vmem:[#allocation6 + $0x494] ss:$8 sps:$4 sm:$0xff]  }
 0x8c2   :  { %17952 = vmatprep.subr.bf16.mxu1 %v24537_v31  ;;  %v24607_v31 = vld [vmem:[#allocation6 + $0x410] ss:$8 sps:$4 sm:$0xff]  }
 0x8c3   :  { %18097 = vmatpush1.bf16.msra.mxu0 %v24532_v52  ;;  %v24615_v52 = vld [vmem:[#allocation6 + $0x404] ss:$8 sps:$4 sm:$0xff]  }
 0x8c4   :  { %18098 = vmatprep.subr.bf16.mxu0 %v24540_v42  ;;  %v24610_v42 = vld [vmem:[#allocation6 + $0x490] ss:$8 sps:$4 sm:$0xff]  }
 0x8c5   :  { %17953 = vmatpush1.bf16.msra.mxu1 %v24535_v41  ;;  %v24618_v41 = vld [vmem:[#allocation6 + $0x484] ss:$8 sps:$4 sm:$0xff]  }
 0x8c6   :  { %17954 = vmatprep.subr.bf16.mxu1 %v24543_v16  ;;  %v24613_v16 = vld [vmem:[#allocation6 + $0x400] ss:$8 sps:$4 sm:$0xff]  }
 0x8c7   :  { %18099 = vmatpush1.bf16.msra.mxu0 %v24538_v4  ;;  %v24621_v4 = vld [vmem:[#allocation6 + $0x574] ss:$8 sps:$4 sm:$0xff]  }
 0x8c8   :  { %18100 = vmatprep.subr.bf16.mxu0 %v24546_v59  ;;  %v24616_v59 = vld [vmem:[#allocation6 + $0x480] ss:$8 sps:$4 sm:$0xff]  }
 0x8c9   :  { %17955 = vmatpush1.bf16.msra.mxu1 %v24541_v56  ;;  %v24624_v56 = vld [vmem:[#allocation6 + $0x5f4] ss:$8 sps:$4 sm:$0xff]  }
 0x8ca   :  { %17956 = vmatprep.subr.bf16.mxu1 %v24549_v17  ;;  %v24619_v17 = vld [vmem:[#allocation6 + $0x570] ss:$8 sps:$4 sm:$0xff]  }
 0x8cb   :  { %18101 = vmatpush1.bf16.msra.mxu0 %v24544_v50  ;;  %v18141_v50 = vpack.c.bf16 %v26475_v46, %v26475_v46  ;;  %v24636_v46 = vld [vmem:[#allocation6 + $0x5d4] ss:$8 sps:$4 sm:$0xff]  }
 0x8cc   :  { %18102 = vmatprep.subr.bf16.mxu0 %v24552_v0  ;;  %v24627_v0 = vld [vmem:[#allocation6 + $0x564] ss:$8 sps:$4 sm:$0xff]  }
 0x8cd   :  { %17957 = vmatpush1.bf16.msra.mxu1 %v24547_v21  ;;  %v24622_v21 = vld [vmem:[#allocation6 + $0x5f0] ss:$8 sps:$4 sm:$0xff]  }
 0x8ce   :  { %17958 = vmatprep.subr.bf16.mxu1 %v24555_v61  ;;  %v18286_v61 = vpack.c.bf16 %v26479_v25, %v26479_v25  ;;  %v24634_v25 = vld [vmem:[#allocation6 + $0x5d0] ss:$8 sps:$4 sm:$0xff]  }
 0x8cf   :  { %18103 = vmatpush1.bf16.msra.mxu0 %v24550_v29  ;;  %v24630_v29 = vld [vmem:[#allocation6 + $0x5e4] ss:$8 sps:$4 sm:$0xff]  }
 0x8d0   :  { %18104 = vmatprep.subr.bf16.mxu0 %v24558_v30  ;;  %v24625_v30 = vld [vmem:[#allocation6 + $0x560] ss:$8 sps:$4 sm:$0xff]  }
 0x8d1   :  { %17959 = vmatpush1.bf16.msra.mxu1 %v24553_v45  ;;  %v24633_v45 = vld [vmem:[#allocation6 + $0x554] ss:$8 sps:$4 sm:$0xff]  }
 0x8d2   :  { %17960 = vmatprep.subr.bf16.mxu1 %v24561_v6  ;;  %v24628_v6 = vld [vmem:[#allocation6 + $0x5e0] ss:$8 sps:$4 sm:$0xff]  }
 0x8d3   :  { %18105 = vmatpush1.bf16.msra.mxu0 %v24556_v48  ;;  %v24631_v48 = vld [vmem:[#allocation6 + $0x550] ss:$8 sps:$4 sm:$0xff]  }
 0x8d4   :  { %18106 = vmatprep.subr.bf16.mxu0 %v24564_v7  ;;  %v24639_v7 = vld [vmem:[#allocation6 + $0x544] ss:$8 sps:$4 sm:$0xff]  }
 0x8d5   :  { %17961 = vmatpush1.bf16.msra.mxu1 %v24559_v37  ;;  %v24642_v37 = vld [vmem:[#allocation6 + $0x5c4] ss:$8 sps:$4 sm:$0xff]  }
 0x8d6   :  { %17962 = vmatprep.subr.bf16.mxu1 %v24567_v53  ;;  %v24637_v53 = vld [vmem:[#allocation6 + $0x540] ss:$8 sps:$4 sm:$0xff]  }
 0x8d7   :  { %18107 = vmatpush1.bf16.msra.mxu0 %v24562_v3  ;;  %v24645_v3 = vld [vmem:[#allocation6 + $0x534] ss:$8 sps:$4 sm:$0xff]  }
 0x8d8   :  { %18108 = vmatprep.subr.bf16.mxu0 %v24570_v9  ;;  %v24648_v9 = vld [vmem:[#allocation6 + $0x5b4] ss:$8 sps:$4 sm:$0xff]  }
 0x8d9   :  { %17963 = vmatpush1.bf16.msra.mxu1 %v24565_v18  ;;  %v24651_v18 = vld [vmem:[#allocation6 + $0x524] ss:$8 sps:$4 sm:$0xff]  }
 0x8da   :  { %18239 = vmatprep.subr.bf16.mxu1 %v24573_v26  ;;  %v24649_v26 = vld [vmem:[#allocation6 + $0x520] ss:$8 sps:$4 sm:$0xff]  }
 0x8db   :  { %18109 = vmatpush1.bf16.msra.mxu0 %v24568_v57  ;;  %v24657_v57 = vld [vmem:[#allocation6 + $0x514] ss:$8 sps:$4 sm:$0xff]  }
 0x8dc   :  { %17981 = vmatmul.mubr.bf16.vlgmr.msra.gmra.mxu1 %v17850_v1  ;;  %18384 = vmatprep.subr.bf16.mxu0 %v24576_v27  ;;  %v24655_v27 = vld [vmem:[#allocation6 + $0x510] ss:$8 sps:$4 sm:$0xff]   ;;  %v24666_v1 = vld [vmem:[#allocation6 + $0x584] ss:$8 sps:$4 sm:$0xff]  }
 0x8dd   :  { %18240 = vmatpush1.bf16.msra.mxu1 %v24571_v39  ;;  %18271 = vmatprep.mubr.bf16.mxu1 %v24772_v33  ;;  %v24663_v39 = vld [vmem:[#allocation6 + $0x504] ss:$8 sps:$4 sm:$0xff]  }
 0x8de   :  { %18127 = vmatmul.mubr.bf16.vlgmr.msra.gmra.mxu0 %v17996_v14  ;;  %18241 = vmatprep.subr.bf16.mxu1 %v24579_v49  ;;  %v24661_v49 = vld [vmem:[#allocation6 + $0x500] ss:$8 sps:$4 sm:$0xff]   ;;  %v18432_v14 = vpack.c.bf16 %v26492_v32, %v26492_v32 }
 0x8df   :  { %18385 = vmatpush1.bf16.msra.mxu0 %v24574_v51  ;;  %18416 = vmatprep.mubr.bf16.mxu0 %v24772_v33  ;;  %v24664_v51 = vld [vmem:[#allocation6 + $0x580] ss:$8 sps:$4 sm:$0xff]  }
 0x8e0   :  { %18386 = vmatprep.subr.bf16.mxu0 %v24582_v36  ;;  %v18578_v36 = vpack.c.bf16 %v26495_v47, %v26495_v47  ;;  %v24667_v32 = vld [vmem:[%s26591_s9 + $0x78] sm:$0xff]   ;;  %v24669_v47 = vld [vmem:[%s26591_s9 + $0x70] sm:$0xff]  }
 0x8e1   :  { %18242 = vmatpush1.bf16.msra.mxu1 %v24577_v38 }
 0x8e2   :  { %18243 = vmatprep.subr.bf16.mxu1 %v24585_v43 }
 0x8e3   :  { %18387 = vmatpush1.bf16.msra.mxu0 %v24580_v13 }
 0x8e4   :  { %18388 = vmatprep.subr.bf16.mxu0 %v24588_v63 }
 0x8e5   :  { %18244 = vmatpush1.bf16.msra.mxu1 %v24583_v28 }
 0x8e6   :  { %18245 = vmatprep.subr.bf16.mxu1 %v24591_v40 }
 0x8e7   :  { %18389 = vmatpush1.bf16.msra.mxu0 %v24586_v11 }
 0x8e8   :  { %18390 = vmatprep.subr.bf16.mxu0 %v24594_v8 }
 0x8e9   :  { %18246 = vmatpush1.bf16.msra.mxu1 %v24589_v15 }
 0x8ea   :  { %18247 = vmatprep.subr.bf16.mxu1 %v24597_v20 }
 0x8eb   :  { %18391 = vmatpush1.bf16.msra.mxu0 %v24592_v60  ;;  %v24668_v60 = vld [vmem:[%s26591_s9 + $0x38] sm:$0xff]  }
 0x8ec   :  { %18392 = vmatprep.subr.bf16.mxu0 %v24600_v58  ;;  %v24670_v58 = vld [vmem:[%s26591_s9 + $0x30] sm:$0xff]  }
 0x8ed   :  { %18248 = vmatpush1.bf16.msra.mxu1 %v24595_v5  ;;  %v24671_v5 = vld [vmem:[%s26591_s9 + $0x68] sm:$0xff]  }
 0x8ee   :  { %18249 = vmatprep.subr.bf16.mxu1 %v24603_v34  ;;  %v24672_v34 = vld [vmem:[%s26591_s9 + $0x28] sm:$0xff]  }
 0x8ef   :  { %18393 = vmatpush1.bf16.msra.mxu0 %v24598_v10  ;;  %v24673_v10 = vld [vmem:[%s26591_s9 + $0x60] sm:$0xff]  }
 0x8f0   :  { %18394 = vmatprep.subr.bf16.mxu0 %v24606_v24  ;;  %v24674_v24 = vld [vmem:[%s26591_s9 + $0x20] sm:$0xff]  }
 0x8f1   :  { %18250 = vmatpush1.bf16.msra.mxu1 %v24601_v62  ;;  %v24675_v62 = vld [vmem:[%s26591_s9 + $0x58] sm:$0xff]  }
 0x8f2   :  { %18251 = vmatprep.subr.bf16.mxu1 %v24609_v44  ;;  %v24676_v44 = vld [vmem:[%s26591_s9 + $0x18] sm:$0xff]  }
 0x8f3   :  { %18395 = vmatpush1.bf16.msra.mxu0 %v24604_v35 }
 0x8f4   :  { %18396 = vmatprep.subr.bf16.mxu0 %v24612_v12 }
 0x8f5   :  { %18252 = vmatpush1.bf16.msra.mxu1 %v24607_v31 }
 0x8f6   :  { %18253 = vmatprep.subr.bf16.mxu1 %v24615_v52 }
 0x8f7   :  { %18397 = vmatpush1.bf16.msra.mxu0 %v24610_v42 }
 0x8f8   :  { %18398 = vmatprep.subr.bf16.mxu0 %v24618_v41 }
 0x8f9   :  { %18254 = vmatpush1.bf16.msra.mxu1 %v24613_v16 }
 0x8fa   :  { %18530 = vmatprep.subr.bf16.mxu1 %v24621_v4 }
 0x8fb   :  { %18399 = vmatpush1.bf16.msra.mxu0 %v24616_v59 }
 0x8fc   :  { %18272 = vmatmul.mubr.bf16.vlgmr.msra.gmra.mxu1 %v18141_v50  ;;  %18676 = vmatprep.subr.bf16.mxu0 %v24624_v56 }
 0x8fd   :  { %18531 = vmatpush1.bf16.msra.mxu1 %v24619_v17  ;;  %18562 = vmatprep.mubr.bf16.mxu1 %v24772_v33 }
 0x8fe   :  { %18417 = vmatmul.mubr.bf16.vlgmr.msra.gmra.mxu0 %v18286_v61  ;;  %18532 = vmatprep.subr.bf16.mxu1 %v24627_v0  ;;  %v24677_v0 = vld [vmem:[%s26591_s9 + $0x50] sm:$0xff]   ;;  %v24679_v61 = vld [vmem:[%s26591_s9 + $0x48] sm:$0xff]  }
 0x8ff   :  { %18677 = vmatpush1.bf16.msra.mxu0 %v24622_v21  ;;  %18708 = vmatprep.mubr.bf16.mxu0 %v24772_v33  ;;  %v24643_v33 = vld [vmem:[#allocation6 + $0x530] ss:$8 sps:$4 sm:$0xff]  }
 0x900   :  { %18678 = vmatprep.subr.bf16.mxu0 %v24630_v29  ;;  %v24678_v21 = vld [vmem:[%s26591_s9 + $0x10] sm:$0xff]   ;;  %v24680_v29 = vld [vmem:[%s26591_s9 + $0x8] sm:$0xff]  }
 0x901   :  { %18533 = vmatpush1.bf16.msra.mxu1 %v24625_v30  ;;  %v24681_v30 = vld [vmem:[%s26591_s9 + $0x40] sm:$0xff]  }
 0x902   :  { %18534 = vmatprep.subr.bf16.mxu1 %v24633_v45  ;;  %v24682_v45 = vld [vmem:[%s26591_s9] sm:$0xff]  }
 0x903   :  { %18679 = vmatpush1.bf16.msra.mxu0 %v24628_v6 }
 0x904   :  { %18680 = vmatprep.subr.bf16.mxu0 %v24636_v46 }
 0x905   :  { %18535 = vmatpush1.bf16.msra.mxu1 %v24631_v48 }
 0x906   :  { %18536 = vmatprep.subr.bf16.mxu1 %v24639_v7 }
 0x907   :  { %18681 = vmatpush1.bf16.msra.mxu0 %v24634_v25 }
 0x908   :  { %18682 = vmatprep.subr.bf16.mxu0 %v24642_v37 }
 0x909   :  { %18537 = vmatpush1.bf16.msra.mxu1 %v24637_v53 }
 0x90a   :  { %18538 = vmatprep.subr.bf16.mxu1 %v24645_v3 }
 0x90b   :  { %18683 = vmatpush1.bf16.msra.mxu0 %v24640_v23 }
 0x90c   :  { %18684 = vmatprep.subr.bf16.mxu0 %v24648_v9 }
 0x90d   :  { %18539 = vmatpush1.bf16.msra.mxu1 %v24643_v33 }
 0x90e   :  { %18540 = vmatprep.subr.bf16.mxu1 %v24651_v18 }
 0x90f   :  { %18685 = vmatpush1.bf16.msra.mxu0 %v24646_v22 }
 0x910   :  { %18686 = vmatprep.subr.bf16.mxu0 %v24654_v19 }
 0x911   :  { %18541 = vmatpush1.bf16.msra.mxu1 %v24649_v26 }
 0x912   :  { %18542 = vmatprep.subr.bf16.mxu1 %v24657_v57 }
 0x913   :  { %18687 = vmatpush1.bf16.msra.mxu0 %v24652_v55 }
 0x914   :  { %18688 = vmatprep.subr.bf16.mxu0 %v24660_v54 }
 0x915   :  { %18543 = vmatpush1.bf16.msra.mxu1 %v24655_v27 }
 0x916   :  { %18544 = vmatprep.subr.bf16.mxu1 %v24663_v39 }
 0x917   :  { %18689 = vmatpush1.bf16.msra.mxu0 %v24658_v2 }
 0x918   :  { %18690 = vmatprep.subr.bf16.mxu0 %v24666_v1 }
 0x919   :  { %18545 = vmatpush1.bf16.msra.mxu1 %v24661_v49 }
 0x91a   :  { %22321 = vmatprep.subr.bf16.mxu1 %v24667_v32 }
 0x91b   :  { %18691 = vmatpush1.bf16.msra.mxu0 %v24664_v51 }
 0x91c   :  { %18563 = vmatmul.mubr.bf16.vlgmr.msra.gmra.mxu1 %v18432_v14 }
 0x91d   :  { %22322 = vmatpush3.bf16.msra.mxu1 %v24668_v60  ;;  %v18719_v60 = vld [vmem:[%s26590_s8] sm:$0x3] }
 0x91e   :  { %18709 = vmatmul.mubr.bf16.vlgmr.msra.gmra.mxu0 %v18578_v36  ;;  %22323 = vmatprep.subr.bf16.mxu1 %v24669_v47 }
 0x921   :  { %22324 = vmatpush3.bf16.msra.mxu1 %v24670_v58 }
 0x922   :  { %22325 = vmatprep.subr.bf16.mxu1 %v24671_v5 }
 0x925   :  { %22326 = vmatpush3.bf16.msra.mxu1 %v24672_v34 }
 0x926   :  { %22327 = vmatprep.subr.bf16.mxu1 %v24673_v10 }
 0x929   :  { %22328 = vmatpush3.bf16.msra.mxu1 %v24674_v24 }
 0x92a   :  { %22329 = vmatprep.subr.bf16.mxu1 %v24675_v62 }
 0x92d   :  { %22330 = vmatpush3.bf16.msra.mxu1 %v24676_v44 }
 0x92e   :  { %22331 = vmatprep.subr.bf16.mxu1 %v24677_v0 }
 0x931   :  { %22332 = vmatpush3.bf16.msra.mxu1 %v24678_v21 }
 0x932   :  { %22333 = vmatprep.subr.bf16.mxu1 %v24679_v61 }
 0x935   :  { %22334 = vmatpush3.bf16.msra.mxu1 %v24680_v29 }
 0x936   :  { %22335 = vmatprep.subr.bf16.mxu1 %v24681_v30  ;;  %v20513_v30 = vld [vmem:[%s26592_s10] ss:$0 sm:$0xff] }
 0x939   :  { %22336 = vmatpush3.bf16.msra.mxu1 %v24682_v45 }
 0x93c   :  { %v17133_v38 = vpop.f32.mrf.mxu1 }
 0x93e   :  { %v17135_v43 = vpop.f32.mrf.mxu1  ;;  %v17254_v13 = vpop.f32.mrf.mxu0 }
 0x93f   :  { %v17255_v63 = vadd.f32 %v17254_v13, %v17133_v38 }
 0x940   :  { %v17137_v28 = vpop.f32.mrf.mxu1  ;;  %v17256_v40 = vpop.f32.mrf.mxu0 }
 0x941   :  { %v17257_v11 = vadd.f32 %v17256_v40, %v17135_v43 }
 0x942   :  { %v17138_v8 = vpop.f32.mrf.mxu1  ;;  %v17258_v15 = vpop.f32.mrf.mxu0 }
 0x944   :  { %v17259_v20 = vpop.f32.mrf.mxu0 }
 0x95c   :  { %v17398_v35 = vpop.f32.mrf.mxu1 }
 0x95d   :  { %v17405_v12 = vadd.f32 %v17398_v35, %v17255_v63  ;;  %v18721_v63 = vlaneseq }
 0x95e   :  { %v17400_v31 = vpop.f32.mrf.mxu1  ;;  %v17544_v52 = vpop.f32.mrf.mxu0 }
 0x95f   :  { %v17406_v42 = vadd.f32 %v17400_v31, %v17257_v11  ;;  %v17551_v41 = vadd.f32 %v17544_v52, %v17405_v12  ;;  %v18722_v11 = vshrl.u32 %v18721_v63, 7 }
 0x960   :  { %v17402_v16 = vpop.f32.mrf.mxu1  ;;  %v17546_v4 = vpop.f32.mrf.mxu0 }
 0x961   :  { %v17552_v59 = vadd.f32 %v17546_v4, %v17406_v42  ;;  %v18723_v32 = vsub.s32 0, %v18722_v11  ;;  %v18727_v58 = vsub.s32 1, %v18722_v11 }
 0x962   :  { %v17403_v56 = vpop.f32.mrf.mxu1  ;;  %v17548_v17 = vpop.f32.mrf.mxu0 }
 0x963   :  { %v18724_v24 = vrot.slane %v18719_v60, %v18723_v32  ;;  %v18728_v31 = vrot.slane %v18719_v60, %v18727_v58 }
 0x964   :  { %v17549_v50 = vpop.f32.mrf.mxu0 }
 0x97c   :  { %v17690_v6 = vpop.f32.mrf.mxu1 }
 0x97d   :  { %v17697_v46 = vadd.f32 %v17690_v6, %v17551_v41 }
 0x97e   :  { %v17692_v48 = vpop.f32.mrf.mxu1  ;;  %v17836_v7 = vpop.f32.mrf.mxu0 }
 0x97f   :  { %v17698_v25 = vadd.f32 %v17692_v48, %v17552_v59  ;;  %v17843_v37 = vadd.f32 %v17836_v7, %v17697_v46 }
 0x980   :  { %v17694_v53 = vpop.f32.mrf.mxu1  ;;  %v17838_v3 = vpop.f32.mrf.mxu0 }
 0x981   :  { %v17844_v23 = vadd.f32 %v17838_v3, %v17698_v25 }
 0x982   :  { %v17695_v9 = vpop.f32.mrf.mxu1  ;;  %v17840_v33 = vpop.f32.mrf.mxu0 }
 0x984   :  { %v17841_v18 = vpop.f32.mrf.mxu0 }
 0x99c   :  { %v17982_v22 = vpop.f32.mrf.mxu1 }
 0x99d   :  { %v17989_v13 = vadd.f32 %v17982_v22, %v17843_v37 }
 0x99e   :  { %v17984_v19 = vpop.f32.mrf.mxu1  ;;  %v18128_v26 = vpop.f32.mrf.mxu0 }
 0x99f   :  { %v17990_v28 = vadd.f32 %v17984_v19, %v17844_v23  ;;  %v18135_v40 = vadd.f32 %v18128_v26, %v17989_v13 }
 0x9a0   :  { %v17986_v57 = vpop.f32.mrf.mxu1  ;;  %v18130_v55 = vpop.f32.mrf.mxu0 }
 0x9a1   :  { %v18136_v8 = vadd.f32 %v18130_v55, %v17990_v28 }
 0x9a2   :  { %v17987_v54 = vpop.f32.mrf.mxu1  ;;  %v18132_v27 = vpop.f32.mrf.mxu0 }
 0x9a4   :  { %v18133_v39 = vpop.f32.mrf.mxu0 }
 0x9bc   :  { %v18273_v2 = vpop.f32.mrf.mxu1 }
 0x9bd   :  { %v18280_v15 = vadd.f32 %v18273_v2, %v18135_v40 }
 0x9be   :  { %v18275_v1 = vpop.f32.mrf.mxu1  ;;  %v18418_v49 = vpop.f32.mrf.mxu0 }
 0x9bf   :  { %v18281_v20 = vadd.f32 %v18275_v1, %v18136_v8  ;;  %v18425_v47 = vadd.f32 %v18418_v49, %v18280_v15 }
 0x9c0   :  { %v18277_v51 = vpop.f32.mrf.mxu1  ;;  %v18420_v14 = vpop.f32.mrf.mxu0 }
 0x9c1   :  { %v18426_v34 = vadd.f32 %v18420_v14, %v18281_v20 }
 0x9c2   :  { %v18278_v36 = vpop.f32.mrf.mxu1  ;;  %v18422_v38 = vpop.f32.mrf.mxu0 }
 0x9c4   :  { %v18423_v43 = vpop.f32.mrf.mxu0 }
 0x9dc   :  { %v18564_v5 = vpop.f32.mrf.mxu1 }
 0x9dd   :  { %v18571_v10 = vadd.f32 %v18564_v5, %v18425_v47 }
 0x9de   :  { %v18566_v62 = vpop.f32.mrf.mxu1  ;;  %v18710_v44 = vpop.f32.mrf.mxu0 }
 0x9df   :  { %v18572_v35 = vadd.f32 %v18566_v62, %v18426_v34  ;;  %v18717_v12 = vadd.f32 %v18710_v44, %v18571_v10 }
 0x9e0   :  { %v18568_v52 = vpop.f32.mrf.mxu1  ;;  %v18712_v42 = vpop.f32.mrf.mxu0 }
 0x9e1   :  { %v18731_v41 = vadd.f32 %v18724_v24, %v18717_v12  ;;  %v18718_v16 = vadd.f32 %v18712_v42, %v18572_v35 }
 0x9e2   :  { %v18569_v4 = vpop.f32.mrf.mxu1  ;;  %v18714_v59 = vpop.f32.mrf.mxu0 }
 0x9e3   :  { %v18732_v56 = vadd.f32 %v18728_v31, %v18718_v16  ;;  %v18733_v17 = vmax.f32 %v18731_v41, 0.0 }
 0x9e4   :  { %v18715_v50 = vpop.f32.mrf.mxu0 }
 0x9e5   :  { %v18734_v0 = vmax.f32 %v18732_v56, 0.0  ;;  %v18735_v61 = vpack.c.bf16 %v18733_v17, %v18733_v17 }
 0x9e7   :  { %v18736_v21 = vpack.c.bf16 %v18734_v0, %v18734_v0 }
 0x9e9   :  { %18904 = vmatprep.mubr.bf16.mxu1 %v18736_v21 }
 0x9ea   :  { %18905 = vmatmul.mubr.bf16.vlgmr.msra.gmra.mxu1 %v18735_v61 }
 0xaaa   :  { %v22337_v29 = vpop.f32.mrf.mxu1 }
 0xaac   :  { %v22338_v45 = vpop.f32.mrf.mxu1 }
 0xaad   :  { %v22339_v6 = vadd.f32 %v22338_v45, %v22337_v29 }
 0xaae   :  { %v22340_v46 = vpop.f32.mrf.mxu1 }
 0xaaf   :  { %v18907_v48 = vadd.f32 %v22339_v6, %v20513_v30 }
 0xab0   :  { %v22341_v7 = vpop.f32.mrf.mxu1 }
 0xab1   :  { %18912 = vst [vmem:[%s26593_s11] sm:$0x3] %v18907_v48 }
 0xab2   :  { %18917 = vsyncpa [#allocation5], 1 }
 0xab3   :  { %18918 = vsyncpa [#allocation7], 1 }

</bundles_post_ra>
